<compile_context>
chip_gen: v7x
topology: tpu7x:2x2x1
jax: 0.10.0
libtpu: 0.0.40
codegen_flags: <defaults>
</compile_context>

<pallas_src>
import functools

import jax
import jax.numpy as jnp
import numpy as np
from jax.experimental import pallas as pl
from jax.experimental.pallas import tpu as pltpu


def _attention_kernel(x_ref, wqkv_ref, bqkv_ref, wout_ref, bout_ref, o_ref,
                      *, heads, dim_head, rows_per_head, num_groups, eps):
    """grid = (B,).  One batch element per step: GroupNorm -> one qkv matmul for
    all heads -> per-head attention (static unroll) -> one output projection."""
    D = dim_head
    R = rows_per_head
    _, C, N = o_ref.shape
    G = num_groups
    Cg = C // G

    # ---- GroupNorm: two-pass stats in f32 (gamma/beta folded into qkv weights).
    x = x_ref[0].astype(jnp.float32)                                   # (C, N)
    cnt = float(Cg * N)
    ch_sum = jnp.sum(x, axis=-1, keepdims=True)                        # (C, 1)
    mean_g = jnp.sum(ch_sum.reshape(G, Cg), axis=-1, keepdims=True) / cnt   # (G, 1)
    mean_c = jnp.broadcast_to(mean_g, (G, Cg)).reshape(C, 1)
    xc = x - mean_c
    ch_sq = jnp.sum(xc * xc, axis=-1, keepdims=True)                   # (C, 1)
    var_g = jnp.sum(ch_sq.reshape(G, Cg), axis=-1, keepdims=True) / cnt
    inv_g = jax.lax.rsqrt(var_g + eps)
    inv_c = jnp.broadcast_to(inv_g, (G, Cg)).reshape(C, 1)
    xh = (xc * inv_c).astype(jnp.bfloat16)                             # (C, N)

    # ---- one qkv projection for ALL heads (+ folded GroupNorm-affine bias).
    # Row layout per head: [q (D) ; k (D) ; v (D) ; ones-row ; zero pad to R].
    qkv = jnp.dot(wqkv_ref[...], xh, preferred_element_type=jnp.float32)
    qkv = qkv + bqkv_ref[...]                                          # (heads*R, N) f32

    outs = []
    for h in range(heads):                                             # static unroll
        base = h * R                                                   # 8-aligned row offset
        q = qkv[base:base + D].astype(jnp.bfloat16)                    # (D, N), q-scale folded
        k = qkv[base + D:base + 2 * D].astype(jnp.bfloat16)            # (D, N)
        # v plus a constant ones row: the PV matmul's last column is the denom.
        v_aug = qkv[base + 2 * D:base + 3 * D + 1].astype(jnp.bfloat16)    # (D+1, N)

        # sim[i, j] = sum_d q[d, i] * k[d, j]   (bf16 in, f32 acc)
        sim = jax.lax.dot_general(q, k, (((0,), (0,)), ((), ())),
                                  preferred_element_type=jnp.float32)      # (N, N)
        m = jnp.max(sim, axis=-1, keepdims=True)
        # exp argument kept f32 (no bf16 EUP on v5e); live e tensor is bf16.
        e = jnp.exp(sim - m).astype(jnp.bfloat16)                          # (N, N)

        # pv[i, :D] = unnormalized out; pv[i, D] = sum_j e[i, j]  (f32 MXU acc)
        pv = jax.lax.dot_general(e, v_aug, (((1,), (1,)), ((), ())),
                                 preferred_element_type=jnp.float32)       # (N, D+1)
        denom = pv[:, D:D + 1]                                             # (N, 1)
        out_h = pv[:, :D] * pl.reciprocal(denom, approx=True)              # (N, D)
        outs.append(out_h.astype(jnp.bfloat16))

    # Lane-dense stack of all heads: column order = (h, d), matching 'b (h d) n'.
    out_stack = jnp.concatenate(outs, axis=-1)                             # (N, heads*D)

    # ---- single output projection for all heads: contraction K = heads*D.
    y = jax.lax.dot_general(wout_ref[...], out_stack, (((1,), (1,)), ((), ())),
                            preferred_element_type=jnp.float32)            # (C, N)
    o_ref[0] = y + bout_ref[...]


def attention_forward(x, params, *, heads=4, dim_head=32, num_groups=8, eps=1e-5):
    B, C, H, W = x.shape
    N = H * W
    D = dim_head
    hidden = heads * D
    scale = D ** (-0.5)

    # bf16 input halves the x DMA; GroupNorm stats are computed in f32 in-kernel.
    x2 = x.reshape(B, C, N).astype(jnp.bfloat16)

    gamma = params["gamma"].reshape(C).astype(jnp.float32)
    beta = params["beta"].reshape(C).astype(jnp.float32)
    w_qkv = params["w_qkv"].astype(jnp.float32)                    # (3*hidden, C)
    w_out = params["w_out"].astype(jnp.float32)                    # (C, hidden)
    b_out = params["b_out"].reshape(C, 1).astype(jnp.float32)      # (C, 1)

    # Fold GroupNorm affine and the q-scale into the qkv projection:
    #   qkv = W (x_hat * gamma + beta) = (W * gamma^T) x_hat + W beta
    w_fold = w_qkv * gamma[None, :]                                # (3*hidden, C)
    b_fold = w_qkv @ beta                                          # (3*hidden,)

    wq = w_fold[0 * hidden:1 * hidden].reshape(heads, D, C) * scale
    wk = w_fold[1 * hidden:2 * hidden].reshape(heads, D, C)
    wv = w_fold[2 * hidden:3 * hidden].reshape(heads, D, C)
    bq = b_fold[0 * hidden:1 * hidden].reshape(heads, D) * scale
    bk = b_fold[1 * hidden:2 * hidden].reshape(heads, D)
    bv = b_fold[2 * hidden:3 * hidden].reshape(heads, D)

    # Pack per head as [q; k; v; ones-row; zero pad] at 8-aligned row offsets so
    # a single matmul produces q/k/v and the softmax-denominator ones row.
    R = ((3 * D + 1 + 7) // 8) * 8
    pad = R - (3 * D + 1)
    w_extra = jnp.zeros((heads, 1 + pad, C), jnp.float32)
    b_extra = jnp.concatenate(
        [jnp.ones((heads, 1), jnp.float32), jnp.zeros((heads, pad), jnp.float32)],
        axis=1)

    w_packed = jnp.concatenate([wq, wk, wv, w_extra], axis=1)      # (heads, R, C)
    w_packed = w_packed.reshape(heads * R, C).astype(jnp.bfloat16)
    b_packed = jnp.concatenate([bq, bk, bv, b_extra], axis=1).reshape(heads * R, 1)

    kern = functools.partial(_attention_kernel, heads=heads, dim_head=D,
                             rows_per_head=R, num_groups=num_groups, eps=eps)

    out = pl.pallas_call(
        kern,
        out_shape=jax.ShapeDtypeStruct((B, C, N), jnp.float32),
        grid=(B,),
        in_specs=[
            pl.BlockSpec((1, C, N), lambda b: (b, 0, 0)),          # x (bf16)
            pl.BlockSpec((heads * R, C), lambda b: (0, 0)),        # packed qkv weight
            pl.BlockSpec((heads * R, 1), lambda b: (0, 0)),        # packed qkv bias (f32)
            pl.BlockSpec((C, hidden), lambda b: (0, 0)),           # out weight
            pl.BlockSpec((C, 1), lambda b: (0, 0)),                # out bias (f32)
        ],
        out_specs=pl.BlockSpec((1, C, N), lambda b: (b, 0, 0)),
        compiler_params=pltpu.CompilerParams(
            dimension_semantics=("parallel",),
        ),
    )(x2, w_packed, b_packed, w_out.astype(jnp.bfloat16), b_out)

    return out.reshape(B, C, H, W)


def attention_reference(x, params, *, heads=4, dim_head=32, num_groups=8, eps=1e-5):
    """Pure-JAX reference matching the PyTorch forward semantics."""
    B, C, H, W = x.shape
    N = H * W
    scale = dim_head ** (-0.5)
    # GroupNorm
    xg = x.reshape(B, num_groups, (C // num_groups) * N)
    mean = xg.mean(-1, keepdims=True)
    var = ((xg - mean) ** 2).mean(-1, keepdims=True)
    xn = (xg - mean) / jnp.sqrt(var + eps)
    xn = xn.reshape(B, C, N) * params["gamma"].reshape(1, C, 1) + params["beta"].reshape(1, C, 1)
    # to_qkv (1x1 conv, no bias)
    qkv = jnp.einsum('oc,bcn->bon', params["w_qkv"], xn)
    q, k, v = jnp.split(qkv, 3, axis=1)
    q = q.reshape(B, heads, dim_head, N) * scale
    k = k.reshape(B, heads, dim_head, N)
    v = v.reshape(B, heads, dim_head, N)
    sim = jnp.einsum('bhdi,bhdj->bhij', q, k)
    sim = sim - sim.max(-1, keepdims=True)
    attn = jax.nn.softmax(sim, axis=-1)
    out = jnp.einsum('bhij,bhdj->bhid', attn, v)                       # (B, h, N, d)
    out = out.transpose(0, 1, 3, 2).reshape(B, heads * dim_head, N)    # b (h d) n
    y = jnp.einsum('oc,bcn->bon', params["w_out"], out) + params["b_out"].reshape(1, C, 1)
    return y.reshape(B, C, H, W)


if __name__ == "__main__":
    # Module config (dim must be divisible by numgroups for GroupNorm)
    dim, heads, dim_head, num_groups = 8, 4, 32, 8
    hidden = heads * dim_head
    B, H, W = 2, 16, 16

    key = jax.random.PRNGKey(0)
    kx, k1, k2, k3, k4, k5 = jax.random.split(key, 6)

    x = jax.random.normal(kx, (B, dim, H, W), jnp.float32)

    # Deterministic synthetic parameters (shapes follow the module's __init__);
    # gamma/beta made non-trivial to exercise the affine folding.
    params = {
        "gamma": 1.0 + 0.2 * jax.random.normal(k4, (dim, 1), jnp.float32),
        "beta": 0.1 * jax.random.normal(k5, (dim, 1), jnp.float32),
        # to_qkv: Conv2d(dim, hidden*3, 1, bias=False) -> weight (3*hidden, dim)
        "w_qkv": jax.random.normal(k1, (3 * hidden, dim), jnp.float32) * 0.1,
        # to_out: Conv2d(hidden, dim, 1) -> weight (dim, hidden), bias (dim,)
        "w_out": jax.random.normal(k2, (dim, hidden), jnp.float32) * 0.1,
        "b_out": jax.random.normal(k3, (dim, 1), jnp.float32) * 0.1,
    }

    out = attention_forward(x, params, heads=heads, dim_head=dim_head,
                            num_groups=num_groups)
    out = jax.block_until_ready(out)

    ref = attention_reference(x, params, heads=heads, dim_head=dim_head,
                              num_groups=num_groups)
    ref = jax.block_until_ready(ref)

    np.testing.assert_allclose(np.asarray(out), np.asarray(ref),
                               rtol=2e-2, atol=5e-3)
    print("KERNEL_OK")
</pallas_src>

<mosaic_0001>
module attributes {stable_mosaic.version = 11 : i64} {
  func.func @_attention_kernel(%arg0: i32, %arg1: memref<1x8x256xbf16, #tpu.memory_space<vmem>>, %arg2: memref<416x8xbf16, #tpu.memory_space<vmem>>, %arg3: memref<416x1xf32, #tpu.memory_space<vmem>>, %arg4: memref<8x128xbf16, #tpu.memory_space<vmem>>, %arg5: memref<8x1xf32, #tpu.memory_space<vmem>>, %arg6: memref<1x8x256xf32, #tpu.memory_space<vmem>>) attributes {dimension_semantics = [#tpu.dimension_semantics<parallel>], iteration_bounds = array<i64: 2>, scalar_prefetch = 0 : i64, scratch_operands = 0 : i64, tpu.core_type = #tpu.core_type<tc>, window_params = [{transform_indices = @transform_0, window_bounds = array<i64: 1, 8, 256>}, {pipeline_mode = #tpu.pipeline_mode<synchronous>, transform_indices = @transform_1, window_bounds = array<i64: 416, 8>}, {pipeline_mode = #tpu.pipeline_mode<synchronous>, transform_indices = @transform_2, window_bounds = array<i64: 416, 1>}, {pipeline_mode = #tpu.pipeline_mode<synchronous>, transform_indices = @transform_3, window_bounds = array<i64: 8, 128>}, {pipeline_mode = #tpu.pipeline_mode<synchronous>, transform_indices = @transform_4, window_bounds = array<i64: 8, 1>}, {transform_indices = @transform_5, window_bounds = array<i64: 1, 8, 256>}]} {
    %c0 = arith.constant 0 : index
    %c0_0 = arith.constant 0 : index
    %c0_1 = arith.constant 0 : index
    %0 = vector.load %arg1[%c0, %c0_0, %c0_1] : memref<1x8x256xbf16, #tpu.memory_space<vmem>>, vector<1x8x256xbf16>
    %1 = vector.shape_cast %0 : vector<1x8x256xbf16> to vector<8x256xbf16>
    %2 = arith.extf %1 : vector<8x256xbf16> to vector<8x256xf32>
    %cst = arith.constant dense<0.000000e+00> : vector<8xf32>
    %3 = vector.multi_reduction <add>, %2, %cst [1] : vector<8x256xf32> to vector<8xf32>
    %4 = vector.shape_cast %3 : vector<8xf32> to vector<8x1xf32>
    %cst_2 = arith.constant dense<0.000000e+00> : vector<8xf32>
    %5 = vector.multi_reduction <add>, %4, %cst_2 [1] : vector<8x1xf32> to vector<8xf32>
    %6 = vector.shape_cast %5 : vector<8xf32> to vector<8x1xf32>
    %cst_3 = arith.constant 2.560000e+02 : f32
    %7 = vector.broadcast %cst_3 : f32 to vector<8x1xf32>
    %8 = arith.divf %6, %7 : vector<8x1xf32>
    %9 = vector.broadcast %8 : vector<8x1xf32> to vector<8x256xf32>
    %10 = arith.subf %2, %9 : vector<8x256xf32>
    %11 = arith.mulf %10, %10 : vector<8x256xf32>
    %cst_4 = arith.constant dense<0.000000e+00> : vector<8xf32>
    %12 = vector.multi_reduction <add>, %11, %cst_4 [1] : vector<8x256xf32> to vector<8xf32>
    %13 = vector.shape_cast %12 : vector<8xf32> to vector<8x1xf32>
    %cst_5 = arith.constant dense<0.000000e+00> : vector<8xf32>
    %14 = vector.multi_reduction <add>, %13, %cst_5 [1] : vector<8x1xf32> to vector<8xf32>
    %15 = vector.shape_cast %14 : vector<8xf32> to vector<8x1xf32>
    %cst_6 = arith.constant 2.560000e+02 : f32
    %16 = vector.broadcast %cst_6 : f32 to vector<8x1xf32>
    %17 = arith.divf %15, %16 : vector<8x1xf32>
    %cst_7 = arith.constant 9.99999974E-6 : f32
    %18 = vector.broadcast %cst_7 : f32 to vector<8x1xf32>
    %19 = arith.addf %17, %18 : vector<8x1xf32>
    %20 = math.rsqrt %19 : vector<8x1xf32>
    %21 = vector.broadcast %20 : vector<8x1xf32> to vector<8x256xf32>
    %22 = arith.mulf %10, %21 : vector<8x256xf32>
    %23 = arith.truncf %22 : vector<8x256xf32> to vector<8x256xbf16>
    %c0_8 = arith.constant 0 : index
    %c0_9 = arith.constant 0 : index
    %24 = vector.load %arg2[%c0_8, %c0_9] : memref<416x8xbf16, #tpu.memory_space<vmem>>, vector<416x8xbf16>
    %cst_10 = arith.constant dense<0.000000e+00> : vector<416x256xf32>
    %25 = tpu.matmul %24, %23, %cst_10 {dimension_numbers = #tpu.dot_dimension_numbers<[1], [0], [0], [1], [0, 0, 1, 1], [], []>} : vector<416x8xbf16>, vector<8x256xbf16>, vector<416x256xf32> -> vector<416x256xf32>
    %c0_11 = arith.constant 0 : index
    %c0_12 = arith.constant 0 : index
    %26 = vector.load %arg3[%c0_11, %c0_12] : memref<416x1xf32, #tpu.memory_space<vmem>>, vector<416x1xf32>
    %27 = vector.broadcast %26 : vector<416x1xf32> to vector<416x256xf32>
    %28 = arith.addf %25, %27 : vector<416x256xf32>
    %29 = vector.extract_strided_slice %28 {offsets = [0, 0], sizes = [32, 256], strides = [1, 1]} : vector<416x256xf32> to vector<32x256xf32>
    %30 = arith.truncf %29 : vector<32x256xf32> to vector<32x256xbf16>
    %31 = vector.extract_strided_slice %28 {offsets = [32, 0], sizes = [32, 256], strides = [1, 1]} : vector<416x256xf32> to vector<32x256xf32>
    %32 = arith.truncf %31 : vector<32x256xf32> to vector<32x256xbf16>
    %33 = vector.extract_strided_slice %28 {offsets = [64, 0], sizes = [33, 256], strides = [1, 1]} : vector<416x256xf32> to vector<33x256xf32>
    %34 = arith.truncf %33 : vector<33x256xf32> to vector<33x256xbf16>
    %cst_13 = arith.constant dense<0.000000e+00> : vector<256x256xf32>
    %35 = tpu.matmul %30, %32, %cst_13 {dimension_numbers = #tpu.dot_dimension_numbers<[0], [0], [1], [1], [0, 1, 1, 1], [], []>} : vector<32x256xbf16>, vector<32x256xbf16>, vector<256x256xf32> -> vector<256x256xf32>
    %cst_14 = arith.constant dense<0xFF800000> : vector<256xf32>
    %36 = vector.multi_reduction <maximumf>, %35, %cst_14 [1] : vector<256x256xf32> to vector<256xf32>
    %37 = vector.shape_cast %36 : vector<256xf32> to vector<256x1xf32>
    %38 = vector.broadcast %37 : vector<256x1xf32> to vector<256x256xf32>
    %39 = arith.subf %35, %38 : vector<256x256xf32>
    %40 = math.exp %39 : vector<256x256xf32>
    %41 = arith.truncf %40 : vector<256x256xf32> to vector<256x256xbf16>
    %cst_15 = arith.constant dense<0.000000e+00> : vector<256x33xf32>
    %42 = tpu.matmul %41, %34, %cst_15 {dimension_numbers = #tpu.dot_dimension_numbers<[1], [1], [0], [0], [0, 0, 1, 0], [], []>} : vector<256x256xbf16>, vector<33x256xbf16>, vector<256x33xf32> -> vector<256x33xf32>
    %43 = vector.extract_strided_slice %42 {offsets = [0, 32], sizes = [256, 1], strides = [1, 1]} : vector<256x33xf32> to vector<256x1xf32>
    %44 = vector.extract_strided_slice %42 {offsets = [0, 0], sizes = [256, 32], strides = [1, 1]} : vector<256x33xf32> to vector<256x32xf32>
    %45 = tpu.reciprocal %43 {approx = true} : vector<256x1xf32> -> vector<256x1xf32>
    %46 = vector.broadcast %45 : vector<256x1xf32> to vector<256x32xf32>
    %47 = arith.mulf %44, %46 : vector<256x32xf32>
    %48 = arith.truncf %47 : vector<256x32xf32> to vector<256x32xbf16>
    %49 = vector.extract_strided_slice %28 {offsets = [104, 0], sizes = [32, 256], strides = [1, 1]} : vector<416x256xf32> to vector<32x256xf32>
    %50 = arith.truncf %49 : vector<32x256xf32> to vector<32x256xbf16>
    %51 = vector.extract_strided_slice %28 {offsets = [136, 0], sizes = [32, 256], strides = [1, 1]} : vector<416x256xf32> to vector<32x256xf32>
    %52 = arith.truncf %51 : vector<32x256xf32> to vector<32x256xbf16>
    %53 = vector.extract_strided_slice %28 {offsets = [168, 0], sizes = [33, 256], strides = [1, 1]} : vector<416x256xf32> to vector<33x256xf32>
    %54 = arith.truncf %53 : vector<33x256xf32> to vector<33x256xbf16>
    %cst_16 = arith.constant dense<0.000000e+00> : vector<256x256xf32>
    %55 = tpu.matmul %50, %52, %cst_16 {dimension_numbers = #tpu.dot_dimension_numbers<[0], [0], [1], [1], [0, 1, 1, 1], [], []>} : vector<32x256xbf16>, vector<32x256xbf16>, vector<256x256xf32> -> vector<256x256xf32>
    %cst_17 = arith.constant dense<0xFF800000> : vector<256xf32>
    %56 = vector.multi_reduction <maximumf>, %55, %cst_17 [1] : vector<256x256xf32> to vector<256xf32>
    %57 = vector.shape_cast %56 : vector<256xf32> to vector<256x1xf32>
    %58 = vector.broadcast %57 : vector<256x1xf32> to vector<256x256xf32>
    %59 = arith.subf %55, %58 : vector<256x256xf32>
    %60 = math.exp %59 : vector<256x256xf32>
    %61 = arith.truncf %60 : vector<256x256xf32> to vector<256x256xbf16>
    %cst_18 = arith.constant dense<0.000000e+00> : vector<256x33xf32>
    %62 = tpu.matmul %61, %54, %cst_18 {dimension_numbers = #tpu.dot_dimension_numbers<[1], [1], [0], [0], [0, 0, 1, 0], [], []>} : vector<256x256xbf16>, vector<33x256xbf16>, vector<256x33xf32> -> vector<256x33xf32>
    %63 = vector.extract_strided_slice %62 {offsets = [0, 32], sizes = [256, 1], strides = [1, 1]} : vector<256x33xf32> to vector<256x1xf32>
    %64 = vector.extract_strided_slice %62 {offsets = [0, 0], sizes = [256, 32], strides = [1, 1]} : vector<256x33xf32> to vector<256x32xf32>
    %65 = tpu.reciprocal %63 {approx = true} : vector<256x1xf32> -> vector<256x1xf32>
    %66 = vector.broadcast %65 : vector<256x1xf32> to vector<256x32xf32>
    %67 = arith.mulf %64, %66 : vector<256x32xf32>
    %68 = arith.truncf %67 : vector<256x32xf32> to vector<256x32xbf16>
    %69 = vector.extract_strided_slice %28 {offsets = [208, 0], sizes = [32, 256], strides = [1, 1]} : vector<416x256xf32> to vector<32x256xf32>
    %70 = arith.truncf %69 : vector<32x256xf32> to vector<32x256xbf16>
    %71 = vector.extract_strided_slice %28 {offsets = [240, 0], sizes = [32, 256], strides = [1, 1]} : vector<416x256xf32> to vector<32x256xf32>
    %72 = arith.truncf %71 : vector<32x256xf32> to vector<32x256xbf16>
    %73 = vector.extract_strided_slice %28 {offsets = [272, 0], sizes = [33, 256], strides = [1, 1]} : vector<416x256xf32> to vector<33x256xf32>
    %74 = arith.truncf %73 : vector<33x256xf32> to vector<33x256xbf16>
    %cst_19 = arith.constant dense<0.000000e+00> : vector<256x256xf32>
    %75 = tpu.matmul %70, %72, %cst_19 {dimension_numbers = #tpu.dot_dimension_numbers<[0], [0], [1], [1], [0, 1, 1, 1], [], []>} : vector<32x256xbf16>, vector<32x256xbf16>, vector<256x256xf32> -> vector<256x256xf32>
    %cst_20 = arith.constant dense<0xFF800000> : vector<256xf32>
    %76 = vector.multi_reduction <maximumf>, %75, %cst_20 [1] : vector<256x256xf32> to vector<256xf32>
    %77 = vector.shape_cast %76 : vector<256xf32> to vector<256x1xf32>
    %78 = vector.broadcast %77 : vector<256x1xf32> to vector<256x256xf32>
    %79 = arith.subf %75, %78 : vector<256x256xf32>
    %80 = math.exp %79 : vector<256x256xf32>
    %81 = arith.truncf %80 : vector<256x256xf32> to vector<256x256xbf16>
    %cst_21 = arith.constant dense<0.000000e+00> : vector<256x33xf32>
    %82 = tpu.matmul %81, %74, %cst_21 {dimension_numbers = #tpu.dot_dimension_numbers<[1], [1], [0], [0], [0, 0, 1, 0], [], []>} : vector<256x256xbf16>, vector<33x256xbf16>, vector<256x33xf32> -> vector<256x33xf32>
    %83 = vector.extract_strided_slice %82 {offsets = [0, 32], sizes = [256, 1], strides = [1, 1]} : vector<256x33xf32> to vector<256x1xf32>
    %84 = vector.extract_strided_slice %82 {offsets = [0, 0], sizes = [256, 32], strides = [1, 1]} : vector<256x33xf32> to vector<256x32xf32>
    %85 = tpu.reciprocal %83 {approx = true} : vector<256x1xf32> -> vector<256x1xf32>
    %86 = vector.broadcast %85 : vector<256x1xf32> to vector<256x32xf32>
    %87 = arith.mulf %84, %86 : vector<256x32xf32>
    %88 = arith.truncf %87 : vector<256x32xf32> to vector<256x32xbf16>
    %89 = vector.extract_strided_slice %28 {offsets = [312, 0], sizes = [32, 256], strides = [1, 1]} : vector<416x256xf32> to vector<32x256xf32>
    %90 = arith.truncf %89 : vector<32x256xf32> to vector<32x256xbf16>
    %91 = vector.extract_strided_slice %28 {offsets = [344, 0], sizes = [32, 256], strides = [1, 1]} : vector<416x256xf32> to vector<32x256xf32>
    %92 = arith.truncf %91 : vector<32x256xf32> to vector<32x256xbf16>
    %93 = vector.extract_strided_slice %28 {offsets = [376, 0], sizes = [33, 256], strides = [1, 1]} : vector<416x256xf32> to vector<33x256xf32>
    %94 = arith.truncf %93 : vector<33x256xf32> to vector<33x256xbf16>
    %cst_22 = arith.constant dense<0.000000e+00> : vector<256x256xf32>
    %95 = tpu.matmul %90, %92, %cst_22 {dimension_numbers = #tpu.dot_dimension_numbers<[0], [0], [1], [1], [0, 1, 1, 1], [], []>} : vector<32x256xbf16>, vector<32x256xbf16>, vector<256x256xf32> -> vector<256x256xf32>
    %cst_23 = arith.constant dense<0xFF800000> : vector<256xf32>
    %96 = vector.multi_reduction <maximumf>, %95, %cst_23 [1] : vector<256x256xf32> to vector<256xf32>
    %97 = vector.shape_cast %96 : vector<256xf32> to vector<256x1xf32>
    %98 = vector.broadcast %97 : vector<256x1xf32> to vector<256x256xf32>
    %99 = arith.subf %95, %98 : vector<256x256xf32>
    %100 = math.exp %99 : vector<256x256xf32>
    %101 = arith.truncf %100 : vector<256x256xf32> to vector<256x256xbf16>
    %cst_24 = arith.constant dense<0.000000e+00> : vector<256x33xf32>
    %102 = tpu.matmul %101, %94, %cst_24 {dimension_numbers = #tpu.dot_dimension_numbers<[1], [1], [0], [0], [0, 0, 1, 0], [], []>} : vector<256x256xbf16>, vector<33x256xbf16>, vector<256x33xf32> -> vector<256x33xf32>
    %103 = vector.extract_strided_slice %102 {offsets = [0, 32], sizes = [256, 1], strides = [1, 1]} : vector<256x33xf32> to vector<256x1xf32>
    %104 = vector.extract_strided_slice %102 {offsets = [0, 0], sizes = [256, 32], strides = [1, 1]} : vector<256x33xf32> to vector<256x32xf32>
    %105 = tpu.reciprocal %103 {approx = true} : vector<256x1xf32> -> vector<256x1xf32>
    %106 = vector.broadcast %105 : vector<256x1xf32> to vector<256x32xf32>
    %107 = arith.mulf %104, %106 : vector<256x32xf32>
    %108 = arith.truncf %107 : vector<256x32xf32> to vector<256x32xbf16>
    %109 = tpu.concatenate %48, %68, %88, %108 in 1 : vector<256x32xbf16>, vector<256x32xbf16>, vector<256x32xbf16>, vector<256x32xbf16> -> vector<256x128xbf16>
    %c0_25 = arith.constant 0 : index
    %c0_26 = arith.constant 0 : index
    %110 = vector.load %arg4[%c0_25, %c0_26] : memref<8x128xbf16, #tpu.memory_space<vmem>>, vector<8x128xbf16>
    %cst_27 = arith.constant dense<0.000000e+00> : vector<8x256xf32>
    %111 = tpu.matmul %110, %109, %cst_27 {dimension_numbers = #tpu.dot_dimension_numbers<[1], [1], [0], [0], [0, 0, 1, 0], [], []>} : vector<8x128xbf16>, vector<256x128xbf16>, vector<8x256xf32> -> vector<8x256xf32>
    %c0_28 = arith.constant 0 : index
    %c0_29 = arith.constant 0 : index
    %112 = vector.load %arg5[%c0_28, %c0_29] : memref<8x1xf32, #tpu.memory_space<vmem>>, vector<8x1xf32>
    %113 = vector.broadcast %112 : vector<8x1xf32> to vector<8x256xf32>
    %114 = arith.addf %111, %113 : vector<8x256xf32>
    %c0_30 = arith.constant 0 : index
    %c0_31 = arith.constant 0 : index
    %c0_32 = arith.constant 0 : index
    %115 = vector.load %arg6[%c0_30, %c0_31, %c0_32] : memref<1x8x256xf32, #tpu.memory_space<vmem>>, vector<1x8x256xf32>
    %116 = vector.shape_cast %115 : vector<1x8x256xf32> to vector<8x256xf32>
    %117 = vector.shape_cast %114 : vector<8x256xf32> to vector<1x8x256xf32>
    tpu.vector_store %arg6[%c0_30, %c0_31, %c0_32], %117 {strides = array<i32>} : memref<1x8x256xf32, #tpu.memory_space<vmem>>, vector<1x8x256xf32>,
    return
  }
  func.func @transform_0(%arg0: i32) -> (i32, i32, i32) {
    %c0_i32 = arith.constant 0 : i32
    %c0_i32_0 = arith.constant 0 : i32
    %c0_i32_1 = arith.constant 0 : i32
    return %arg0, %c0_i32, %c0_i32_0 : i32, i32, i32
  }
  func.func @transform_1(%arg0: i32) -> (i32, i32) {
    %c0_i32 = arith.constant 0 : i32
    %c0_i32_0 = arith.constant 0 : i32
    %c0_i32_1 = arith.constant 0 : i32
    return %c0_i32, %c0_i32_0 : i32, i32
  }
  func.func @transform_2(%arg0: i32) -> (i32, i32) {
    %c0_i32 = arith.constant 0 : i32
    %c0_i32_0 = arith.constant 0 : i32
    %c0_i32_1 = arith.constant 0 : i32
    return %c0_i32, %c0_i32_0 : i32, i32
  }
  func.func @transform_3(%arg0: i32) -> (i32, i32) {
    %c0_i32 = arith.constant 0 : i32
    %c0_i32_0 = arith.constant 0 : i32
    %c0_i32_1 = arith.constant 0 : i32
    return %c0_i32, %c0_i32_0 : i32, i32
  }
  func.func @transform_4(%arg0: i32) -> (i32, i32) {
    %c0_i32 = arith.constant 0 : i32
    %c0_i32_0 = arith.constant 0 : i32
    %c0_i32_1 = arith.constant 0 : i32
    return %c0_i32, %c0_i32_0 : i32, i32
  }
  func.func @transform_5(%arg0: i32) -> (i32, i32, i32) {
    %c0_i32 = arith.constant 0 : i32
    %c0_i32_0 = arith.constant 0 : i32
    %c0_i32_1 = arith.constant 0 : i32
    return %arg0, %c0_i32, %c0_i32_0 : i32, i32, i32
  }
}

</mosaic_0001>

<bundles_post_ra>
// kernel: tpu_custom_call.1
= control target key start
LH: loop header
LB: loop body
LE: loop exit
PB: predicated region body
PF: predicated region fallthrough
CT: control target
= control target key end

     0   :  { %10 = vsyncpa [#allocation3], 0  ;;  %s10681_s0 = inlined_call_operand.vmem [shape: bf16[2,8,256], index: 0, kind: input, shape index: {}]   ;;  %s10682_s1 = inlined_call_operand.vmem [shape: bf16[416,8], index: 1, kind: input, shape index: {}]   ;;  %s10683_s2 = inlined_call_operand.vmem [shape: f32[416,1], index: 2, kind: input, shape index: {}]   ;;  %s10684_s3 = inlined_call_operand.vmem [shape: bf16[8,128], index: 3, kind: input, shape index: {}]   ;;  %s10685_s4 = inlined_call_operand.vmem [shape: f32[8,1], index: 4, kind: input, shape index: {}]   ;;  %s10686_s5 = inlined_call_operand.hbm [shape: f32[2,8,256], index: 5, kind: output, shape index: {}]  }
   0x1   :  { %12 = vsyncpa [#allocation3 + $0x1], 0  ;;  %s6651_s18 = smov 0   ;;  %s6653_s19 = smov 0  }
   0x2   :  { %s6655_s20 = smov 0   ;;  %s6657_s21 = smov 0  }
   0x3 LB: > { %s6672_s22 = sadd.s32 4294967295, %s6613_s21   ;;  %s5552_s23 = sadd.s32 4294967294, %s6613_s21   ;;  %s6613_s21 = sphi %s6657_s21, %s11996_s21   ;;  %s6609_s20 = sphi %s6655_s20, %s11995_s20   ;;  %s6605_s19 = sphi %s6653_s19, %s11994_s19   ;;  %s6601_s18 = sphi %s6651_s18, %s11993_s18  }
   0x4   : > { %s6676_s24 = sadd.s32 1, %s6613_s21   ;;  %s135_s25 = sadd.s32 1, %s6609_s20 }
   0x5   : > { %s132_s26 = ssub.s32 %s6613_s21, %s6676_s24  ;;  %p145_p0 = scmp.ne.s32.totalorder %s6609_s20, %s6605_s19 }
   0x6   : > { %p133_p1 = scmp.eq.s32.totalorder %s132_s26, 0  ;;  %p146_p2 = scmp.eq.s32.totalorder %s6672_s22, 1 }
   0x7   : > { %p151_p3 = scmp.ne.s32.totalorder %s6605_s19, %s6601_s18  ;;  %p152_p4 = scmp.eq.s32.totalorder %s5552_s23, 1 }
   0x8   : > { %s6687_s27 = scalar_select %p133_p1, %s6609_s20, %s135_s25  }
   0x9   : > { %p6689_p5 = por %p146_p2, %p145_p0  ;;  %p6693_p6 = por %p152_p4, %p151_p3 }
   0xa   : > { %p5555_p7 = scmp.ge.s32.totalorder %s6613_s21, 1  ;;  %p190_p8 = scmp.lt.s32.totalorder %s6613_s21, 3 }
   0xc   : > { %p191_p9 = pnand %p5555_p7, %p190_p8 }
   0xe   : > { %194 = sbr.rel (%p191_p9) target bundleno = 2419 (0x973), region = 40 }
  0x15   : > { %p218_p10 = scmp.lt.s32.totalorder %s6672_s22, 1  ;;  %v10687_v11 = vmov 0   ;;  %v302_v12 = vld [vmem:[%s10683_s2 + $0x10] sm:$0xff]  ;;  %v313_v13 = vld [vmem:[%s10683_s2 + $0x68] sm:$0xff]  ;;  %v300_v14 = vld [vmem:[%s10683_s2] sm:$0xff]  ;;  %vm821_vm0 = vcmask 1043456  }
  0x16   : > { %860 = vmatprep.mubr.bf16.mxu0 %v10687_v11  ;;  %5749 = vset.pattern.permute.xlu1 %v10687_v11  ;;  %v314_v15 = vld [vmem:[%s10683_s2 + $0x70] sm:$0xff]  ;;  %v315_v16 = vld [vmem:[%s10683_s2 + $0x78] sm:$0xff]  ;;  %v301_v17 = vld [vmem:[%s10683_s2 + $0x8] sm:$0xff]  ;;  %vm742_vm1 = vcmask 64512   ;;  %vm1167_vm2 = vcmask 261120   ;;  %s6618_s7 = smov 64  }
  0x17   : > { %s219_s30 = scalar_select %p218_p10, %s6672_s22, 1  ;;  %5750 = vset.pattern.permute.xlu0 %v10687_v11  ;;  %1268 = vmatprep.mubr.bf16.mxu1 %v10687_v11  ;;  %v316_v18 = vld [vmem:[%s10683_s2 + $0x80] sm:$0xff]  ;;  %v303_v19 = vld [vmem:[%s10683_s2 + $0x18] sm:$0xff]  ;;  %v317_v20 = vld [vmem:[%s10683_s2 + $0x88] sm:$0xff]  ;;  %vm5346_vm3 = vcmask 523264   ;;  %vm5379_vm4 = vcmask 785408  }
  0x18   : > { %354 = vperm.xlu1 %5749, %v300_v14   ;;  %v304_v21 = vld [vmem:[%s10683_s2 + $0x20] sm:$0xff]  ;;  %v318_v22 = vld [vmem:[%s10683_s2 + $0x90] sm:$0xff]  ;;  %v305_v23 = vld [vmem:[%s10683_s2 + $0x28] sm:$0xff]  ;;  %s6619_s8 = smov 96   ;;  %s215_s13 = sand.u32 1, %s6605_s19  }
  0x19   : > { %s5681_s6 = sshll.u32 %s219_s30, 3  ;;  %v319_v24 = vld [vmem:[%s10683_s2 + $0x98] sm:$0xff]  ;;  %v306_v25 = vld [vmem:[%s10683_s2 + $0x30] sm:$0xff]  ;;  %v320_v26 = vld [vmem:[%s10683_s2 + $0xa0] sm:$0xff]  ;;  %s5556_s14 = sshll.u32 %s215_s13, 4 }
  0x1a   : > { %s222_s9 = scalar_lea.vmem %s10681_s0, %s5681_s6  ;;  %v307_v27 = vld [vmem:[%s10683_s2 + $0x38] sm:$0xff]  ;;  %v326_v29 = vld [vmem:[%s10683_s2 + $0xd0] sm:$0xff]  ;;  %v328_v31 = vld [vmem:[%s10683_s2 + $0xe0] sm:$0xff]  ;;  %s6617_s6 = smov 32  }
  0x1b   : > { %v224_v0 = vld [vmem:[%s222_s9] sm:$0xff]  ;;  %v327_v28 = vld [vmem:[%s10683_s2 + $0xd8] sm:$0xff]  ;;  %v330_v30 = vld [vmem:[%s10683_s2 + $0xf0] sm:$0xff]  ;;  %s5682_s15 = sshll.u32 %s6672_s22, 8  ;;  %s217_s16 = scalar_lea.vmem [#allocation2], %s5556_s14 }
  0x1c   : > { %v225_v1 = vunpack.c.l.bf16 %v224_v0  ;;  %v226_v2 = vunpack.c.h.bf16 %v224_v0  ;;  %359 = vperm.xlu1 %5749, %v301_v17   ;;  %v331_v32 = vld [vmem:[%s10683_s2 + $0xf8] sm:$0xff]  ;;  %v329_v33 = vld [vmem:[%s10683_s2 + $0xe8] sm:$0xff]  ;;  %v332_v34 = vld [vmem:[%s10683_s2 + $0x100] sm:$0xff]  ;;  %s5493_s17 = sshll.u32 %s217_s16, 4  ;;  %s10639_s26 = scalar_lea.hbm %s10686_s5, %s5682_s15  ;;  %s10641_s17 = int_to_ptr.vmem [resolvable:$true] %s5493_s17 }
  0x1d   : > { %v310_v35 = vld [vmem:[%s10683_s2 + $0x50] sm:$0xff]  ;;  %v333_v36 = vld [vmem:[%s10683_s2 + $0x108] sm:$0xff]  ;;  %v311_v37 = vld [vmem:[%s10683_s2 + $0x58] sm:$0xff]  ;;  %s5479_s22 = scalar_lea.sflag [#allocation3], %s215_s13  ;;  %s6551_s30 = scalar_lea.vmem %s10641_s17, 256 }
  0x1e   : > { %v227_v3 = vadd.f32 %v226_v2, %v225_v1  ;;  %v308_v38 = vld [vmem:[%s10683_s2 + $0x40] sm:$0xff]  ;;  %v309_v40 = vld [vmem:[%s10683_s2 + $0x48] sm:$0xff]  ;;  %v5757_v54 = vld [vmem:[%s10682_s1 + $0x10] sm:$0xff]   ;;  %p6552_p11 = scmp.ne.s32.totalorder %s10641_s17, %s6551_s30 }
  0x1f   : > { %v312_v39 = vld [vmem:[%s10683_s2 + $0x60] sm:$0xff]  ;;  %v345_v42 = vld [vmem:[%s10683_s2 + $0x168] sm:$0xff]  ;;  %v5758_v55 = vld [vmem:[%s10682_s1 + $0x18] sm:$0xff]  }
  0x20   : > { %228 = vadd.xlane.f32.xlu0 %v227_v3  ;;  %369 = vperm.xlu1 %5749, %v303_v19   ;;  %v340_v41 = vld [vmem:[%s10683_s2 + $0x140] sm:$0xff]  ;;  %v5756_v53 = vld [vmem:[%s10682_s1 + $0x8] sm:$0xff]   ;;  %v5761_v58 = vld [vmem:[%s10682_s1 + $0x30] sm:$0xff]   ;;  %p6553_p12 = pnand %p6552_p11, %p6689_p5 }
  0x21   : > { %v5755_v52 = vld [vmem:[%s10682_s1] sm:$0xff]   ;;  %v5760_v57 = vld [vmem:[%s10682_s1 + $0x28] sm:$0xff]   ;;  %v5762_v59 = vld [vmem:[%s10682_s1 + $0x38] sm:$0xff]  }
  0x22   : > { %v5759_v56 = vld [vmem:[%s10682_s1 + $0x20] sm:$0xff]   ;;  %v5764_v61 = vld [vmem:[%s10682_s1 + $0x48] sm:$0xff]   ;;  %v5765_v62 = vld [vmem:[%s10682_s1 + $0x50] sm:$0xff]   ;;  %p6554_p13 = pneg %p6553_p12 }
  0x23   : > { %v5763_v60 = vld [vmem:[%s10682_s1 + $0x40] sm:$0xff]   ;;  %v5766_v63 = vld [vmem:[%s10682_s1 + $0x58] sm:$0xff]   ;;  %v5777_v14 = vld [vmem:[%s10682_s1 + $0xb0] sm:$0xff]  }
  0x24   : > { %374 = vperm.xlu1 %5749, %v304_v21   ;;  %v5767_v0 = vld [vmem:[%s10682_s1 + $0x60] sm:$0xff]   ;;  %v5770_v3 = vld [vmem:[%s10682_s1 + $0x78] sm:$0xff]  }
  0x25   : > { %v5778_v17 = vld [vmem:[%s10682_s1 + $0xb8] sm:$0xff]  }
  0x28   : > { %379 = vperm.xlu1 %5749, %v305_v23   ;;  %v5780_v23 = vld [vmem:[%s10682_s1 + $0xc8] sm:$0xff]  }
  0x2c   : > { %384 = vperm.xlu1 %5749, %v306_v25  }
  0x30   : > { %389 = vperm.xlu1 %5749, %v307_v27  }
  0x34   : > { %484 = vperm.xlu1 %5749, %v326_v29  }
  0x38   : > { %494 = vperm.xlu1 %5749, %v328_v31  }
  0x3c   : > { %499 = vperm.xlu1 %5749, %v329_v33  }
  0x40   : > { %404 = vperm.xlu1 %5749, %v310_v35  }
  0x44   : > { %409 = vperm.xlu1 %5749, %v311_v37  }
  0x48   : > { %414 = vperm.xlu1 %5749, %v312_v39  }
  0x97   : > { %v355_v19 = vpop.permute.xlu1 %354 }
  0xad   : > { %v229_v4 = vpop.xlane.xlu0 %228 }
  0xae   : > { %v232_v5 = vmul.f32 0.00390625, %v229_v4  ;;  %v5771_v4 = vld [vmem:[%s10682_s1 + $0x80] sm:$0xff]  }
  0xb0   : > { %v6704_v6 = vsub.f32 %v225_v1, %v232_v5  ;;  %v6706_v7 = vsub.f32 %v226_v2, %v232_v5  ;;  %v5768_v1 = vld [vmem:[%s10682_s1 + $0x68] sm:$0xff]   ;;  %v5769_v2 = vld [vmem:[%s10682_s1 + $0x70] sm:$0xff]  }
  0xb1   : > { %v5772_v5 = vld [vmem:[%s10682_s1 + $0x88] sm:$0xff]  }
  0xb2   : > { %v235_v8 = vmul.f32 %v6704_v6, %v6704_v6  ;;  %v236_v9 = vmul.f32 %v6706_v7, %v6706_v7 }
  0xb4   : > { %v237_v10 = vadd.f32 %v236_v9, %v235_v8  ;;  %v5775_v9 = vld [vmem:[%s10682_s1 + $0xa0] sm:$0xff]  }
  0xb6   : > { %238 = vadd.xlane.f32.xlu0 %v237_v10 }
  0xcc   : > { %364 = vperm.xlu0 %5750, %v302_v12   ;;  %v5776_v12 = vld [vmem:[%s10682_s1 + $0xa8] sm:$0xff]  }
  0xd0   : > { %419 = vperm.xlu0 %5750, %v313_v13  }
  0xd4   : > { %424 = vperm.xlu0 %5750, %v314_v15  }
  0xd8   : > { %429 = vperm.xlu0 %5750, %v315_v16  }
  0xdc   : > { %434 = vperm.xlu0 %5750, %v316_v18  }
  0xe0   : > { %439 = vperm.xlu0 %5750, %v317_v20   ;;  %v5779_v20 = vld [vmem:[%s10682_s1 + $0xc0] sm:$0xff]  }
  0xe4   : > { %444 = vperm.xlu0 %5750, %v318_v22   ;;  %v360_v22 = vpop.permute.xlu1 %359 }
  0xe8   : > { %449 = vperm.xlu0 %5750, %v319_v24   ;;  %v370_v25 = vpop.permute.xlu1 %369 }
  0xec   : > { %454 = vperm.xlu0 %5750, %v320_v26   ;;  %v375_v27 = vpop.permute.xlu1 %374 }
  0xf0   : > { %489 = vperm.xlu0 %5750, %v327_v28   ;;  %v380_v29 = vpop.permute.xlu1 %379 }
  0xf4   : > { %504 = vperm.xlu0 %5750, %v330_v30  }
  0xf8   : > { %509 = vperm.xlu0 %5750, %v331_v32  }
  0xfc   : > { %514 = vperm.xlu0 %5750, %v332_v34  }
 0x100   : > { %519 = vperm.xlu0 %5750, %v333_v36  }
 0x104   : > { %394 = vperm.xlu0 %5750, %v308_v38  }
 0x108   : > { %399 = vperm.xlu0 %5750, %v309_v40   ;;  %v385_v40 = vpop.permute.xlu1 %384 }
 0x10c   : > { %554 = vperm.xlu0 %5750, %v340_v41  }
 0x110   : > { %579 = vperm.xlu0 %5750, %v345_v42  }
 0x143   : > { %v239_v43 = vpop.xlane.xlu0 %238 }
 0x144   : > { %v241_v44 = vmul.f32 0.00390625, %v239_v43 }
 0x146   : > { %v242_v45 = vadd.f32 1e-05, %v241_v44 }
 0x148   : > { %5781 = vrsqrt.f32 %v242_v45 }
 0x14b   : > { %v365_v8 = vpop.permute.xlu0 %364 }
 0x14f   : > { %v6916_v10 = vpop.permute.xlu0 %419 }
 0x152   : > { %v5782_v46 = vpop.eup %5781 }
 0x153   : > { %v245_v47 = vmul.f32 %v5782_v46, %v6706_v7  ;;  %v244_v48 = vmul.f32 %v5782_v46, %v6704_v6  ;;  %v5773_v6 = vld [vmem:[%s10682_s1 + $0x90] sm:$0xff]   ;;  %v5774_v7 = vld [vmem:[%s10682_s1 + $0x98] sm:$0xff]   ;;  %v6921_v13 = vpop.permute.xlu0 %424 }
 0x155   : > { %v247_v49 = vpack.c.bf16 %v245_v47, %v245_v47  ;;  %v246_v50 = vpack.c.bf16 %v244_v48, %v244_v48 }
 0x157   : > { %5585 = vmatprep.subr.msk.bf16.mxu0 %vm821_vm0, %v247_v49  ;;  %v823_v51 = vsel %vm821_vm0, %v246_v50, 0  ;;  %v6928_v15 = vpop.permute.xlu0 %429  ;;  %v390_v49 = vpop.permute.xlu1 %389 }
 0x158   : > { %829 = vmatpush1.bf16.msra.mxu0 %v823_v51 }
 0x15b   : > { %5586 = vmatmul.mubr.msk.bf16.vlgmr.msra.gmra.mrb[0].mxu0 %vm742_vm1, %v5755_v52  ;;  %v6932_v16 = vpop.permute.xlu0 %434 }
 0x15c   : > { %870 = vmatprep.mubr.bf16.mxu0 %v10687_v11 }
 0x15f   : > { %v6938_v18 = vpop.permute.xlu0 %439 }
 0x163   : > { %5587 = vmatmul.mubr.msk.bf16.gmra.mrb[4].mxu0 %vm742_vm1, %v5756_v53  ;;  %v6944_v21 = vpop.permute.xlu0 %444 }
 0x164   : > { %880 = vmatprep.mubr.bf16.mxu0 %v10687_v11 }
 0x167   : > { %v6951_v24 = vpop.permute.xlu0 %449 }
 0x16b   : > { %5588 = vmatmul.mubr.msk.bf16.gmra.mrb[8].mxu0 %vm742_vm1, %v5757_v54  ;;  %v6955_v26 = vpop.permute.xlu0 %454 }
 0x16c   : > { %890 = vmatprep.mubr.bf16.mxu0 %v10687_v11 }
 0x16f   : > { %v6957_v28 = vpop.permute.xlu0 %489 }
 0x173   : > { %5589 = vmatmul.mubr.msk.bf16.gmra.mrb[12].mxu0 %vm742_vm1, %v5758_v55  ;;  %v6963_v38 = vpop.permute.xlu0 %504 }
 0x174   : > { %900 = vmatprep.mubr.bf16.mxu0 %v10687_v11 }
 0x177   : > { %v6967_v45 = vpop.permute.xlu0 %509 }
 0x17b   : > { %5590 = vmatmul.mubr.msk.bf16.gmra.mrb[16].mxu0 %vm742_vm1, %v5759_v56  ;;  %v6975_v55 = vpop.permute.xlu0 %514 }
 0x17c   : > { %910 = vmatprep.mubr.bf16.mxu0 %v10687_v11 }
 0x183   : > { %5591 = vmatmul.mubr.msk.bf16.gmra.mrb[20].mxu0 %vm742_vm1, %v5760_v57  ;;  %v6977_v57 = vpop.permute.xlu1 %484 }
 0x184   : > { %920 = vmatprep.mubr.bf16.mxu0 %v10687_v11 }
 0x18b   : > { %5592 = vmatmul.mubr.msk.bf16.gmra.mrb[24].mxu0 %vm742_vm1, %v5761_v58 }
 0x18c   : > { %930 = vmatprep.mubr.bf16.mxu0 %v10687_v11 }
 0x193   : > { %5593 = vmatmul.mubr.msk.bf16.gmra.mrb[28].mxu0 %vm742_vm1, %v5762_v59 }
 0x194   : > { %940 = vmatprep.mubr.bf16.mxu0 %v10687_v11 }
 0x19b   : > { %5594 = vmatmul.mubr.msk.bf16.gmra.mrb[32].mxu0 %vm742_vm1, %v5763_v60 }
 0x19c   : > { %950 = vmatprep.mubr.bf16.mxu0 %v10687_v11 }
 0x1a3   : > { %5595 = vmatmul.mubr.msk.bf16.gmra.mrb[36].mxu0 %vm742_vm1, %v5764_v61 }
 0x1a4   : > { %960 = vmatprep.mubr.bf16.mxu0 %v10687_v11 }
 0x1ab   : > { %5596 = vmatmul.mubr.msk.bf16.gmra.mrb[40].mxu0 %vm742_vm1, %v5765_v62 }
 0x1ac   : > { %970 = vmatprep.mubr.bf16.mxu0 %v10687_v11 }
 0x1b3   : > { %5597 = vmatmul.mubr.msk.bf16.gmra.mrb[44].mxu0 %vm742_vm1, %v5766_v63 }
 0x1b4   : > { %980 = vmatprep.mubr.bf16.mxu0 %v10687_v11 }
 0x1bb   : > { %5598 = vmatmul.mubr.msk.bf16.gmra.mrb[48].mxu0 %vm742_vm1, %v5767_v0 }
 0x1bc   : > { %990 = vmatprep.mubr.bf16.mxu0 %v10687_v11 }
 0x1c3   : > { %5599 = vmatmul.mubr.msk.bf16.gmra.mrb[52].mxu0 %vm742_vm1, %v5768_v1 }
 0x1c4   : > { %1000 = vmatprep.mubr.bf16.mxu0 %v10687_v11 }
 0x1cb   : > { %5600 = vmatmul.mubr.msk.bf16.gmra.mrb[56].mxu0 %vm742_vm1, %v5769_v2  ;;  %v6979_v2 = vpop.permute.xlu0 %519 }
 0x1cc   : > { %1010 = vmatprep.mubr.bf16.mxu0 %v10687_v11 }
 0x1d3   : > { %5601 = vmatmul.mubr.msk.bf16.gmra.mrb[60].mxu0 %vm742_vm1, %v5770_v3  ;;  %v6981_v3 = vpop.permute.xlu1 %494 }
 0x1d4   : > { %1020 = vmatprep.mubr.bf16.mxu0 %v10687_v11 }
 0x1db   : > { %5602 = vmatmul.mubr.msk.bf16.gmra.mrb[64].mxu0 %vm742_vm1, %v5771_v4 }
 0x1dc   : > { %1030 = vmatprep.mubr.bf16.mxu0 %v10687_v11 }
 0x1e3   : > { %5603 = vmatmul.mubr.msk.bf16.gmra.mrb[68].mxu0 %vm742_vm1, %v5772_v5 }
 0x1e4   : > { %1040 = vmatprep.mubr.bf16.mxu0 %v10687_v11 }
 0x1eb   : > { %5604 = vmatmul.mubr.msk.bf16.gmra.mrb[72].mxu0 %vm742_vm1, %v5773_v6 }
 0x1ec   : > { %1050 = vmatprep.mubr.bf16.mxu0 %v10687_v11 }
 0x1f3   : > { %5605 = vmatmul.mubr.msk.bf16.gmra.mrb[76].mxu0 %vm742_vm1, %v5774_v7 }
 0x1f4   : > { %1060 = vmatprep.mubr.bf16.mxu0 %v10687_v11 }
 0x1fb   : > { %5606 = vmatmul.mubr.msk.bf16.gmra.mrb[80].mxu0 %vm742_vm1, %v5775_v9 }
 0x1fc   : > { %1070 = vmatprep.mubr.bf16.mxu0 %v10687_v11 }
 0x203   : > { %5607 = vmatmul.mubr.msk.bf16.gmra.mrb[84].mxu0 %vm742_vm1, %v5776_v12 }
 0x204   : > { %1080 = vmatprep.mubr.bf16.mxu0 %v10687_v11 }
 0x20b   : > { %5608 = vmatmul.mubr.msk.bf16.gmra.mrb[88].mxu0 %vm742_vm1, %v5777_v14 }
 0x20c   : > { %1090 = vmatprep.mubr.bf16.mxu0 %v10687_v11 }
 0x213   : > { %5609 = vmatmul.mubr.msk.bf16.gmra.mrb[92].mxu0 %vm742_vm1, %v5778_v17  ;;  %v395_v17 = vpop.permute.xlu0 %394 }
 0x214   : > { %1100 = vmatprep.mubr.bf16.mxu0 %v10687_v11 }
 0x21b   : > { %5610 = vmatmul.mubr.msk.bf16.gmra.mrb[96].mxu0 %vm742_vm1, %v5779_v20  ;;  %v6983_v20 = vpop.permute.xlu1 %499 }
 0x21c   : > { %1110 = vmatprep.mubr.bf16.mxu0 %v10687_v11 }
 0x223   : > { %5611 = vmatmul.mubr.msk.bf16.gmra.mrb[100].mxu0 %vm742_vm1, %v5780_v23 }
 0x224   : > { %1248 = vmatprep.mubr.bf16.mxu0 %v10687_v11 }
 0x22e   : > { %v862_v30 = vpop.f32.mrb[0].mxu0 }
 0x22f   : > { %v864_v31 = vpop.f32.mrb[1].mxu0  ;;  %v863_v33 = vadd.f32 %v862_v30, %v355_v19 }
 0x230   : > { %v866_v32 = vpop.f32.mrb[2].mxu0  ;;  %v6959_v36 = vadd.f32 %v864_v31, %v355_v19 }
 0x231   : > { %v867_v34 = vadd.f32 %v866_v32, %v360_v22  ;;  %v868_v35 = vpop.f32.mrb[3].mxu0 }
 0x232   : > { %v6961_v37 = vadd.f32 %v868_v35, %v360_v22 }
 0x233   : > { %v1121_v39 = vpack.c.bf16 %v867_v34, %v863_v33  ;;  %v405_v33 = vpop.permute.xlu1 %404 }
 0x234   : > { %v1122_v41 = vpack.c.bf16 %v6961_v37, %v6959_v36 }
 0x235   : > { %1135 = vxpose.xlu1.c.b16.start [1/2] (short) %v1121_v39, 128 }
 0x236   : > { %v872_v42 = vpop.f32.mrb[4].mxu0 }
 0x237   : > { %v874_v43 = vpop.f32.mrb[5].mxu0  ;;  %v873_v46 = vadd.f32 %v872_v42, %v365_v8 }
 0x238   : > { %v876_v44 = vpop.f32.mrb[6].mxu0  ;;  %v6969_v50 = vadd.f32 %v874_v43, %v365_v8  ;;  %v339_v43 = vld [vmem:[%s10683_s2 + $0x138] sm:$0xff] }
 0x239   : > { %v877_v47 = vadd.f32 %v876_v44, %v370_v25  ;;  %v878_v48 = vpop.f32.mrb[7].mxu0 }
 0x23a   : > { %v6971_v51 = vadd.f32 %v878_v48, %v370_v25 }
 0x23b   : > { %v1123_v52 = vpack.c.bf16 %v877_v47, %v873_v46  ;;  %v410_v46 = vpop.permute.xlu1 %409 }
 0x23c   : > { %v1124_v53 = vpack.c.bf16 %v6971_v51, %v6969_v50 }
 0x23d   : > { %1136 = vxpose.xlu1.c.b16.end [2/2] (short) %v1123_v52, 128 }
 0x23e   : > { %v882_v54 = vpop.f32.mrb[8].mxu0 }
 0x23f   : > { %v884_v56 = vpop.f32.mrb[9].mxu0  ;;  %v883_v59 = vadd.f32 %v882_v54, %v375_v27 }
 0x240   : > { %v886_v58 = vpop.f32.mrb[10].mxu0  ;;  %v885_v62 = vadd.f32 %v884_v56, %v375_v27 }
 0x241   : > { %v887_v60 = vadd.f32 %v886_v58, %v380_v29  ;;  %v888_v61 = vpop.f32.mrb[11].mxu0 }
 0x242   : > { %v889_v63 = vadd.f32 %v888_v61, %v380_v29  ;;  %v400_v29 = vpop.permute.xlu0 %399 }
 0x243   : > { %v1125_v0 = vpack.c.bf16 %v887_v60, %v883_v59 }
 0x244   : > { %v1126_v1 = vpack.c.bf16 %v889_v63, %v885_v62 }
 0x246   : > { %v892_v4 = vpop.f32.mrb[12].mxu0  ;;  %1216 = vmatprep.subr.bf16.mxu0 %v1126_v1  ;;  %5701 = vmatprep.subr.bf16.mxu1 %v1126_v1 }
 0x247   : > { %v894_v5 = vpop.f32.mrb[13].mxu0  ;;  %1217 = vmatpush1.bf16.msra.mxu0 %v1125_v0  ;;  %5703 = vmatpush1.bf16.msra.mxu1 %v1125_v0  ;;  %v893_v7 = vadd.f32 %v892_v4, %v385_v40 }
 0x248   : > { %v896_v6 = vpop.f32.mrb[14].mxu0  ;;  %v895_v12 = vadd.f32 %v894_v5, %v385_v40 }
 0x249   : > { %v897_v8 = vadd.f32 %v896_v6, %v390_v49  ;;  %v898_v9 = vpop.f32.mrb[15].mxu0 }
 0x24a   : > { %v899_v14 = vadd.f32 %v898_v9, %v390_v49 }
 0x24b   : > { %v1127_v19 = vpack.c.bf16 %v897_v8, %v893_v7 }
 0x24c   : > { %v1128_v22 = vpack.c.bf16 %v899_v14, %v895_v12 }
 0x24e   : > { %1218 = vmatprep.subr.bf16.mxu0 %v1128_v22  ;;  %5702 = vmatprep.subr.bf16.mxu1 %v1128_v22  ;;  %v902_v23 = vpop.f32.mrb[16].mxu0 }
 0x24f   : > { %1219 = vmatpush1.bf16.msra.mxu0 %v1127_v19  ;;  %5704 = vmatpush1.bf16.msra.mxu1 %v1127_v19  ;;  %v904_v25 = vpop.f32.mrb[17].mxu0  ;;  %v6985_v31 = vadd.f32 %v902_v23, %v395_v17 }
 0x250   : > { %v906_v27 = vpop.f32.mrb[18].mxu0  ;;  %v905_v34 = vadd.f32 %v904_v25, %v395_v17 }
 0x251   : > { %v908_v30 = vpop.f32.mrb[19].mxu0  ;;  %v6987_v32 = vadd.f32 %v906_v27, %v400_v29 }
 0x252   : > { %v909_v35 = vadd.f32 %v908_v30, %v400_v29 }
 0x253   : > { %v1129_v39 = vpack.c.bf16 %v6987_v32, %v6985_v31 }
 0x254   : > { %v1130_v40 = vpack.c.bf16 %v909_v35, %v905_v34 }
 0x256   : > { %v912_v42 = vpop.f32.mrb[20].mxu0  ;;  %1729 = vmatprep.subr.bf16.mxu1 %v1130_v40 }
 0x257   : > { %v914_v44 = vpop.f32.mrb[21].mxu0  ;;  %v6994_v48 = vadd.f32 %v912_v42, %v405_v33 }
 0x258   : > { %v916_v47 = vpop.f32.mrb[22].mxu0  ;;  %v6998_v54 = vadd.f32 %v914_v44, %v405_v33 }
 0x259   : > { %v6996_v49 = vadd.f32 %v916_v47, %v410_v46  ;;  %v918_v52 = vpop.f32.mrb[23].mxu0  ;;  %549 = vperm.xlu1 %5749, %v339_v43  }
 0x25a   : > { %v7000_v56 = vadd.f32 %v918_v52, %v410_v46 }
 0x25b   : > { %v1131_v58 = vpack.c.bf16 %v6996_v49, %v6994_v48 }
 0x25c   : > { %v1132_v59 = vpack.c.bf16 %v7000_v56, %v6998_v54 }
 0x25e   : > { %v7006_v60 = vpop.f32.mrb[24].mxu0 }
 0x25f   : > { %v7008_v61 = vpop.f32.mrb[25].mxu0 }
 0x260   : > { %v926_v62 = vpop.f32.mrb[26].mxu0 }
 0x261   : > { %v928_v63 = vpop.f32.mrb[27].mxu0  ;;  %v927_v1 = vadd.f32 %v926_v62, %v6916_v10 }
 0x262   : > { %v7013_v6 = vadd.f32 %v928_v63, %v6916_v10 }
 0x266   : > { %v932_v0 = vpop.f32.mrb[28].mxu0 }
 0x267   : > { %v933_v4 = vadd.f32 %v932_v0, %v6921_v13  ;;  %v934_v5 = vpop.f32.mrb[29].mxu0 }
 0x268   : > { %v7016_v7 = vadd.f32 %v934_v5, %v6921_v13  ;;  %v936_v8 = vpop.f32.mrb[30].mxu0 }
 0x269   : > { %v938_v9 = vpop.f32.mrb[31].mxu0  ;;  %v2130_v12 = vpack.c.bf16 %v933_v4, %v927_v1  ;;  %v937_v19 = vadd.f32 %v936_v8, %v6928_v15 }
 0x26a   : > { %v2131_v14 = vpack.c.bf16 %v7016_v7, %v7013_v6  ;;  %v7023_v25 = vadd.f32 %v938_v9, %v6928_v15 }
 0x26b   : > { %2144 = vxpose.xlu0.c.b16.start [1/2] (short) %v2130_v12, 128 }
 0x26e   : > { %v942_v17 = vpop.f32.mrb[32].mxu0 }
 0x26f   : > { %v943_v22 = vadd.f32 %v942_v17, %v6932_v16  ;;  %v944_v23 = vpop.f32.mrb[33].mxu0 }
 0x270   : > { %v7026_v10 = vadd.f32 %v944_v23, %v6932_v16  ;;  %v946_v13 = vpop.f32.mrb[34].mxu0  ;;  %v341_v23 = vld [vmem:[%s10683_s2 + $0x148] sm:$0xff] }
 0x271   : > { %v2132_v27 = vpack.c.bf16 %v943_v22, %v937_v19  ;;  %v948_v29 = vpop.f32.mrb[35].mxu0  ;;  %v947_v34 = vadd.f32 %v946_v13, %v6938_v18 }
 0x272   : > { %v2133_v30 = vpack.c.bf16 %v7026_v10, %v7023_v25  ;;  %v949_v42 = vadd.f32 %v948_v29, %v6938_v18  ;;  %v7075_v29 = vpop.permute.xlu1 %414 }
 0x273   : > { %2145 = vxpose.xlu0.c.b16.end [2/2] (short) %v2132_v27, 128  ;;  %v925_v32 = vadd.f32 %v7008_v61, %v7075_v29 }
 0x276   : > { %v952_v33 = vpop.f32.mrb[36].mxu0 }
 0x277   : > { %v953_v35 = vadd.f32 %v952_v33, %v6944_v21  ;;  %v954_v40 = vpop.f32.mrb[37].mxu0 }
 0x278   : > { %v955_v15 = vadd.f32 %v954_v40, %v6944_v21  ;;  %v956_v43 = vpop.f32.mrb[38].mxu0 }
 0x279   : > { %v2134_v16 = vpack.c.bf16 %v953_v35, %v947_v34  ;;  %v958_v44 = vpop.f32.mrb[39].mxu0  ;;  %v957_v52 = vadd.f32 %v956_v43, %v6951_v24  ;;  %v342_v35 = vld [vmem:[%s10683_s2 + $0x150] sm:$0xff] }
 0x27a   : > { %v2135_v46 = vpack.c.bf16 %v955_v15, %v949_v42  ;;  %v959_v0 = vadd.f32 %v958_v44, %v6951_v24 }
 0x27c   : > { %1151 = vxpose.xlu1.c.b16.start [1/2] (short) %v1122_v41, 128  ;;  %2224 = vmatprep.subr.bf16.mxu0 %v2135_v46  ;;  %v343_v46 = vld [vmem:[%s10683_s2 + $0x158] sm:$0xff] }
 0x27e   : > { %v962_v47 = vpop.f32.mrb[40].mxu0 }
 0x27f   : > { %v963_v62 = vadd.f32 %v962_v47, %v6955_v26  ;;  %v964_v63 = vpop.f32.mrb[41].mxu0 }
 0x280   : > { %v965_v18 = vadd.f32 %v964_v63, %v6955_v26  ;;  %1152 = vxpose.xlu1.c.b16.end [2/2] (short) %v1124_v53, 128  ;;  %v7044_v21 = vpop.f32.mrb[42].mxu0 }
 0x281   : > { %v2136_v1 = vpack.c.bf16 %v963_v62, %v957_v52  ;;  %v7046_v36 = vpop.f32.mrb[43].mxu0 }
 0x282   : > { %v2137_v37 = vpack.c.bf16 %v965_v18, %v959_v0 }
 0x286   : > { %v7048_v41 = vpop.f32.mrb[44].mxu0 }
 0x287   : > { %v7050_v4 = vpop.f32.mrb[45].mxu0 }
 0x288   : > { %v7052_v5 = vpop.f32.mrb[46].mxu0 }
 0x289   : > { %v7054_v8 = vpop.f32.mrb[47].mxu0 }
 0x28e   : > { %v7056_v24 = vpop.f32.mrb[48].mxu0 }
 0x28f   : > { %v7058_v26 = vpop.f32.mrb[49].mxu0 }
 0x290   : > { %v7060_v50 = vpop.f32.mrb[50].mxu0 }
 0x291   : > { %v7062_v51 = vpop.f32.mrb[51].mxu0 }
 0x296   : > { %v992_v53 = vpop.f32.mrb[52].mxu0 }
 0x297   : > { %v994_v9 = vpop.f32.mrb[53].mxu0  ;;  %v993_v17 = vadd.f32 %v992_v53, %v6977_v57 }
 0x298   : > { %v996_v12 = vpop.f32.mrb[54].mxu0  ;;  %v7070_v13 = vadd.f32 %v994_v9, %v6977_v57 }
 0x299   : > { %v997_v19 = vadd.f32 %v996_v12, %v6957_v28  ;;  %v998_v22 = vpop.f32.mrb[55].mxu0  ;;  %v346_v12 = vld [vmem:[%s10683_s2 + $0x170] sm:$0xff] }
 0x29a   : > { %v7073_v27 = vadd.f32 %v998_v22, %v6957_v28 }
 0x29b   : > { %v3138_v33 = vpack.c.bf16 %v997_v19, %v993_v17 }
 0x29c   : > { %v3139_v34 = vpack.c.bf16 %v7073_v27, %v7070_v13  ;;  %559 = vperm.xlu1 %5749, %v341_v23  }
 0x29d   : > { %3152 = vxpose.xlu0.c.b16.start [1/2] (short) %v3138_v33, 128 }
 0x29e   : > { %v1002_v40 = vpop.f32.mrb[56].mxu0 }
 0x29f   : > { %v1004_v42 = vpop.f32.mrb[57].mxu0  ;;  %v1143_v57 = vpop.trf.xlu1  ;;  %v1003_v28 = vadd.f32 %v1002_v40, %v6981_v3 }
 0x2a0   : > { %v1006_v15 = vpop.f32.mrb[58].mxu0  ;;  %564 = vperm.xlu1 %5749, %v342_v35   ;;  %5612 = vmatmul.mubr.msk.bf16.vlgmr.msra.gmra.mrb[104].mxu0 %vm1167_vm2, %v1143_v57  ;;  %v7090_v47 = vadd.f32 %v1004_v42, %v6981_v3  ;;  %v923_v42 = vadd.f32 %v7006_v60, %v7075_v29 }
 0x2a1   : > { %v1007_v43 = vadd.f32 %v1006_v15, %v6983_v20  ;;  %2225 = vmatpush1.bf16.msra.mxu0 %v2134_v16  ;;  %v1008_v44 = vpop.f32.mrb[59].mxu0  ;;  %1258 = vmatprep.mubr.bf16.mxu0 %v10687_v11  ;;  %v344_v16 = vld [vmem:[%s10683_s2 + $0x160] sm:$0xff] }
 0x2a2   : > { %v7093_v52 = vadd.f32 %v1008_v44, %v6983_v20  ;;  %2226 = vmatprep.subr.bf16.mxu0 %v2137_v37 }
 0x2a3   : > { %v3140_v62 = vpack.c.bf16 %v1007_v43, %v1003_v28  ;;  %v1144_v63 = vpop.trf.xlu1  ;;  %v1133_v43 = vpack.c.bf16 %v923_v42, %v923_v42 }
 0x2a4   : > { %v3141_v0 = vpack.c.bf16 %v7093_v52, %v7090_v47  ;;  %569 = vperm.xlu1 %5749, %v343_v46  }
 0x2a5   : > { %2227 = vmatpush1.bf16.msra.mxu0 %v2136_v1  ;;  %3153 = vxpose.xlu0.c.b16.end [2/2] (short) %v3140_v62, 128  ;;  %v555_v62 = vpop.permute.xlu0 %554 }
 0x2a6   : > { %v1012_v18 = vpop.f32.mrb[60].mxu0 }
 0x2a7   : > { %v1014_v53 = vpop.f32.mrb[61].mxu0  ;;  %v1145_v3 = vpop.trf.xlu1  ;;  %v7102_v20 = vadd.f32 %v1012_v18, %v6963_v38 }
 0x2a8   : > { %v1016_v9 = vpop.f32.mrb[62].mxu0  ;;  %574 = vperm.xlu1 %5749, %v344_v16   ;;  %5614 = vmatmul.mubr.msk.bf16.vlgmr.msra.gmra.mrb[0].mxu1 %vm1167_vm2, %v1145_v3  ;;  %v1015_v17 = vadd.f32 %v1014_v53, %v6963_v38  ;;  %v322_v38 = vld [vmem:[%s10683_s2 + $0xb0] sm:$0xff] }
 0x2a9   : > { %v7105_v37 = vadd.f32 %v1016_v9, %v6967_v45  ;;  %1730 = vmatpush1.bf16.xpose.msra.mxu1 %v1129_v39  ;;  %v1018_v1 = vpop.f32.mrb[63].mxu0  ;;  %1278 = vmatprep.mubr.bf16.mxu1 %v10687_v11 }
 0x2aa   : > { %v1019_v19 = vadd.f32 %v1018_v1, %v6967_v45  ;;  %1731 = vmatprep.subr.bf16.mxu1 %v1132_v59  ;;  %5613 = vmatmul.mubr.msk.bf16.gmra.mrb[108].mxu0 %vm1167_vm2, %v1144_v63  ;;  %v1134_v59 = vpack.c.bf16 %v925_v32, %v925_v32 }
 0x2ab   : > { %v3142_v31 = vpack.c.bf16 %v7105_v37, %v7102_v20  ;;  %2256 = vmatprep.mubr.bf16.mxu0 %v10687_v11  ;;  %v1146_v45 = vpop.trf.xlu1 }
 0x2ac   : > { %v3143_v39 = vpack.c.bf16 %v1019_v19, %v1015_v17  ;;  %584 = vperm.xlu1 %5749, %v346_v12  }
 0x2ae   : > { %v1022_v22 = vpop.f32.mrb[64].mxu0  ;;  %3232 = vmatprep.subr.bf16.mxu0 %v3143_v39 }
 0x2af   : > { %v1024_v54 = vpop.f32.mrb[65].mxu0  ;;  %v7130_v23 = vadd.f32 %v1022_v22, %v6975_v55  ;;  %v1147_v48 = vpop.trf.xlu1 }
 0x2b0   : > { %v1026_v56 = vpop.f32.mrb[66].mxu0  ;;  %464 = vperm.xlu1 %5749, %v322_v38   ;;  %5615 = vmatmul.mubr.msk.bf16.gmra.mrb[4].mxu1 %vm1167_vm2, %v1146_v45  ;;  %v1025_v35 = vadd.f32 %v1024_v54, %v6975_v55 }
 0x2b1   : > { %v1027_v61 = vadd.f32 %v1026_v56, %v6979_v2  ;;  %1732 = vmatpush1.bf16.xpose.msra.mxu1 %v1131_v58  ;;  %v1028_v33 = vpop.f32.mrb[67].mxu0  ;;  %1288 = vmatprep.mubr.bf16.mxu1 %v10687_v11 }
 0x2b2   : > { %v1029_v40 = vadd.f32 %v1028_v33, %v6979_v2  ;;  %1733 = vmatprep.subr.bf16.mxu1 %v1134_v59 }
 0x2b3   : > { %v3144_v57 = vpack.c.bf16 %v1027_v61, %v7130_v23  ;;  %v1148_v60 = vpop.trf.xlu1 }
 0x2b4   : > { %v3145_v15 = vpack.c.bf16 %v1029_v40, %v1025_v35 }
 0x2b6   : > { %v7142_v28 = vpop.f32.mrb[68].mxu0 }
 0x2b7   : > { %11058 = vst [vmem:[#allocation5_spill] sm:$0xff] %v7142_v28  ;;  %v7144_v44 = vpop.f32.mrb[69].mxu0  ;;  %v1149_v13 = vpop.trf.xlu1 }
 0x2b8   : > { %11059 = vst [vmem:[#allocation6_spill] sm:$0xff] %v7144_v44  ;;  %v7146_v49 = vpop.f32.mrb[70].mxu0  ;;  %5616 = vmatmul.mubr.msk.bf16.gmra.mrb[8].mxu1 %vm1167_vm2, %v1147_v48 }
 0x2b9   : > { %11060 = vst [vmem:[#allocation7_spill] sm:$0xff] %v7146_v49  ;;  %1734 = vmatpush1.bf16.xpose.msra.mxu1 %v1133_v43  ;;  %v7149_v55 = vpop.f32.mrb[71].mxu0  ;;  %1298 = vmatprep.mubr.bf16.mxu1 %v10687_v11 }
 0x2ba   : > { %11061 = vst [vmem:[#allocation8_spill] sm:$0xff] %v7149_v55 }
 0x2bb   : > { %v1150_v18 = vpop.trf.xlu1 }
 0x2be   : > { %3168 = vxpose.xlu0.c.b16.start [1/2] (short) %v3139_v34, 128  ;;  %v7155_v2 = vpop.f32.mrb[72].mxu0 }
 0x2bf   : > { %11062 = vst [vmem:[#allocation9_spill] sm:$0xff] %v7155_v2  ;;  %v7157_v58 = vpop.f32.mrb[73].mxu0 }
 0x2c0   : > { %11063 = vst [vmem:[#allocation10_spill] sm:$0xff] %v7157_v58  ;;  %v7159_v29 = vpop.f32.mrb[74].mxu0  ;;  %5617 = vmatmul.mubr.msk.bf16.gmra.mrb[12].mxu1 %vm1167_vm2, %v1148_v60 }
 0x2c1   : > { %11064 = vst [vmem:[#allocation11_spill] sm:$0xff] %v7159_v29  ;;  %v7162_v46 = vpop.f32.mrb[75].mxu0  ;;  %1308 = vmatprep.mubr.bf16.mxu1 %v10687_v11  ;;  %v11103_v29 = vmov 0  }
 0x2c2   : > { %11065 = vst [vmem:[#allocation12_spill] sm:$0xff] %v7162_v46  ;;  %3169 = vxpose.xlu0.c.b16.end [2/2] (short) %v3141_v0, 128  ;;  %v7174_v0 = vpop.permute.xlu0 %579 }
 0x2c6   : > { %v7165_v47 = vpop.f32.mrb[76].mxu0 }
 0x2c7   : > { %11066 = vst [vmem:[#allocation13_spill] sm:$0xff] %v7165_v47  ;;  %v7167_v52 = vpop.f32.mrb[77].mxu0 }
 0x2c8   : > { %11067 = vst [vmem:[#allocation14_spill] sm:$0xff] %v7167_v52  ;;  %v1056_v27 = vpop.f32.mrb[78].mxu0  ;;  %5618 = vmatmul.mubr.msk.bf16.gmra.mrb[16].mxu1 %vm1167_vm2, %v1149_v13 }
 0x2c9   : > { %v1058_v34 = vpop.f32.mrb[79].mxu0  ;;  %1318 = vmatprep.mubr.bf16.mxu1 %v10687_v11 }
 0x2ce   : > { %v1062_v63 = vpop.f32.mrb[80].mxu0 }
 0x2cf   : > { %v1064_v16 = vpop.f32.mrb[81].mxu0  ;;  %v1063_v6 = vadd.f32 %v1062_v63, %v555_v62 }
 0x2d0   : > { %v7171_v53 = vpop.f32.mrb[82].mxu0  ;;  %5619 = vmatmul.mubr.msk.bf16.gmra.mrb[20].mxu1 %vm1167_vm2, %v1150_v18  ;;  %v7193_v7 = vadd.f32 %v1064_v16, %v555_v62 }
 0x2d1   : > { %v7176_v3 = vpop.f32.mrb[83].mxu0  ;;  %1328 = vmatprep.mubr.bf16.mxu1 %v10687_v11 }
 0x2d3   : > { %2160 = vxpose.xlu1.c.b16.start [1/2] (short) %v2131_v14, 128 }
 0x2d5   : > { %v2152_v9 = vpop.trf.xlu0 }
 0x2d6   : > { %5628 = vmatmul.mubr.msk.bf16.vlgmr.msra.gmra.mrb[112].mxu0 %vm1167_vm2, %v2152_v9  ;;  %v7183_v20 = vpop.f32.mrb[84].mxu0 }
 0x2d7   : > { %3233 = vmatpush1.bf16.msra.mxu0 %v3142_v31  ;;  %2161 = vxpose.xlu1.c.b16.end [2/2] (short) %v2133_v30, 128  ;;  %v7188_v37 = vpop.f32.mrb[85].mxu0 }
 0x2d8   : > { %3234 = vmatprep.subr.bf16.mxu0 %v3145_v15  ;;  %v550_v1 = vpop.permute.xlu1 %549  ;;  %v7190_v12 = vpop.f32.mrb[86].mxu0  ;;  %2266 = vmatprep.mubr.bf16.mxu0 %v10687_v11 }
 0x2d9   : > { %v1057_v14 = vadd.f32 %v1056_v27, %v550_v1  ;;  %v7195_v17 = vadd.f32 %v1058_v34, %v550_v1  ;;  %v7197_v19 = vpop.f32.mrb[87].mxu0  ;;  %v2153_v10 = vpop.trf.xlu0 }
 0x2db   : > { %v4146_v31 = vpack.c.bf16 %v1063_v6, %v1057_v14  ;;  %3235 = vmatpush1.bf16.msra.mxu0 %v3144_v57 }
 0x2dd   : > { %4160 = vxpose.xlu0.c.b16.start [1/2] (short) %v4146_v31, 128  ;;  %v2154_v22 = vpop.trf.xlu0 }
 0x2de   : > { %v7201_v30 = vpop.f32.mrb[88].mxu0  ;;  %5629 = vmatmul.mubr.msk.bf16.gmra.mrb[116].mxu0 %vm1167_vm2, %v2153_v10 }
 0x2df   : > { %v7204_v32 = vpop.f32.mrb[89].mxu0  ;;  %2276 = vmatprep.mubr.bf16.mxu0 %v10687_v11 }
 0x2e0   : > { %v7207_v39 = vpop.f32.mrb[90].mxu0 }
 0x2e1   : > { %v7209_v38 = vpop.f32.mrb[91].mxu0  ;;  %v2155_v33 = vpop.trf.xlu0 }
 0x2e2   : > { %v1159_v45 = vpop.trf.xlu1 }
 0x2e3   : > { %5620 = vmatmul.mubr.msk.bf16.gmra.mrb[24].mxu1 %vm1167_vm2, %v1159_v45 }
 0x2e4   : > { %1338 = vmatprep.mubr.bf16.mxu1 %v10687_v11 }
 0x2e5   : > { %v2156_v43 = vpop.trf.xlu0 }
 0x2e6   : > { %5630 = vmatmul.mubr.msk.bf16.gmra.mrb[120].mxu0 %vm1167_vm2, %v2154_v22  ;;  %v7214_v54 = vpop.f32.mrb[92].mxu0  ;;  %v1160_v59 = vpop.trf.xlu1 }
 0x2e7   : > { %2286 = vmatprep.mubr.bf16.mxu0 %v10687_v11  ;;  %v7217_v56 = vpop.f32.mrb[93].mxu0 }
 0x2e8   : > { %v7219_v23 = vpop.f32.mrb[94].mxu0 }
 0x2e9   : > { %11068 = vst [vmem:[#allocation15_spill] sm:$0xff] %v7219_v23  ;;  %v7221_v61 = vpop.f32.mrb[95].mxu0  ;;  %v2157_v62 = vpop.trf.xlu0 }
 0x2ea   : > { %11069 = vst [vmem:[#allocation16_spill] sm:$0xff] %v7221_v61  ;;  %v1161_v42 = vpop.trf.xlu1 }
 0x2eb   : > { %5621 = vmatmul.mubr.msk.bf16.gmra.mrb[28].mxu1 %vm1167_vm2, %v1160_v59 }
 0x2ec   : > { %1348 = vmatprep.mubr.bf16.mxu1 %v10687_v11 }
 0x2ed   : > { %v2158_v16 = vpop.trf.xlu0 }
 0x2ee   : > { %5631 = vmatmul.mubr.msk.bf16.gmra.mrb[124].mxu0 %vm1167_vm2, %v2155_v33  ;;  %v7226_v35 = vpop.f32.mrb[96].mxu0  ;;  %v1162_v13 = vpop.trf.xlu1 }
 0x2ef   : > { %11070 = vst [vmem:[#allocation17_spill] sm:$0xff] %v7226_v35  ;;  %2296 = vmatprep.mubr.bf16.mxu0 %v10687_v11  ;;  %v7229_v40 = vpop.f32.mrb[97].mxu0 }
 0x2f0   : > { %11071 = vst [vmem:[#allocation18_spill] sm:$0xff] %v7229_v40  ;;  %v7231_v57 = vpop.f32.mrb[98].mxu0 }
 0x2f1   : > { %11072 = vst [vmem:[#allocation19_spill] sm:$0xff] %v7231_v57  ;;  %v7233_v15 = vpop.f32.mrb[99].mxu0  ;;  %v2159_v9 = vpop.trf.xlu0 }
 0x2f2   : > { %11073 = vst [vmem:[#allocation20_spill] sm:$0xff] %v7233_v15  ;;  %v1163_v63 = vpop.trf.xlu1 }
 0x2f3   : > { %5622 = vmatmul.mubr.msk.bf16.gmra.mrb[32].mxu1 %vm1167_vm2, %v1161_v42  ;;  %v321_v42 = vld [vmem:[%s10683_s2 + $0xa8] sm:$0xff] }
 0x2f4   : > { %1358 = vmatprep.mubr.bf16.mxu1 %v10687_v11 }
 0x2f6   : > { %5632 = vmatmul.mubr.msk.bf16.gmra.mrb[128].mxu0 %vm1167_vm2, %v2156_v43  ;;  %v7238_v48 = vpop.f32.mrb[100].mxu0  ;;  %v1164_v18 = vpop.trf.xlu1 }
 0x2f7   : > { %11074 = vst [vmem:[#allocation21_spill] sm:$0xff] %v7238_v48  ;;  %2306 = vmatprep.mubr.bf16.mxu0 %v10687_v11  ;;  %v7241_v60 = vpop.f32.mrb[101].mxu0 }
 0x2f8   : > { %11075 = vst [vmem:[#allocation22_spill] sm:$0xff] %v7241_v60  ;;  %v7243_v27 = vpop.f32.mrb[102].mxu0 }
 0x2f9   : > { %11076 = vst [vmem:[#allocation23_spill] sm:$0xff] %v7243_v27  ;;  %v7245_v34 = vpop.f32.mrb[103].mxu0 }
 0x2fa   : > { %11077 = vst [vmem:[#allocation24_spill] sm:$0xff] %v7245_v34  ;;  %v1165_v1 = vpop.trf.xlu1 }
 0x2fb   : > { %5623 = vmatmul.mubr.msk.bf16.gmra.mrb[36].mxu1 %vm1167_vm2, %v1162_v13 }
 0x2fc   : > { %1368 = vmatprep.mubr.bf16.mxu1 %v10687_v11 }
 0x2fe   : > { %5633 = vmatmul.mubr.msk.bf16.gmra.mrb[132].mxu0 %vm1167_vm2, %v2157_v62  ;;  %v1166_v6 = vpop.trf.xlu1 }
 0x2ff   : > { %2316 = vmatprep.mubr.bf16.mxu0 %v10687_v11 }
 0x303   : > { %5624 = vmatmul.mubr.msk.bf16.gmra.mrb[40].mxu1 %vm1167_vm2, %v1163_v63 }
 0x304   : > { %1378 = vmatprep.mubr.bf16.mxu1 %v10687_v11 }
 0x306   : > { %5634 = vmatmul.mubr.msk.bf16.gmra.mrb[136].mxu0 %vm1167_vm2, %v2158_v16 }
 0x307   : > { %2326 = vmatprep.mubr.bf16.mxu0 %v10687_v11 }
 0x30b   : > { %5625 = vmatmul.mubr.msk.bf16.gmra.mrb[44].mxu1 %vm1167_vm2, %v1164_v18 }
 0x30c   : > { %1388 = vmatprep.mubr.bf16.mxu1 %v10687_v11 }
 0x30e   : > { %5635 = vmatmul.mubr.msk.bf16.gmra.mrb[140].mxu0 %vm1167_vm2, %v2159_v9  ;;  %v1089_v9 = vadd.f32 %v7209_v38, %v7174_v0 }
 0x30f   : > { %2336 = vmatprep.mubr.bf16.mxu0 %v10687_v11 }
 0x313   : > { %5626 = vmatmul.mubr.msk.bf16.gmra.mrb[48].mxu1 %vm1167_vm2, %v1165_v1 }
 0x314   : > { %1398 = vmatprep.mubr.bf16.mxu1 %v10687_v11 }
 0x31b   : > { %v560_v14 = vpop.permute.xlu1 %559  ;;  %5627 = vmatmul.mubr.msk.bf16.gmra.mrb[52].mxu1 %vm1167_vm2, %v1166_v6 }
 0x31c   : > { %v1067_v10 = vadd.f32 %v7171_v53, %v560_v14  ;;  %v7264_v45 = vadd.f32 %v7176_v3, %v560_v14 }
 0x31f   : > { %v565_v31 = vpop.permute.xlu1 %564 }
 0x320   : > { %v1073_v22 = vadd.f32 %v7183_v20, %v565_v31  ;;  %v7268_v59 = vadd.f32 %v7188_v37, %v565_v31  ;;  %v1087_v37 = vadd.f32 %v7207_v39, %v7174_v0 }
 0x322   : > { %v4148_v33 = vpack.c.bf16 %v1073_v22, %v1067_v10 }
 0x323   : > { %v570_v43 = vpop.permute.xlu1 %569 }
 0x324   : > { %4161 = vxpose.xlu0.c.b16.end [2/2] (short) %v4148_v33, 128  ;;  %v1077_v62 = vadd.f32 %v7190_v12, %v570_v43  ;;  %v1079_v63 = vadd.f32 %v7197_v19, %v570_v43 }
 0x327   : > { %v575_v13 = vpop.permute.xlu1 %574 }
 0x328   : > { %v1083_v53 = vadd.f32 %v7201_v30, %v575_v13  ;;  %v1085_v3 = vadd.f32 %v7204_v32, %v575_v13 }
 0x32a   : > { %v4150_v16 = vpack.c.bf16 %v1083_v53, %v1077_v62  ;;  %v4151_v20 = vpack.c.bf16 %v1085_v3, %v1079_v63  ;;  %v3160_v63 = vpop.trf.xlu0 }
 0x32b   : > { %v585_v18 = vpop.permute.xlu1 %584 }
 0x32c   : > { %v1093_v1 = vadd.f32 %v7214_v54, %v585_v18  ;;  %v1095_v6 = vadd.f32 %v7217_v56, %v585_v18  ;;  %4240 = vmatprep.subr.bf16.mxu0 %v4151_v20 }
 0x32e   : > { %v4152_v12 = vpack.c.bf16 %v1093_v1, %v1087_v37  ;;  %v4153_v19 = vpack.c.bf16 %v1095_v6, %v1089_v9 }
 0x32f   : > { %v7282_v14 = vpop.permute.xlu1 %464 }
 0x339   : > { %v2168_v30 = vpop.trf.xlu1 }
 0x33a   : > { %5636 = vmatmul.mubr.msk.bf16.gmra.mrb[144].mxu0 %vm1167_vm2, %v2168_v30 }
 0x33b   : > { %2346 = vmatprep.mubr.bf16.mxu0 %v10687_v11 }
 0x33d   : > { %v2169_v32 = vpop.trf.xlu1 }
 0x341   : > { %v2170_v0 = vpop.trf.xlu1 }
 0x342   : > { %5637 = vmatmul.mubr.msk.bf16.gmra.mrb[148].mxu0 %vm1167_vm2, %v2169_v32 }
 0x343   : > { %2356 = vmatprep.mubr.bf16.mxu0 %v10687_v11 }
 0x345   : > { %v2171_v39 = vpop.trf.xlu1 }
 0x349   : > { %v2172_v38 = vpop.trf.xlu1 }
 0x34a   : > { %5638 = vmatmul.mubr.msk.bf16.gmra.mrb[152].mxu0 %vm1167_vm2, %v2170_v0 }
 0x34b   : > { %2366 = vmatprep.mubr.bf16.mxu0 %v10687_v11 }
 0x34d   : > { %v2173_v54 = vpop.trf.xlu1 }
 0x351   : > { %v2174_v56 = vpop.trf.xlu1 }
 0x352   : > { %5639 = vmatmul.mubr.msk.bf16.gmra.mrb[156].mxu0 %vm1167_vm2, %v2171_v39 }
 0x353   : > { %2376 = vmatprep.mubr.bf16.mxu0 %v10687_v11 }
 0x355   : > { %v2175_v31 = vpop.trf.xlu1 }
 0x35a   : > { %5640 = vmatmul.mubr.msk.bf16.gmra.mrb[160].mxu0 %vm1167_vm2, %v2172_v38  ;;  %v323_v38 = vld [vmem:[%s10683_s2 + $0xb8] sm:$0xff] }
 0x35b   : > { %2386 = vmatprep.mubr.bf16.mxu0 %v10687_v11 }
 0x362   : > { %5641 = vmatmul.mubr.msk.bf16.gmra.mrb[164].mxu0 %vm1167_vm2, %v2173_v54 }
 0x363   : > { %2396 = vmatprep.mubr.bf16.mxu0 %v10687_v11 }
 0x36a   : > { %5642 = vmatmul.mubr.msk.bf16.gmra.mrb[168].mxu0 %vm1167_vm2, %v2174_v56 }
 0x36b   : > { %2406 = vmatprep.mubr.bf16.mxu0 %v10687_v11 }
 0x372   : > { %5643 = vmatmul.mubr.msk.bf16.gmra.mrb[172].mxu0 %vm1167_vm2, %v2175_v31 }
 0x373   : > { %v7299_v10 = vpop.f32.mrb[104].mxu0  ;;  %3264 = vmatprep.mubr.bf16.mxu0 %v10687_v11 }
 0x374   : > { %v7302_v22 = vpop.f32.mrb[105].mxu0 }
 0x375   : > { %v7304_v33 = vpop.f32.mrb[106].mxu0  ;;  %v1409_v43 = vmax.f32 %v7299_v10, %v7302_v22 }
 0x376   : > { %v7308_v13 = vpop.f32.mrb[107].mxu0 }
 0x377   : > { %v1412_v62 = vmax.f32 %v7304_v33, %v7308_v13  ;;  %1410 = vmax.xlane.f32.xlu1 %v1409_v43 }
 0x379   : > { %1413 = vmax.xlane.f32.xlu0 %v1412_v62 }
 0x37a   : > { %5644 = vmatmul.mubr.msk.bf16.vlgmr.msra.gmra.mrb[176].mxu0 %vm1167_vm2, %v3160_v63  ;;  %v324_v63 = vld [vmem:[%s10683_s2 + $0xc0] sm:$0xff] }
 0x37b   : > { %4241 = vmatpush1.bf16.msra.mxu0 %v4150_v16  ;;  %3274 = vmatprep.mubr.bf16.mxu0 %v10687_v11  ;;  %v7314_v53 = vpop.f32.mrb[0].mxu1  ;;  %v3161_v16 = vpop.trf.xlu0 }
 0x37c   : > { %11078 = vst [vmem:[#allocation25_spill] sm:$0xff] %v7314_v53  ;;  %4242 = vmatprep.subr.bf16.mxu0 %v4153_v19  ;;  %v7316_v3 = vpop.f32.mrb[1].mxu1 }
 0x37d   : > { %11079 = vst [vmem:[#allocation26_spill] sm:$0xff] %v7316_v3  ;;  %v7318_v20 = vpop.f32.mrb[108].mxu0  ;;  %v7320_v18 = vpop.f32.mrb[2].mxu1 }
 0x37e   : > { %v7324_v9 = vpop.f32.mrb[109].mxu0  ;;  %v7326_v1 = vpop.f32.mrb[3].mxu1 }
 0x37f   : > { %11080 = vst [vmem:[#allocation27_spill] sm:$0xff] %v7324_v9  ;;  %4243 = vmatpush1.bf16.msra.mxu0 %v4152_v12  ;;  %v7328_v6 = vpop.f32.mrb[110].mxu0  ;;  %v3162_v43 = vpop.trf.xlu0  ;;  %v11107_v49 = vmax.f32 %v7320_v18, %v7326_v1 }
 0x380   : > { %v7334_v32 = vpop.f32.mrb[111].mxu0 }
 0x382   : > { %5645 = vmatmul.mubr.msk.bf16.gmra.mrb[180].mxu0 %vm1167_vm2, %v3161_v16 }
 0x383   : > { %3284 = vmatprep.mubr.bf16.mxu0 %v10687_v11  ;;  %v7340_v39 = vpop.f32.mrb[4].mxu1  ;;  %v3163_v56 = vpop.trf.xlu0 }
 0x384   : > { %11081 = vst [vmem:[#allocation28_spill] sm:$0xff] %v7340_v39  ;;  %v7342_v12 = vpop.f32.mrb[5].mxu1 }
 0x385   : > { %11082 = vst [vmem:[#allocation29_spill] sm:$0xff] %v7342_v12  ;;  %v7347_v54 = vpop.f32.mrb[6].mxu1 }
 0x386   : > { %11083 = vst [vmem:[#allocation30_spill] sm:$0xff] %v7347_v54  ;;  %v7351_v31 = vpop.f32.mrb[7].mxu1 }
 0x387   : > { %11084 = vst [vmem:[#allocation31_spill] sm:$0xff] %v7351_v31  ;;  %v3164_v19 = vpop.trf.xlu0 }
 0x388   : > { %469 = vperm.xlu1 %5749, %v323_v38   ;;  %v325_v38 = vld [vmem:[%s10683_s2 + $0xc8] sm:$0xff] }
 0x38a   : > { %5646 = vmatmul.mubr.msk.bf16.gmra.mrb[184].mxu0 %vm1167_vm2, %v3162_v43 }
 0x38b   : > { %3294 = vmatprep.mubr.bf16.mxu0 %v10687_v11  ;;  %v7360_v16 = vpop.f32.mrb[8].mxu1 }
 0x38c   : > { %11085 = vst [vmem:[#allocation32_spill] sm:$0xff] %v7360_v16  ;;  %474 = vperm.xlu1 %5749, %v324_v63   ;;  %v7365_v25 = vpop.f32.mrb[9].mxu1  ;;  %v11105_v63 = vmax.f32 %v7328_v6, %v7334_v32 }
 0x38d   : > { %11086 = vst [vmem:[#allocation33_spill] sm:$0xff] %v7365_v25  ;;  %v7370_v62 = vpop.f32.mrb[10].mxu1 }
 0x38e   : > { %11087 = vst [vmem:[#allocation34_spill] sm:$0xff] %v7370_v62  ;;  %v7374_v37 = vpop.f32.mrb[11].mxu1 }
 0x38f   : > { %11088 = vst [vmem:[#allocation35_spill] sm:$0xff] %v7374_v37  ;;  %459 = vperm.xlu0 %5750, %v321_v42  }
 0x390   : > { %479 = vperm.xlu1 %5749, %v325_v38   ;;  %v3165_v38 = vpop.trf.xlu0 }
 0x392   : > { %5647 = vmatmul.mubr.msk.bf16.gmra.mrb[188].mxu0 %vm1167_vm2, %v3163_v56 }
 0x393   : > { %3304 = vmatprep.mubr.bf16.mxu0 %v10687_v11  ;;  %v7380_v30 = vpop.f32.mrb[12].mxu1 }
 0x394   : > { %11089 = vst [vmem:[#allocation36_spill] sm:$0xff] %v7380_v30  ;;  %v7382_v0 = vpop.f32.mrb[13].mxu1  ;;  %v3166_v60 = vpop.trf.xlu0 }
 0x395   : > { %11090 = vst [vmem:[#allocation37_spill] sm:$0xff] %v7382_v0  ;;  %v7384_v34 = vpop.f32.mrb[14].mxu1 }
 0x396   : > { %11091 = vst [vmem:[#allocation38_spill] sm:$0xff] %v7384_v34  ;;  %v7388_v42 = vpop.f32.mrb[15].mxu1 }
 0x397   : > { %11092 = vst [vmem:[#allocation39_spill] sm:$0xff] %v7388_v42 }
 0x398   : > { %v3167_v57 = vpop.trf.xlu0 }
 0x39a   : > { %5648 = vmatmul.mubr.msk.bf16.gmra.mrb[192].mxu0 %vm1167_vm2, %v3164_v19 }
 0x39b   : > { %3314 = vmatprep.mubr.bf16.mxu0 %v10687_v11  ;;  %v7394_v56 = vpop.f32.mrb[16].mxu1 }
 0x39c   : > { %11093 = vst [vmem:[#allocation40_spill] sm:$0xff] %v7394_v56  ;;  %v7396_v27 = vpop.f32.mrb[17].mxu1  ;;  %v3176_v47 = vpop.trf.xlu0 }
 0x39d   : > { %11094 = vst [vmem:[#allocation41_spill] sm:$0xff] %v7396_v27  ;;  %v7398_v48 = vpop.f32.mrb[18].mxu1  ;;  %v1445_v43 = vmax.f32 %v7394_v56, %v7396_v27 }
 0x39e   : > { %11095 = vst [vmem:[#allocation42_spill] sm:$0xff] %v7398_v48  ;;  %v7402_v15 = vpop.f32.mrb[19].mxu1 }
 0x39f   : > { %11096 = vst [vmem:[#allocation43_spill] sm:$0xff] %v7402_v15 }
 0x3a0   : > { %v3177_v52 = vpop.trf.xlu0 }
 0x3a2   : > { %5649 = vmatmul.mubr.msk.bf16.gmra.mrb[196].mxu0 %vm1167_vm2, %v3165_v38 }
 0x3a3   : > { %3324 = vmatprep.mubr.bf16.mxu0 %v10687_v11  ;;  %v7408_v19 = vpop.f32.mrb[20].mxu1 }
 0x3a4   : > { %11097 = vst [vmem:[#allocation44_spill] sm:$0xff] %v7408_v19  ;;  %v7410_v40 = vpop.f32.mrb[21].mxu1  ;;  %v3178_v28 = vpop.trf.xlu0 }
 0x3a5   : > { %11098 = vst [vmem:[#allocation45_spill] sm:$0xff] %v7410_v40  ;;  %v7412_v35 = vpop.f32.mrb[22].mxu1  ;;  %v1451_v61 = vmax.f32 %v7408_v19, %v7410_v40 }
 0x3a6   : > { %11099 = vst [vmem:[#allocation46_spill] sm:$0xff] %v7412_v35  ;;  %v7416_v23 = vpop.f32.mrb[23].mxu1 }
 0x3a7   : > { %11100 = vst [vmem:[#allocation47_spill] sm:$0xff] %v7416_v23 }
 0x3a9   : > { %v7420_v46 = vpop.f32.mrb[112].mxu0 }
 0x3aa   : > { %11101 = vst [vmem:[#allocation48_spill] sm:$0xff] %v7420_v46  ;;  %5650 = vmatmul.mubr.msk.bf16.gmra.mrb[200].mxu0 %vm1167_vm2, %v3166_v60  ;;  %v7423_v38 = vpop.f32.mrb[113].mxu0 }
 0x3ab   : > { %11102 = vst [vmem:[#allocation49_spill] sm:$0xff] %v7423_v38  ;;  %v2417_v11 = vmax.f32 %v7420_v46, %v7423_v38  ;;  %3334 = vmatprep.mubr.bf16.mxu0 %v11103_v29  ;;  %v7428_v58 = vpop.f32.mrb[114].mxu0 }
 0x3ac   : > { %v7430_v2 = vpop.f32.mrb[115].mxu0 }
 0x3ad   : > { %11104 = vst [vmem:[#allocation50_spill] sm:$0xff] %v7430_v2 }
 0x3ae   : > { %1419 = vmax.xlane.f32.xlu0 %v11105_v63  ;;  %v11109_v63 = vmax.f32 %v7318_v20, %v7324_v9 }
 0x3b1   : > { %v7437_v60 = vpop.f32.mrb[116].mxu0 }
 0x3b2   : > { %11106 = vst [vmem:[#allocation51_spill] sm:$0xff] %v7437_v60  ;;  %1425 = vmax.xlane.f32.xlu0 %v11107_v49  ;;  %5651 = vmatmul.mubr.msk.bf16.gmra.mrb[204].mxu0 %vm1167_vm2, %v3167_v57  ;;  %v7443_v44 = vpop.f32.mrb[117].mxu0  ;;  %v11110_v57 = vmax.f32 %v7340_v39, %v7342_v12 }
 0x3b3   : > { %11108 = vst [vmem:[#allocation52_spill] sm:$0xff] %v7443_v44  ;;  %v2423_v38 = vmax.f32 %v7437_v60, %v7443_v44  ;;  %3344 = vmatprep.mubr.bf16.mxu0 %v11103_v29  ;;  %v7448_v55 = vpop.f32.mrb[118].mxu0  ;;  %v11112_v60 = vmax.f32 %v7314_v53, %v7316_v3 }
 0x3b4   : > { %1416 = vmax.xlane.f32.xlu1 %v11109_v63  ;;  %v7453_v46 = vpop.f32.mrb[119].mxu0  ;;  %v7469_v63 = vpop.trf.xlu0 }
 0x3b6   : > { %1428 = vmax.xlane.f32.xlu0 %v11110_v57  ;;  %v7460_v40 = vpop.f32.mrb[24].mxu1  ;;  %v11116_v57 = vmax.f32 %v7347_v54, %v7351_v31 }
 0x3b7   : > { %v7462_v44 = vpop.f32.mrb[25].mxu1 }
 0x3b8   : > { %11111 = vst [vmem:[#allocation53_spill] sm:$0xff] %v7462_v44  ;;  %1422 = vmax.xlane.f32.xlu1 %v11112_v60  ;;  %v7467_v19 = vpop.f32.mrb[26].mxu1 }
 0x3b9   : > { %11113 = vst [vmem:[#allocation54_spill] sm:$0xff] %v7467_v19  ;;  %v7473_v49 = vpop.f32.mrb[27].mxu1  ;;  %v7475_v56 = vpop.f32.mrb[120].mxu0 }
 0x3ba   : > { %11114 = vst [vmem:[#allocation55_spill] sm:$0xff] %v7473_v49  ;;  %11115 = vst [vmem:[#allocation56_spill] sm:$0xff] %v7475_v56  ;;  %1431 = vmax.xlane.f32.xlu0 %v11116_v57  ;;  %v1460_v12 = vmax.f32 %v7467_v19, %v7473_v49  ;;  %5652 = vmatmul.mubr.msk.bf16.gmra.mrb[208].mxu0 %vm1167_vm2, %v3176_v47  ;;  %v7483_v60 = vpop.f32.mrb[121].mxu0  ;;  %v11120_v49 = vmax.f32 %v7360_v16, %v7365_v25  ;;  %v7499_v19 = vpop.trf.xlu0 }
 0x3bb   : > { %11117 = vst [vmem:[#allocation57_spill] sm:$0xff] %v7483_v60  ;;  %3354 = vmatprep.mubr.bf16.mxu0 %v11103_v29  ;;  %v7488_v3 = vpop.f32.mrb[122].mxu0  ;;  %v11125_v57 = vmax.f32 %v7370_v62, %v7374_v37 }
 0x3bc   : > { %11118 = vst [vmem:[#allocation58_spill] sm:$0xff] %v7488_v3  ;;  %1446 = vmax.xlane.f32.xlu1 %v1445_v43  ;;  %v7490_v53 = vpop.f32.mrb[123].mxu0 }
 0x3bd   : > { %11119 = vst [vmem:[#allocation59_spill] sm:$0xff] %v7490_v53 }
 0x3be   : > { %1434 = vmax.xlane.f32.xlu0 %v11120_v49  ;;  %v7497_v47 = vpop.f32.mrb[28].mxu1 }
 0x3bf   : > { %11121 = vst [vmem:[#allocation60_spill] sm:$0xff] %v7497_v47  ;;  %v7501_v31 = vpop.f32.mrb[29].mxu1 }
 0x3c0   : > { %11122 = vst [vmem:[#allocation61_spill] sm:$0xff] %v7501_v31  ;;  %1452 = vmax.xlane.f32.xlu1 %v1451_v61  ;;  %v7503_v27 = vpop.f32.mrb[30].mxu1  ;;  %v1463_v43 = vmax.f32 %v7497_v47, %v7501_v31  ;;  %v7524_v47 = vpop.trf.xlu0 }
 0x3c1   : > { %11123 = vst [vmem:[#allocation62_spill] sm:$0xff] %v7503_v27  ;;  %v7507_v54 = vpop.f32.mrb[31].mxu1  ;;  %v7509_v39 = vpop.f32.mrb[124].mxu0 }
 0x3c2   : > { %11124 = vst [vmem:[#allocation63_spill] sm:$0xff] %v7507_v54  ;;  %1437 = vmax.xlane.f32.xlu0 %v11125_v57  ;;  %5653 = vmatmul.mubr.msk.bf16.gmra.mrb[212].mxu0 %vm1167_vm2, %v3177_v52  ;;  %v1466_v49 = vmax.f32 %v7503_v27, %v7507_v54  ;;  %v7517_v25 = vpop.f32.mrb[125].mxu0  ;;  %v11126_v57 = vmax.f32 %v7380_v30, %v7382_v0 }
 0x3c3   : > { %3364 = vmatprep.mubr.bf16.mxu0 %v11103_v29  ;;  %v7522_v31 = vpop.f32.mrb[126].mxu0  ;;  %v11131_v52 = vmax.f32 %v7384_v34, %v7388_v42 }
 0x3c4   : > { %2418 = vmax.xlane.f32.xlu1 %v2417_v11  ;;  %v7526_v16 = vpop.f32.mrb[127].mxu0 }
 0x3c6   : > { %1440 = vmax.xlane.f32.xlu0 %v11126_v57  ;;  %v7533_v54 = vpop.f32.mrb[32].mxu1  ;;  %v7549_v57 = vpop.trf.xlu0 }
 0x3c7   : > { %11127 = vst [vmem:[#allocation64_spill] sm:$0xff] %v7533_v54  ;;  %v7535_v27 = vpop.f32.mrb[33].mxu1 }
 0x3c8   : > { %11128 = vst [vmem:[#allocation65_spill] sm:$0xff] %v7535_v27  ;;  %1461 = vmax.xlane.f32.xlu1 %v1460_v12  ;;  %v7537_v61 = vpop.f32.mrb[34].mxu1  ;;  %v1469_v11 = vmax.f32 %v7533_v54, %v7535_v27 }
 0x3c9   : > { %11129 = vst [vmem:[#allocation66_spill] sm:$0xff] %v7537_v61  ;;  %v7541_v37 = vpop.f32.mrb[35].mxu1  ;;  %v7543_v62 = vpop.f32.mrb[128].mxu0 }
 0x3ca   : > { %11130 = vst [vmem:[#allocation67_spill] sm:$0xff] %v7541_v37  ;;  %1443 = vmax.xlane.f32.xlu0 %v11131_v52  ;;  %5654 = vmatmul.mubr.msk.bf16.gmra.mrb[216].mxu0 %vm1167_vm2, %v3178_v28  ;;  %v1472_v12 = vmax.f32 %v7537_v61, %v7541_v37  ;;  %v7553_v0 = vpop.f32.mrb[129].mxu0  ;;  %v11132_v52 = vmax.f32 %v7398_v48, %v7402_v15  ;;  %v7571_v42 = vpop.trf.xlu0 }
 0x3cb   : > { %3374 = vmatprep.mubr.bf16.mxu0 %v11103_v29  ;;  %v7558_v54 = vpop.f32.mrb[130].mxu0  ;;  %v11137_v28 = vmax.f32 %v7412_v35, %v7416_v23 }
 0x3cc   : > { %2424 = vmax.xlane.f32.xlu1 %v2423_v38  ;;  %v7560_v30 = vpop.f32.mrb[131].mxu0 }
 0x3ce   : > { %1449 = vmax.xlane.f32.xlu0 %v11132_v52  ;;  %v7567_v37 = vpop.f32.mrb[36].mxu1 }
 0x3cf   : > { %11133 = vst [vmem:[#allocation68_spill] sm:$0xff] %v7567_v37  ;;  %v7569_v61 = vpop.f32.mrb[37].mxu1 }
 0x3d0   : > { %11134 = vst [vmem:[#allocation69_spill] sm:$0xff] %v7569_v61  ;;  %1464 = vmax.xlane.f32.xlu1 %v1463_v43  ;;  %v7573_v27 = vpop.f32.mrb[38].mxu1  ;;  %v1475_v38 = vmax.f32 %v7567_v37, %v7569_v61  ;;  %v11142_v61 = vmax.f32 %v7475_v56, %v7483_v60 }
 0x3d1   : > { %11135 = vst [vmem:[#allocation70_spill] sm:$0xff] %v7573_v27  ;;  %v7577_v34 = vpop.f32.mrb[39].mxu1  ;;  %v7579_v9 = vpop.f32.mrb[132].mxu0 }
 0x3d2   : > { %11136 = vst [vmem:[#allocation71_spill] sm:$0xff] %v7577_v34  ;;  %1455 = vmax.xlane.f32.xlu0 %v11137_v28  ;;  %5655 = vmatmul.mubr.msk.bf16.gmra.mrb[220].mxu0 %vm1167_vm2, %v7469_v63  ;;  %v1478_v43 = vmax.f32 %v7573_v27, %v7577_v34  ;;  %v7588_v52 = vpop.f32.mrb[133].mxu0  ;;  %v11139_v63 = vmax.f32 %v7460_v40, %v7462_v44  ;;  %v7602_v34 = vpop.trf.xlu0 }
 0x3d3   : > { %3384 = vmatprep.mubr.bf16.mxu0 %v11103_v29  ;;  %v7593_v37 = vpop.f32.mrb[134].mxu0 }
 0x3d4   : > { %1467 = vmax.xlane.f32.xlu1 %v1466_v49  ;;  %v7595_v15 = vpop.f32.mrb[135].mxu0 }
 0x3d5   : > { %11138 = vst [vmem:[#allocation72_spill] sm:$0xff] %v7595_v15 }
 0x3d6   : > { %1458 = vmax.xlane.f32.xlu0 %v11139_v63  ;;  %v7604_v27 = vpop.f32.mrb[40].mxu1  ;;  %v11146_v63 = vmax.f32 %v7428_v58, %v7430_v2  ;;  %v4169_v60 = vpop.trf.xlu0 }
 0x3d7   : > { %11140 = vst [vmem:[#allocation73_spill] sm:$0xff] %v7604_v27  ;;  %v7606_v23 = vpop.f32.mrb[41].mxu1 }
 0x3d8   : > { %11141 = vst [vmem:[#allocation74_spill] sm:$0xff] %v7606_v23  ;;  %2430 = vmax.xlane.f32.xlu1 %v11142_v61  ;;  %v7611_v49 = vpop.f32.mrb[42].mxu1  ;;  %v1481_v35 = vmax.f32 %v7604_v27, %v7606_v23 }
 0x3d9   : > { %11143 = vst [vmem:[#allocation75_spill] sm:$0xff] %v7611_v49  ;;  %v7615_v28 = vpop.f32.mrb[43].mxu1  ;;  %v7617_v48 = vpop.f32.mrb[136].mxu0 }
 0x3da   : > { %11144 = vst [vmem:[#allocation76_spill] sm:$0xff] %v7615_v28  ;;  %11145 = vst [vmem:[#allocation77_spill] sm:$0xff] %v7617_v48  ;;  %2421 = vmax.xlane.f32.xlu0 %v11146_v63  ;;  %5656 = vmatmul.mubr.msk.bf16.gmra.mrb[224].mxu0 %vm1167_vm2, %v7499_v19  ;;  %v7624_v44 = vpop.f32.mrb[137].mxu0  ;;  %v1484_v61 = vmax.f32 %v7611_v49, %v7615_v28  ;;  %v11150_v19 = vmax.f32 %v7448_v55, %v7453_v46 }
 0x3db   : > { %11147 = vst [vmem:[#allocation78_spill] sm:$0xff] %v7624_v44  ;;  %3394 = vmatprep.mubr.bf16.mxu0 %v11103_v29  ;;  %v2453_v23 = vmax.f32 %v7617_v48, %v7624_v44  ;;  %v7631_v27 = vpop.f32.mrb[138].mxu0 }
 0x3dc   : > { %11148 = vst [vmem:[#allocation79_spill] sm:$0xff] %v7631_v27  ;;  %1470 = vmax.xlane.f32.xlu1 %v1469_v11  ;;  %v7633_v56 = vpop.f32.mrb[139].mxu0 }
 0x3dd   : > { %11149 = vst [vmem:[#allocation80_spill] sm:$0xff] %v7633_v56  ;;  %v2456_v63 = vmax.f32 %v7631_v27, %v7633_v56  ;;  %v11156_v56 = vmax.f32 %v7488_v3, %v7490_v53  ;;  %v7655_v27 = vpop.trf.xlu0 }
 0x3de   : > { %2427 = vmax.xlane.f32.xlu0 %v11150_v19  ;;  %v7640_v2 = vpop.f32.mrb[44].mxu1 }
 0x3df   : > { %11151 = vst [vmem:[#allocation81_spill] sm:$0xff] %v7640_v2  ;;  %v7642_v28 = vpop.f32.mrb[45].mxu1 }
 0x3e0   : > { %11152 = vst [vmem:[#allocation82_spill] sm:$0xff] %v7642_v28  ;;  %1473 = vmax.xlane.f32.xlu1 %v1472_v12  ;;  %v7644_v49 = vpop.f32.mrb[46].mxu1  ;;  %v1487_v11 = vmax.f32 %v7640_v2, %v7642_v28 }
 0x3e1   : > { %11153 = vst [vmem:[#allocation83_spill] sm:$0xff] %v7644_v49  ;;  %v7648_v44 = vpop.f32.mrb[47].mxu1  ;;  %v7650_v48 = vpop.f32.mrb[140].mxu0 }
 0x3e2   : > { %11154 = vst [vmem:[#allocation84_spill] sm:$0xff] %v7648_v44  ;;  %11155 = vst [vmem:[#allocation85_spill] sm:$0xff] %v7650_v48  ;;  %2433 = vmax.xlane.f32.xlu0 %v11156_v56  ;;  %5657 = vmatmul.mubr.msk.bf16.gmra.mrb[228].mxu0 %vm1167_vm2, %v7524_v47  ;;  %v1490_v12 = vmax.f32 %v7644_v49, %v7648_v44  ;;  %v7661_v19 = vpop.f32.mrb[141].mxu0  ;;  %v11160_v47 = vmax.f32 %v7509_v39, %v7517_v25  ;;  %v7679_v3 = vpop.trf.xlu0 }
 0x3e3   : > { %11157 = vst [vmem:[#allocation86_spill] sm:$0xff] %v7661_v19  ;;  %3404 = vmatprep.mubr.bf16.mxu0 %v11103_v29  ;;  %v2459_v28 = vmax.f32 %v7650_v48, %v7661_v19  ;;  %v7666_v2 = vpop.f32.mrb[142].mxu0 }
 0x3e4   : > { %11158 = vst [vmem:[#allocation87_spill] sm:$0xff] %v7666_v2  ;;  %1476 = vmax.xlane.f32.xlu1 %v1475_v38  ;;  %v7668_v53 = vpop.f32.mrb[143].mxu0 }
 0x3e5   : > { %11159 = vst [vmem:[#allocation88_spill] sm:$0xff] %v7668_v53  ;;  %v2462_v56 = vmax.f32 %v7666_v2, %v7668_v53  ;;  %v11165_v53 = vmax.f32 %v7522_v31, %v7526_v16 }
 0x3e6   : > { %2436 = vmax.xlane.f32.xlu0 %v11160_v47  ;;  %v7675_v44 = vpop.f32.mrb[48].mxu1  ;;  %v7698_v2 = vpop.trf.xlu0 }
 0x3e7   : > { %11161 = vst [vmem:[#allocation89_spill] sm:$0xff] %v7675_v44  ;;  %v7677_v49 = vpop.f32.mrb[49].mxu1 }
 0x3e8   : > { %11162 = vst [vmem:[#allocation90_spill] sm:$0xff] %v7677_v49  ;;  %1479 = vmax.xlane.f32.xlu1 %v1478_v43  ;;  %v7681_v19 = vpop.f32.mrb[50].mxu1  ;;  %v1493_v38 = vmax.f32 %v7675_v44, %v7677_v49  ;;  %v11166_v43 = vmax.f32 %v7543_v62, %v7553_v0 }
 0x3e9   : > { %11163 = vst [vmem:[#allocation91_spill] sm:$0xff] %v7681_v19  ;;  %v7685_v48 = vpop.f32.mrb[51].mxu1 }
 0x3ea   : > { %11164 = vst [vmem:[#allocation92_spill] sm:$0xff] %v7685_v48  ;;  %2439 = vmax.xlane.f32.xlu0 %v11165_v53  ;;  %5658 = vmatmul.mubr.msk.bf16.gmra.mrb[232].mxu0 %vm1167_vm2, %v7549_v57  ;;  %v1496_v47 = vmax.f32 %v7681_v19, %v7685_v48  ;;  %v11231_v19 = vld [vmem:[#allocation49_spill] sm:$0xff] }
 0x3eb   : > { %3414 = vmatprep.mubr.bf16.mxu0 %v11103_v29 }
 0x3ec   : > { %1482 = vmax.xlane.f32.xlu1 %v1481_v35  ;;  %v11171_v35 = vmax.f32 %v7558_v54, %v7560_v30 }
 0x3ee   : > { %2442 = vmax.xlane.f32.xlu0 %v11166_v43  ;;  %v7700_v49 = vpop.f32.mrb[52].mxu1 }
 0x3ef   : > { %11167 = vst [vmem:[#allocation93_spill] sm:$0xff] %v7700_v49  ;;  %v7702_v44 = vpop.f32.mrb[53].mxu1 }
 0x3f0   : > { %11168 = vst [vmem:[#allocation94_spill] sm:$0xff] %v7702_v44  ;;  %1488 = vmax.xlane.f32.xlu1 %v1487_v11  ;;  %v7704_v53 = vpop.f32.mrb[54].mxu1  ;;  %v1499_v57 = vmax.f32 %v7700_v49, %v7702_v44  ;;  %v7718_v11 = vpop.trf.xlu0  ;;  %v11172_v44 = vmax.f32 %v7579_v9, %v7588_v52 }
 0x3f1   : > { %11169 = vst [vmem:[#allocation95_spill] sm:$0xff] %v7704_v53  ;;  %v7708_v48 = vpop.f32.mrb[55].mxu1 }
 0x3f2   : > { %11170 = vst [vmem:[#allocation96_spill] sm:$0xff] %v7708_v48  ;;  %2445 = vmax.xlane.f32.xlu0 %v11171_v35  ;;  %5659 = vmatmul.mubr.msk.bf16.gmra.mrb[236].mxu0 %vm1167_vm2, %v7571_v42  ;;  %v1502_v43 = vmax.f32 %v7704_v53, %v7708_v48  ;;  %v11173_v42 = vmax.f32 %v7593_v37, %v7595_v15 }
 0x3f3   : > { %4272 = vmatprep.mubr.bf16.mxu0 %v11103_v29 }
 0x3f4   : > { %1491 = vmax.xlane.f32.xlu1 %v1490_v12  ;;  %v7723_v49 = vpop.trf.xlu0 }
 0x3f6   : > { %1485 = vmax.xlane.f32.xlu0 %v1484_v61 }
 0x3f8   : > { %2454 = vmax.xlane.f32.xlu1 %v2453_v23  ;;  %v7731_v12 = vpop.trf.xlu0 }
 0x3fa   : > { %2448 = vmax.xlane.f32.xlu0 %v11172_v44  ;;  %5660 = vmatmul.mubr.msk.bf16.vlgmr.msra.gmra.mrb[240].mxu0 %vm1167_vm2, %v7602_v34 }
 0x3fb   : > { %4282 = vmatprep.mubr.bf16.mxu0 %v11103_v29 }
 0x3fc   : > { %1494 = vmax.xlane.f32.xlu1 %v1493_v38 }
 0x3fe   : > { %2451 = vmax.xlane.f32.xlu0 %v11173_v42 }
 0x400   : > { %1497 = vmax.xlane.f32.xlu1 %v1496_v47 }
 0x402   : > { %2457 = vmax.xlane.f32.xlu0 %v2456_v63  ;;  %5661 = vmatmul.mubr.msk.bf16.gmra.mrb[244].mxu0 %vm1167_vm2, %v4169_v60 }
 0x403   : > { %4292 = vmatprep.mubr.bf16.mxu0 %v11103_v29 }
 0x404   : > { %v1411_v44 = vpop.xlane.xlu1 %1410  ;;  %2460 = vmax.xlane.f32.xlu1 %v2459_v28 }
 0x405   : > { %v1505_v23 = vsub.f32 %v7299_v10, %v1411_v44  ;;  %v1506_v34 = vsub.f32 %v7302_v22, %v1411_v44 }
 0x406   : > { %2463 = vmax.xlane.f32.xlu0 %v2462_v56  ;;  %v1414_v61 = vpop.xlane.xlu0 %1413 }
 0x407   : > { %v1569_v38 = vmul.f32 1.442695, %v1505_v23  ;;  %v1571_v35 = vmul.f32 1.442695, %v1506_v34  ;;  %v1507_v42 = vsub.f32 %v7304_v33, %v1414_v61  ;;  %v1508_v47 = vsub.f32 %v7308_v13, %v1414_v61 }
 0x408   : > { %v470_v48 = vpop.permute.xlu1 %469  ;;  %1500 = vmax.xlane.f32.xlu1 %v1499_v57  ;;  %v973_v57 = vadd.f32 %v7048_v41, %v7282_v14 }
 0x409   : > { %5783 = vpow2.f32 %v1569_v38  ;;  %v1573_v60 = vmul.f32 1.442695, %v1507_v42  ;;  %v1575_v63 = vmul.f32 1.442695, %v1508_v47  ;;  %v977_v22 = vadd.f32 %v7052_v5, %v470_v48 }
 0x40a   : > { %5785 = vpow2.f32 %v1571_v35  ;;  %5662 = vmatmul.mubr.msk.bf16.gmra.mrb[248].mxu0 %vm1167_vm2, %v7655_v27  ;;  %v979_v33 = vadd.f32 %v7054_v8, %v470_v48  ;;  %v975_v27 = vadd.f32 %v7050_v4, %v7282_v14 }
 0x40b   : > { %5787 = vpow2.f32 %v1573_v60  ;;  %4302 = vmatprep.mubr.bf16.mxu0 %v11103_v29 }
 0x40c   : > { %5789 = vpow2.f32 %v1575_v63  ;;  %v475_v10 = vpop.permute.xlu1 %474  ;;  %1503 = vmax.xlane.f32.xlu1 %v1502_v43 }
 0x40d   : > { %v983_v13 = vadd.f32 %v7056_v24, %v475_v10  ;;  %v985_v28 = vadd.f32 %v7058_v26, %v475_v10  ;;  %v7746_v56 = vpop.f32.mrb[144].mxu0  ;;  %v11198_v26 = vpack.c.bf16 %v7193_v7, %v7195_v17 }
 0x40e   : > { %11174 = vst [vmem:[#allocation97_spill] sm:$0xff] %v7746_v56  ;;  %v460_v44 = vpop.permute.xlu0 %459  ;;  %v7752_v23 = vpop.f32.mrb[145].mxu0 }
 0x40f   : > { %11175 = vst [vmem:[#allocation98_spill] sm:$0xff] %v7752_v23  ;;  %v2140_v43 = vpack.c.bf16 %v983_v13, %v977_v22  ;;  %v967_v5 = vadd.f32 %v7044_v21, %v460_v44  ;;  %v969_v8 = vadd.f32 %v7046_v36, %v460_v44  ;;  %v2141_v48 = vpack.c.bf16 %v985_v28, %v979_v33  ;;  %v7756_v24 = vpop.f32.mrb[146].mxu0  ;;  %v335_v28 = vld [vmem:[%s10683_s2 + $0x118] sm:$0xff] }
 0x410   : > { %11176 = vst [vmem:[#allocation99_spill] sm:$0xff] %v7756_v24  ;;  %v7760_v34 = vpop.f32.mrb[147].mxu0  ;;  %v480_v13 = vpop.permute.xlu1 %479 }
 0x411   : > { %11177 = vst [vmem:[#allocation100_spill] sm:$0xff] %v7760_v34  ;;  %v2138_v41 = vpack.c.bf16 %v973_v57, %v967_v5  ;;  %v2139_v61 = vpack.c.bf16 %v975_v27, %v969_v8  ;;  %v2468_v4 = vmax.f32 %v7756_v24, %v7760_v34  ;;  %v989_v27 = vadd.f32 %v7062_v51, %v480_v13  ;;  %v11217_v24 = vld [vmem:[#allocation41_spill] sm:$0xff] }
 0x412   : > { %5663 = vmatmul.mubr.msk.bf16.gmra.mrb[252].mxu0 %vm1167_vm2, %v7679_v3  ;;  %v334_v3 = vld [vmem:[%s10683_s2 + $0x110] sm:$0xff]  ;;  %v987_v51 = vadd.f32 %v7060_v50, %v480_v13 }
 0x413   : > { %v5784_v14 = vpop.eup %5783  ;;  %2737 = vmatprep.subr.bf16.mxu1 %v2139_v61  ;;  %4312 = vmatprep.mubr.bf16.mxu0 %v11103_v29  ;;  %v2143_v61 = vpack.c.bf16 %v989_v27, %v989_v27 }
 0x414   : > { %v5786_v21 = vpop.eup %5785 }
 0x415   : > { %v5788_v36 = vpop.eup %5787  ;;  %v7767_v38 = vpop.f32.mrb[148].mxu0 }
 0x416   : > { %11178 = vst [vmem:[#allocation101_spill] sm:$0xff] %v7767_v38  ;;  %v5790_v35 = vpop.eup %5789  ;;  %v1697_v42 = vpack.c.bf16 %v5788_v36, %v5784_v14  ;;  %v7769_v47 = vpop.f32.mrb[149].mxu0  ;;  %v11199_v36 = vpack.c.bf16 %v7268_v59, %v7264_v45 }
 0x417   : > { %11179 = vst [vmem:[#allocation102_spill] sm:$0xff] %v7769_v47  ;;  %v1698_v60 = vpack.c.bf16 %v5790_v35, %v5786_v21  ;;  %v7773_v10 = vpop.f32.mrb[150].mxu0 }
 0x418   : > { %11180 = vst [vmem:[#allocation103_spill] sm:$0xff] %v7773_v10  ;;  %v7775_v22 = vpop.f32.mrb[151].mxu0 }
 0x419   : > { %11181 = vst [vmem:[#allocation104_spill] sm:$0xff] %v7775_v22  ;;  %1761 = vmatprep.mubr.bf16.mxu1 %v1698_v60  ;;  %v2142_v60 = vpack.c.bf16 %v987_v51, %v987_v51 }
 0x41a   : > { %1762 = vmatmul.mubr.bf16.vlgmr.msra.gmra.mrb[56].mxu1 %v1697_v42  ;;  %5664 = vmatmul.mubr.msk.bf16.gmra.mrb[0].mxu0 %vm1167_vm2, %v7698_v2 }
 0x41b   : > { %2738 = vmatpush1.bf16.xpose.msra.mxu1 %v2138_v41  ;;  %4322 = vmatprep.mubr.bf16.mxu0 %v11103_v29 }
 0x41c   : > { %2739 = vmatprep.subr.bf16.mxu1 %v2141_v48  ;;  %524 = vperm.xlu0 %5750, %v334_v3   ;;  %v338_v48 = vld [vmem:[%s10683_s2 + $0x130] sm:$0xff] }
 0x41d   : > { %v7788_v57 = vpop.f32.mrb[152].mxu0 }
 0x41e   : > { %11182 = vst [vmem:[#allocation105_spill] sm:$0xff] %v7788_v57  ;;  %v7791_v44 = vpop.f32.mrb[153].mxu0 }
 0x41f   : > { %11183 = vst [vmem:[#allocation106_spill] sm:$0xff] %v7791_v44  ;;  %v7795_v2 = vpop.f32.mrb[154].mxu0 }
 0x420   : > { %11184 = vst [vmem:[#allocation107_spill] sm:$0xff] %v7795_v2  ;;  %529 = vperm.xlu0 %5750, %v335_v28   ;;  %v7797_v8 = vpop.f32.mrb[155].mxu0 }
 0x421   : > { %11185 = vst [vmem:[#allocation108_spill] sm:$0xff] %v7797_v8 }
 0x422   : > { %5665 = vmatmul.mubr.msk.bf16.gmra.mrb[4].mxu0 %vm1167_vm2, %v7718_v11 }
 0x423   : > { %2740 = vmatpush1.bf16.xpose.msra.mxu1 %v2140_v43  ;;  %4332 = vmatprep.mubr.bf16.mxu0 %v11103_v29 }
 0x424   : > { %2741 = vmatprep.subr.bf16.mxu1 %v2143_v61  ;;  %544 = vperm.xlu0 %5750, %v338_v48  }
 0x425   : > { %v7808_v14 = vpop.f32.mrb[156].mxu0 }
 0x426   : > { %11186 = vst [vmem:[#allocation109_spill] sm:$0xff] %v7808_v14  ;;  %v7810_v21 = vpop.f32.mrb[157].mxu0 }
 0x427   : > { %11187 = vst [vmem:[#allocation110_spill] sm:$0xff] %v7810_v21  ;;  %v7814_v35 = vpop.f32.mrb[158].mxu0 }
 0x428   : > { %11188 = vst [vmem:[#allocation111_spill] sm:$0xff] %v7814_v35  ;;  %v7816_v42 = vpop.f32.mrb[159].mxu0 }
 0x429   : > { %11189 = vst [vmem:[#allocation112_spill] sm:$0xff] %v7816_v42 }
 0x42a   : > { %5666 = vmatmul.mubr.msk.bf16.gmra.mrb[8].mxu0 %vm1167_vm2, %v7723_v49 }
 0x42b   : > { %2742 = vmatpush1.bf16.xpose.msra.mxu1 %v2142_v60  ;;  %4342 = vmatprep.mubr.bf16.mxu0 %v11103_v29 }
 0x42d   : > { %v7823_v50 = vpop.f32.mrb[160].mxu0 }
 0x42e   : > { %11190 = vst [vmem:[#allocation113_spill] sm:$0xff] %v7823_v50  ;;  %v7825_v43 = vpop.f32.mrb[161].mxu0 }
 0x42f   : > { %11191 = vst [vmem:[#allocation114_spill] sm:$0xff] %v7825_v43  ;;  %v7829_v13 = vpop.f32.mrb[162].mxu0 }
 0x430   : > { %11192 = vst [vmem:[#allocation115_spill] sm:$0xff] %v7829_v13  ;;  %v7831_v28 = vpop.f32.mrb[163].mxu0 }
 0x431   : > { %11193 = vst [vmem:[#allocation116_spill] sm:$0xff] %v7831_v28 }
 0x432   : > { %5667 = vmatmul.mubr.msk.bf16.gmra.mrb[12].mxu0 %vm1167_vm2, %v7731_v12  ;;  %v11204_v12 = vld [vmem:[#allocation27_spill] sm:$0xff] }
 0x433   : > { %4352 = vmatprep.mubr.bf16.mxu0 %v11103_v29  ;;  %v11206_v29 = vld [vmem:[#allocation29_spill] sm:$0xff] }
 0x435   : > { %v7838_v49 = vpop.f32.mrb[164].mxu0 }
 0x436   : > { %11194 = vst [vmem:[#allocation117_spill] sm:$0xff] %v7838_v49  ;;  %v7840_v48 = vpop.f32.mrb[165].mxu0 }
 0x437   : > { %11195 = vst [vmem:[#allocation118_spill] sm:$0xff] %v7840_v48  ;;  %v7844_v51 = vpop.f32.mrb[166].mxu0 }
 0x438   : > { %11196 = vst [vmem:[#allocation119_spill] sm:$0xff] %v7844_v51  ;;  %v7846_v60 = vpop.f32.mrb[167].mxu0 }
 0x439   : > { %11197 = vst [vmem:[#allocation120_spill] sm:$0xff] %v7846_v60  ;;  %4176 = vxpose.xlu1.c.b16.start [1/2] (short) %v11198_v26, 128 }
 0x43b   : > { %v1420_v27 = vpop.xlane.xlu0 %1419 }
 0x43c   : > { %v1511_v3 = vsub.f32 %v7328_v6, %v1420_v27  ;;  %v1512_v11 = vsub.f32 %v7334_v32, %v1420_v27 }
 0x43d   : > { %4177 = vxpose.xlu1.c.b16.end [2/2] (short) %v11199_v36, 128  ;;  %v7858_v61 = vpop.f32.mrb[168].mxu0 }
 0x43e   : > { %11200 = vst [vmem:[#allocation121_spill] sm:$0xff] %v7858_v61  ;;  %v1581_v41 = vmul.f32 1.442695, %v1511_v3  ;;  %v7860_v5 = vpop.f32.mrb[169].mxu0  ;;  %v1583_v33 = vmul.f32 1.442695, %v1512_v11 }
 0x43f   : > { %11201 = vst [vmem:[#allocation122_spill] sm:$0xff] %v7860_v5  ;;  %v1426_v7 = vpop.xlane.xlu0 %1425  ;;  %v7864_v26 = vpop.f32.mrb[170].mxu0 }
 0x440   : > { %11202 = vst [vmem:[#allocation123_spill] sm:$0xff] %v7864_v26  ;;  %v1515_v6 = vsub.f32 %v7320_v18, %v1426_v7  ;;  %v1516_v32 = vsub.f32 %v7326_v1, %v1426_v7  ;;  %v7868_v27 = vpop.f32.mrb[171].mxu0  ;;  %5791 = vpow2.f32 %v1581_v41  ;;  %v11205_v41 = vld [vmem:[#allocation28_spill] sm:$0xff] }
 0x441   : > { %11203 = vst [vmem:[#allocation124_spill] sm:$0xff] %v7868_v27  ;;  %v1417_v45 = vpop.xlane.xlu1 %1416  ;;  %5793 = vpow2.f32 %v1583_v33 }
 0x442   : > { %v1589_v36 = vmul.f32 1.442695, %v1515_v6  ;;  %v1591_v3 = vmul.f32 1.442695, %v1516_v32  ;;  %v1509_v11 = vsub.f32 %v7318_v20, %v1417_v45  ;;  %v1510_v63 = vsub.f32 %v11204_v12, %v1417_v45  ;;  %v11208_v12 = vld [vmem:[#allocation25_spill] sm:$0xff]  ;;  %v11209_v45 = vld [vmem:[#allocation26_spill] sm:$0xff] }
 0x443   : > { %2469 = vmax.xlane.f32.xlu0 %v2468_v4  ;;  %v1429_v18 = vpop.xlane.xlu0 %1428 }
 0x444   : > { %5795 = vpow2.f32 %v1589_v36  ;;  %v1577_v1 = vmul.f32 1.442695, %v1509_v11  ;;  %v1579_v7 = vmul.f32 1.442695, %v1510_v63  ;;  %v1517_v17 = vsub.f32 %v11205_v41, %v1429_v18 }
 0x445   : > { %5797 = vpow2.f32 %v1591_v3  ;;  %v1518_v59 = vsub.f32 %v11206_v29, %v1429_v18  ;;  %v1423_v6 = vpop.xlane.xlu1 %1422  ;;  %v7879_v32 = vpop.f32.mrb[172].mxu0  ;;  %v11211_v63 = vmax.f32 %v7767_v38, %v7769_v47  ;;  %v11213_v18 = vld [vmem:[#allocation30_spill] sm:$0xff] }
 0x446   : > { %11207 = vst [vmem:[#allocation27_spill] sm:$0xff] %v7879_v32  ;;  %5799 = vpow2.f32 %v1577_v1  ;;  %v1593_v20 = vmul.f32 1.442695, %v1517_v17  ;;  %v1513_v33 = vsub.f32 %v11208_v12, %v1423_v6  ;;  %v1514_v53 = vsub.f32 %v11209_v45, %v1423_v6  ;;  %v7883_v34 = vpop.f32.mrb[173].mxu0 }
 0x447   : > { %11210 = vst [vmem:[#allocation28_spill] sm:$0xff] %v7883_v34  ;;  %5801 = vpow2.f32 %v1579_v7  ;;  %v1595_v4 = vmul.f32 1.442695, %v1518_v59  ;;  %2472 = vmax.xlane.f32.xlu0 %v11211_v63  ;;  %v1432_v36 = vpop.xlane.xlu0 %1431  ;;  %v7890_v3 = vpop.f32.mrb[174].mxu0  ;;  %v11215_v7 = vld [vmem:[#allocation31_spill] sm:$0xff]  ;;  %v11216_v63 = vld [vmem:[#allocation40_spill] sm:$0xff] }
 0x448   : > { %11212 = vst [vmem:[#allocation29_spill] sm:$0xff] %v7890_v3  ;;  %5803 = vpow2.f32 %v1593_v20  ;;  %v1585_v17 = vmul.f32 1.442695, %v1513_v33  ;;  %v1587_v11 = vmul.f32 1.442695, %v1514_v53  ;;  %v1519_v1 = vsub.f32 %v11213_v18, %v1432_v36  ;;  %v7893_v41 = vpop.f32.mrb[175].mxu0 }
 0x449   : > { %11214 = vst [vmem:[#allocation25_spill] sm:$0xff] %v7893_v41  ;;  %5805 = vpow2.f32 %v1595_v4  ;;  %v1520_v59 = vsub.f32 %v11215_v7, %v1432_v36  ;;  %v1447_v6 = vpop.xlane.xlu1 %1446  ;;  %v11218_v33 = vmax.f32 %v7773_v10, %v7775_v22  ;;  %v11219_v7 = vld [vmem:[#allocation32_spill] sm:$0xff] }
 0x44a   : > { %5807 = vpow2.f32 %v1585_v17  ;;  %v1597_v45 = vmul.f32 1.442695, %v1519_v1  ;;  %v1529_v29 = vsub.f32 %v11216_v63, %v1447_v6  ;;  %v1530_v47 = vsub.f32 %v11217_v24, %v1447_v6  ;;  %v7900_v20 = vpop.eup %5791  ;;  %v11220_v1 = vld [vmem:[#allocation33_spill] sm:$0xff] }
 0x44b   : > { %5809 = vpow2.f32 %v1587_v11  ;;  %v1599_v53 = vmul.f32 1.442695, %v1520_v59  ;;  %2475 = vmax.xlane.f32.xlu0 %v11218_v33  ;;  %v1435_v4 = vpop.xlane.xlu0 %1434  ;;  %v5794_v17 = vpop.eup %5793  ;;  %v11222_v59 = vld [vmem:[#allocation44_spill] sm:$0xff]  ;;  %v11223_v33 = vld [vmem:[#allocation45_spill] sm:$0xff] }
 0x44c   : > { %5811 = vpow2.f32 %v1597_v45  ;;  %v1617_v36 = vmul.f32 1.442695, %v1529_v29  ;;  %v1619_v18 = vmul.f32 1.442695, %v1530_v47  ;;  %v1521_v12 = vsub.f32 %v11219_v7, %v1435_v4 }
 0x44d   : > { %5813 = vpow2.f32 %v1599_v53  ;;  %v1522_v63 = vsub.f32 %v11220_v1, %v1435_v4  ;;  %v1453_v38 = vpop.xlane.xlu1 %1452  ;;  %v7907_v24 = vpop.f32.mrb[176].mxu0  ;;  %v11225_v53 = vmax.f32 %v7788_v57, %v7791_v44 }
 0x44e   : > { %11221 = vst [vmem:[#allocation26_spill] sm:$0xff] %v7907_v24  ;;  %v7909_v6 = vpop.eup %5795  ;;  %5815 = vpow2.f32 %v1617_v36  ;;  %v1601_v11 = vmul.f32 1.442695, %v1521_v12  ;;  %v1533_v22 = vsub.f32 %v11222_v59, %v1453_v38  ;;  %v1534_v10 = vsub.f32 %v11223_v33, %v1453_v38  ;;  %v7913_v45 = vpop.f32.mrb[177].mxu0  ;;  %v11227_v59 = vld [vmem:[#allocation34_spill] sm:$0xff] }
 0x44f   : > { %11224 = vst [vmem:[#allocation30_spill] sm:$0xff] %v7913_v45  ;;  %v7915_v47 = vpop.eup %5797  ;;  %5817 = vpow2.f32 %v1619_v18  ;;  %v1603_v29 = vmul.f32 1.442695, %v1522_v63  ;;  %2478 = vmax.xlane.f32.xlu0 %v11225_v53  ;;  %v1438_v4 = vpop.xlane.xlu0 %1437  ;;  %v11229_v63 = vld [vmem:[#allocation35_spill] sm:$0xff] }
 0x450   : > { %v7922_v36 = vpop.f32.mrb[178].mxu0  ;;  %v5800_v12 = vpop.eup %5799  ;;  %5819 = vpow2.f32 %v1601_v11  ;;  %v1625_v1 = vmul.f32 1.442695, %v1533_v22  ;;  %v1627_v38 = vmul.f32 1.442695, %v1534_v10  ;;  %v1523_v33 = vsub.f32 %v11227_v59, %v1438_v4  ;;  %v11230_v22 = vld [vmem:[#allocation48_spill] sm:$0xff] }
 0x451   : > { %11226 = vst [vmem:[#allocation31_spill] sm:$0xff] %v7922_v36  ;;  %v7925_v34 = vpop.f32.mrb[179].mxu0  ;;  %v5802_v18 = vpop.eup %5801  ;;  %5821 = vpow2.f32 %v1603_v29  ;;  %v1524_v32 = vsub.f32 %v11229_v63, %v1438_v4  ;;  %v1699_v53 = vpack.c.bf16 %v7900_v20, %v5800_v12  ;;  %v11232_v4 = vmax.f32 %v7795_v2, %v7797_v8 }
 0x452   : > { %11228 = vst [vmem:[#allocation40_spill] sm:$0xff] %v7925_v34  ;;  %v2419_v44 = vpop.xlane.xlu1 %2418  ;;  %v7931_v57 = vpop.eup %5803  ;;  %5823 = vpow2.f32 %v1625_v1  ;;  %v1605_v11 = vmul.f32 1.442695, %v1523_v33  ;;  %v1700_v20 = vpack.c.bf16 %v5794_v17, %v5802_v18  ;;  %v11233_v33 = vld [vmem:[#allocation36_spill] sm:$0xff] }
 0x453   : > { %v2513_v10 = vsub.f32 %v11230_v22, %v2419_v44  ;;  %v2514_v59 = vsub.f32 %v11231_v19, %v2419_v44  ;;  %v7935_v15 = vpop.eup %5805  ;;  %5825 = vpow2.f32 %v1627_v38  ;;  %v1607_v29 = vmul.f32 1.442695, %v1524_v32  ;;  %2481 = vmax.xlane.f32.xlu0 %v11232_v4  ;;  %v1441_v12 = vpop.xlane.xlu0 %1440  ;;  %v11234_v19 = vld [vmem:[#allocation37_spill] sm:$0xff] }
 0x454   : > { %v7940_v63 = vpop.eup %5807  ;;  %5827 = vpow2.f32 %v1605_v11  ;;  %v1525_v34 = vsub.f32 %v11233_v33, %v1441_v12  ;;  %1769 = vmatprep.mubr.bf16.mxu1 %v1700_v20  ;;  %v1526_v44 = vsub.f32 %v11234_v19, %v1441_v12  ;;  %v11236_v11 = vld [vmem:[#allocation54_spill] sm:$0xff] }
 0x455   : > { %v2577_v7 = vmul.f32 1.442695, %v2513_v10  ;;  %v2579_v1 = vmul.f32 1.442695, %v2514_v59  ;;  %v5810_v22 = vpop.eup %5809  ;;  %5829 = vpow2.f32 %v1607_v29  ;;  %v1701_v32 = vpack.c.bf16 %v7909_v6, %v7940_v63  ;;  %v7946_v8 = vpop.f32.mrb[180].mxu0  ;;  %1770 = vmatmul.mubr.bf16.gmra.mrb[60].mxu1 %v1699_v53  ;;  %v11237_v59 = vld [vmem:[#allocation55_spill] sm:$0xff] }
 0x456   : > { %v1462_v38 = vpop.xlane.xlu1 %1461  ;;  %11235 = vst [vmem:[#allocation41_spill] sm:$0xff] %v7946_v8  ;;  %v7948_v17 = vpop.eup %5811  ;;  %v1609_v18 = vmul.f32 1.442695, %v1525_v34  ;;  %v336_v29 = vld [vmem:[%s10683_s2 + $0x120] sm:$0xff]  ;;  %v1611_v6 = vmul.f32 1.442695, %v1526_v44  ;;  %v11239_v63 = vmax.f32 %v7808_v14, %v7810_v21  ;;  %v1702_v34 = vpack.c.bf16 %v7915_v47, %v5810_v22 }
 0x457   : > { %5831 = vpow2.f32 %v2577_v7  ;;  %v1539_v10 = vsub.f32 %v11236_v11, %v1462_v38  ;;  %v1540_v4 = vsub.f32 %v11237_v59, %v1462_v38  ;;  %v7955_v20 = vpop.f32.mrb[181].mxu0  ;;  %v5814_v12 = vpop.eup %5813  ;;  %v11241_v59 = vld [vmem:[#allocation38_spill] sm:$0xff]  ;;  %v11243_v47 = vld [vmem:[#allocation39_spill] sm:$0xff]  ;;  %v11245_v14 = vld [vmem:[#allocation52_spill] sm:$0xff] }
 0x458   : > { %11238 = vst [vmem:[#allocation32_spill] sm:$0xff] %v7955_v20  ;;  %5833 = vpow2.f32 %v2579_v1  ;;  %2484 = vmax.xlane.f32.xlu0 %v11239_v63  ;;  %v1444_v7 = vpop.xlane.xlu0 %1443  ;;  %v7963_v33 = vpop.f32.mrb[182].mxu0  ;;  %1777 = vmatprep.mubr.bf16.mxu1 %v1702_v34  ;;  %v1704_v53 = vpack.c.bf16 %v5814_v12, %v7935_v15  ;;  %v11246_v15 = vmax.f32 %v7814_v35, %v7816_v42  ;;  %v11250_v35 = vld [vmem:[#allocation60_spill] sm:$0xff] }
 0x459   : > { %11240 = vst [vmem:[#allocation33_spill] sm:$0xff] %v7963_v33  ;;  %v7965_v19 = vpop.eup %5815  ;;  %5835 = vpow2.f32 %v1609_v18  ;;  %v1637_v38 = vmul.f32 1.442695, %v1539_v10  ;;  %v1639_v11 = vmul.f32 1.442695, %v1540_v4  ;;  %v1527_v1 = vsub.f32 %v11241_v59, %v1444_v7  ;;  %v7968_v44 = vpop.f32.mrb[183].mxu0  ;;  %534 = vperm.xlu1 %5749, %v336_v29  }
 0x45a   : > { %11242 = vst [vmem:[#allocation44_spill] sm:$0xff] %v7968_v44  ;;  %v7970_v2 = vpop.eup %5817  ;;  %5837 = vpow2.f32 %v1611_v6  ;;  %v1528_v22 = vsub.f32 %v11243_v47, %v1444_v7  ;;  %v2425_v63 = vpop.xlane.xlu1 %2424  ;;  %v11244_v4 = vld [vmem:[#allocation51_spill] sm:$0xff]  ;;  %v337_v6 = vld [vmem:[%s10683_s2 + $0x128] sm:$0xff] }
 0x45b   : > { %v7976_v18 = vpop.eup %5819  ;;  %5839 = vpow2.f32 %v1637_v38  ;;  %v1613_v10 = vmul.f32 1.442695, %v1527_v1  ;;  %v2517_v59 = vsub.f32 %v11244_v4, %v2425_v63  ;;  %v2518_v36 = vsub.f32 %v11245_v14, %v2425_v63  ;;  %v11247_v47 = vld [vmem:[#allocation42_spill] sm:$0xff] }
 0x45c   : > { %v7983_v34 = vpop.eup %5821  ;;  %5841 = vpow2.f32 %v1639_v11  ;;  %v1615_v29 = vmul.f32 1.442695, %v1528_v22  ;;  %2487 = vmax.xlane.f32.xlu0 %v11246_v15  ;;  %v1450_v12 = vpop.xlane.xlu0 %1449  ;;  %v11248_v11 = vld [vmem:[#allocation43_spill] sm:$0xff] }
 0x45d   : > { %v7990_v38 = vpop.eup %5823  ;;  %5843 = vpow2.f32 %v1613_v10  ;;  %v2585_v14 = vmul.f32 1.442695, %v2517_v59  ;;  %v2587_v1 = vmul.f32 1.442695, %v2518_v36  ;;  %v1531_v63 = vsub.f32 %v11247_v47, %v1450_v12  ;;  %539 = vperm.xlu1 %5749, %v337_v6   ;;  %v7996_v42 = vpop.f32.mrb[184].mxu0  ;;  %1778 = vmatmul.mubr.bf16.gmra.mrb[64].mxu1 %v1701_v32  ;;  %v11251_v59 = vld [vmem:[#allocation61_spill] sm:$0xff] }
 0x45e   : > { %v7993_v4 = vpop.eup %5825  ;;  %5845 = vpow2.f32 %v1615_v29  ;;  %v1532_v22 = vsub.f32 %v11248_v11, %v1450_v12  ;;  %v1465_v21 = vpop.xlane.xlu1 %1464  ;;  %11249 = vst [vmem:[#allocation45_spill] sm:$0xff] %v7996_v42  ;;  %1785 = vmatprep.mubr.bf16.mxu1 %v1704_v53  ;;  %v11253_v6 = vmax.f32 %v7823_v50, %v7825_v43  ;;  %v11255_v11 = vld [vmem:[#allocation46_spill] sm:$0xff] }
 0x45f   : > { %v7998_v15 = vpop.eup %5827  ;;  %5847 = vpow2.f32 %v2585_v14  ;;  %v1621_v7 = vmul.f32 1.442695, %v1531_v63  ;;  %v1541_v10 = vsub.f32 %v11250_v35, %v1465_v21  ;;  %v1542_v36 = vsub.f32 %v11251_v59, %v1465_v21  ;;  %v8002_v44 = vpop.f32.mrb[185].mxu0 }
 0x460   : > { %11252 = vst [vmem:[#allocation34_spill] sm:$0xff] %v8002_v44  ;;  %v5830_v47 = vpop.eup %5829  ;;  %5849 = vpow2.f32 %v2587_v1  ;;  %v1623_v29 = vmul.f32 1.442695, %v1532_v22  ;;  %2490 = vmax.xlane.f32.xlu0 %v11253_v6  ;;  %v1456_v12 = vpop.xlane.xlu0 %1455  ;;  %v11257_v6 = vld [vmem:[#allocation47_spill] sm:$0xff] }
 0x461   : > { %v8011_v35 = vpop.f32.mrb[186].mxu0  ;;  %v8013_v21 = vpop.eup %5831  ;;  %5851 = vpow2.f32 %v1621_v7  ;;  %v1641_v63 = vmul.f32 1.442695, %v1541_v10  ;;  %v1643_v1 = vmul.f32 1.442695, %v1542_v36  ;;  %v1535_v53 = vsub.f32 %v11255_v11, %v1456_v12  ;;  %v11258_v10 = vld [vmem:[#allocation62_spill] sm:$0xff] }
 0x462   : > { %11254 = vst [vmem:[#allocation35_spill] sm:$0xff] %v8011_v35  ;;  %v8016_v22 = vpop.f32.mrb[187].mxu0  ;;  %v8018_v59 = vpop.eup %5833  ;;  %5853 = vpow2.f32 %v1623_v29  ;;  %v1536_v43 = vsub.f32 %v11257_v6, %v1456_v12  ;;  %v1706_v50 = vpack.c.bf16 %v5830_v47, %v7983_v34  ;;  %v11259_v11 = vld [vmem:[#allocation63_spill] sm:$0xff]  ;;  %v11260_v12 = vmax.f32 %v7829_v13, %v7831_v28 }
 0x463   : > { %11256 = vst [vmem:[#allocation48_spill] sm:$0xff] %v8016_v22  ;;  %v1468_v14 = vpop.xlane.xlu1 %1467  ;;  %v8024_v33 = vpop.eup %5835  ;;  %5855 = vpow2.f32 %v1641_v63  ;;  %v1629_v7 = vmul.f32 1.442695, %v1535_v53  ;;  %v11263_v28 = vpack.c.bf16 %v7948_v17, %v7931_v57 }
 0x464   : > { %v1543_v36 = vsub.f32 %v11258_v10, %v1468_v14  ;;  %v1544_v44 = vsub.f32 %v11259_v11, %v1468_v14  ;;  %v8028_v42 = vpop.eup %5837  ;;  %5857 = vpow2.f32 %v1643_v1  ;;  %v1631_v29 = vmul.f32 1.442695, %v1536_v43  ;;  %2493 = vmax.xlane.f32.xlu0 %v11260_v12  ;;  %v1459_v34 = vpop.xlane.xlu0 %1458  ;;  %v11261_v14 = vld [vmem:[#allocation53_spill] sm:$0xff] }
 0x465   : > { %v8033_v47 = vpop.eup %5839  ;;  %5859 = vpow2.f32 %v1629_v7  ;;  %v1537_v63 = vsub.f32 %v7460_v40, %v1459_v34  ;;  %v1538_v10 = vsub.f32 %v11261_v14, %v1459_v34  ;;  %v8039_v1 = vpop.f32.mrb[188].mxu0  ;;  %1786 = vmatmul.mubr.bf16.gmra.mrb[68].mxu1 %v11263_v28  ;;  %v11264_v7 = vld [vmem:[#allocation56_spill] sm:$0xff]  ;;  %v11267_v14 = vmax.f32 %v7838_v49, %v7840_v48 }
 0x466   : > { %v1645_v6 = vmul.f32 1.442695, %v1543_v36  ;;  %v1647_v32 = vmul.f32 1.442695, %v1544_v44  ;;  %v8036_v53 = vpop.eup %5841  ;;  %5861 = vpow2.f32 %v1631_v29  ;;  %11262 = vst [vmem:[#allocation49_spill] sm:$0xff] %v8039_v1  ;;  %v11265_v36 = vld [vmem:[#allocation57_spill] sm:$0xff]  ;;  %1793 = vmatprep.mubr.bf16.mxu1 %v1706_v50 }
 0x467   : > { %v2431_v11 = vpop.xlane.xlu1 %2430  ;;  %v8041_v43 = vpop.eup %5843  ;;  %v1633_v12 = vmul.f32 1.442695, %v1537_v63  ;;  %v1635_v34 = vmul.f32 1.442695, %v1538_v10 }
 0x468   : > { %5863 = vpow2.f32 %v1645_v6  ;;  %v2521_v44 = vsub.f32 %v11264_v7, %v2431_v11  ;;  %v2522_v40 = vsub.f32 %v11265_v36, %v2431_v11  ;;  %v8048_v13 = vpop.f32.mrb[189].mxu0  ;;  %v5846_v29 = vpop.eup %5845  ;;  %2496 = vmax.xlane.f32.xlu0 %v11267_v14  ;;  %v11270_v36 = vld [vmem:[#allocation50_spill] sm:$0xff] }
 0x469   : > { %11266 = vst [vmem:[#allocation36_spill] sm:$0xff] %v8048_v13  ;;  %5865 = vpow2.f32 %v1647_v32  ;;  %v2422_v6 = vpop.xlane.xlu0 %2421  ;;  %v8057_v28 = vpop.f32.mrb[190].mxu0  ;;  %v1708_v48 = vpack.c.bf16 %v5846_v29, %v8028_v42 }
 0x46a   : > { %11268 = vst [vmem:[#allocation37_spill] sm:$0xff] %v8057_v28  ;;  %v8059_v17 = vpop.eup %5847  ;;  %5867 = vpow2.f32 %v1633_v12  ;;  %v2593_v11 = vmul.f32 1.442695, %v2521_v44  ;;  %v2595_v32 = vmul.f32 1.442695, %v2522_v40  ;;  %v2515_v50 = vsub.f32 %v7428_v58, %v2422_v6  ;;  %v8062_v10 = vpop.f32.mrb[191].mxu0 }
 0x46b   : > { %11269 = vst [vmem:[#allocation54_spill] sm:$0xff] %v8062_v10  ;;  %v8064_v7 = vpop.eup %5849  ;;  %5869 = vpow2.f32 %v1635_v34  ;;  %v2516_v14 = vsub.f32 %v11270_v36, %v2422_v6  ;;  %v1471_v63 = vpop.xlane.xlu1 %1470  ;;  %v11271_v44 = vld [vmem:[#allocation64_spill] sm:$0xff]  ;;  %v11272_v58 = vld [vmem:[#allocation65_spill] sm:$0xff]  ;;  %v11273_v6 = vmax.f32 %v7844_v51, %v7846_v60 }
 0x46c   : > { %v8070_v49 = vpop.eup %5851  ;;  %5871 = vpow2.f32 %v2593_v11  ;;  %v2581_v12 = vmul.f32 1.442695, %v2515_v50  ;;  %v1545_v40 = vsub.f32 %v11271_v44, %v1471_v63  ;;  %v1546_v13 = vsub.f32 %v11272_v58, %v1471_v63 }
 0x46d   : > { %v8074_v1 = vpop.eup %5853  ;;  %5873 = vpow2.f32 %v2595_v32  ;;  %v2583_v34 = vmul.f32 1.442695, %v2516_v14  ;;  %2499 = vmax.xlane.f32.xlu0 %v11273_v6  ;;  %v2428_v42 = vpop.xlane.xlu0 %2427  ;;  %v11279_v58 = vmax.f32 %v7858_v61, %v7860_v5 }
 0x46e   : > { %v8081_v36 = vpop.eup %5855  ;;  %5875 = vpow2.f32 %v2581_v12  ;;  %v1649_v11 = vmul.f32 1.442695, %v1545_v40  ;;  %v1651_v50 = vmul.f32 1.442695, %v1546_v13  ;;  %v2519_v44 = vsub.f32 %v7448_v55, %v2428_v42  ;;  %v8089_v6 = vpop.f32.mrb[192].mxu0  ;;  %v11276_v55 = vld [vmem:[#allocation66_spill] sm:$0xff] }
 0x46f   : > { %v8084_v63 = vpop.eup %5857  ;;  %5877 = vpow2.f32 %v2583_v34  ;;  %v2520_v32 = vsub.f32 %v7453_v46, %v2428_v42  ;;  %v1474_v14 = vpop.xlane.xlu1 %1473  ;;  %11274 = vst [vmem:[#allocation55_spill] sm:$0xff] %v8089_v6  ;;  %v11275_v13 = vpack.c.bf16 %v7998_v15, %v7976_v18  ;;  %v11277_v40 = vld [vmem:[#allocation67_spill] sm:$0xff] }
 0x470   : > { %v8091_v57 = vpop.eup %5859  ;;  %5879 = vpow2.f32 %v1649_v11  ;;  %v2589_v29 = vmul.f32 1.442695, %v2519_v44  ;;  %v1547_v12 = vsub.f32 %v11276_v55, %v1474_v14  ;;  %v1548_v34 = vsub.f32 %v11277_v40, %v1474_v14  ;;  %v8098_v60 = vpop.f32.mrb[193].mxu0 }
 0x471   : > { %1794 = vmatmul.mubr.bf16.gmra.mrb[72].mxu1 %v11275_v13  ;;  %11278 = vst [vmem:[#allocation38_spill] sm:$0xff] %v8098_v60  ;;  %v8100_v46 = vpop.eup %5861  ;;  %5881 = vpow2.f32 %v1651_v50  ;;  %v2591_v42 = vmul.f32 1.442695, %v2520_v32  ;;  %2502 = vmax.xlane.f32.xlu0 %v11279_v58  ;;  %v2434_v11 = vpop.xlane.xlu0 %2433  ;;  %v11281_v32 = vld [vmem:[#allocation58_spill] sm:$0xff]  ;;  %v11283_v58 = vld [vmem:[#allocation59_spill] sm:$0xff] }
 0x472   : > { %1801 = vmatprep.mubr.bf16.mxu1 %v1708_v48  ;;  %v8109_v44 = vpop.f32.mrb[194].mxu0  ;;  %v8111_v14 = vpop.eup %5863  ;;  %5883 = vpow2.f32 %v2589_v29  ;;  %v1653_v13 = vmul.f32 1.442695, %v1547_v12  ;;  %v1655_v50 = vmul.f32 1.442695, %v1548_v34  ;;  %v2523_v48 = vsub.f32 %v11281_v32, %v2434_v11  ;;  %v11284_v12 = vld [vmem:[#allocation68_spill] sm:$0xff] }
 0x473   : > { %11280 = vst [vmem:[#allocation39_spill] sm:$0xff] %v8109_v44  ;;  %v8114_v55 = vpop.f32.mrb[195].mxu0  ;;  %v8116_v40 = vpop.eup %5865  ;;  %5885 = vpow2.f32 %v2591_v42  ;;  %v2524_v5 = vsub.f32 %v11283_v58, %v2434_v11  ;;  %v11285_v32 = vld [vmem:[#allocation69_spill] sm:$0xff]  ;;  %v11286_v11 = vmax.f32 %v7864_v26, %v7868_v27  ;;  %v11294_v26 = vpack.c.bf16 %v8074_v1, %v7970_v2 }
 0x474   : > { %11282 = vst [vmem:[#allocation51_spill] sm:$0xff] %v8114_v55  ;;  %v1477_v18 = vpop.xlane.xlu1 %1476  ;;  %v8123_v51 = vpop.eup %5867  ;;  %5887 = vpow2.f32 %v1653_v13  ;;  %v2597_v29 = vmul.f32 1.442695, %v2523_v48 }
 0x475   : > { %v1549_v34 = vsub.f32 %v11284_v12, %v1477_v18  ;;  %v1550_v60 = vsub.f32 %v11285_v32, %v1477_v18  ;;  %v8127_v6 = vpop.eup %5869  ;;  %5889 = vpow2.f32 %v1655_v50  ;;  %v2599_v42 = vmul.f32 1.442695, %v2524_v5  ;;  %2505 = vmax.xlane.f32.xlu0 %v11286_v11  ;;  %v2437_v58 = vpop.xlane.xlu0 %2436 }
 0x476   : > { %v8136_v48 = vpop.eup %5871  ;;  %5891 = vpow2.f32 %v2597_v29  ;;  %v2525_v32 = vsub.f32 %v7509_v39, %v2437_v58  ;;  %v2526_v5 = vsub.f32 %v7517_v25, %v2437_v58  ;;  %v8146_v13 = vpop.f32.mrb[196].mxu0  ;;  %v11290_v39 = vpack.c.bf16 %v8041_v43, %v8024_v33  ;;  %v11291_v29 = vld [vmem:[#allocation70_spill] sm:$0xff]  ;;  %v11292_v25 = vld [vmem:[#allocation71_spill] sm:$0xff] }
 0x477   : > { %11287 = vst [vmem:[#allocation52_spill] sm:$0xff] %v8136_v48  ;;  %v1657_v12 = vmul.f32 1.442695, %v1549_v34  ;;  %v1659_v18 = vmul.f32 1.442695, %v1550_v60  ;;  %v8139_v50 = vpop.eup %5873  ;;  %5893 = vpow2.f32 %v2599_v42  ;;  %11289 = vst [vmem:[#allocation43_spill] sm:$0xff] %v8146_v13  ;;  %v11307_v43 = vpack.c.bf16 %v8100_v46, %v7993_v4 }
 0x478   : > { %11288 = vst [vmem:[#allocation42_spill] sm:$0xff] %v8139_v50  ;;  %v1480_v11 = vpop.xlane.xlu1 %1479  ;;  %v8148_v27 = vpop.eup %5875  ;;  %v2601_v60 = vmul.f32 1.442695, %v2525_v32  ;;  %v2603_v61 = vmul.f32 1.442695, %v2526_v5 }
 0x479   : > { %5895 = vpow2.f32 %v1657_v12  ;;  %1802 = vmatmul.mubr.bf16.gmra.mrb[76].mxu1 %v11290_v39  ;;  %v1551_v34 = vsub.f32 %v11291_v29, %v1480_v11  ;;  %v1552_v42 = vsub.f32 %v11292_v25, %v1480_v11  ;;  %v8155_v58 = vpop.f32.mrb[197].mxu0  ;;  %v8157_v15 = vpop.eup %5877  ;;  %v11295_v12 = vmax.f32 %v7890_v3, %v7893_v41 }
 0x47a   : > { %11293 = vst [vmem:[#allocation60_spill] sm:$0xff] %v8155_v58  ;;  %5897 = vpow2.f32 %v1659_v18  ;;  %1809 = vmatprep.mubr.bf16.mxu1 %v11294_v26  ;;  %v2440_v33 = vpop.xlane.xlu0 %2439  ;;  %v8167_v32 = vpop.f32.mrb[198].mxu0 }
 0x47b   : > { %2511 = vmax.xlane.f32.xlu0 %v11295_v12  ;;  %11296 = vst [vmem:[#allocation61_spill] sm:$0xff] %v8167_v32  ;;  %v8171_v39 = vpop.eup %5879  ;;  %5899 = vpow2.f32 %v2601_v60  ;;  %v1661_v18 = vmul.f32 1.442695, %v1551_v34  ;;  %v1663_v5 = vmul.f32 1.442695, %v1552_v42  ;;  %v2527_v2 = vsub.f32 %v7522_v31, %v2440_v33  ;;  %v8174_v26 = vpop.f32.mrb[199].mxu0 }
 0x47c   : > { %11297 = vst [vmem:[#allocation46_spill] sm:$0xff] %v8174_v26  ;;  %v8176_v1 = vpop.eup %5881  ;;  %5901 = vpow2.f32 %v2603_v61  ;;  %v2528_v29 = vsub.f32 %v7526_v16, %v2440_v33  ;;  %v1483_v25 = vpop.xlane.xlu1 %1482  ;;  %v11298_v34 = vld [vmem:[#allocation73_spill] sm:$0xff]  ;;  %v11299_v42 = vld [vmem:[#allocation74_spill] sm:$0xff]  ;;  %v11300_v16 = vmax.f32 %v7907_v24, %v7913_v45 }
 0x47d   : > { %v8183_v11 = vpop.eup %5883  ;;  %5903 = vpow2.f32 %v1661_v18  ;;  %v2605_v60 = vmul.f32 1.442695, %v2527_v2  ;;  %v1553_v31 = vsub.f32 %v11298_v34, %v1483_v25  ;;  %v1554_v41 = vsub.f32 %v11299_v42, %v1483_v25 }
 0x47e   : > { %v8187_v3 = vpop.eup %5885  ;;  %5905 = vpow2.f32 %v1663_v5  ;;  %v2607_v61 = vmul.f32 1.442695, %v2528_v29  ;;  %v2443_v33 = vpop.xlane.xlu0 %2442 }
 0x47f   : > { %3426 = vmax.xlane.f32.xlu0 %v11300_v16  ;;  %v8194_v12 = vpop.eup %5887  ;;  %5907 = vpow2.f32 %v2605_v60  ;;  %v1665_v18 = vmul.f32 1.442695, %v1553_v31  ;;  %v1667_v2 = vmul.f32 1.442695, %v1554_v41  ;;  %v2529_v34 = vsub.f32 %v7543_v62, %v2443_v33  ;;  %v8202_v16 = vpop.f32.mrb[200].mxu0  ;;  %v11304_v60 = vld [vmem:[#allocation81_spill] sm:$0xff] }
 0x480   : > { %v8197_v25 = vpop.eup %5889  ;;  %5909 = vpow2.f32 %v2607_v61  ;;  %v2530_v5 = vsub.f32 %v7553_v0, %v2443_v33  ;;  %v1489_v29 = vpop.xlane.xlu1 %1488  ;;  %11301 = vst [vmem:[#allocation47_spill] sm:$0xff] %v8202_v16  ;;  %v11303_v62 = vpack.c.bf16 %v8070_v49, %v7965_v19  ;;  %v11305_v0 = vld [vmem:[#allocation82_spill] sm:$0xff] }
 0x481   : > { %v8206_v45 = vpop.eup %5891  ;;  %5911 = vpow2.f32 %v1665_v18  ;;  %v2609_v41 = vmul.f32 1.442695, %v2529_v34  ;;  %v1557_v31 = vsub.f32 %v11304_v60, %v1489_v29  ;;  %v1558_v61 = vsub.f32 %v11305_v0, %v1489_v29  ;;  %v8213_v33 = vpop.f32.mrb[201].mxu0 }
 0x482   : > { %11302 = vst [vmem:[#allocation62_spill] sm:$0xff] %v8206_v45  ;;  %1810 = vmatmul.mubr.bf16.gmra.mrb[80].mxu1 %v11303_v62  ;;  %11306 = vst [vmem:[#allocation63_spill] sm:$0xff] %v8213_v33  ;;  %v8215_v42 = vpop.eup %5893  ;;  %5913 = vpow2.f32 %v1667_v2  ;;  %v2611_v24 = vmul.f32 1.442695, %v2530_v5  ;;  %v11308_v18 = vmax.f32 %v7946_v8, %v7955_v20  ;;  %v2446_v49 = vpop.xlane.xlu0 %2445  ;;  %v11349_v45 = vld [vmem:[#allocation88_spill] sm:$0xff] }
 0x483   : > { %1817 = vmatprep.mubr.bf16.mxu1 %v11307_v43  ;;  %v8227_v29 = vpop.f32.mrb[202].mxu0  ;;  %v8229_v62 = vpop.eup %5895  ;;  %5915 = vpow2.f32 %v2609_v41  ;;  %v1673_v2 = vmul.f32 1.442695, %v1557_v31  ;;  %v1675_v5 = vmul.f32 1.442695, %v1558_v61  ;;  %v2531_v4 = vsub.f32 %v7558_v54, %v2446_v49  ;;  %v11313_v61 = vld [vmem:[#allocation83_spill] sm:$0xff] }
 0x484   : > { %3432 = vmax.xlane.f32.xlu0 %v11308_v18  ;;  %11309 = vst [vmem:[#allocation53_spill] sm:$0xff] %v8227_v29  ;;  %v8232_v46 = vpop.f32.mrb[203].mxu0  ;;  %v8234_v43 = vpop.eup %5897  ;;  %5917 = vpow2.f32 %v2611_v24  ;;  %v2532_v60 = vsub.f32 %v7560_v30, %v2446_v49  ;;  %v11311_v18 = vmax.f32 %v7746_v56, %v7752_v23  ;;  %v11314_v24 = vld [vmem:[#allocation84_spill] sm:$0xff]  ;;  %v11316_v56 = vld [vmem:[#allocation75_spill] sm:$0xff] }
 0x485   : > { %11310 = vst [vmem:[#allocation56_spill] sm:$0xff] %v8232_v46  ;;  %v1492_v0 = vpop.xlane.xlu1 %1491  ;;  %v8244_v31 = vpop.eup %5899  ;;  %5919 = vpow2.f32 %v1673_v2  ;;  %v2613_v54 = vmul.f32 1.442695, %v2531_v4 }
 0x486   : > { %2466 = vmax.xlane.f32.xlu1 %v11311_v18  ;;  %11312 = vst [vmem:[#allocation57_spill] sm:$0xff] %v8244_v31  ;;  %v1559_v19 = vsub.f32 %v11313_v61, %v1492_v0  ;;  %v1560_v20 = vsub.f32 %v11314_v24, %v1492_v0  ;;  %v8248_v30 = vpop.eup %5901  ;;  %5921 = vpow2.f32 %v1675_v5  ;;  %v2615_v49 = vmul.f32 1.442695, %v2532_v60  ;;  %v1486_v8 = vpop.xlane.xlu0 %1485  ;;  %v11317_v61 = vld [vmem:[#allocation76_spill] sm:$0xff] }
 0x487   : > { %11315 = vst [vmem:[#allocation50_spill] sm:$0xff] %v8248_v30  ;;  %v8252_v34 = vpop.eup %5903  ;;  %5923 = vpow2.f32 %v2613_v54  ;;  %v1555_v2 = vsub.f32 %v11316_v56, %v1486_v8  ;;  %v1556_v0 = vsub.f32 %v11317_v61, %v1486_v8  ;;  %v8260_v60 = vpop.f32.mrb[204].mxu0  ;;  %v11321_v56 = vld [vmem:[#allocation77_spill] sm:$0xff]  ;;  %v11322_v54 = vld [vmem:[#allocation78_spill] sm:$0xff]  ;;  %v11325_v5 = vpack.c.bf16 %v8036_v53, %v8127_v6 }
 0x488   : > { %v1677_v41 = vmul.f32 1.442695, %v1559_v19  ;;  %v1679_v23 = vmul.f32 1.442695, %v1560_v20  ;;  %v8255_v4 = vpop.eup %5905  ;;  %5925 = vpow2.f32 %v2615_v49  ;;  %11318 = vst [vmem:[#allocation64_spill] sm:$0xff] %v8260_v60  ;;  %v11320_v20 = vpack.c.bf16 %v8091_v57, %v7990_v38  ;;  %v8269_v48 = vpop.f32.mrb[205].mxu0 }
 0x489   : > { %v2455_v24 = vpop.xlane.xlu1 %2454  ;;  %v8262_v33 = vpop.eup %5907  ;;  %v1669_v18 = vmul.f32 1.442695, %v1555_v2  ;;  %11323 = vst [vmem:[#allocation66_spill] sm:$0xff] %v8269_v48  ;;  %v1671_v61 = vmul.f32 1.442695, %v1556_v0 }
 0x48a   : > { %11319 = vst [vmem:[#allocation65_spill] sm:$0xff] %v8262_v33  ;;  %5927 = vpow2.f32 %v1677_v41  ;;  %1818 = vmatmul.mubr.bf16.gmra.mrb[84].mxu1 %v11320_v20  ;;  %v2537_v19 = vsub.f32 %v11321_v56, %v2455_v24  ;;  %v2538_v49 = vsub.f32 %v11322_v54, %v2455_v24  ;;  %v8271_v8 = vpop.eup %5909  ;;  %v2449_v41 = vpop.xlane.xlu0 %2448 }
 0x48b   : > { %11324 = vst [vmem:[#allocation67_spill] sm:$0xff] %v8271_v8  ;;  %5929 = vpow2.f32 %v1679_v23  ;;  %1825 = vmatprep.mubr.bf16.mxu1 %v11325_v5  ;;  %v8280_v57 = vpop.f32.mrb[206].mxu0  ;;  %v8282_v24 = vpop.eup %5911  ;;  %v2533_v23 = vsub.f32 %v7579_v9, %v2449_v41  ;;  %v2534_v6 = vsub.f32 %v7588_v52, %v2449_v41  ;;  %v11335_v41 = vpack.c.bf16 %v8033_v47, %v8123_v51  ;;  %v347_v51 = vld [vmem:[%s10683_s2 + $0x178] sm:$0xff] }
 0x48c   : > { %11326 = vst [vmem:[#allocation58_spill] sm:$0xff] %v8280_v57  ;;  %5931 = vpow2.f32 %v1669_v18  ;;  %v2625_v20 = vmul.f32 1.442695, %v2537_v19  ;;  %v2627_v56 = vmul.f32 1.442695, %v2538_v49  ;;  %v8285_v0 = vpop.f32.mrb[207].mxu0  ;;  %v8287_v53 = vpop.eup %5913 }
 0x48d   : > { %11327 = vst [vmem:[#allocation59_spill] sm:$0xff] %v8285_v0  ;;  %5933 = vpow2.f32 %v1671_v61  ;;  %v1495_v5 = vpop.xlane.xlu1 %1494  ;;  %v8294_v2 = vpop.eup %5915  ;;  %v2617_v18 = vmul.f32 1.442695, %v2533_v23  ;;  %v11329_v19 = vld [vmem:[#allocation89_spill] sm:$0xff]  ;;  %v11330_v49 = vld [vmem:[#allocation90_spill] sm:$0xff] }
 0x48e   : > { %11328 = vst [vmem:[#allocation68_spill] sm:$0xff] %v8294_v2  ;;  %5935 = vpow2.f32 %v2625_v20  ;;  %v1561_v9 = vsub.f32 %v11329_v19, %v1495_v5  ;;  %v1562_v48 = vsub.f32 %v11330_v49, %v1495_v5  ;;  %v8298_v60 = vpop.eup %5917  ;;  %v2619_v61 = vmul.f32 1.442695, %v2534_v6  ;;  %v2452_v52 = vpop.xlane.xlu0 %2451  ;;  %v11332_v19 = vld [vmem:[#allocation72_spill] sm:$0xff] }
 0x48f   : > { %11331 = vst [vmem:[#allocation69_spill] sm:$0xff] %v8298_v60  ;;  %5937 = vpow2.f32 %v2627_v56  ;;  %v8302_v54 = vpop.eup %5919  ;;  %v2535_v20 = vsub.f32 %v7593_v37, %v2452_v52  ;;  %v2536_v5 = vsub.f32 %v11332_v19, %v2452_v52  ;;  %v8308_v8 = vpop.f32.mrb[208].mxu0  ;;  %v11340_v19 = vpack.c.bf16 %v8116_v40, %v8084_v63  ;;  %v11342_v63 = vld [vmem:[#allocation79_spill] sm:$0xff] }
 0x490   : > { %5939 = vpow2.f32 %v2617_v18  ;;  %v1681_v38 = vmul.f32 1.442695, %v1561_v9  ;;  %v1683_v30 = vmul.f32 1.442695, %v1562_v48  ;;  %v8305_v23 = vpop.eup %5921  ;;  %11333 = vst [vmem:[#allocation70_spill] sm:$0xff] %v8308_v8  ;;  %v11336_v18 = vld [vmem:[#allocation91_spill] sm:$0xff] }
 0x491   : > { %5941 = vpow2.f32 %v2619_v61  ;;  %v1498_v49 = vpop.xlane.xlu1 %1497  ;;  %v8310_v56 = vpop.eup %5923  ;;  %v2621_v6 = vmul.f32 1.442695, %v2535_v20  ;;  %v11337_v9 = vld [vmem:[#allocation92_spill] sm:$0xff]  ;;  %v2623_v52 = vmul.f32 1.442695, %v2536_v5 }
 0x492   : > { %11334 = vst [vmem:[#allocation71_spill] sm:$0xff] %v8310_v56  ;;  %5943 = vpow2.f32 %v1681_v38  ;;  %1826 = vmatmul.mubr.bf16.gmra.mrb[88].mxu1 %v11335_v41  ;;  %v1563_v48 = vsub.f32 %v11336_v18, %v1498_v49  ;;  %v1564_v37 = vsub.f32 %v11337_v9, %v1498_v49  ;;  %v8317_v31 = vpop.f32.mrb[209].mxu0  ;;  %v8319_v61 = vpop.eup %5925 }
 0x493   : > { %11338 = vst [vmem:[#allocation73_spill] sm:$0xff] %v8317_v31  ;;  %11339 = vst [vmem:[#allocation74_spill] sm:$0xff] %v8319_v61  ;;  %5945 = vpow2.f32 %v1683_v30  ;;  %1833 = vmatprep.mubr.bf16.mxu1 %v11340_v19  ;;  %v2458_v38 = vpop.xlane.xlu0 %2457  ;;  %v8329_v41 = vpop.f32.mrb[210].mxu0  ;;  %v11344_v19 = vld [vmem:[#allocation80_spill] sm:$0xff] }
 0x494   : > { %11341 = vst [vmem:[#allocation81_spill] sm:$0xff] %v8329_v41  ;;  %v8333_v49 = vpop.eup %5927  ;;  %5947 = vpow2.f32 %v2621_v6  ;;  %v1685_v30 = vmul.f32 1.442695, %v1563_v48  ;;  %v1687_v5 = vmul.f32 1.442695, %v1564_v37  ;;  %v2539_v40 = vsub.f32 %v11342_v63, %v2458_v38  ;;  %v8336_v18 = vpop.f32.mrb[211].mxu0 }
 0x495   : > { %11343 = vst [vmem:[#allocation82_spill] sm:$0xff] %v8336_v18  ;;  %v8338_v9 = vpop.eup %5929  ;;  %5949 = vpow2.f32 %v2623_v52  ;;  %v2540_v33 = vsub.f32 %v11344_v19, %v2458_v38  ;;  %v2461_v47 = vpop.xlane.xlu1 %2460  ;;  %v11345_v48 = vld [vmem:[#allocation85_spill] sm:$0xff]  ;;  %v11346_v63 = vld [vmem:[#allocation86_spill] sm:$0xff] }
 0x496   : > { %v8345_v2 = vpop.eup %5931  ;;  %5951 = vpow2.f32 %v1685_v30  ;;  %v2629_v6 = vmul.f32 1.442695, %v2539_v40  ;;  %v2541_v37 = vsub.f32 %v11345_v48, %v2461_v47  ;;  %v2542_v56 = vsub.f32 %v11346_v63, %v2461_v47  ;;  %v348_v52 = vld [vmem:[%s10683_s2 + $0x180] sm:$0xff]  ;;  %v11348_v48 = vld [vmem:[#allocation87_spill] sm:$0xff]  ;;  %v8366_v16 = vpop.f32.mrb[212].mxu0 }
 0x497   : > { %589 = vperm.xlu1 %5749, %v347_v51   ;;  %v8352_v38 = vpop.eup %5933  ;;  %5953 = vpow2.f32 %v1687_v5  ;;  %v2631_v19 = vmul.f32 1.442695, %v2540_v33  ;;  %v2464_v31 = vpop.xlane.xlu0 %2463  ;;  %11350 = vst [vmem:[#allocation84_spill] sm:$0xff] %v8366_v16  ;;  %v11357_v30 = vpack.c.bf16 %v8197_v25, %v8176_v1 }
 0x498   : > { %v8358_v40 = vpop.eup %5935  ;;  %5955 = vpow2.f32 %v2629_v6  ;;  %v2633_v47 = vmul.f32 1.442695, %v2541_v37  ;;  %v2635_v51 = vmul.f32 1.442695, %v2542_v56  ;;  %v2543_v63 = vsub.f32 %v11348_v48, %v2464_v31  ;;  %v8377_v48 = vpop.f32.mrb[213].mxu0 }
 0x499   : > { %11347 = vst [vmem:[#allocation83_spill] sm:$0xff] %v8358_v40  ;;  %v8361_v8 = vpop.eup %5937  ;;  %5957 = vpow2.f32 %v2631_v19  ;;  %v2544_v5 = vsub.f32 %v11349_v45, %v2464_v31  ;;  %v1501_v33 = vpop.xlane.xlu1 %1500  ;;  %v11352_v37 = vpack.c.bf16 %v8111_v14, %v8081_v36  ;;  %v11353_v19 = vld [vmem:[#allocation93_spill] sm:$0xff]  ;;  %v11354_v31 = vld [vmem:[#allocation94_spill] sm:$0xff]  ;;  %11355 = vst [vmem:[#allocation76_spill] sm:$0xff] %v8377_v48 }
 0x49a   : > { %594 = vperm.xlu0 %5750, %v348_v52   ;;  %v8370_v6 = vpop.eup %5939  ;;  %5959 = vpow2.f32 %v2633_v47  ;;  %v2637_v56 = vmul.f32 1.442695, %v2543_v63  ;;  %v1565_v45 = vsub.f32 %v11353_v19, %v1501_v33  ;;  %v1566_v52 = vsub.f32 %v11354_v31, %v1501_v33  ;;  %v8386_v63 = vpop.f32.mrb[214].mxu0  ;;  %v11362_v31 = vld [vmem:[#allocation96_spill] sm:$0xff] }
 0x49b   : > { %11351 = vst [vmem:[#allocation75_spill] sm:$0xff] %v8370_v6  ;;  %1834 = vmatmul.mubr.bf16.gmra.mrb[92].mxu1 %v11352_v37  ;;  %v8379_v20 = vpop.eup %5941  ;;  %5961 = vpow2.f32 %v2635_v51  ;;  %v2639_v50 = vmul.f32 1.442695, %v2544_v5  ;;  %11358 = vst [vmem:[#allocation78_spill] sm:$0xff] %v8386_v63  ;;  %v8390_v33 = vpop.f32.mrb[215].mxu0 }
 0x49c   : > { %11356 = vst [vmem:[#allocation77_spill] sm:$0xff] %v8379_v20  ;;  %1841 = vmatprep.mubr.bf16.mxu1 %v11357_v30  ;;  %v8388_v36 = vpop.eup %5943  ;;  %5963 = vpow2.f32 %v2637_v56  ;;  %v1689_v14 = vmul.f32 1.442695, %v1565_v45  ;;  %11359 = vst [vmem:[#allocation89_spill] sm:$0xff] %v8390_v33  ;;  %v1691_v51 = vmul.f32 1.442695, %v1566_v52  ;;  %v525_v56 = vpop.permute.xlu0 %524  ;;  %v11364_v45 = vpack.c.bf16 %v8194_v12, %v8171_v39 }
 0x49d   : > { %v8392_v37 = vpop.eup %5945  ;;  %5965 = vpow2.f32 %v2639_v50  ;;  %v1504_v5 = vpop.xlane.xlu1 %1503  ;;  %v11361_v30 = vld [vmem:[#allocation95_spill] sm:$0xff]  ;;  %v11373_v39 = vmov 0  }
 0x49e   : > { %v8396_v25 = vpop.eup %5947  ;;  %v1567_v19 = vsub.f32 %v11361_v30, %v1504_v5  ;;  %v1568_v47 = vsub.f32 %v11362_v31, %v1504_v5  ;;  %5967 = vpow2.f32 %v1689_v14  ;;  %v8410_v30 = vpop.f32.mrb[216].mxu0  ;;  %v11367_v5 = vpack.c.bf16 %v8255_v4, %v8234_v43 }
 0x49f   : > { %11360 = vst [vmem:[#allocation90_spill] sm:$0xff] %v8396_v25  ;;  %v8400_v60 = vpop.eup %5949  ;;  %5969 = vpow2.f32 %v1691_v51  ;;  %11363 = vst [vmem:[#allocation72_spill] sm:$0xff] %v8410_v30  ;;  %v8421_v14 = vpop.f32.mrb[217].mxu0 }
 0x4a0   : > { %v8404_v61 = vpop.eup %5951  ;;  %v1693_v50 = vmul.f32 1.442695, %v1567_v19  ;;  %v1695_v52 = vmul.f32 1.442695, %v1568_v47  ;;  %11365 = vst [vmem:[#allocation91_spill] sm:$0xff] %v8421_v14  ;;  %v11366_v19 = vld [vmem:[#allocation5_spill] sm:$0xff]  ;;  %v530_v6 = vpop.permute.xlu0 %529 }
 0x4a1   : > { %v8406_v48 = vpop.eup %5953  ;;  %v8426_v1 = vadd.f32 %v11366_v19, %v525_v56  ;;  %v11371_v19 = vld [vmem:[#allocation8_spill] sm:$0xff]  ;;  %v8443_v43 = vpop.f32.mrb[218].mxu0 }
 0x4a2   : > { %v8414_v31 = vpop.eup %5955  ;;  %5971 = vpow2.f32 %v1693_v50  ;;  %v1726_v47 = vpack.c.bf16 %v8406_v48, %v8392_v37  ;;  %v4184_v50 = vpop.trf.xlu1  ;;  %v11369_v37 = vld [vmem:[#allocation6_spill] sm:$0xff]  ;;  %v1039_v20 = vadd.f32 %v11371_v19, %v530_v6  ;;  %11372 = vst [vmem:[#allocation79_spill] sm:$0xff] %v8443_v43 }
 0x4a3   : > { %1842 = vmatmul.mubr.bf16.gmra.mrb[96].mxu1 %v11364_v45  ;;  %v8423_v51 = vpop.eup %5957  ;;  %5973 = vpow2.f32 %v1695_v52  ;;  %v1035_v45 = vadd.f32 %v11369_v37, %v525_v56  ;;  %v11370_v52 = vld [vmem:[#allocation7_spill] sm:$0xff]  ;;  %5668 = vmatmul.mubr.msk.bf16.gmra.mrb[16].mxu0 %vm1167_vm2, %v4184_v50  ;;  %v8450_v12 = vpop.f32.mrb[219].mxu0  ;;  %v11376_v56 = vpack.c.bf16 %v8252_v34, %v8229_v62 }
 0x4a4   : > { %1849 = vmatprep.mubr.bf16.mxu1 %v11367_v5  ;;  %v8435_v48 = vpop.eup %5959  ;;  %v8439_v25 = vadd.f32 %v11370_v52, %v530_v6  ;;  %4362 = vmatprep.mubr.bf16.mxu0 %v11373_v39  ;;  %11374 = vst [vmem:[#allocation80_spill] sm:$0xff] %v8450_v12  ;;  %v11377_v6 = vpack.c.bf16 %v8352_v38, %v8287_v53 }
 0x4a5   : > { %11368 = vst [vmem:[#allocation92_spill] sm:$0xff] %v8435_v48  ;;  %v8447_v5 = vpop.eup %5961  ;;  %v3147_v37 = vpack.c.bf16 %v1039_v20, %v1035_v45  ;;  %v8464_v30 = vpop.f32.mrb[220].mxu0 }
 0x4a6   : > { %v8452_v14 = vpop.eup %5963  ;;  %v4185_v4 = vpop.trf.xlu1 }
 0x4a7   : > { %11375 = vst [vmem:[#allocation85_spill] sm:$0xff] %v8452_v14  ;;  %v8458_v50 = vpop.eup %5965  ;;  %3745 = vmatprep.subr.bf16.mxu1 %v3147_v37  ;;  %v8469_v20 = vpop.f32.mrb[221].mxu0 }
 0x4a8   : > { %v5968_v40 = vpop.eup %5967  ;;  %v8476_v52 = vpop.f32.mrb[222].mxu0 }
 0x4a9   : > { %v5970_v45 = vpop.eup %5969  ;;  %11378 = vst [vmem:[#allocation86_spill] sm:$0xff] %v8476_v52  ;;  %v8479_v48 = vpop.f32.mrb[223].mxu0 }
 0x4aa   : > { %11379 = vst [vmem:[#allocation87_spill] sm:$0xff] %v8479_v48  ;;  %v4186_v53 = vpop.trf.xlu1 }
 0x4ab   : > { %1850 = vmatmul.mubr.bf16.gmra.mrb[100].mxu1 %v11376_v56  ;;  %5669 = vmatmul.mubr.msk.bf16.gmra.mrb[20].mxu0 %vm1167_vm2, %v4185_v4  ;;  %v11383_v4 = vpack.c.bf16 %v8338_v9, %v8305_v23 }
 0x4ac   : > { %1857 = vmatprep.mubr.bf16.mxu1 %v11377_v6  ;;  %v5972_v19 = vpop.eup %5971  ;;  %4372 = vmatprep.mubr.bf16.mxu0 %v11373_v39  ;;  %v11381_v6 = vpack.c.bf16 %v8345_v2, %v8282_v24  ;;  %v11386_v24 = vld [vmem:[#allocation45_spill] sm:$0xff]  ;;  %v11399_v2 = vmax.f32 %v8227_v29, %v8232_v46 }
 0x4ad   : > { %v5974_v14 = vpop.eup %5973  ;;  %v1727_v34 = vpack.c.bf16 %v5972_v19, %v5968_v40  ;;  %v8484_v38 = vpop.f32.mrb[224].mxu0  ;;  %v11390_v40 = vld [vmem:[#allocation27_spill] sm:$0xff] }
 0x4ae   : > { %v1728_v56 = vpack.c.bf16 %v5974_v14, %v5970_v45  ;;  %11380 = vst [vmem:[#allocation88_spill] sm:$0xff] %v8484_v38  ;;  %v8489_v37 = vpop.f32.mrb[225].mxu0  ;;  %v11387_v45 = vld [vmem:[#allocation34_spill] sm:$0xff]  ;;  %v4187_v23 = vpop.trf.xlu1 }
 0x4af   : > { %11382 = vst [vmem:[#allocation93_spill] sm:$0xff] %v8489_v37  ;;  %v8496_v19 = vpop.f32.mrb[226].mxu0 }
 0x4b0   : > { %11384 = vst [vmem:[#allocation94_spill] sm:$0xff] %v8496_v19  ;;  %v8499_v14 = vpop.f32.mrb[227].mxu0 }
 0x4b1   : > { %11385 = vst [vmem:[#allocation95_spill] sm:$0xff] %v8499_v14 }
 0x4b3   : > { %1858 = vmatmul.mubr.bf16.gmra.mrb[104].mxu1 %v11381_v6  ;;  %5670 = vmatmul.mubr.msk.bf16.gmra.mrb[24].mxu0 %vm1167_vm2, %v4186_v53  ;;  %v11388_v6 = vmax.f32 %v11386_v24, %v11387_v45  ;;  %v11391_v53 = vld [vmem:[#allocation28_spill] sm:$0xff]  ;;  %v4188_v45 = vpop.trf.xlu1 }
 0x4b4   : > { %1865 = vmatprep.mubr.bf16.mxu1 %v11383_v4  ;;  %4382 = vmatprep.mubr.bf16.mxu0 %v11373_v39  ;;  %v11389_v4 = vpack.c.bf16 %v8333_v49, %v8302_v54  ;;  %v11392_v62 = vmax.f32 %v11390_v40, %v11391_v53 }
 0x4b5   : > { %v8507_v9 = vpop.f32.mrb[228].mxu0 }
 0x4b6   : > { %v8515_v37 = vpop.f32.mrb[229].mxu0 }
 0x4b7   : > { %v8519_v38 = vpop.f32.mrb[230].mxu0 }
 0x4b8   : > { %11393 = vst [vmem:[#allocation96_spill] sm:$0xff] %v8519_v38  ;;  %v8525_v54 = vpop.f32.mrb[231].mxu0 }
 0x4b9   : > { %3438 = vmax.xlane.f32.xlu0 %v11388_v6  ;;  %v11394_v6 = vmax.f32 %v8167_v32, %v8174_v26  ;;  %11395 = vst [vmem:[#allocation5_spill] sm:$0xff] %v8525_v54  ;;  %v11403_v32 = vld [vmem:[#allocation44_spill] sm:$0xff] }
 0x4bb   : > { %1866 = vmatmul.mubr.bf16.gmra.mrb[108].mxu1 %v11389_v4  ;;  %2508 = vmax.xlane.f32.xlu1 %v11392_v62  ;;  %v11396_v62 = vld [vmem:[#allocation31_spill] sm:$0xff] }
 0x4bc   : > { %1873 = vmatprep.mubr.bf16.mxu1 %v1726_v47  ;;  %5671 = vmatmul.mubr.msk.bf16.gmra.mrb[28].mxu0 %vm1167_vm2, %v4187_v23  ;;  %v11397_v47 = vld [vmem:[#allocation40_spill] sm:$0xff]  ;;  %v11401_v23 = vpack.c.bf16 %v8404_v61, %v8388_v36  ;;  %v11416_v36 = vpack.c.bf16 %v8157_v15, %v8018_v59  ;;  %v11420_v59 = vmax.f32 %v8057_v28, %v8062_v10  ;;  %v8591_v15 = vpop.permute.xlu0 %544 }
 0x4bd   : > { %3459 = vmax.xlane.f32.xlu0 %v11394_v6  ;;  %4392 = vmatprep.mubr.bf16.mxu0 %v11373_v39  ;;  %v11398_v4 = vmax.f32 %v11396_v62, %v11397_v47  ;;  %v8536_v26 = vpop.f32.mrb[232].mxu0  ;;  %v11402_v6 = vld [vmem:[#allocation33_spill] sm:$0xff] }
 0x4be   : > { %11400 = vst [vmem:[#allocation6_spill] sm:$0xff] %v8536_v26  ;;  %v11404_v24 = vmax.f32 %v11402_v6, %v11403_v32  ;;  %v8544_v49 = vpop.f32.mrb[233].mxu0 }
 0x4bf   : > { %3429 = vmax.xlane.f32.xlu1 %v11398_v4  ;;  %11405 = vst [vmem:[#allocation7_spill] sm:$0xff] %v8544_v49  ;;  %v8548_v47 = vpop.f32.mrb[234].mxu0  ;;  %v11413_v4 = vld [vmem:[#allocation36_spill] sm:$0xff] }
 0x4c0   : > { %11406 = vst [vmem:[#allocation8_spill] sm:$0xff] %v8548_v47  ;;  %v8554_v61 = vpop.f32.mrb[235].mxu0 }
 0x4c1   : > { %3465 = vmax.xlane.f32.xlu0 %v11399_v2  ;;  %v11407_v2 = vmax.f32 %v8280_v57, %v8285_v0  ;;  %11408 = vst [vmem:[#allocation125_spill] sm:$0xff] %v8554_v61 }
 0x4c3   : > { %1874 = vmatmul.mubr.bf16.gmra.mrb[112].mxu1 %v11401_v23  ;;  %3435 = vmax.xlane.f32.xlu1 %v11404_v24  ;;  %v11410_v24 = vmax.f32 %v8329_v41, %v8336_v18 }
 0x4c4   : > { %1881 = vmatprep.mubr.bf16.mxu1 %v1728_v56  ;;  %5672 = vmatmul.mubr.msk.bf16.gmra.mrb[32].mxu0 %vm1167_vm2, %v4188_v45  ;;  %v11409_v56 = vmax.f32 %v8011_v35, %v8016_v22  ;;  %v4189_v45 = vpop.trf.xlu1 }
 0x4c5   : > { %3471 = vmax.xlane.f32.xlu0 %v11407_v2  ;;  %4402 = vmatprep.mubr.bf16.mxu0 %v11373_v39  ;;  %v8565_v23 = vpop.f32.mrb[236].mxu0  ;;  %v11412_v2 = vld [vmem:[#allocation49_spill] sm:$0xff] }
 0x4c6   : > { %11411 = vst [vmem:[#allocation126_spill] sm:$0xff] %v8565_v23  ;;  %v11414_v0 = vmax.f32 %v11412_v2, %v11413_v4  ;;  %v8570_v57 = vpop.f32.mrb[237].mxu0 }
 0x4c7   : > { %3441 = vmax.xlane.f32.xlu1 %v11409_v56  ;;  %11415 = vst [vmem:[#allocation127_spill] sm:$0xff] %v8570_v57  ;;  %v8577_v46 = vpop.f32.mrb[238].mxu0 }
 0x4c8   : > { %11417 = vst [vmem:[#allocation128_spill] sm:$0xff] %v8577_v46 }
 0x4c9   : > { %3477 = vmax.xlane.f32.xlu0 %v11410_v24  ;;  %v8583_v24 = vpop.f32.mrb[239].mxu0 }
 0x4ca   : > { %11419 = vst [vmem:[#allocation129_spill] sm:$0xff] %v8583_v24 }
 0x4cb   : > { %1882 = vmatmul.mubr.bf16.gmra.mrb[116].mxu1 %v1727_v34  ;;  %3444 = vmax.xlane.f32.xlu1 %v11414_v0  ;;  %v11418_v34 = vmax.f32 %v8386_v63, %v8390_v33  ;;  %v11424_v33 = vld [vmem:[#allocation55_spill] sm:$0xff]  ;;  %v11425_v63 = vld [vmem:[#allocation38_spill] sm:$0xff] }
 0x4cc   : > { %2769 = vmatprep.mubr.bf16.mxu1 %v11416_v36  ;;  %5673 = vmatmul.mubr.msk.bf16.gmra.mrb[36].mxu0 %vm1167_vm2, %v4189_v45  ;;  %v11421_v36 = vmax.f32 %v8443_v43, %v8450_v12  ;;  %v4190_v45 = vpop.trf.xlu1  ;;  %v11426_v0 = vmax.f32 %v11424_v33, %v11425_v63  ;;  %v11462_v63 = vld [vmem:[#allocation64_spill] sm:$0xff] }
 0x4cd   : > { %3483 = vmax.xlane.f32.xlu0 %v11418_v34  ;;  %4412 = vmatprep.mubr.bf16.mxu0 %v11373_v39  ;;  %v8596_v56 = vpop.f32.mrb[240].mxu0  ;;  %v11423_v34 = vpack.c.bf16 %v8148_v27, %v8013_v21  ;;  %v11431_v27 = vmax.f32 %v8476_v52, %v8479_v48  ;;  %v11449_v52 = vld [vmem:[#allocation63_spill] sm:$0xff]  ;;  %v11501_v33 = vld [vmem:[#allocation116_spill] sm:$0xff] }
 0x4ce   : > { %11422 = vst [vmem:[#allocation130_spill] sm:$0xff] %v8596_v56  ;;  %v8604_v18 = vpop.f32.mrb[241].mxu0 }
 0x4cf   : > { %3447 = vmax.xlane.f32.xlu1 %v11420_v59  ;;  %11427 = vst [vmem:[#allocation131_spill] sm:$0xff] %v8604_v18  ;;  %v11428_v59 = vpack.c.bf16 %v8439_v25, %v8426_v1  ;;  %v8614_v43 = vpop.f32.mrb[242].mxu0  ;;  %v11434_v25 = vmax.f32 %v8496_v19, %v8499_v14 }
 0x4d0   : > { %11430 = vst [vmem:[#allocation132_spill] sm:$0xff] %v8614_v43  ;;  %v8620_v21 = vpop.xlane.xlu0 %2469  ;;  %v4191_v1 = vpop.trf.xlu1 }
 0x4d1   : > { %3489 = vmax.xlane.f32.xlu0 %v11421_v36  ;;  %v11429_v36 = vpack.c.bf16 %v8187_v3, %v8064_v7  ;;  %v11433_v7 = vmax.f32 %v8109_v44, %v8114_v55  ;;  %v11439_v3 = vmax.f32 %v8146_v13, %v8155_v58 }
 0x4d3   : > { %2770 = vmatmul.mubr.bf16.vlgmr.msra.gmra.mrb[120].mxu1 %v11423_v34  ;;  %3450 = vmax.xlane.f32.xlu1 %v11426_v0  ;;  %v8622_v0 = vpop.f32.mrb[243].mxu0  ;;  %v11435_v34 = vld [vmem:[#allocation101_spill] sm:$0xff] }
 0x4d4   : > { %3746 = vmatpush1.bf16.xpose.msra.mxu1 %v11428_v59  ;;  %2777 = vmatprep.mubr.bf16.mxu1 %v11429_v36  ;;  %11432 = vst [vmem:[#allocation133_spill] sm:$0xff] %v8622_v0  ;;  %v11436_v36 = vld [vmem:[#allocation102_spill] sm:$0xff] }
 0x4d5   : > { %5674 = vmatmul.mubr.msk.bf16.gmra.mrb[40].mxu0 %vm1167_vm2, %v4190_v45  ;;  %3495 = vmax.xlane.f32.xlu0 %v11431_v27  ;;  %v2473_v45 = vpop.xlane.xlu0 %2472  ;;  %v8635_v12 = vpop.f32.mrb[244].mxu0 }
 0x4d6   : > { %4422 = vmatprep.mubr.bf16.mxu0 %v11373_v39  ;;  %v2549_v59 = vsub.f32 %v11435_v34, %v2473_v45  ;;  %v2550_v27 = vsub.f32 %v11436_v36, %v2473_v45  ;;  %11437 = vst [vmem:[#allocation101_spill] sm:$0xff] %v8635_v12  ;;  %v11438_v39 = vpack.c.bf16 %v8183_v11, %v8059_v17 }
 0x4d7   : > { %3453 = vmax.xlane.f32.xlu1 %v11433_v7  ;;  %v8643_v7 = vpop.f32.mrb[245].mxu0  ;;  %v11444_v17 = vmax.f32 %v8519_v38, %v8525_v54 }
 0x4d8   : > { %11440 = vst [vmem:[#allocation102_spill] sm:$0xff] %v8643_v7  ;;  %v2649_v48 = vmul.f32 1.442695, %v2549_v59  ;;  %v8650_v34 = vpop.f32.mrb[246].mxu0  ;;  %v2651_v36 = vmul.f32 1.442695, %v2550_v27  ;;  %v535_v19 = vpop.permute.xlu1 %534 }
 0x4d9   : > { %3501 = vmax.xlane.f32.xlu0 %v11434_v25  ;;  %v11441_v25 = vld [vmem:[#allocation42_spill] sm:$0xff]  ;;  %v2476_v11 = vpop.xlane.xlu0 %2475  ;;  %v8657_v59 = vpop.f32.mrb[247].mxu0 }
 0x4da   : > { %v11442_v14 = vpack.c.bf16 %v8215_v42, %v11441_v25  ;;  %11443 = vst [vmem:[#allocation42_spill] sm:$0xff] %v8650_v34  ;;  %v11447_v42 = vld [vmem:[#allocation104_spill] sm:$0xff]  ;;  %v11448_v25 = vld [vmem:[#allocation47_spill] sm:$0xff]  ;;  %5975 = vpow2.f32 %v2649_v48 }
 0x4db   : > { %2778 = vmatmul.mubr.bf16.gmra.mrb[124].mxu1 %v11438_v39  ;;  %3456 = vmax.xlane.f32.xlu1 %v11439_v3  ;;  %v11445_v39 = vld [vmem:[#allocation103_spill] sm:$0xff]  ;;  %v11450_v45 = vmax.f32 %v11448_v25, %v11449_v52  ;;  %5977 = vpow2.f32 %v2651_v36  ;;  %v11456_v52 = vld [vmem:[#allocation12_spill] sm:$0xff]  ;;  %v11458_v36 = vld [vmem:[#allocation62_spill] sm:$0xff] }
 0x4dc   : > { %2785 = vmatprep.mubr.bf16.mxu1 %v11442_v14  ;;  %v2551_v3 = vsub.f32 %v11445_v39, %v2476_v11  ;;  %11446 = vst [vmem:[#allocation103_spill] sm:$0xff] %v8657_v59  ;;  %v2552_v14 = vsub.f32 %v11447_v42, %v2476_v11  ;;  %v11453_v39 = vld [vmem:[#allocation10_spill] sm:$0xff]  ;;  %v540_v13 = vpop.permute.xlu1 %539  ;;  %v11454_v11 = vmax.f32 %v8548_v47, %v8554_v61  ;;  %v11455_v42 = vld [vmem:[#allocation11_spill] sm:$0xff] }
 0x4dd   : > { %5675 = vmatmul.mubr.msk.bf16.gmra.mrb[44].mxu0 %vm1167_vm2, %v4191_v1  ;;  %3507 = vmax.xlane.f32.xlu0 %v11444_v17  ;;  %v11451_v1 = vld [vmem:[#allocation14_spill] sm:$0xff]  ;;  %v11452_v17 = vld [vmem:[#allocation9_spill] sm:$0xff]  ;;  %v1045_v29 = vadd.f32 %v11453_v39, %v535_v19  ;;  %v1047_v27 = vadd.f32 %v11455_v42, %v540_v13  ;;  %v1049_v25 = vadd.f32 %v11456_v52, %v540_v13  ;;  %v11465_v13 = vld [vmem:[#allocation67_spill] sm:$0xff] }
 0x4de   : > { %v1055_v41 = vadd.f32 %v11451_v1, %v8591_v15  ;;  %v2653_v54 = vmul.f32 1.442695, %v2551_v3  ;;  %v1043_v38 = vadd.f32 %v11452_v17, %v535_v19  ;;  %v2655_v58 = vmul.f32 1.442695, %v2552_v14  ;;  %v11457_v1 = vld [vmem:[#allocation105_spill] sm:$0xff]  ;;  %v8675_v3 = vpop.f32.mrb[248].mxu0 }
 0x4df   : > { %3462 = vmax.xlane.f32.xlu1 %v11450_v45  ;;  %v2479_v45 = vpop.xlane.xlu0 %2478  ;;  %v11459_v17 = vld [vmem:[#allocation52_spill] sm:$0xff]  ;;  %v11461_v14 = vld [vmem:[#allocation106_spill] sm:$0xff]  ;;  %v3149_v55 = vpack.c.bf16 %v1049_v25, %v1045_v29 }
 0x4e0   : > { %5979 = vpow2.f32 %v2653_v54  ;;  %v2553_v48 = vsub.f32 %v11457_v1, %v2479_v45  ;;  %v11460_v19 = vpack.c.bf16 %v11458_v36, %v11459_v17  ;;  %v2554_v39 = vsub.f32 %v11461_v14, %v2479_v45  ;;  %v11463_v61 = vld [vmem:[#allocation66_spill] sm:$0xff]  ;;  %v8684_v54 = vpop.f32.mrb[249].mxu0 }
 0x4e1   : > { %3513 = vmax.xlane.f32.xlu0 %v11454_v11  ;;  %5981 = vpow2.f32 %v2655_v58  ;;  %v11464_v11 = vmax.f32 %v11462_v63, %v11463_v61  ;;  %v3148_v42 = vpack.c.bf16 %v1047_v27, %v1043_v38  ;;  %v11466_v52 = vld [vmem:[#allocation50_spill] sm:$0xff]  ;;  %v8691_v36 = vpop.f32.mrb[250].mxu0  ;;  %v11468_v45 = vmax.f32 %v8577_v46, %v8583_v24  ;;  %v11469_v38 = vld [vmem:[#allocation107_spill] sm:$0xff]  ;;  %3747 = vmatprep.subr.bf16.mxu1 %v3149_v55  ;;  %v11474_v58 = vld [vmem:[#allocation13_spill] sm:$0xff] }
 0x4e2   : > { %v2657_v47 = vmul.f32 1.442695, %v2553_v48  ;;  %v11467_v1 = vpack.c.bf16 %v11465_v13, %v11466_v52  ;;  %v2659_v17 = vmul.f32 1.442695, %v2554_v39  ;;  %v8696_v14 = vpop.f32.mrb[251].mxu0  ;;  %v11470_v48 = vld [vmem:[#allocation108_spill] sm:$0xff]  ;;  %v3151_v13 = vpack.c.bf16 %v1055_v41, %v1055_v41 }
 0x4e3   : > { %2786 = vmatmul.mubr.bf16.gmra.mrb[128].mxu1 %v11460_v19  ;;  %3468 = vmax.xlane.f32.xlu1 %v11464_v11  ;;  %v2482_v19 = vpop.xlane.xlu0 %2481  ;;  %v11471_v25 = vld [vmem:[#allocation70_spill] sm:$0xff]  ;;  %v11472_v52 = vld [vmem:[#allocation73_spill] sm:$0xff]  ;;  %v1053_v24 = vadd.f32 %v11474_v58, %v8591_v15  ;;  %v11475_v55 = vmax.f32 %v8614_v43, %v8622_v0 }
 0x4e4   : > { %2793 = vmatprep.mubr.bf16.mxu1 %v11467_v1  ;;  %v2555_v27 = vsub.f32 %v11469_v38, %v2482_v19  ;;  %v2556_v11 = vsub.f32 %v11470_v48, %v2482_v19  ;;  %v11473_v1 = vmax.f32 %v11471_v25, %v11472_v52  ;;  %3748 = vmatpush1.bf16.xpose.msra.mxu1 %v3148_v42  ;;  %5983 = vpow2.f32 %v2657_v47  ;;  %v8710_v19 = vpop.eup %5975  ;;  %v11476_v38 = vld [vmem:[#allocation109_spill] sm:$0xff]  ;;  %v11483_v29 = vld [vmem:[#allocation74_spill] sm:$0xff] }
 0x4e5   : > { %3519 = vmax.xlane.f32.xlu0 %v11468_v45  ;;  %3749 = vmatprep.subr.bf16.mxu1 %v3151_v13  ;;  %5985 = vpow2.f32 %v2659_v17  ;;  %v8714_v47 = vpop.f32.mrb[252].mxu0  ;;  %v11479_v15 = vld [vmem:[#allocation57_spill] sm:$0xff]  ;;  %v11481_v17 = vld [vmem:[#allocation76_spill] sm:$0xff] }
 0x4e6   : > { %v2661_v39 = vmul.f32 1.442695, %v2555_v27  ;;  %v2663_v45 = vmul.f32 1.442695, %v2556_v11  ;;  %v8716_v27 = vpop.eup %5977  ;;  %v11478_v11 = vld [vmem:[#allocation65_spill] sm:$0xff]  ;;  %v11482_v13 = vmax.f32 %v8366_v16, %v11481_v17  ;;  %v11487_v16 = vld [vmem:[#allocation112_spill] sm:$0xff] }
 0x4e7   : > { %3474 = vmax.xlane.f32.xlu1 %v11473_v1  ;;  %v2485_v41 = vpop.xlane.xlu0 %2484  ;;  %v11477_v1 = vld [vmem:[#allocation110_spill] sm:$0xff]  ;;  %v11480_v58 = vpack.c.bf16 %v11478_v11, %v11479_v15  ;;  %v3150_v15 = vpack.c.bf16 %v1053_v24, %v1053_v24 }
 0x4e8   : > { %5987 = vpow2.f32 %v2661_v39  ;;  %v2557_v48 = vsub.f32 %v11476_v38, %v2485_v41  ;;  %v2558_v42 = vsub.f32 %v11477_v1, %v2485_v41  ;;  %v11484_v41 = vld [vmem:[#allocation69_spill] sm:$0xff] }
 0x4e9   : > { %4437 = vmax.xlane.f32.xlu0 %v11475_v55  ;;  %5989 = vpow2.f32 %v2663_v45  ;;  %v8724_v55 = vpop.f32.mrb[253].mxu0  ;;  %v11485_v1 = vpack.c.bf16 %v11483_v29, %v11484_v41 }
 0x4ea   : > { %v8726_v39 = vpop.eup %5979  ;;  %v2665_v38 = vmul.f32 1.442695, %v2557_v48  ;;  %v8733_v0 = vpop.f32.mrb[254].mxu0  ;;  %v11486_v48 = vld [vmem:[#allocation111_spill] sm:$0xff] }
 0x4eb   : > { %2794 = vmatmul.mubr.bf16.gmra.mrb[132].mxu1 %v11480_v58  ;;  %3480 = vmax.xlane.f32.xlu1 %v11482_v13  ;;  %v8735_v11 = vpop.eup %5981  ;;  %v2667_v58 = vmul.f32 1.442695, %v2558_v42  ;;  %v2488_v43 = vpop.xlane.xlu0 %2487 }
 0x4ec   : > { %2801 = vmatprep.mubr.bf16.mxu1 %v11485_v1  ;;  %v8737_v13 = vpop.f32.mrb[255].mxu0  ;;  %v2559_v17 = vsub.f32 %v11486_v48, %v2488_v43  ;;  %v2560_v29 = vsub.f32 %v11487_v16, %v2488_v43  ;;  %3750 = vmatpush1.bf16.xpose.msra.mxu1 %v3150_v15  ;;  %5991 = vpow2.f32 %v2665_v38  ;;  %v11489_v48 = vld [vmem:[#allocation113_spill] sm:$0xff]  ;;  %v11490_v16 = vld [vmem:[#allocation114_spill] sm:$0xff]  ;;  %v11492_v1 = vld [vmem:[#allocation71_spill] sm:$0xff] }
 0x4ed   : > { %5993 = vpow2.f32 %v2667_v58  ;;  %v8749_v46 = vpop.f32.mrb[56].mxu1  ;;  %v8753_v61 = vpop.f32.mrb[0].mxu0  ;;  %v11493_v38 = vld [vmem:[#allocation68_spill] sm:$0xff] }
 0x4ee   : > { %v2669_v24 = vmul.f32 1.442695, %v2559_v17  ;;  %v2671_v42 = vmul.f32 1.442695, %v2560_v29  ;;  %v8747_v52 = vpop.eup %5983  ;;  %11488 = vst [vmem:[#allocation104_spill] sm:$0xff] %v8749_v46  ;;  %11491 = vst [vmem:[#allocation14_spill] sm:$0xff] %v8753_v61  ;;  %v11494_v17 = vpack.c.bf16 %v11492_v1, %v11493_v38 }
 0x4ef   : > { %v2491_v45 = vpop.xlane.xlu0 %2490  ;;  %v8755_v15 = vpop.eup %5985  ;;  %v11496_v46 = vld [vmem:[#allocation77_spill] sm:$0xff] }
 0x4f0   : > { %5995 = vpow2.f32 %v2669_v24  ;;  %v2561_v25 = vsub.f32 %v11489_v48, %v2491_v45  ;;  %v2562_v43 = vsub.f32 %v11490_v16, %v2491_v45  ;;  %v1765_v58 = vpop.f32.mrb[57].mxu1  ;;  %v8760_v29 = vpop.f32.mrb[1].mxu0  ;;  %v11497_v48 = vpack.c.bf16 %v8400_v60, %v11496_v46  ;;  %v11504_v60 = vld [vmem:[#allocation118_spill] sm:$0xff] }
 0x4f1   : > { %5997 = vpow2.f32 %v2671_v42  ;;  %11495 = vst [vmem:[#allocation9_spill] sm:$0xff] %v8760_v29  ;;  %v8767_v45 = vpop.f32.mrb[58].mxu1  ;;  %v8771_v42 = vpop.f32.mrb[2].mxu0  ;;  %v349_v58 = vld [vmem:[%s10683_s2 + $0x188] sm:$0xff] }
 0x4f2   : > { %v8762_v41 = vpop.eup %5987  ;;  %v2673_v24 = vmul.f32 1.442695, %v2561_v25  ;;  %11498 = vst [vmem:[#allocation10_spill] sm:$0xff] %v8767_v45  ;;  %11499 = vst [vmem:[#allocation11_spill] sm:$0xff] %v8771_v42  ;;  %v2675_v1 = vmul.f32 1.442695, %v2562_v43 }
 0x4f3   : > { %2802 = vmatmul.mubr.bf16.gmra.mrb[136].mxu1 %v11494_v17  ;;  %v8773_v63 = vpop.eup %5989  ;;  %v1768_v38 = vpop.f32.mrb[59].mxu1  ;;  %v11500_v25 = vld [vmem:[#allocation115_spill] sm:$0xff]  ;;  %v11527_v42 = vld [vmem:[#allocation124_spill] sm:$0xff] }
 0x4f4   : > { %2809 = vmatprep.mubr.bf16.mxu1 %v11497_v48  ;;  %v2494_v17 = vpop.xlane.xlu0 %2493  ;;  %v8781_v48 = vpop.f32.mrb[3].mxu0  ;;  %5999 = vpow2.f32 %v2673_v24  ;;  %v11507_v24 = vld [vmem:[#allocation75_spill] sm:$0xff] }
 0x4f5   : > { %v2563_v44 = vsub.f32 %v11500_v25, %v2494_v17  ;;  %v2564_v46 = vsub.f32 %v11501_v33, %v2494_v17  ;;  %11502 = vst [vmem:[#allocation12_spill] sm:$0xff] %v8781_v48  ;;  %6001 = vpow2.f32 %v2675_v1  ;;  %v11503_v33 = vld [vmem:[#allocation117_spill] sm:$0xff]  ;;  %v8792_v10 = vpop.f32.mrb[4].mxu0 }
 0x4f6   : > { %v8788_v25 = vpop.eup %5991  ;;  %11505 = vst [vmem:[#allocation105_spill] sm:$0xff] %v8792_v10 }
 0x4f7   : > { %v2677_v45 = vmul.f32 1.442695, %v2563_v44  ;;  %v2679_v43 = vmul.f32 1.442695, %v2564_v46  ;;  %v8794_v28 = vpop.eup %5993  ;;  %v11506_v44 = vld [vmem:[#allocation90_spill] sm:$0xff]  ;;  %v8799_v46 = vpop.f32.mrb[5].mxu0 }
 0x4f8   : > { %v2497_v38 = vpop.xlane.xlu0 %2496  ;;  %v11508_v1 = vpack.c.bf16 %v11506_v44, %v11507_v24  ;;  %11509 = vst [vmem:[#allocation62_spill] sm:$0xff] %v8799_v46 }
 0x4f9   : > { %6003 = vpow2.f32 %v2677_v45  ;;  %v2565_v17 = vsub.f32 %v11503_v33, %v2497_v38  ;;  %v2566_v4 = vsub.f32 %v11504_v60, %v2497_v38  ;;  %v11510_v45 = vpack.c.bf16 %v8423_v51, %v8361_v8  ;;  %v350_v60 = vld [vmem:[%s10683_s2 + $0x190] sm:$0xff]  ;;  %v8811_v38 = vpop.f32.mrb[6].mxu0  ;;  %v11516_v8 = vld [vmem:[#allocation121_spill] sm:$0xff] }
 0x4fa   : > { %6005 = vpow2.f32 %v2679_v43  ;;  %v8801_v16 = vpop.eup %5995  ;;  %11511 = vst [vmem:[#allocation52_spill] sm:$0xff] %v8811_v38  ;;  %v11513_v51 = vld [vmem:[#allocation119_spill] sm:$0xff] }
 0x4fb   : > { %2810 = vmatmul.mubr.bf16.gmra.mrb[140].mxu1 %v11508_v1  ;;  %v2681_v48 = vmul.f32 1.442695, %v2565_v17  ;;  %v8813_v33 = vpop.eup %5997  ;;  %v2683_v44 = vmul.f32 1.442695, %v2566_v4  ;;  %v8815_v1 = vpop.f32.mrb[7].mxu0  ;;  %v11514_v17 = vld [vmem:[#allocation120_spill] sm:$0xff] }
 0x4fc   : > { %2817 = vmatprep.mubr.bf16.mxu1 %v11510_v45  ;;  %599 = vperm.xlu1 %5749, %v349_v58   ;;  %v2500_v24 = vpop.xlane.xlu0 %2499  ;;  %11512 = vst [vmem:[#allocation106_spill] sm:$0xff] %v8815_v1 }
 0x4fd   : > { %v2567_v58 = vsub.f32 %v11513_v51, %v2500_v24  ;;  %v2568_v45 = vsub.f32 %v11514_v17, %v2500_v24  ;;  %6007 = vpow2.f32 %v2681_v48  ;;  %v11517_v51 = vld [vmem:[#allocation122_spill] sm:$0xff]  ;;  %v8829_v24 = vpop.f32.mrb[8].mxu0 }
 0x4fe   : > { %6009 = vpow2.f32 %v2683_v44  ;;  %v8825_v35 = vpop.eup %5999  ;;  %11518 = vst [vmem:[#allocation50_spill] sm:$0xff] %v8829_v24  ;;  %v8836_v48 = vpop.f32.mrb[9].mxu0 }
 0x4ff   : > { %604 = vperm.xlu0 %5750, %v350_v60   ;;  %v2685_v2 = vmul.f32 1.442695, %v2567_v58  ;;  %v2687_v4 = vmul.f32 1.442695, %v2568_v45  ;;  %11515 = vst [vmem:[#allocation67_spill] sm:$0xff] %v8825_v35  ;;  %v8831_v17 = vpop.eup %6001  ;;  %v11519_v60 = vld [vmem:[#allocation83_spill] sm:$0xff] }
 0x500   : > { %v2503_v22 = vpop.xlane.xlu0 %2502  ;;  %v11520_v43 = vpack.c.bf16 %v8414_v31, %v11519_v60  ;;  %11521 = vst [vmem:[#allocation107_spill] sm:$0xff] %v8836_v48  ;;  %v11526_v60 = vld [vmem:[#allocation123_spill] sm:$0xff] }
 0x501   : > { %6011 = vpow2.f32 %v2685_v2  ;;  %v2569_v32 = vsub.f32 %v11516_v8, %v2503_v22  ;;  %v2570_v6 = vsub.f32 %v11517_v51, %v2503_v22  ;;  %v11523_v2 = vpack.c.bf16 %v8458_v50, %v8447_v5  ;;  %v8845_v8 = vpop.f32.mrb[10].mxu0  ;;  %v11540_v50 = vld [vmem:[#allocation99_spill] sm:$0xff] }
 0x502   : > { %6013 = vpow2.f32 %v2687_v4  ;;  %11524 = vst [vmem:[#allocation13_spill] sm:$0xff] %v8845_v8  ;;  %v8849_v31 = vpop.f32.mrb[11].mxu0 }
 0x503   : > { %2818 = vmatmul.mubr.bf16.gmra.mrb[144].mxu1 %v11520_v43  ;;  %v8838_v44 = vpop.eup %6003  ;;  %v2689_v58 = vmul.f32 1.442695, %v2569_v32  ;;  %v2691_v4 = vmul.f32 1.442695, %v2570_v6  ;;  %11525 = vst [vmem:[#allocation109_spill] sm:$0xff] %v8849_v31 }
 0x504   : > { %11522 = vst [vmem:[#allocation108_spill] sm:$0xff] %v8838_v44  ;;  %2825 = vmatprep.mubr.bf16.mxu1 %v11523_v2  ;;  %v8847_v45 = vpop.eup %6005  ;;  %v2506_v51 = vpop.xlane.xlu0 %2505 }
 0x505   : > { %v2571_v32 = vsub.f32 %v11526_v60, %v2506_v51  ;;  %v2572_v62 = vsub.f32 %v11527_v42, %v2506_v51  ;;  %6015 = vpow2.f32 %v2689_v58  ;;  %v8863_v43 = vpop.f32.mrb[12].mxu0  ;;  %v11532_v42 = vld [vmem:[#allocation85_spill] sm:$0xff]  ;;  %v11533_v51 = vld [vmem:[#allocation92_spill] sm:$0xff] }
 0x506   : > { %6017 = vpow2.f32 %v2691_v4  ;;  %11530 = vst [vmem:[#allocation57_spill] sm:$0xff] %v8863_v43  ;;  %v11534_v5 = vpack.c.bf16 %v11532_v42, %v11533_v51  ;;  %v8870_v40 = vpop.f32.mrb[13].mxu0  ;;  %v2547_v42 = vsub.f32 %v11540_v50, %v8620_v21  ;;  %v11541_v51 = vld [vmem:[#allocation100_spill] sm:$0xff]  ;;  %v11543_v50 = vld [vmem:[#allocation97_spill] sm:$0xff] }
 0x507   : > { %v2693_v2 = vmul.f32 1.442695, %v2571_v32  ;;  %v2695_v22 = vmul.f32 1.442695, %v2572_v62  ;;  %v8861_v53 = vpop.eup %6007  ;;  %11535 = vst [vmem:[#allocation69_spill] sm:$0xff] %v8870_v40  ;;  %v8876_v4 = vpop.f32.mrb[14].mxu0  ;;  %v2548_v35 = vsub.f32 %v11541_v51, %v8620_v21 }
 0x508   : > { %v8859_v6 = vpop.xlane.xlu0 %2511  ;;  %11529 = vst [vmem:[#allocation65_spill] sm:$0xff] %v8861_v53  ;;  %v8865_v60 = vpop.eup %6009  ;;  %11537 = vst [vmem:[#allocation112_spill] sm:$0xff] %v8876_v4  ;;  %v2645_v43 = vmul.f32 1.442695, %v2547_v42  ;;  %v11546_v4 = vld [vmem:[#allocation15_spill] sm:$0xff]  ;;  %v11549_v51 = vld [vmem:[#allocation18_spill] sm:$0xff] }
 0x509   : > { %11528 = vst [vmem:[#allocation110_spill] sm:$0xff] %v8859_v6  ;;  %6019 = vpow2.f32 %v2693_v2  ;;  %11531 = vst [vmem:[#allocation74_spill] sm:$0xff] %v8865_v60  ;;  %v8880_v2 = vpop.f32.mrb[15].mxu0 }
 0x50a   : > { %6021 = vpow2.f32 %v2695_v22  ;;  %11539 = vst [vmem:[#allocation114_spill] sm:$0xff] %v8880_v2  ;;  %v2647_v22 = vmul.f32 1.442695, %v2548_v35 }
 0x50b   : > { %2826 = vmatmul.mubr.bf16.gmra.mrb[148].mxu1 %v11534_v5  ;;  %v8872_v58 = vpop.eup %6011  ;;  %v11544_v5 = vld [vmem:[#allocation98_spill] sm:$0xff]  ;;  %6023 = vpow2.f32 %v2645_v43 }
 0x50c   : > { %11536 = vst [vmem:[#allocation111_spill] sm:$0xff] %v8872_v58  ;;  %v8878_v32 = vpop.eup %6013  ;;  %v8890_v44 = vpop.xlane.xlu0 %3426  ;;  %6025 = vpow2.f32 %v2647_v22  ;;  %v11550_v22 = vmax.f32 %v8650_v34, %v8657_v59  ;;  %v11652_v59 = vld [vmem:[#allocation12_spill] sm:$0xff]  ;;  %v11674_v34 = vld [vmem:[#allocation19_spill] sm:$0xff] }
 0x50d   : > { %11538 = vst [vmem:[#allocation113_spill] sm:$0xff] %v8878_v32  ;;  %11542 = vst [vmem:[#allocation71_spill] sm:$0xff] %v8890_v44 }
 0x50f   : > { %v8894_v40 = vpop.eup %6015 }
 0x510   : > { %v8896_v6 = vpop.eup %6017 }
 0x511   : > { %v8904_v21 = vpop.xlane.xlu0 %3432 }
 0x512   : > { %11545 = vst [vmem:[#allocation68_spill] sm:$0xff] %v8904_v21  ;;  %v11548_v21 = vld [vmem:[#allocation17_spill] sm:$0xff] }
 0x513   : > { %v2467_v53 = vpop.xlane.xlu1 %2466  ;;  %v8898_v58 = vpop.eup %6019 }
 0x514   : > { %v2545_v31 = vsub.f32 %v11543_v50, %v2467_v53  ;;  %v2546_v60 = vsub.f32 %v11544_v5, %v2467_v53  ;;  %v8902_v32 = vpop.eup %6021  ;;  %v11547_v5 = vld [vmem:[#allocation16_spill] sm:$0xff] }
 0x516   : > { %v2641_v62 = vmul.f32 1.442695, %v2545_v31  ;;  %v2643_v42 = vmul.f32 1.442695, %v2546_v60  ;;  %v11559_v31 = vld [vmem:[#allocation93_spill] sm:$0xff] }
 0x517   : > { %v590_v2 = vpop.permute.xlu1 %589 }
 0x518   : > { %6027 = vpow2.f32 %v2641_v62  ;;  %v8911_v53 = vadd.f32 %v11546_v4, %v590_v2  ;;  %v1099_v44 = vadd.f32 %v11547_v5, %v590_v2  ;;  %v6024_v62 = vpop.eup %6023  ;;  %v11552_v4 = vld [vmem:[#allocation91_spill] sm:$0xff] }
 0x519   : > { %6029 = vpow2.f32 %v2643_v42  ;;  %v595_v50 = vpop.permute.xlu0 %594  ;;  %v11551_v42 = vld [vmem:[#allocation72_spill] sm:$0xff]  ;;  %v6026_v2 = vpop.eup %6025 }
 0x51a   : > { %v8915_v8 = vadd.f32 %v11548_v21, %v595_v50  ;;  %v1105_v43 = vadd.f32 %v11549_v51, %v595_v50  ;;  %v11553_v35 = vmax.f32 %v11551_v42, %v11552_v4  ;;  %v11554_v21 = vmax.f32 %v8675_v3, %v8684_v54 }
 0x51c   : > { %v4155_v60 = vpack.c.bf16 %v1105_v43, %v1099_v44  ;;  %v11555_v44 = vmax.f32 %v8464_v30, %v8469_v20 }
 0x51e   : > { %4443 = vmax.xlane.f32.xlu0 %v11550_v22  ;;  %4753 = vmatprep.subr.bf16.mxu1 %v4155_v60  ;;  %v11556_v60 = vmax.f32 %v8691_v36, %v8696_v14  ;;  %v11558_v22 = vld [vmem:[#allocation88_spill] sm:$0xff] }
 0x520   : > { %3486 = vmax.xlane.f32.xlu1 %v11553_v35  ;;  %v11557_v35 = vpack.c.bf16 %v8735_v11, %v8716_v27  ;;  %v11565_v11 = vpack.c.bf16 %v8726_v39, %v8710_v19  ;;  %v11572_v39 = vmax.f32 %v8792_v10, %v8799_v46 }
 0x522   : > { %v6028_v5 = vpop.eup %6027  ;;  %4446 = vmax.xlane.f32.xlu0 %v11554_v21  ;;  %v11560_v21 = vmax.f32 %v11558_v22, %v11559_v31 }
 0x523   : > { %v6030_v51 = vpop.eup %6029  ;;  %v2721_v50 = vpack.c.bf16 %v6024_v62, %v6028_v5  ;;  %v11561_v62 = vmax.f32 %v8714_v47, %v8724_v55 }
 0x524   : > { %3492 = vmax.xlane.f32.xlu1 %v11555_v44  ;;  %v2722_v43 = vpack.c.bf16 %v6026_v2, %v6030_v51  ;;  %v11562_v2 = vmax.f32 %v8507_v9, %v8515_v37  ;;  %v11564_v51 = vmax.f32 %v8733_v0, %v8737_v13  ;;  %v11567_v44 = vpack.c.bf16 %v8773_v63, %v8755_v15 }
 0x525   : > { %v11573_v15 = vpack.c.bf16 %v8762_v41, %v8747_v52  ;;  %v11580_v41 = vmax.f32 %v8829_v24, %v8836_v48  ;;  %v11606_v48 = vld [vmem:[#allocation114_spill] sm:$0xff]  ;;  %v11612_v24 = vld [vmem:[#allocation40_spill] sm:$0xff] }
 0x526   : > { %2833 = vmatprep.mubr.bf16.mxu1 %v2722_v43  ;;  %4449 = vmax.xlane.f32.xlu0 %v11556_v60  ;;  %v11568_v43 = vmax.f32 %v8536_v26, %v8544_v49 }
 0x527   : > { %2834 = vmatmul.mubr.bf16.gmra.mrb[152].mxu1 %v2721_v50 }
 0x528   : > { %2841 = vmatprep.mubr.bf16.mxu1 %v11557_v35  ;;  %3498 = vmax.xlane.f32.xlu1 %v11560_v21  ;;  %v8947_v5 = vpop.f32.mrb[60].mxu1  ;;  %v11569_v35 = vmax.f32 %v8753_v61, %v8760_v29  ;;  %v11570_v21 = vmax.f32 %v8565_v23, %v8570_v57  ;;  %v11598_v29 = vld [vmem:[#allocation26_spill] sm:$0xff] }
 0x529   : > { %11563 = vst [vmem:[#allocation77_spill] sm:$0xff] %v8947_v5  ;;  %v1773_v27 = vpop.f32.mrb[61].mxu1 }
 0x52a   : > { %4452 = vmax.xlane.f32.xlu0 %v11561_v62  ;;  %v8955_v50 = vpop.f32.mrb[62].mxu1 }
 0x52b   : > { %11566 = vst [vmem:[#allocation115_spill] sm:$0xff] %v8955_v50  ;;  %v1776_v60 = vpop.f32.mrb[63].mxu1 }
 0x52c   : > { %3504 = vmax.xlane.f32.xlu1 %v11562_v2  ;;  %v11575_v2 = vpack.c.bf16 %v8813_v33, %v8794_v28  ;;  %v11581_v33 = vpack.c.bf16 %v8801_v16, %v8788_v25  ;;  %v11583_v60 = vpack.c.bf16 %v8847_v45, %v8831_v17 }
 0x52e   : > { %4455 = vmax.xlane.f32.xlu0 %v11564_v51  ;;  %v11576_v51 = vmax.f32 %v8596_v56, %v8604_v18 }
 0x52f   : > { %2842 = vmatmul.mubr.bf16.gmra.mrb[156].mxu1 %v11565_v11  ;;  %v11577_v11 = vmax.f32 %v8811_v38, %v8815_v1 }
 0x530   : > { %2849 = vmatprep.mubr.bf16.mxu1 %v11567_v44  ;;  %3510 = vmax.xlane.f32.xlu1 %v11568_v43  ;;  %v8969_v19 = vpop.f32.mrb[64].mxu1  ;;  %v11578_v44 = vmax.f32 %v8635_v12, %v8643_v7 }
 0x531   : > { %11571 = vst [vmem:[#allocation116_spill] sm:$0xff] %v8969_v19  ;;  %v1781_v63 = vpop.f32.mrb[65].mxu1 }
 0x532   : > { %4458 = vmax.xlane.f32.xlu0 %v11569_v35  ;;  %v8977_v62 = vpop.f32.mrb[66].mxu1 }
 0x533   : > { %11574 = vst [vmem:[#allocation117_spill] sm:$0xff] %v8977_v62  ;;  %v1784_v27 = vpop.f32.mrb[67].mxu1 }
 0x534   : > { %3516 = vmax.xlane.f32.xlu1 %v11570_v21  ;;  %v11584_v21 = vld [vmem:[#allocation13_spill] sm:$0xff] }
 0x536   : > { %4464 = vmax.xlane.f32.xlu0 %v11572_v39  ;;  %v11585_v39 = vld [vmem:[#allocation109_spill] sm:$0xff] }
 0x537   : > { %2850 = vmatmul.mubr.bf16.gmra.mrb[160].mxu1 %v11573_v15  ;;  %v11586_v63 = vmax.f32 %v11584_v21, %v11585_v39  ;;  %v11587_v15 = vld [vmem:[#allocation110_spill] sm:$0xff]  ;;  %v11603_v39 = vld [vmem:[#allocation27_spill] sm:$0xff] }
 0x538   : > { %2857 = vmatprep.mubr.bf16.mxu1 %v11575_v2  ;;  %4434 = vmax.xlane.f32.xlu1 %v11576_v51  ;;  %v8991_v52 = vpop.f32.mrb[68].mxu1  ;;  %v11588_v2 = vld [vmem:[#allocation29_spill] sm:$0xff] }
 0x539   : > { %11579 = vst [vmem:[#allocation118_spill] sm:$0xff] %v8991_v52  ;;  %v1789_v28 = vpop.f32.mrb[69].mxu1  ;;  %v2575_v51 = vsub.f32 %v11588_v2, %v11587_v15  ;;  %v11601_v52 = vld [vmem:[#allocation74_spill] sm:$0xff] }
 0x53a   : > { %4467 = vmax.xlane.f32.xlu0 %v11577_v11  ;;  %v8999_v43 = vpop.f32.mrb[70].mxu1  ;;  %v11590_v11 = vld [vmem:[#allocation57_spill] sm:$0xff]  ;;  %v11594_v28 = vld [vmem:[#allocation108_spill] sm:$0xff] }
 0x53b   : > { %11582 = vst [vmem:[#allocation90_spill] sm:$0xff] %v8999_v43  ;;  %v1792_v35 = vpop.f32.mrb[71].mxu1 }
 0x53c   : > { %4440 = vmax.xlane.f32.xlu1 %v11578_v44  ;;  %v11591_v44 = vld [vmem:[#allocation69_spill] sm:$0xff]  ;;  %v2701_v35 = vmul.f32 1.442695, %v2575_v51 }
 0x53d   : > { %v11592_v16 = vmax.f32 %v11590_v11, %v11591_v44 }
 0x53e   : > { %4470 = vmax.xlane.f32.xlu0 %v11580_v41  ;;  %v11593_v41 = vld [vmem:[#allocation25_spill] sm:$0xff]  ;;  %6031 = vpow2.f32 %v2701_v35 }
 0x53f   : > { %2858 = vmatmul.mubr.bf16.gmra.mrb[164].mxu1 %v11581_v33  ;;  %v2576_v17 = vsub.f32 %v11593_v41, %v11587_v15  ;;  %v11595_v33 = vld [vmem:[#allocation67_spill] sm:$0xff]  ;;  %v11604_v15 = vld [vmem:[#allocation28_spill] sm:$0xff] }
 0x540   : > { %2865 = vmatprep.mubr.bf16.mxu1 %v11583_v60  ;;  %v11596_v60 = vpack.c.bf16 %v11594_v28, %v11595_v33 }
 0x541   : > { %v2703_v33 = vmul.f32 1.442695, %v2576_v17 }
 0x542   : > { %4473 = vmax.xlane.f32.xlu0 %v11586_v63  ;;  %v11597_v63 = vld [vmem:[#allocation71_spill] sm:$0xff] }
 0x543   : > { %v3521_v2 = vsub.f32 %v11598_v29, %v11597_v63  ;;  %v351_v29 = vld [vmem:[%s10683_s2 + $0x198] sm:$0xff] }
 0x544   : > { %v9009_v27 = vpop.f32.mrb[72].mxu1 }
 0x545   : > { %11589 = vst [vmem:[#allocation75_spill] sm:$0xff] %v9009_v27  ;;  %v1797_v45 = vpop.f32.mrb[73].mxu1  ;;  %v11600_v27 = vld [vmem:[#allocation113_spill] sm:$0xff] }
 0x546   : > { %4476 = vmax.xlane.f32.xlu0 %v11592_v16  ;;  %v9014_v25 = vpop.xlane.xlu0 %3438  ;;  %v9023_v61 = vpop.f32.mrb[74].mxu1  ;;  %v11602_v44 = vpack.c.bf16 %v11600_v27, %v11601_v52  ;;  %v11605_v45 = vld [vmem:[#allocation112_spill] sm:$0xff]  ;;  %v11608_v52 = vld [vmem:[#allocation30_spill] sm:$0xff] }
 0x547   : > { %2866 = vmatmul.mubr.bf16.gmra.mrb[168].mxu1 %v11596_v60  ;;  %11599 = vst [vmem:[#allocation119_spill] sm:$0xff] %v9023_v61  ;;  %v1800_v11 = vpop.f32.mrb[75].mxu1  ;;  %v11607_v28 = vmax.f32 %v11605_v45, %v11606_v48  ;;  %v3522_v27 = vsub.f32 %v11608_v52, %v11597_v63  ;;  %v11611_v48 = vld [vmem:[#allocation41_spill] sm:$0xff] }
 0x548   : > { %2873 = vmatprep.mubr.bf16.mxu1 %v11602_v44  ;;  %v2509_v16 = vpop.xlane.xlu1 %2508  ;;  %v3585_v11 = vmul.f32 1.442695, %v3521_v2  ;;  %v11614_v2 = vld [vmem:[#allocation111_spill] sm:$0xff] }
 0x549   : > { %v2573_v21 = vsub.f32 %v11603_v39, %v2509_v16  ;;  %v2574_v41 = vsub.f32 %v11604_v15, %v2509_v16  ;;  %v11609_v16 = vld [vmem:[#allocation31_spill] sm:$0xff] }
 0x54a   : > { %4479 = vmax.xlane.f32.xlu0 %v11607_v28  ;;  %v9033_v51 = vpop.xlane.xlu0 %3459  ;;  %v11610_v28 = vld [vmem:[#allocation68_spill] sm:$0xff] }
 0x54b   : > { %v2697_v44 = vmul.f32 1.442695, %v2573_v21  ;;  %v2699_v39 = vmul.f32 1.442695, %v2574_v41  ;;  %v3525_v45 = vsub.f32 %v11611_v48, %v11610_v28  ;;  %v3587_v21 = vmul.f32 1.442695, %v3522_v27 }
 0x54c   : > { %v3430_v60 = vpop.xlane.xlu1 %3429  ;;  %v9044_v12 = vpop.f32.mrb[76].mxu1  ;;  %v11615_v41 = vld [vmem:[#allocation65_spill] sm:$0xff] }
 0x54d   : > { %6033 = vpow2.f32 %v2697_v44  ;;  %v3523_v15 = vsub.f32 %v11609_v16, %v3430_v60  ;;  %609 = vperm.xlu1 %5749, %v351_v29   ;;  %v3524_v7 = vsub.f32 %v11612_v24, %v3430_v60  ;;  %11613 = vst [vmem:[#allocation120_spill] sm:$0xff] %v9044_v12  ;;  %v1805_v63 = vpop.f32.mrb[77].mxu1  ;;  %v11616_v52 = vpack.c.bf16 %v11614_v2, %v11615_v41  ;;  %v11620_v16 = vld [vmem:[#allocation33_spill] sm:$0xff] }
 0x54e   : > { %6035 = vpow2.f32 %v2699_v39  ;;  %v9046_v17 = vpop.xlane.xlu0 %3465  ;;  %v6616_v44 = vmov 32   ;;  %v9051_v48 = vpop.f32.mrb[78].mxu1  ;;  %v11618_v24 = vpack.c.bf16 %v8902_v32, %v8896_v6  ;;  %v3593_v63 = vmul.f32 1.442695, %v3525_v45  ;;  %v11621_v2 = vld [vmem:[#allocation45_spill] sm:$0xff] }
 0x54f   : > { %6037 = vpow2.f32 %v2703_v33  ;;  %v3589_v35 = vmul.f32 1.442695, %v3523_v15  ;;  %2874 = vmatmul.mubr.bf16.gmra.mrb[172].mxu1 %v11616_v52  ;;  %5752 = vset.pattern.permute.xlu0 %v6616_v44  ;;  %v3591_v29 = vmul.f32 1.442695, %v3524_v7  ;;  %11617 = vst [vmem:[#allocation121_spill] sm:$0xff] %v9051_v48  ;;  %v11619_v33 = vld [vmem:[#allocation32_spill] sm:$0xff] }
 0x550   : > { %6039 = vpow2.f32 %v3585_v11  ;;  %2881 = vmatprep.mubr.bf16.mxu1 %v11618_v24  ;;  %v3436_v39 = vpop.xlane.xlu1 %3435  ;;  %v3526_v27 = vsub.f32 %v11619_v33, %v11610_v28  ;;  %v1808_v60 = vpop.f32.mrb[79].mxu1  ;;  %v3529_v11 = vsub.f32 %v11621_v2, %v9014_v25  ;;  %v11622_v7 = vld [vmem:[#allocation44_spill] sm:$0xff]  ;;  %v11623_v28 = vld [vmem:[#allocation34_spill] sm:$0xff]  ;;  %v11624_v33 = vld [vmem:[#allocation35_spill] sm:$0xff] }
 0x551   : > { %6041 = vpow2.f32 %v3589_v35  ;;  %v3527_v15 = vsub.f32 %v11620_v16, %v3436_v39  ;;  %5751 = vset.pattern.permute.xlu1 %v6616_v44  ;;  %v3528_v41 = vsub.f32 %v11622_v7, %v3436_v39  ;;  %v3530_v35 = vsub.f32 %v11623_v28, %v9014_v25  ;;  %v6032_v44 = vpop.eup %6031  ;;  %v11625_v16 = vld [vmem:[#allocation48_spill] sm:$0xff] }
 0x552   : > { %6043 = vpow2.f32 %v3591_v29  ;;  %v9062_v52 = vpop.xlane.xlu0 %3471  ;;  %v3595_v48 = vmul.f32 1.442695, %v3526_v27  ;;  %v3601_v45 = vmul.f32 1.442695, %v3529_v11  ;;  %v11627_v27 = vpack.c.bf16 %v8898_v58, %v8894_v40  ;;  %v11629_v58 = vld [vmem:[#allocation49_spill] sm:$0xff] }
 0x553   : > { %6045 = vpow2.f32 %v3587_v21  ;;  %v3597_v6 = vmul.f32 1.442695, %v3527_v15  ;;  %v3599_v32 = vmul.f32 1.442695, %v3528_v41 }
 0x554   : > { %v3442_v24 = vpop.xlane.xlu1 %3441  ;;  %6047 = vpow2.f32 %v3593_v63 }
 0x555   : > { %v3531_v60 = vsub.f32 %v11624_v33, %v3442_v24  ;;  %v3532_v2 = vsub.f32 %v11625_v16, %v3442_v24  ;;  %v9068_v29 = vpop.f32.mrb[80].mxu1  ;;  %6049 = vpow2.f32 %v3597_v6  ;;  %v3603_v33 = vmul.f32 1.442695, %v3530_v35  ;;  %v11631_v35 = vld [vmem:[#allocation54_spill] sm:$0xff] }
 0x556   : > { %11626 = vst [vmem:[#allocation122_spill] sm:$0xff] %v9068_v29  ;;  %v9070_v39 = vpop.xlane.xlu0 %3477  ;;  %v1813_v15 = vpop.f32.mrb[81].mxu1  ;;  %6051 = vpow2.f32 %v3599_v32 }
 0x557   : > { %v6034_v7 = vpop.eup %6033  ;;  %v3605_v21 = vmul.f32 1.442695, %v3531_v60  ;;  %2882 = vmatmul.mubr.bf16.gmra.mrb[176].mxu1 %v11627_v27  ;;  %v3607_v41 = vmul.f32 1.442695, %v3532_v2  ;;  %v9075_v28 = vpop.f32.mrb[82].mxu1  ;;  %6053 = vpow2.f32 %v3595_v48 }
 0x558   : > { %v6036_v25 = vpop.eup %6035  ;;  %11628 = vst [vmem:[#allocation83_spill] sm:$0xff] %v9075_v28  ;;  %v3445_v63 = vpop.xlane.xlu1 %3444  ;;  %v2735_v11 = vpack.c.bf16 %v6032_v44, %v6034_v7  ;;  %6055 = vpow2.f32 %v3601_v45  ;;  %v11630_v44 = vld [vmem:[#allocation37_spill] sm:$0xff] }
 0x559   : > { %v6038_v24 = vpop.eup %6037  ;;  %v1816_v16 = vpop.f32.mrb[83].mxu1  ;;  %6057 = vpow2.f32 %v3605_v21  ;;  %v3533_v32 = vsub.f32 %v11629_v58, %v3445_v63 }
 0x55a   : > { %v6040_v29 = vpop.eup %6039  ;;  %v2736_v6 = vpack.c.bf16 %v6038_v24, %v6036_v25  ;;  %v9077_v60 = vpop.xlane.xlu0 %3483  ;;  %6059 = vpow2.f32 %v3607_v41  ;;  %v11633_v24 = vld [vmem:[#allocation36_spill] sm:$0xff] }
 0x55b   : > { %v6042_v15 = vpop.eup %6041  ;;  %6061 = vpow2.f32 %v3603_v33  ;;  %v3534_v21 = vsub.f32 %v11633_v24, %v3445_v63  ;;  %v3609_v58 = vmul.f32 1.442695, %v3533_v32 }
 0x55c   : > { %v6044_v40 = vpop.eup %6043  ;;  %2889 = vmatprep.mubr.bf16.mxu1 %v2736_v6  ;;  %v3448_v2 = vpop.xlane.xlu1 %3447  ;;  %v3713_v27 = vpack.c.bf16 %v6042_v15, %v6040_v29 }
 0x55d   : > { %v6046_v28 = vpop.eup %6045  ;;  %v3535_v48 = vsub.f32 %v11630_v44, %v3448_v2  ;;  %v3536_v7 = vsub.f32 %v11631_v35, %v3448_v2  ;;  %v9082_v16 = vpop.f32.mrb[84].mxu1  ;;  %6063 = vpow2.f32 %v3609_v58 }
 0x55e   : > { %11632 = vst [vmem:[#allocation123_spill] sm:$0xff] %v9082_v16  ;;  %v9084_v45 = vpop.xlane.xlu0 %3489  ;;  %v3714_v25 = vpack.c.bf16 %v6044_v40, %v6046_v28  ;;  %v1821_v12 = vpop.f32.mrb[85].mxu1  ;;  %v3611_v28 = vmul.f32 1.442695, %v3534_v21 }
 0x55f   : > { %2890 = vmatmul.mubr.bf16.gmra.mrb[180].mxu1 %v2735_v11  ;;  %v6048_v41 = vpop.eup %6047  ;;  %v9087_v6 = vpop.f32.mrb[86].mxu1  ;;  %v3613_v15 = vmul.f32 1.442695, %v3535_v48  ;;  %v3615_v2 = vmul.f32 1.442695, %v3536_v7 }
 0x560   : > { %11634 = vst [vmem:[#allocation124_spill] sm:$0xff] %v9087_v6  ;;  %3777 = vmatprep.mubr.bf16.mxu1 %v3714_v25  ;;  %v3451_v29 = vpop.xlane.xlu1 %3450  ;;  %v6050_v33 = vpop.eup %6049  ;;  %v11635_v25 = vld [vmem:[#allocation55_spill] sm:$0xff] }
 0x561   : > { %v1824_v44 = vpop.f32.mrb[87].mxu1  ;;  %v6052_v1 = vpop.eup %6051  ;;  %v3715_v16 = vpack.c.bf16 %v6050_v33, %v6048_v41  ;;  %6065 = vpow2.f32 %v3613_v15  ;;  %v3537_v48 = vsub.f32 %v11635_v25, %v3451_v29  ;;  %v11637_v33 = vld [vmem:[#allocation39_spill] sm:$0xff] }
 0x562   : > { %v9089_v35 = vpop.xlane.xlu0 %3495  ;;  %v6054_v38 = vpop.eup %6053  ;;  %6067 = vpow2.f32 %v3615_v2  ;;  %v11640_v2 = vpack.c.bf16 %v8915_v8, %v8911_v53  ;;  %v11644_v53 = vld [vmem:[#allocation43_spill] sm:$0xff] }
 0x563   : > { %v9091_v40 = vpop.eup %6055  ;;  %v3716_v63 = vpack.c.bf16 %v6052_v1, %v6054_v38  ;;  %6069 = vpow2.f32 %v3611_v28  ;;  %v11638_v38 = vld [vmem:[#allocation51_spill] sm:$0xff]  ;;  %v3617_v18 = vmul.f32 1.442695, %v3537_v48 }
 0x564   : > { %v3454_v12 = vpop.xlane.xlu1 %3453  ;;  %v9093_v11 = vpop.eup %6057 }
 0x565   : > { %v6060_v32 = vpop.eup %6059  ;;  %v9096_v24 = vpop.f32.mrb[88].mxu1  ;;  %v3539_v58 = vsub.f32 %v11637_v33, %v3454_v12  ;;  %v3540_v1 = vsub.f32 %v11638_v38, %v3454_v12  ;;  %v11642_v33 = vld [vmem:[#allocation61_spill] sm:$0xff]  ;;  %v11643_v12 = vld [vmem:[#allocation46_spill] sm:$0xff]  ;;  %6071 = vpow2.f32 %v3617_v18 }
 0x566   : > { %11636 = vst [vmem:[#allocation85_spill] sm:$0xff] %v9096_v24  ;;  %v9098_v7 = vpop.xlane.xlu0 %3501  ;;  %v6062_v21 = vpop.eup %6061  ;;  %v11641_v24 = vld [vmem:[#allocation38_spill] sm:$0xff]  ;;  %v3544_v38 = vsub.f32 %v11643_v12, %v9033_v51  ;;  %v11648_v12 = vld [vmem:[#allocation56_spill] sm:$0xff] }
 0x567   : > { %v1829_v44 = vpop.f32.mrb[89].mxu1  ;;  %3778 = vmatmul.mubr.bf16.vlgmr.msra.gmra.mrb[184].mxu1 %v3713_v27  ;;  %v3718_v6 = vpack.c.bf16 %v6060_v32, %v6062_v21  ;;  %v3538_v46 = vsub.f32 %v11641_v24, %v3451_v29  ;;  %v3543_v27 = vsub.f32 %v11642_v33, %v9033_v51  ;;  %v3623_v56 = vmul.f32 1.442695, %v3540_v1  ;;  %v11645_v29 = vld [vmem:[#allocation60_spill] sm:$0xff] }
 0x568   : > { %v9104_v15 = vpop.f32.mrb[90].mxu1  ;;  %4754 = vmatpush1.bf16.xpose.msra.mxu1 %v11640_v2  ;;  %3785 = vmatprep.mubr.bf16.mxu1 %v3716_v63  ;;  %v3457_v25 = vpop.xlane.xlu1 %3456  ;;  %v3621_v44 = vmul.f32 1.442695, %v3539_v58  ;;  %v11647_v58 = vld [vmem:[#allocation53_spill] sm:$0xff]  ;;  %v3631_v33 = vmul.f32 1.442695, %v3544_v38  ;;  %v3548_v18 = vsub.f32 %v11648_v12, %v9046_v17 }
 0x569   : > { %11639 = vst [vmem:[#allocation92_spill] sm:$0xff] %v9104_v15  ;;  %v1832_v41 = vpop.f32.mrb[91].mxu1  ;;  %v3619_v8 = vmul.f32 1.442695, %v3538_v46  ;;  %v3541_v63 = vsub.f32 %v11644_v53, %v3457_v25  ;;  %v9117_v2 = vpop.eup %6063  ;;  %v3542_v32 = vsub.f32 %v11645_v29, %v3457_v25  ;;  %v3629_v21 = vmul.f32 1.442695, %v3543_v27 }
 0x56a   : > { %v9110_v28 = vpop.xlane.xlu0 %3507  ;;  %v3547_v51 = vsub.f32 %v11647_v58, %v9046_v17  ;;  %6073 = vpow2.f32 %v3621_v44  ;;  %v11650_v58 = vld [vmem:[#allocation47_spill] sm:$0xff]  ;;  %v3639_v29 = vmul.f32 1.442695, %v3548_v18 }
 0x56b   : > { %v9124_v41 = vpop.eup %6065  ;;  %6075 = vpow2.f32 %v3623_v56  ;;  %v3627_v57 = vmul.f32 1.442695, %v3542_v32  ;;  %v11654_v17 = vld [vmem:[#allocation63_spill] sm:$0xff] }
 0x56c   : > { %v3463_v10 = vpop.xlane.xlu1 %3462  ;;  %v6068_v46 = vpop.eup %6067  ;;  %6077 = vpow2.f32 %v3619_v8 }
 0x56d   : > { %v6070_v27 = vpop.eup %6069  ;;  %v3545_v44 = vsub.f32 %v11650_v58, %v3463_v10  ;;  %v3546_v56 = vsub.f32 %v11654_v17, %v3463_v10  ;;  %6079 = vpow2.f32 %v3629_v21  ;;  %v11656_v58 = vld [vmem:[#allocation59_spill] sm:$0xff] }
 0x56e   : > { %v9120_v48 = vpop.f32.mrb[92].mxu1  ;;  %v9122_v24 = vpop.xlane.xlu0 %3513  ;;  %v3720_v12 = vpack.c.bf16 %v6068_v46, %v6070_v27  ;;  %6081 = vpow2.f32 %v3631_v33  ;;  %v11659_v33 = vpack.c.bf16 %v9093_v11, %v9091_v40  ;;  %v11661_v27 = vld [vmem:[#allocation66_spill] sm:$0xff] }
 0x56f   : > { %11646 = vst [vmem:[#allocation99_spill] sm:$0xff] %v9120_v48  ;;  %v1837_v1 = vpop.f32.mrb[93].mxu1  ;;  %3786 = vmatmul.mubr.bf16.gmra.mrb[188].mxu1 %v3715_v16  ;;  %v3625_v48 = vmul.f32 1.442695, %v3541_v63  ;;  %v11651_v16 = vld [vmem:[#allocation11_spill] sm:$0xff]  ;;  %v9153_v18 = vpop.eup %6071 }
 0x570   : > { %v9130_v25 = vpop.f32.mrb[94].mxu1  ;;  %3793 = vmatprep.mubr.bf16.mxu1 %v3718_v6  ;;  %v3469_v53 = vpop.xlane.xlu1 %3468  ;;  %v11653_v38 = vmax.f32 %v11651_v16, %v11652_v59  ;;  %v3637_v6 = vmul.f32 1.442695, %v3547_v51  ;;  %v3635_v32 = vmul.f32 1.442695, %v3546_v56  ;;  %v11658_v51 = vld [vmem:[#allocation64_spill] sm:$0xff] }
 0x571   : > { %11649 = vst [vmem:[#allocation100_spill] sm:$0xff] %v9130_v25  ;;  %v1840_v1 = vpop.f32.mrb[95].mxu1  ;;  %v11655_v25 = vld [vmem:[#allocation58_spill] sm:$0xff]  ;;  %6083 = vpow2.f32 %v3625_v48  ;;  %v3549_v46 = vsub.f32 %v11658_v51, %v3469_v53 }
 0x572   : > { %4461 = vmax.xlane.f32.xlu1 %v11653_v38  ;;  %v3551_v23 = vsub.f32 %v11655_v25, %v9062_v52  ;;  %v9141_v8 = vpop.xlane.xlu0 %3519  ;;  %v3552_v1 = vsub.f32 %v11656_v58, %v9062_v52  ;;  %v3633_v38 = vmul.f32 1.442695, %v3545_v44  ;;  %6085 = vpow2.f32 %v3627_v57  ;;  %v11660_v52 = vld [vmem:[#allocation81_spill] sm:$0xff]  ;;  %v11665_v51 = vld [vmem:[#allocation78_spill] sm:$0xff] }
 0x573   : > { %6087 = vpow2.f32 %v3637_v6  ;;  %v3555_v48 = vsub.f32 %v11660_v52, %v9070_v39  ;;  %v3550_v57 = vsub.f32 %v11661_v27, %v3469_v53  ;;  %v11663_v6 = vld [vmem:[#allocation82_spill] sm:$0xff] }
 0x574   : > { %v9143_v63 = vpop.xlane.xlu1 %3474  ;;  %v3645_v21 = vmul.f32 1.442695, %v3551_v23  ;;  %6089 = vpow2.f32 %v3639_v29  ;;  %v9162_v23 = vpop.eup %6073  ;;  %v3647_v56 = vmul.f32 1.442695, %v3552_v1  ;;  %v3556_v40 = vsub.f32 %v11663_v6, %v9070_v39  ;;  %v11666_v53 = vld [vmem:[#allocation70_spill] sm:$0xff] }
 0x575   : > { %6091 = vpow2.f32 %v3633_v38  ;;  %v6076_v29 = vpop.eup %6075  ;;  %v3641_v38 = vmul.f32 1.442695, %v3549_v46 }
 0x576   : > { %v9147_v10 = vpop.f32.mrb[96].mxu1  ;;  %v9166_v58 = vpop.f32.mrb[16].mxu0  ;;  %6093 = vpow2.f32 %v3635_v32  ;;  %v3643_v32 = vmul.f32 1.442695, %v3550_v57  ;;  %v3655_v1 = vmul.f32 1.442695, %v3556_v40 }
 0x577   : > { %11657 = vst [vmem:[#allocation97_spill] sm:$0xff] %v9147_v10  ;;  %v1845_v25 = vpop.f32.mrb[97].mxu1  ;;  %3794 = vmatmul.mubr.bf16.gmra.mrb[192].mxu1 %v11659_v33  ;;  %11664 = vst [vmem:[#allocation15_spill] sm:$0xff] %v9166_v58  ;;  %v9172_v33 = vpop.f32.mrb[17].mxu0  ;;  %6095 = vpow2.f32 %v3645_v21  ;;  %v11672_v21 = vld [vmem:[#allocation89_spill] sm:$0xff]  ;;  %v11676_v40 = vld [vmem:[#allocation20_spill] sm:$0xff] }
 0x578   : > { %v9158_v44 = vpop.f32.mrb[98].mxu1  ;;  %3801 = vmatprep.mubr.bf16.mxu1 %v3720_v12  ;;  %v9160_v17 = vpop.xlane.xlu1 %3480  ;;  %v3559_v25 = vsub.f32 %v11665_v51, %v9077_v60  ;;  %v3553_v12 = vsub.f32 %v11666_v53, %v9143_v63  ;;  %11667 = vst [vmem:[#allocation16_spill] sm:$0xff] %v9172_v33  ;;  %v4481_v27 = vmax.f32 %v9166_v58, %v9172_v33  ;;  %v11670_v51 = vld [vmem:[#allocation73_spill] sm:$0xff]  ;;  %6097 = vpow2.f32 %v3647_v56 }
 0x579   : > { %11662 = vst [vmem:[#allocation98_spill] sm:$0xff] %v9158_v44  ;;  %v1848_v11 = vpop.f32.mrb[99].mxu1  ;;  %v9174_v52 = vpop.xlane.xlu0 %4437  ;;  %v3554_v53 = vsub.f32 %v11670_v51, %v9143_v63  ;;  %v3560_v46 = vsub.f32 %v11672_v21, %v9077_v60  ;;  %v11673_v63 = vld [vmem:[#allocation84_spill] sm:$0xff]  ;;  %6099 = vpow2.f32 %v3641_v38  ;;  %v11677_v21 = vpack.c.bf16 %v9124_v41, %v9117_v2 }
 0x57a   : > { %11668 = vst [vmem:[#allocation17_spill] sm:$0xff] %v9174_v52  ;;  %v6078_v39 = vpop.eup %6077  ;;  %v9180_v6 = vpop.f32.mrb[18].mxu0  ;;  %v3653_v11 = vmul.f32 1.442695, %v3555_v48  ;;  %4482 = vmax.xlane.f32.xlu0 %v4481_v27  ;;  %v3661_v57 = vmul.f32 1.442695, %v3559_v25  ;;  %v3557_v51 = vsub.f32 %v11673_v63, %v9160_v17  ;;  %6101 = vpow2.f32 %v3643_v32 }
 0x57b   : > { %11669 = vst [vmem:[#allocation18_spill] sm:$0xff] %v9180_v6  ;;  %v9184_v16 = vpop.f32.mrb[19].mxu0  ;;  %v3722_v10 = vpack.c.bf16 %v6076_v29, %v6078_v39  ;;  %v9186_v44 = vpop.eup %6079  ;;  %v3649_v58 = vmul.f32 1.442695, %v3553_v12  ;;  %v11678_v25 = vld [vmem:[#allocation21_spill] sm:$0xff] }
 0x57c   : > { %v600_v59 = vpop.permute.xlu1 %599  ;;  %11671 = vst [vmem:[#allocation72_spill] sm:$0xff] %v9184_v16  ;;  %v4484_v33 = vmax.f32 %v9180_v6, %v9184_v16  ;;  %v6082_v48 = vpop.eup %6081  ;;  %v11679_v16 = vld [vmem:[#allocation22_spill] sm:$0xff]  ;;  %6103 = vpow2.f32 %v3653_v11 }
 0x57d   : > { %v1107_v52 = vadd.f32 %v11674_v34, %v600_v59  ;;  %v9197_v56 = vpop.eup %6083  ;;  %v1109_v60 = vadd.f32 %v11676_v40, %v600_v59  ;;  %v3651_v34 = vmul.f32 1.442695, %v3554_v53  ;;  %6105 = vpow2.f32 %v3655_v1 }
 0x57e   : > { %v9195_v29 = vpop.f32.mrb[100].mxu1  ;;  %v605_v39 = vpop.permute.xlu0 %604  ;;  %v3723_v59 = vpack.c.bf16 %v9186_v44, %v9197_v56  ;;  %4485 = vmax.xlane.f32.xlu0 %v4484_v33  ;;  %6107 = vpow2.f32 %v3649_v58  ;;  %v3657_v44 = vmul.f32 1.442695, %v3557_v51 }
 0x57f   : > { %11675 = vst [vmem:[#allocation91_spill] sm:$0xff] %v9195_v29  ;;  %v1853_v27 = vpop.f32.mrb[101].mxu1  ;;  %3802 = vmatmul.mubr.bf16.gmra.mrb[196].mxu1 %v11677_v21  ;;  %v1113_v12 = vadd.f32 %v11678_v25, %v605_v39  ;;  %v1115_v6 = vadd.f32 %v11679_v16, %v605_v39  ;;  %v6086_v63 = vpop.eup %6085  ;;  %v11680_v29 = vld [vmem:[#allocation76_spill] sm:$0xff]  ;;  %6109 = vpow2.f32 %v3651_v34 }
 0x580   : > { %v3558_v49 = vsub.f32 %v11680_v29, %v9160_v17  ;;  %v9207_v26 = vpop.f32.mrb[102].mxu1  ;;  %3809 = vmatprep.mubr.bf16.mxu1 %v3722_v10  ;;  %v9209_v38 = vpop.f32.mrb[20].mxu0  ;;  %v3724_v53 = vpack.c.bf16 %v6082_v48, %v6086_v63  ;;  %v3663_v17 = vmul.f32 1.442695, %v3560_v46  ;;  %6111 = vpow2.f32 %v3661_v57 }
 0x581   : > { %v9213_v2 = vpop.eup %6087  ;;  %v4156_v41 = vpack.c.bf16 %v1113_v12, %v1107_v52  ;;  %v1856_v40 = vpop.f32.mrb[103].mxu1  ;;  %v4157_v32 = vpack.c.bf16 %v1115_v6, %v1109_v60 }
 0x582   : > { %v9215_v16 = vpop.f32.mrb[21].mxu0  ;;  %v6090_v39 = vpop.eup %6089  ;;  %v3659_v52 = vmul.f32 1.442695, %v3558_v49  ;;  %6113 = vpow2.f32 %v3663_v17  ;;  %v11681_v49 = vpack.c.bf16 %v9162_v23, %v9153_v18 }
 0x583   : > { %v4487_v10 = vmax.f32 %v9209_v38, %v9215_v16  ;;  %v9219_v29 = vpop.f32.mrb[22].mxu0  ;;  %v9221_v27 = vpop.eup %6091  ;;  %4755 = vmatprep.subr.bf16.mxu1 %v4157_v32  ;;  %6115 = vpow2.f32 %v3657_v44 }
 0x584   : > { %v9223_v11 = vpop.f32.mrb[23].mxu0  ;;  %v6094_v33 = vpop.eup %6093  ;;  %4756 = vmatpush1.bf16.xpose.msra.mxu1 %v4156_v41  ;;  %v3725_v1 = vpack.c.bf16 %v9213_v2, %v9221_v27  ;;  %6117 = vpow2.f32 %v3659_v52 }
 0x585   : > { %v4490_v6 = vmax.f32 %v9219_v29, %v9223_v11  ;;  %v9229_v46 = vpop.eup %6095  ;;  %4488 = vmax.xlane.f32.xlu0 %v4487_v10  ;;  %v3726_v48 = vpack.c.bf16 %v6090_v39, %v6094_v33 }
 0x586   : > { %v9231_v58 = vpop.f32.mrb[104].mxu1  ;;  %v6098_v51 = vpop.eup %6097 }
 0x587   : > { %4491 = vmax.xlane.f32.xlu1 %v4490_v6  ;;  %v1861_v56 = vpop.f32.mrb[105].mxu1  ;;  %3810 = vmatmul.mubr.bf16.gmra.mrb[200].mxu1 %v11681_v49  ;;  %v9238_v21 = vpop.f32.mrb[24].mxu0 }
 0x588   : > { %v9236_v60 = vpop.f32.mrb[106].mxu1  ;;  %3817 = vmatprep.mubr.bf16.mxu1 %v3724_v53  ;;  %11682 = vst [vmem:[#allocation88_spill] sm:$0xff] %v9238_v21  ;;  %v6100_v57 = vpop.eup %6099 }
 0x589   : > { %v1864_v25 = vpop.f32.mrb[107].mxu1  ;;  %v9240_v12 = vpop.f32.mrb[25].mxu0  ;;  %v3727_v41 = vpack.c.bf16 %v9229_v46, %v6100_v57 }
 0x58a   : > { %11683 = vst [vmem:[#allocation93_spill] sm:$0xff] %v9240_v12  ;;  %v6102_v63 = vpop.eup %6101  ;;  %v4493_v34 = vmax.f32 %v9238_v21, %v9240_v12  ;;  %v9244_v2 = vpop.f32.mrb[26].mxu0  ;;  %v11749_v21 = vld [vmem:[#allocation107_spill] sm:$0xff] }
 0x58b   : > { %11684 = vst [vmem:[#allocation110_spill] sm:$0xff] %v9244_v2  ;;  %v9247_v18 = vpop.eup %6103  ;;  %v9249_v23 = vpop.f32.mrb[27].mxu0  ;;  %v3728_v40 = vpack.c.bf16 %v6098_v51, %v6102_v63 }
 0x58c   : > { %11685 = vst [vmem:[#allocation29_spill] sm:$0xff] %v9249_v23  ;;  %v6106_v32 = vpop.eup %6105  ;;  %v4496_v53 = vmax.f32 %v9244_v2, %v9249_v23  ;;  %4494 = vmax.xlane.f32.xlu0 %v4493_v34 }
 0x58d   : > { %v9253_v39 = vpop.eup %6107 }
 0x58e   : > { %v6110_v17 = vpop.eup %6109  ;;  %v9255_v10 = vpop.f32.mrb[108].mxu1  ;;  %4497 = vmax.xlane.f32.xlu1 %v4496_v53 }
 0x58f   : > { %11686 = vst [vmem:[#allocation25_spill] sm:$0xff] %v9255_v10  ;;  %v9259_v44 = vpop.eup %6111  ;;  %v1869_v33 = vpop.f32.mrb[109].mxu1  ;;  %3818 = vmatmul.mubr.bf16.gmra.mrb[204].mxu1 %v3723_v59  ;;  %v3730_v52 = vpack.c.bf16 %v6106_v32, %v6110_v17 }
 0x590   : > { %v9261_v6 = vpop.eup %6113  ;;  %v9263_v46 = vpop.f32.mrb[110].mxu1  ;;  %3825 = vmatprep.mubr.bf16.mxu1 %v3726_v48 }
 0x591   : > { %11687 = vst [vmem:[#allocation108_spill] sm:$0xff] %v9263_v46  ;;  %v9265_v51 = vpop.f32.mrb[28].mxu0  ;;  %v9267_v56 = vpop.eup %6115 }
 0x592   : > { %11688 = vst [vmem:[#allocation67_spill] sm:$0xff] %v9265_v51  ;;  %v1872_v49 = vpop.f32.mrb[111].mxu1  ;;  %v9269_v57 = vpop.f32.mrb[29].mxu0 }
 0x593   : > { %11689 = vst [vmem:[#allocation71_spill] sm:$0xff] %v9269_v57  ;;  %v6118_v25 = vpop.eup %6117  ;;  %v4499_v63 = vmax.f32 %v9265_v51, %v9269_v57  ;;  %v9273_v34 = vpop.f32.mrb[30].mxu0 }
 0x594   : > { %11690 = vst [vmem:[#allocation26_spill] sm:$0xff] %v9273_v34  ;;  %v9277_v32 = vpop.f32.mrb[31].mxu0  ;;  %v3732_v48 = vpack.c.bf16 %v9261_v6, %v6118_v25 }
 0x595   : > { %11691 = vst [vmem:[#allocation113_spill] sm:$0xff] %v9277_v32  ;;  %v4502_v53 = vmax.f32 %v9273_v34, %v9277_v32  ;;  %4500 = vmax.xlane.f32.xlu0 %v4499_v63  ;;  %v11727_v34 = vld [vmem:[#allocation6_spill] sm:$0xff] }
 0x596   : > { %v9282_v17 = vpop.f32.mrb[112].mxu1 }
 0x597   : > { %11692 = vst [vmem:[#allocation74_spill] sm:$0xff] %v9282_v17  ;;  %4503 = vmax.xlane.f32.xlu1 %v4502_v53  ;;  %v1877_v33 = vpop.f32.mrb[113].mxu1  ;;  %3826 = vmatmul.mubr.bf16.gmra.mrb[208].mxu1 %v3725_v1  ;;  %v9286_v27 = vpop.f32.mrb[32].mxu0 }
 0x598   : > { %v9284_v49 = vpop.f32.mrb[114].mxu1  ;;  %3833 = vmatprep.mubr.bf16.mxu1 %v3728_v40  ;;  %11694 = vst [vmem:[#allocation28_spill] sm:$0xff] %v9286_v27  ;;  %v9288_v59 = vpop.f32.mrb[33].mxu0  ;;  %v11701_v33 = vld [vmem:[#allocation104_spill] sm:$0xff] }
 0x599   : > { %11693 = vst [vmem:[#allocation27_spill] sm:$0xff] %v9284_v49  ;;  %v1880_v46 = vpop.f32.mrb[115].mxu1  ;;  %11695 = vst [vmem:[#allocation30_spill] sm:$0xff] %v9288_v59  ;;  %v4505_v6 = vmax.f32 %v9286_v27, %v9288_v59  ;;  %v9292_v25 = vpop.f32.mrb[34].mxu0  ;;  %6119 = vrcp.f32 %v11701_v33  ;;  %v11702_v49 = vld [vmem:[#allocation79_spill] sm:$0xff] }
 0x59a   : > { %11696 = vst [vmem:[#allocation31_spill] sm:$0xff] %v9292_v25  ;;  %v9294_v10 = vpop.f32.mrb[35].mxu0  ;;  %v3563_v17 = vsub.f32 %v11702_v49, %v9084_v45 }
 0x59b   : > { %11697 = vst [vmem:[#allocation68_spill] sm:$0xff] %v9294_v10  ;;  %v4508_v63 = vmax.f32 %v9292_v25, %v9294_v10  ;;  %4506 = vmax.xlane.f32.xlu0 %v4505_v6  ;;  %v11704_v10 = vld [vmem:[#allocation10_spill] sm:$0xff]  ;;  %v11705_v6 = vld [vmem:[#allocation80_spill] sm:$0xff] }
 0x59c   : > { %6121 = vrcp.f32 %v11704_v10  ;;  %v11710_v10 = vld [vmem:[#allocation94_spill] sm:$0xff] }
 0x59d   : > { %4509 = vmax.xlane.f32.xlu1 %v4508_v63  ;;  %v3564_v63 = vsub.f32 %v11705_v6, %v9084_v45  ;;  %6123 = vrcp.f32 %v8947_v5  ;;  %v3669_v6 = vmul.f32 1.442695, %v3563_v17 }
 0x59e   : > { %v9298_v1 = vpop.f32.mrb[116].mxu1  ;;  %6125 = vrcp.f32 %v8955_v50 }
 0x59f   : > { %11698 = vst [vmem:[#allocation41_spill] sm:$0xff] %v9298_v1  ;;  %v1885_v40 = vpop.f32.mrb[117].mxu1  ;;  %3834 = vmatmul.mubr.bf16.gmra.mrb[212].mxu1 %v3727_v41  ;;  %v9302_v46 = vpop.f32.mrb[36].mxu0  ;;  %6127 = vrcp.f32 %v8969_v19  ;;  %v3671_v5 = vmul.f32 1.442695, %v3564_v63  ;;  %v11713_v63 = vld [vmem:[#allocation96_spill] sm:$0xff] }
 0x5a0   : > { %v9300_v53 = vpop.f32.mrb[118].mxu1  ;;  %3841 = vmatprep.mubr.bf16.mxu1 %v3730_v52  ;;  %11700 = vst [vmem:[#allocation111_spill] sm:$0xff] %v9302_v46  ;;  %v9307_v27 = vpop.f32.mrb[37].mxu0  ;;  %v11707_v52 = vld [vmem:[#allocation86_spill] sm:$0xff]  ;;  %6129 = vrcp.f32 %v8977_v62 }
 0x5a1   : > { %11699 = vst [vmem:[#allocation40_spill] sm:$0xff] %v9300_v53  ;;  %v1888_v59 = vpop.f32.mrb[119].mxu1  ;;  %11703 = vst [vmem:[#allocation65_spill] sm:$0xff] %v9307_v27  ;;  %v4511_v41 = vmax.f32 %v9302_v46, %v9307_v27  ;;  %v9314_v40 = vpop.f32.mrb[38].mxu0  ;;  %v3567_v1 = vsub.f32 %v11707_v52, %v9089_v35  ;;  %v3571_v52 = vsub.f32 %v11710_v10, %v9098_v7  ;;  %6131 = vrcp.f32 %v8999_v43 }
 0x5a2   : > { %11706 = vst [vmem:[#allocation32_spill] sm:$0xff] %v9314_v40  ;;  %v9319_v53 = vpop.f32.mrb[39].mxu0  ;;  %v11709_v59 = vld [vmem:[#allocation87_spill] sm:$0xff]  ;;  %6133 = vrcp.f32 %v9023_v61  ;;  %v3575_v10 = vsub.f32 %v11713_v63, %v9110_v28  ;;  %v11718_v63 = vld [vmem:[#allocation8_spill] sm:$0xff] }
 0x5a3   : > { %11708 = vst [vmem:[#allocation33_spill] sm:$0xff] %v9319_v53  ;;  %v3568_v49 = vsub.f32 %v11709_v59, %v9089_v35  ;;  %v4514_v45 = vmax.f32 %v9314_v40, %v9319_v53  ;;  %4512 = vmax.xlane.f32.xlu0 %v4511_v41  ;;  %v3677_v50 = vmul.f32 1.442695, %v3567_v1  ;;  %v11711_v35 = vld [vmem:[#allocation95_spill] sm:$0xff]  ;;  %v11712_v41 = vpack.c.bf16 %v9247_v18, %v9253_v39  ;;  %v11715_v1 = vld [vmem:[#allocation5_spill] sm:$0xff] }
 0x5a4   : > { %v3572_v59 = vsub.f32 %v11711_v35, %v9098_v7  ;;  %6135 = vpow2.f32 %v3669_v6  ;;  %v3576_v7 = vsub.f32 %v11715_v1, %v9110_v28  ;;  %v3685_v18 = vmul.f32 1.442695, %v3571_v52 }
 0x5a5   : > { %4515 = vmax.xlane.f32.xlu1 %v4514_v45  ;;  %v3679_v17 = vmul.f32 1.442695, %v3568_v49  ;;  %6137 = vpow2.f32 %v3671_v5  ;;  %v3579_v6 = vsub.f32 %v11718_v63, %v9122_v24  ;;  %v3693_v5 = vmul.f32 1.442695, %v3575_v10 }
 0x5a6   : > { %v9330_v33 = vpop.f32.mrb[120].mxu1  ;;  %6139 = vpow2.f32 %v3677_v50  ;;  %v3695_v50 = vmul.f32 1.442695, %v3576_v7 }
 0x5a7   : > { %v2773_v53 = vpop.f32.mrb[121].mxu1  ;;  %3842 = vmatmul.mubr.bf16.gmra.mrb[216].mxu1 %v11712_v41  ;;  %v9353_v41 = vpop.eup %6119  ;;  %6141 = vpow2.f32 %v3679_v17 }
 0x5a8   : > { %v9341_v62 = vpop.f32.mrb[122].mxu1  ;;  %3849 = vmatprep.mubr.bf16.mxu1 %v3732_v48  ;;  %v9343_v45 = vpop.f32.mrb[40].mxu0  ;;  %v3687_v48 = vmul.f32 1.442695, %v3572_v59  ;;  %6143 = vrcp.f32 %v9104_v15  ;;  %v11720_v15 = vpack.c.bf16 %v9259_v44, %v9267_v56 }
 0x5a9   : > { %11714 = vst [vmem:[#allocation45_spill] sm:$0xff] %v9343_v45  ;;  %v2776_v53 = vpop.f32.mrb[123].mxu1  ;;  %v9347_v35 = vpop.f32.mrb[41].mxu0  ;;  %6145 = vpow2.f32 %v3685_v18 }
 0x5aa   : > { %11716 = vst [vmem:[#allocation44_spill] sm:$0xff] %v9347_v35  ;;  %v4517_v39 = vmax.f32 %v9343_v45, %v9347_v35  ;;  %v9351_v49 = vpop.f32.mrb[42].mxu0  ;;  %v9361_v1 = vpop.eup %6121  ;;  %6147 = vpow2.f32 %v3687_v48 }
 0x5ab   : > { %11717 = vst [vmem:[#allocation34_spill] sm:$0xff] %v9351_v49  ;;  %v9357_v61 = vpop.f32.mrb[43].mxu0  ;;  %v9359_v28 = vpop.xlane.xlu0 %4443  ;;  %6149 = vpow2.f32 %v3693_v5 }
 0x5ac   : > { %11719 = vst [vmem:[#allocation35_spill] sm:$0xff] %v9357_v61  ;;  %v4520_v52 = vmax.f32 %v9351_v49, %v9357_v61  ;;  %4518 = vmax.xlane.f32.xlu0 %v4517_v39  ;;  %v9365_v53 = vpop.eup %6123  ;;  %v3701_v39 = vmul.f32 1.442695, %v3579_v6  ;;  %6151 = vpow2.f32 %v3695_v50 }
 0x5ad   : > { %v3487_v59 = vpop.xlane.xlu1 %3486  ;;  %v9368_v43 = vpop.eup %6125 }
 0x5ae   : > { %v9370_v63 = vpop.f32.mrb[124].mxu1  ;;  %v3561_v19 = vsub.f32 %v11551_v42, %v3487_v59  ;;  %v3562_v17 = vsub.f32 %v11552_v4, %v3487_v59  ;;  %4521 = vmax.xlane.f32.xlu1 %v4520_v52  ;;  %v9374_v10 = vpop.eup %6127  ;;  %v11723_v59 = vld [vmem:[#allocation125_spill] sm:$0xff] }
 0x5af   : > { %v2781_v61 = vpop.f32.mrb[125].mxu1  ;;  %3850 = vmatmul.mubr.bf16.gmra.mrb[220].mxu1 %v11720_v15  ;;  %v4447_v7 = vpop.xlane.xlu0 %4446 }
 0x5b0   : > { %v9379_v49 = vpop.eup %6129  ;;  %v3665_v18 = vmul.f32 1.442695, %v3561_v19  ;;  %v3667_v35 = vmul.f32 1.442695, %v3562_v17  ;;  %v9381_v45 = vpop.f32.mrb[126].mxu1  ;;  %v4537_v42 = vsub.f32 %v8675_v3, %v4447_v7  ;;  %v4538_v48 = vsub.f32 %v8684_v54, %v4447_v7 }
 0x5b1   : > { %v9384_v4 = vpop.f32.mrb[44].mxu0  ;;  %v9386_v52 = vpop.eup %6131  ;;  %v3580_v17 = vsub.f32 %v11723_v59, %v9122_v24  ;;  %v11724_v24 = vld [vmem:[#allocation128_spill] sm:$0xff] }
 0x5b2   : > { %11721 = vst [vmem:[#allocation48_spill] sm:$0xff] %v9384_v4  ;;  %v2784_v61 = vpop.f32.mrb[127].mxu1  ;;  %v3493_v44 = vpop.xlane.xlu1 %3492  ;;  %6153 = vpow2.f32 %v3665_v18  ;;  %v4609_v56 = vmul.f32 1.442695, %v4537_v42  ;;  %v4611_v50 = vmul.f32 1.442695, %v4538_v48 }
 0x5b3   : > { %v9389_v15 = vpop.eup %6133  ;;  %v3565_v19 = vsub.f32 %v8464_v30, %v3493_v44  ;;  %v3566_v6 = vsub.f32 %v8469_v20, %v3493_v44  ;;  %v9393_v5 = vpop.f32.mrb[45].mxu0  ;;  %6155 = vpow2.f32 %v3667_v35  ;;  %v3583_v35 = vsub.f32 %v11724_v24, %v9141_v8 }
 0x5b4   : > { %11722 = vst [vmem:[#allocation49_spill] sm:$0xff] %v9393_v5  ;;  %v9395_v3 = vpop.eup %6135  ;;  %v4523_v54 = vmax.f32 %v9384_v4, %v9393_v5  ;;  %v4450_v7 = vpop.xlane.xlu0 %4449  ;;  %6157 = vpow2.f32 %v3701_v39 }
 0x5b5   : > { %v9401_v61 = vpop.f32.mrb[46].mxu0  ;;  %v9403_v18 = vpop.eup %6137  ;;  %v3673_v30 = vmul.f32 1.442695, %v3565_v19  ;;  %v3675_v20 = vmul.f32 1.442695, %v3566_v6  ;;  %v4539_v42 = vsub.f32 %v8691_v36, %v4450_v7  ;;  %6159 = vpow2.f32 %v4609_v56 }
 0x5b6   : > { %v9406_v44 = vpop.f32.mrb[47].mxu0  ;;  %v9408_v40 = vpop.eup %6139  ;;  %v4540_v48 = vsub.f32 %v8696_v14, %v4450_v7  ;;  %4524 = vmax.xlane.f32.xlu0 %v4523_v54  ;;  %6161 = vpow2.f32 %v4611_v50  ;;  %v3703_v56 = vmul.f32 1.442695, %v3580_v17 }
 0x5b7   : > { %v3499_v59 = vpop.xlane.xlu1 %3498  ;;  %v9415_v39 = vpop.eup %6141  ;;  %v4613_v19 = vmul.f32 1.442695, %v4539_v42  ;;  %6163 = vpow2.f32 %v3673_v30 }
 0x5b8   : > { %v9417_v36 = vpop.f32.mrb[128].mxu1  ;;  %v3569_v6 = vsub.f32 %v11558_v22, %v3499_v59  ;;  %v3570_v4 = vsub.f32 %v11559_v31, %v3499_v59  ;;  %v9421_v27 = vpop.eup %6143  ;;  %v4615_v14 = vmul.f32 1.442695, %v4540_v48  ;;  %6165 = vpow2.f32 %v3675_v20 }
 0x5b9   : > { %v2789_v54 = vpop.f32.mrb[129].mxu1  ;;  %v4453_v7 = vpop.xlane.xlu0 %4452  ;;  %6167 = vpow2.f32 %v4613_v19  ;;  %v3709_v48 = vmul.f32 1.442695, %v3583_v35 }
 0x5ba   : > { %v9423_v24 = vpop.eup %6145  ;;  %v3681_v5 = vmul.f32 1.442695, %v3569_v6  ;;  %v9425_v46 = vpop.f32.mrb[130].mxu1  ;;  %v4541_v50 = vsub.f32 %v8714_v47, %v4453_v7  ;;  %v3683_v22 = vmul.f32 1.442695, %v3570_v4  ;;  %v4542_v59 = vsub.f32 %v8724_v55, %v4453_v7  ;;  %v11725_v4 = vld [vmem:[#allocation129_spill] sm:$0xff] }
 0x5bb   : > { %v9428_v42 = vpop.eup %6147  ;;  %v2792_v31 = vpop.f32.mrb[131].mxu1  ;;  %6169 = vpow2.f32 %v4615_v14  ;;  %v3584_v19 = vsub.f32 %v11725_v4, %v9141_v8 }
 0x5bc   : > { %v3505_v17 = vpop.xlane.xlu1 %3504  ;;  %v9431_v30 = vpop.eup %6149  ;;  %6171 = vpow2.f32 %v3703_v56  ;;  %v4617_v47 = vmul.f32 1.442695, %v4541_v50  ;;  %v4619_v55 = vmul.f32 1.442695, %v4542_v59 }
 0x5bd   : > { %v3573_v54 = vsub.f32 %v8507_v9, %v3505_v17  ;;  %v3574_v20 = vsub.f32 %v8515_v37, %v3505_v17  ;;  %v9435_v6 = vpop.eup %6151  ;;  %v4456_v25 = vpop.xlane.xlu0 %4455  ;;  %6173 = vpow2.f32 %v3681_v5  ;;  %v11728_v5 = vld [vmem:[#allocation7_spill] sm:$0xff] }
 0x5be   : > { %v6154_v32 = vpop.eup %6153  ;;  %v4543_v7 = vsub.f32 %v8733_v0, %v4456_v25  ;;  %6175 = vpow2.f32 %v3683_v22  ;;  %v4544_v9 = vsub.f32 %v8737_v13, %v4456_v25  ;;  %v9444_v50 = vpop.f32.mrb[132].mxu1 }
 0x5bf   : > { %v6156_v31 = vpop.eup %6155  ;;  %v3689_v35 = vmul.f32 1.442695, %v3573_v54  ;;  %v3733_v37 = vpack.c.bf16 %v9395_v3, %v6154_v32  ;;  %6177 = vpow2.f32 %v3709_v48  ;;  %v3691_v56 = vmul.f32 1.442695, %v3574_v20  ;;  %11726 = vst [vmem:[#allocation37_spill] sm:$0xff] %v9444_v50  ;;  %v2797_v22 = vpop.f32.mrb[133].mxu1  ;;  %1924 = vperm.xlu1 %5751, %v9353_v41  }
 0x5c0   : > { %v3511_v14 = vpop.xlane.xlu1 %3510  ;;  %v9442_v17 = vpop.eup %6157  ;;  %6179 = vpow2.f32 %v4617_v47  ;;  %v4621_v0 = vmul.f32 1.442695, %v4543_v7  ;;  %v3734_v13 = vpack.c.bf16 %v9403_v18, %v6156_v31  ;;  %v11729_v3 = vld [vmem:[#allocation17_spill] sm:$0xff]  ;;  %v11730_v48 = vld [vmem:[#allocation132_spill] sm:$0xff]  ;;  %v11732_v22 = vld [vmem:[#allocation42_spill] sm:$0xff] }
 0x5c1   : > { %v3577_v8 = vsub.f32 %v11727_v34, %v3511_v14  ;;  %v3578_v59 = vsub.f32 %v11728_v5, %v3511_v14  ;;  %v9448_v4 = vpop.eup %6159  ;;  %v9452_v32 = vpop.xlane.xlu0 %4458  ;;  %v4531_v54 = vsub.f32 %v11730_v48, %v11729_v3  ;;  %6181 = vpow2.f32 %v4619_v55  ;;  %v11731_v47 = vld [vmem:[#allocation133_spill] sm:$0xff] }
 0x5c2   : > { %v9454_v25 = vpop.eup %6161  ;;  %v4623_v34 = vmul.f32 1.442695, %v4544_v9  ;;  %v9458_v20 = vpop.f32.mrb[134].mxu1  ;;  %v3711_v5 = vmul.f32 1.442695, %v3584_v19  ;;  %v4532_v7 = vsub.f32 %v11731_v47, %v11729_v3  ;;  %6183 = vpow2.f32 %v3689_v35  ;;  %3857 = vmatprep.mubr.bf16.mxu1 %v3734_v13  ;;  %v11733_v9 = vld [vmem:[#allocation126_spill] sm:$0xff] }
 0x5c3   : > { %v6164_v14 = vpop.eup %6163  ;;  %v2800_v41 = vpop.f32.mrb[135].mxu1  ;;  %v4535_v57 = vsub.f32 %v11732_v22, %v9359_v28  ;;  %6185 = vpow2.f32 %v3691_v56  ;;  %v3697_v51 = vmul.f32 1.442695, %v3577_v8  ;;  %v3699_v48 = vmul.f32 1.442695, %v3578_v59  ;;  %3858 = vmatmul.mubr.bf16.gmra.mrb[224].mxu1 %v3733_v37  ;;  %1934 = vperm.xlu1 %5751, %v9365_v53   ;;  %v11734_v37 = vld [vmem:[#allocation127_spill] sm:$0xff] }
 0x5c4   : > { %v3517_v18 = vpop.xlane.xlu1 %3516  ;;  %v6166_v31 = vpop.eup %6165  ;;  %6187 = vpow2.f32 %v4621_v0  ;;  %v3735_v13 = vpack.c.bf16 %v9408_v40, %v6164_v14  ;;  %v4597_v41 = vmul.f32 1.442695, %v4531_v54  ;;  %v4599_v0 = vmul.f32 1.442695, %v4532_v7  ;;  %v11735_v53 = vld [vmem:[#allocation103_spill] sm:$0xff] }
 0x5c5   : > { %v9464_v55 = vpop.eup %6167  ;;  %v3581_v19 = vsub.f32 %v11733_v9, %v3517_v18  ;;  %v3736_v35 = vpack.c.bf16 %v9415_v39, %v6166_v31  ;;  %v4465_v3 = vpop.xlane.xlu0 %4464  ;;  %6189 = vpow2.f32 %v4623_v34  ;;  %v3582_v8 = vsub.f32 %v11734_v37, %v3517_v18  ;;  %v11737_v9 = vld [vmem:[#allocation105_spill] sm:$0xff] }
 0x5c6   : > { %v9470_v47 = vpop.eup %6169  ;;  %6191 = vpow2.f32 %v3711_v5  ;;  %v4536_v22 = vsub.f32 %v11735_v53, %v9359_v28  ;;  %v4605_v54 = vmul.f32 1.442695, %v4535_v57  ;;  %v9483_v31 = vpop.f32.mrb[136].mxu1  ;;  %v4549_v5 = vsub.f32 %v11737_v9, %v4465_v3  ;;  %v11738_v57 = vld [vmem:[#allocation130_spill] sm:$0xff] }
 0x5c7   : > { %v9475_v59 = vpop.eup %6171  ;;  %3865 = vmatprep.mubr.bf16.mxu1 %v3736_v35  ;;  %6193 = vpow2.f32 %v3697_v51  ;;  %11736 = vst [vmem:[#allocation54_spill] sm:$0xff] %v9483_v31  ;;  %v3705_v18 = vmul.f32 1.442695, %v3581_v19  ;;  %v2805_v7 = vpop.f32.mrb[137].mxu1  ;;  %1944 = vperm.xlu1 %5751, %v9374_v10   ;;  %v3707_v53 = vmul.f32 1.442695, %v3582_v8 }
 0x5c8   : > { %v4435_v39 = vpop.xlane.xlu1 %4434  ;;  %v9481_v14 = vpop.eup %6173  ;;  %6195 = vpow2.f32 %v3699_v48  ;;  %v4607_v48 = vmul.f32 1.442695, %v4536_v22  ;;  %v11739_v19 = vld [vmem:[#allocation131_spill] sm:$0xff]  ;;  %v11740_v35 = vld [vmem:[#allocation62_spill] sm:$0xff]  ;;  %v11741_v31 = vld [vmem:[#allocation52_spill] sm:$0xff] }
 0x5c9   : > { %v6176_v34 = vpop.eup %6175  ;;  %v4468_v28 = vpop.xlane.xlu0 %4467  ;;  %6197 = vpow2.f32 %v4597_v41  ;;  %v4529_v51 = vsub.f32 %v11738_v57, %v4435_v39  ;;  %v4530_v9 = vsub.f32 %v11739_v19, %v4435_v39  ;;  %v4550_v41 = vsub.f32 %v11740_v35, %v4465_v3  ;;  %v11743_v19 = vld [vmem:[#allocation101_spill] sm:$0xff]  ;;  %v11744_v35 = vld [vmem:[#allocation102_spill] sm:$0xff] }
 0x5ca   : > { %v9489_v37 = vpop.eup %6177  ;;  %v9492_v56 = vpop.f32.mrb[138].mxu1  ;;  %6199 = vpow2.f32 %v4599_v0  ;;  %v3738_v23 = vpack.c.bf16 %v9428_v42, %v6176_v34  ;;  %v4633_v57 = vmul.f32 1.442695, %v4549_v5  ;;  %v4551_v50 = vsub.f32 %v11741_v31, %v4468_v28  ;;  %v11742_v42 = vld [vmem:[#allocation106_spill] sm:$0xff] }
 0x5cb   : > { %v9494_v40 = vpop.eup %6179  ;;  %v2808_v7 = vpop.f32.mrb[139].mxu1  ;;  %6201 = vpow2.f32 %v4605_v54  ;;  %3866 = vmatmul.mubr.bf16.gmra.mrb[228].mxu1 %v3735_v13  ;;  %v4593_v39 = vmul.f32 1.442695, %v4529_v51  ;;  %v4552_v34 = vsub.f32 %v11742_v42, %v4468_v28  ;;  %v4595_v3 = vmul.f32 1.442695, %v4530_v9  ;;  %v11746_v51 = vld [vmem:[#allocation23_spill] sm:$0xff] }
 0x5cc   : > { %v4441_v10 = vpop.xlane.xlu1 %4440  ;;  %v9498_v2 = vpop.eup %6181  ;;  %6203 = vpow2.f32 %v3705_v18  ;;  %3873 = vmatprep.mubr.bf16.mxu1 %v3738_v23  ;;  %1929 = vperm.xlu0 %5752, %v9361_v1   ;;  %v4635_v5 = vmul.f32 1.442695, %v4550_v41  ;;  %v4637_v9 = vmul.f32 1.442695, %v4551_v50 }
 0x5cd   : > { %v9501_v8 = vpop.eup %6183  ;;  %v4471_v0 = vpop.xlane.xlu0 %4470  ;;  %6205 = vpow2.f32 %v3707_v53  ;;  %v4533_v54 = vsub.f32 %v11743_v19, %v4441_v10  ;;  %v4534_v28 = vsub.f32 %v11744_v35, %v4441_v10  ;;  %v4639_v10 = vmul.f32 1.442695, %v4552_v34 }
 0x5ce   : > { %v6186_v22 = vpop.eup %6185  ;;  %6207 = vpow2.f32 %v4607_v48  ;;  %v9517_v53 = vpop.f32.mrb[140].mxu1  ;;  %v11750_v34 = vpack.c.bf16 %v9423_v24, %v9481_v14 }
 0x5cf   : > { %v9507_v7 = vpop.eup %6187  ;;  %v3740_v18 = vpack.c.bf16 %v9435_v6, %v6186_v22  ;;  %11745 = vst [vmem:[#allocation36_spill] sm:$0xff] %v9517_v53  ;;  %6209 = vpow2.f32 %v4633_v57  ;;  %v11747_v6 = vld [vmem:[#allocation24_spill] sm:$0xff]  ;;  %v2813_v19 = vpop.f32.mrb[141].mxu1  ;;  %v4601_v35 = vmul.f32 1.442695, %v4533_v54  ;;  %v11748_v53 = vld [vmem:[#allocation50_spill] sm:$0xff] }
 0x5d0   : > { %v610_v13 = vpop.permute.xlu1 %609  ;;  %v9512_v31 = vpop.eup %6189  ;;  %1939 = vperm.xlu0 %5752, %v9368_v43   ;;  %6211 = vpow2.f32 %v4593_v39  ;;  %v4603_v1 = vmul.f32 1.442695, %v4534_v28  ;;  %v4554_v39 = vsub.f32 %v11749_v21, %v4471_v0 }
 0x5d1   : > { %v1117_v42 = vadd.f32 %v11746_v51, %v610_v13  ;;  %v9520_v48 = vpop.eup %6191  ;;  %v1119_v22 = vadd.f32 %v11747_v6, %v610_v13  ;;  %v4474_v23 = vpop.xlane.xlu0 %4473  ;;  %v4553_v51 = vsub.f32 %v11748_v53, %v4471_v0  ;;  %6213 = vpow2.f32 %v4595_v3  ;;  %v11751_v3 = vld [vmem:[#allocation13_spill] sm:$0xff] }
 0x5d2   : > { %v9526_v41 = vpop.eup %6193  ;;  %v9529_v12 = vpop.f32.mrb[142].mxu1  ;;  %6215 = vpow2.f32 %v4635_v5  ;;  %v11752_v5 = vld [vmem:[#allocation109_spill] sm:$0xff]  ;;  %v4643_v14 = vmul.f32 1.442695, %v4554_v39 }
 0x5d3   : > { %v6196_v57 = vpop.eup %6195  ;;  %v4158_v50 = vpack.c.bf16 %v1117_v42, %v1117_v42  ;;  %v2816_v13 = vpop.f32.mrb[143].mxu1  ;;  %v4159_v6 = vpack.c.bf16 %v1119_v22, %v1119_v22  ;;  %3874 = vmatmul.mubr.bf16.gmra.mrb[232].mxu1 %v11750_v34  ;;  %6217 = vpow2.f32 %v4637_v9  ;;  %v4555_v42 = vsub.f32 %v11751_v3, %v4474_v23  ;;  %v11753_v9 = vld [vmem:[#allocation100_spill] sm:$0xff]  ;;  %v11756_v39 = vld [vmem:[#allocation69_spill] sm:$0xff] }
 0x5d4   : > { %v9533_v19 = vpop.eup %6197  ;;  %v3742_v54 = vpack.c.bf16 %v9475_v59, %v6196_v57  ;;  %3881 = vmatprep.mubr.bf16.mxu1 %v3740_v18  ;;  %1949 = vperm.xlu0 %5752, %v9379_v49   ;;  %6219 = vpow2.f32 %v4639_v10  ;;  %v4556_v21 = vsub.f32 %v11752_v5, %v4474_v23  ;;  %v4641_v24 = vmul.f32 1.442695, %v4553_v51  ;;  %v11754_v23 = vld [vmem:[#allocation57_spill] sm:$0xff] }
 0x5d5   : > { %v9540_v53 = vpop.eup %6199  ;;  %v4477_v22 = vpop.xlane.xlu0 %4476  ;;  %4757 = vmatprep.subr.bf16.mxu1 %v4159_v6  ;;  %6221 = vpow2.f32 %v4601_v35  ;;  %v4645_v10 = vmul.f32 1.442695, %v4555_v42  ;;  %v11757_v42 = vld [vmem:[#allocation112_spill] sm:$0xff] }
 0x5d6   : > { %v9544_v13 = vpop.eup %6201  ;;  %4758 = vmatpush1.bf16.xpose.msra.mxu1 %v4158_v50  ;;  %6223 = vpow2.f32 %v4603_v1  ;;  %v9549_v28 = vpop.f32.mrb[144].mxu1  ;;  %v4557_v57 = vsub.f32 %v11754_v23, %v4477_v22  ;;  %v11755_v1 = vld [vmem:[#allocation98_spill] sm:$0xff]  ;;  %v4647_v50 = vmul.f32 1.442695, %v4556_v21  ;;  %v4558_v34 = vsub.f32 %v11756_v39, %v4477_v22 }
 0x5d7   : > { %v9547_v0 = vpop.eup %6203  ;;  %6225 = vrcp.f32 %v11753_v9  ;;  %v2821_v6 = vpop.f32.mrb[145].mxu1 }
 0x5d8   : > { %v6206_v59 = vpop.eup %6205  ;;  %1959 = vperm.xlu0 %5752, %v9386_v52   ;;  %6227 = vrcp.f32 %v11755_v1  ;;  %v9561_v3 = vpop.f32.mrb[146].mxu1  ;;  %v11758_v52 = vld [vmem:[#allocation114_spill] sm:$0xff]  ;;  %v4649_v22 = vmul.f32 1.442695, %v4557_v57 }
 0x5d9   : > { %v9553_v18 = vpop.eup %6207  ;;  %v4480_v35 = vpop.xlane.xlu0 %4479  ;;  %v3744_v51 = vpack.c.bf16 %v9520_v48, %v6206_v59  ;;  %6229 = vpow2.f32 %v4641_v24  ;;  %v11759_v48 = vpack.c.bf16 %v9431_v30, %v9501_v8 }
 0x5da   : > { %v9563_v5 = vpop.eup %6209  ;;  %v2824_v49 = vpop.f32.mrb[147].mxu1  ;;  %v4559_v43 = vsub.f32 %v11757_v42, %v4480_v35  ;;  %6231 = vpow2.f32 %v4643_v14  ;;  %v4560_v6 = vsub.f32 %v11758_v52, %v4480_v35 }
 0x5db   : > { %v9566_v23 = vpop.eup %6211  ;;  %3882 = vmatmul.mubr.bf16.gmra.mrb[236].mxu1 %v11759_v48  ;;  %6233 = vpow2.f32 %v4645_v10  ;;  %v4651_v49 = vmul.f32 1.442695, %v4558_v34 }
 0x5dc   : > { %v6214_v21 = vpop.eup %6213  ;;  %3889 = vmatprep.mubr.bf16.mxu1 %v3742_v54  ;;  %1969 = vperm.xlu0 %5752, %v9389_v15   ;;  %v4721_v24 = vpack.c.bf16 %v9533_v19, %v9566_v23  ;;  %6235 = vpow2.f32 %v4647_v50  ;;  %v4653_v39 = vmul.f32 1.442695, %v4559_v43  ;;  %v4655_v15 = vmul.f32 1.442695, %v4560_v6 }
 0x5dd   : > { %v9575_v59 = vpop.eup %6215  ;;  %v4722_v14 = vpack.c.bf16 %v9540_v53, %v6214_v21  ;;  %6237 = vrcp.f32 %v9207_v26  ;;  %v11761_v6 = vpack.c.bf16 %v9442_v17, %v9526_v41  ;;  %v11773_v17 = vld [vmem:[#allocation11_spill] sm:$0xff] }
 0x5de   : > { %v9578_v35 = vpop.eup %6217  ;;  %v9585_v54 = vpop.f32.mrb[148].mxu1  ;;  %6239 = vpow2.f32 %v4649_v22 }
 0x5df   : > { %v9580_v30 = vpop.eup %6219  ;;  %v2829_v10 = vpop.f32.mrb[149].mxu1  ;;  %6241 = vpow2.f32 %v4651_v49  ;;  %v11762_v49 = vpack.c.bf16 %v9489_v37, %v9547_v0 }
 0x5e0   : > { %v6222_v19 = vpop.eup %6221  ;;  %2009 = vperm.xlu0 %5752, %v9421_v27   ;;  %v9590_v43 = vpop.f32.mrb[150].mxu1  ;;  %6243 = vpow2.f32 %v4653_v39  ;;  %v11763_v10 = vmax.f32 %v9401_v61, %v9406_v44 }
 0x5e1   : > { %v6224_v57 = vpop.eup %6223  ;;  %11760 = vst [vmem:[#allocation55_spill] sm:$0xff] %v9590_v43  ;;  %v4723_v50 = vpack.c.bf16 %v9544_v13, %v6222_v19  ;;  %v2832_v42 = vpop.f32.mrb[151].mxu1  ;;  %6245 = vpow2.f32 %v4655_v15 }
 0x5e2   : > { %v6226_v34 = vpop.eup %6225  ;;  %v4724_v23 = vpack.c.bf16 %v9553_v18, %v6224_v57  ;;  %6247 = vrcp.f32 %v9236_v60  ;;  %v11765_v42 = vld [vmem:[#allocation75_spill] sm:$0xff]  ;;  %v11772_v18 = vld [vmem:[#allocation97_spill] sm:$0xff] }
 0x5e3   : > { %v6228_v52 = vpop.eup %6227  ;;  %3890 = vmatmul.mubr.bf16.gmra.mrb[240].mxu1 %v11761_v6  ;;  %6249 = vrcp.f32 %v9381_v45  ;;  %v11771_v57 = vld [vmem:[#allocation99_spill] sm:$0xff] }
 0x5e4   : > { %v9597_v27 = vpop.eup %6229  ;;  %3897 = vmatprep.mubr.bf16.mxu1 %v3744_v51  ;;  %2019 = vperm.xlu0 %5752, %v6226_v34   ;;  %6251 = vrcp.f32 %v9425_v46 }
 0x5e5   : > { %v9599_v48 = vpop.eup %6231  ;;  %6253 = vrcp.f32 %v9458_v20 }
 0x5e6   : > { %v9602_v13 = vpop.eup %6233 }
 0x5e7   : > { %v9604_v21 = vpop.eup %6235 }
 0x5e8   : > { %2029 = vperm.xlu0 %5752, %v6228_v52   ;;  %v6238_v41 = vpop.eup %6237  ;;  %v11766_v52 = vld [vmem:[#allocation14_spill] sm:$0xff] }
 0x5e9   : > { %v9611_v51 = vpop.eup %6239  ;;  %v4545_v6 = vsub.f32 %v11766_v52, %v9452_v32 }
 0x5ea   : > { %v9613_v22 = vpop.eup %6241 }
 0x5eb   : > { %3898 = vmatmul.mubr.bf16.gmra.mrb[244].mxu1 %v11762_v49  ;;  %v9618_v39 = vpop.eup %6243  ;;  %4527 = vmax.xlane.f32.xlu1 %v11763_v10 }
 0x5ec   : > { %4785 = vmatprep.mubr.bf16.mxu1 %v4722_v14  ;;  %2039 = vperm.xlu0 %5752, %v6238_v41   ;;  %v9620_v15 = vpop.eup %6245  ;;  %v11764_v14 = vld [vmem:[#allocation118_spill] sm:$0xff]  ;;  %v11767_v41 = vld [vmem:[#allocation9_spill] sm:$0xff] }
 0x5ed   : > { %v6248_v37 = vpop.eup %6247  ;;  %6255 = vrcp.f32 %v11764_v14  ;;  %v4546_v49 = vsub.f32 %v11767_v41, %v9452_v32 }
 0x5ee   : > { %v6250_v0 = vpop.eup %6249  ;;  %6257 = vrcp.f32 %v9492_v56 }
 0x5ef   : > { %v6252_v34 = vpop.eup %6251  ;;  %6259 = vrcp.f32 %v11765_v42  ;;  %v4627_v32 = vmul.f32 1.442695, %v4546_v49 }
 0x5f0   : > { %2049 = vperm.xlu0 %5752, %v6248_v37   ;;  %6261 = vrcp.f32 %v9529_v12  ;;  %v6254_v10 = vpop.eup %6253  ;;  %v11768_v37 = vld [vmem:[#allocation85_spill] sm:$0xff] }
 0x5f1   : > { %6263 = vrcp.f32 %v11768_v37 }
 0x5f2   : > { %6265 = vrcp.f32 %v9561_v3 }
 0x5f3   : > { %4786 = vmatmul.mubr.bf16.vlgmr.msra.gmra.mrb[248].mxu1 %v4721_v24  ;;  %6267 = vrcp.f32 %v11771_v57 }
 0x5f4   : > { %4793 = vmatprep.mubr.bf16.mxu1 %v4724_v23  ;;  %2947 = vperm.xlu0 %5752, %v6250_v0   ;;  %v4625_v23 = vmul.f32 1.442695, %v4545_v6  ;;  %v11770_v0 = vpack.c.bf16 %v9470_v47, %v9454_v25  ;;  %6269 = vrcp.f32 %v11772_v18  ;;  %v11774_v47 = vld [vmem:[#allocation12_spill] sm:$0xff] }
 0x5f6   : > { %6271 = vpow2.f32 %v4625_v23 }
 0x5f7   : > { %v6256_v52 = vpop.eup %6255  ;;  %6273 = vrcp.f32 %v9590_v43 }
 0x5f8   : > { %2957 = vperm.xlu0 %5752, %v6252_v34   ;;  %6275 = vpow2.f32 %v4627_v32 }
 0x5fa   : > { %v9640_v24 = vpop.f32.mrb[152].mxu1 }
 0x5fb   : > { %4794 = vmatmul.mubr.bf16.gmra.mrb[252].mxu1 %v4723_v50  ;;  %11769 = vst [vmem:[#allocation39_spill] sm:$0xff] %v9640_v24  ;;  %v2837_v19 = vpop.f32.mrb[153].mxu1  ;;  %v6258_v50 = vpop.eup %6257  ;;  %6277 = vrcp.f32 %v9640_v24 }
 0x5fc   : > { %4801 = vmatprep.mubr.bf16.mxu1 %v11770_v0  ;;  %2967 = vperm.xlu0 %5752, %v6254_v10   ;;  %v9646_v34 = vpop.f32.mrb[154].mxu1  ;;  %v6260_v10 = vpop.eup %6259 }
 0x5fd   : > { %1954 = vperm.xlu1 %5751, %v6256_v52   ;;  %v2840_v41 = vpop.f32.mrb[155].mxu1  ;;  %v6262_v49 = vpop.eup %6261  ;;  %v11775_v52 = vpack.c.bf16 %v9464_v55, %v9448_v4 }
 0x5fe   : > { %v6264_v32 = vpop.eup %6263 }
 0x5ff   : > { %v4462_v6 = vpop.xlane.xlu1 %4461 }
 0x600   : > { %v4547_v25 = vsub.f32 %v11773_v17, %v4462_v6  ;;  %v4548_v19 = vsub.f32 %v11774_v47, %v4462_v6  ;;  %2977 = vperm.xlu0 %5752, %v6258_v50   ;;  %v11776_v17 = vpack.c.bf16 %v9512_v31, %v9498_v2  ;;  %v11778_v47 = vld [vmem:[#allocation91_spill] sm:$0xff]  ;;  %v11779_v31 = vpack.c.bf16 %v9507_v7, %v9494_v40 }
 0x601   : > { %1964 = vperm.xlu1 %5751, %v6260_v10  }
 0x602   : > { %v4629_v0 = vmul.f32 1.442695, %v4547_v25  ;;  %v4631_v8 = vmul.f32 1.442695, %v4548_v19  ;;  %v9657_v23 = vpop.f32.mrb[156].mxu1  ;;  %v6266_v25 = vpop.eup %6265 }
 0x603   : > { %4802 = vmatmul.mubr.bf16.gmra.mrb[0].mxu1 %v11775_v52  ;;  %v2845_v41 = vpop.f32.mrb[157].mxu1  ;;  %v6268_v4 = vpop.eup %6267 }
 0x604   : > { %6279 = vpow2.f32 %v4629_v0  ;;  %4809 = vmatprep.mubr.bf16.mxu1 %v11776_v17  ;;  %2987 = vperm.xlu0 %5752, %v6262_v49   ;;  %v9662_v50 = vpop.f32.mrb[158].mxu1  ;;  %v6270_v55 = vpop.eup %6269  ;;  %v11781_v49 = vld [vmem:[#allocation15_spill] sm:$0xff]  ;;  %v11782_v17 = vld [vmem:[#allocation16_spill] sm:$0xff] }
 0x605   : > { %6281 = vpow2.f32 %v4631_v8  ;;  %11777 = vst [vmem:[#allocation51_spill] sm:$0xff] %v9662_v50  ;;  %2004 = vperm.xlu1 %5751, %v6264_v32   ;;  %v2848_v6 = vpop.f32.mrb[159].mxu1  ;;  %v6272_v19 = vpop.eup %6271 }
 0x606   : > { %6283 = vrcp.f32 %v11778_v47  ;;  %v6274_v2 = vpop.eup %6273 }
 0x607   : > { %6285 = vrcp.f32 %v9662_v50  ;;  %v4483_v10 = vpop.xlane.xlu0 %4482  ;;  %v6276_v0 = vpop.eup %6275 }
 0x608   : > { %2997 = vperm.xlu0 %5752, %v6266_v25   ;;  %6287 = vrcp.f32 %v9231_v58  ;;  %v4561_v52 = vsub.f32 %v11781_v49, %v4483_v10  ;;  %v4562_v41 = vsub.f32 %v11782_v17, %v4483_v10  ;;  %v6278_v6 = vpop.eup %6277  ;;  %v11784_v10 = vld [vmem:[#allocation18_spill] sm:$0xff] }
 0x609   : > { %2014 = vperm.xlu1 %5751, %v6268_v4  }
 0x60a   : > { %v9670_v8 = vpop.f32.mrb[160].mxu1  ;;  %v4657_v53 = vmul.f32 1.442695, %v4561_v52  ;;  %v4659_v50 = vmul.f32 1.442695, %v4562_v41 }
 0x60b   : > { %4810 = vmatmul.mubr.bf16.gmra.mrb[4].mxu1 %v11779_v31  ;;  %11780 = vst [vmem:[#allocation38_spill] sm:$0xff] %v9670_v8  ;;  %v2853_v32 = vpop.f32.mrb[161].mxu1  ;;  %v4486_v24 = vpop.xlane.xlu0 %4485 }
 0x60c   : > { %3007 = vperm.xlu0 %5752, %v6274_v2   ;;  %v9674_v25 = vpop.f32.mrb[162].mxu1  ;;  %v4563_v49 = vsub.f32 %v11784_v10, %v4486_v24  ;;  %v11785_v2 = vld [vmem:[#allocation72_spill] sm:$0xff] }
 0x60d   : > { %11783 = vst [vmem:[#allocation61_spill] sm:$0xff] %v9674_v25  ;;  %6289 = vrcp.f32 %v9674_v25  ;;  %2024 = vperm.xlu1 %5751, %v6270_v55   ;;  %v2856_v40 = vpop.f32.mrb[163].mxu1  ;;  %v4564_v17 = vsub.f32 %v11785_v2, %v4486_v24 }
 0x60e   : > { %v6280_v4 = vpop.eup %6279  ;;  %6291 = vrcp.f32 %v9330_v33  ;;  %v4661_v55 = vmul.f32 1.442695, %v4563_v49 }
 0x60f   : > { %v6282_v7 = vpop.eup %6281  ;;  %v4729_v31 = vpack.c.bf16 %v6280_v4, %v6272_v19  ;;  %6293 = vrcp.f32 %v9341_v62  ;;  %v4663_v52 = vmul.f32 1.442695, %v4564_v17 }
 0x610   : > { %3012 = vperm.xlu0 %5752, %v6278_v6   ;;  %v4730_v32 = vpack.c.bf16 %v6282_v7, %v6276_v0  ;;  %v6284_v43 = vpop.eup %6283  ;;  %6295 = vrcp.f32 %v9370_v63 }
 0x611   : > { %6297 = vpow2.f32 %v4657_v53  ;;  %2034 = vperm.xlu1 %5751, %v6284_v43   ;;  %v6286_v40 = vpop.eup %6285  ;;  %v11786_v53 = vpack.c.bf16 %v9580_v30, %v9575_v59 }
 0x612   : > { %4817 = vmatprep.mubr.bf16.mxu1 %v4730_v32  ;;  %6299 = vpow2.f32 %v4659_v50  ;;  %v9682_v19 = vpop.f32.mrb[164].mxu1  ;;  %v4489_v41 = vpop.xlane.xlu0 %4488 }
 0x613   : > { %4818 = vmatmul.mubr.bf16.gmra.mrb[8].mxu1 %v4729_v31  ;;  %6301 = vpow2.f32 %v4661_v55  ;;  %v4565_v4 = vsub.f32 %v9209_v38, %v4489_v41  ;;  %v4566_v24 = vsub.f32 %v9215_v16, %v4489_v41  ;;  %v2861_v0 = vpop.f32.mrb[165].mxu1  ;;  %v6288_v43 = vpop.eup %6287  ;;  %v11788_v55 = vpack.c.bf16 %v9578_v35, %v9563_v5  ;;  %v11790_v41 = vld [vmem:[#allocation93_spill] sm:$0xff]  ;;  %v11794_v35 = vld [vmem:[#allocation110_spill] sm:$0xff] }
 0x614   : > { %3027 = vperm.xlu0 %5752, %v6286_v40   ;;  %4825 = vmatprep.mubr.bf16.mxu1 %v11786_v53  ;;  %v4492_v6 = vpop.xlane.xlu1 %4491  ;;  %6303 = vpow2.f32 %v4663_v52  ;;  %v9691_v31 = vpop.f32.mrb[166].mxu1  ;;  %v11789_v52 = vld [vmem:[#allocation88_spill] sm:$0xff]  ;;  %v11791_v0 = vld [vmem:[#allocation37_spill] sm:$0xff] }
 0x615   : > { %v4567_v50 = vsub.f32 %v9219_v29, %v4492_v6  ;;  %v4568_v7 = vsub.f32 %v9223_v11, %v4492_v6  ;;  %11787 = vst [vmem:[#allocation46_spill] sm:$0xff] %v9691_v31  ;;  %6305 = vrcp.f32 %v9417_v36  ;;  %v4665_v38 = vmul.f32 1.442695, %v4565_v4  ;;  %2044 = vperm.xlu1 %5751, %v6288_v43   ;;  %v2864_v16 = vpop.f32.mrb[167].mxu1 }
 0x616   : > { %v4667_v10 = vmul.f32 1.442695, %v4566_v24  ;;  %6307 = vrcp.f32 %v9691_v31  ;;  %v11792_v6 = vpack.c.bf16 %v9604_v21, %v9599_v48 }
 0x617   : > { %v4669_v49 = vmul.f32 1.442695, %v4567_v50  ;;  %v4671_v2 = vmul.f32 1.442695, %v4568_v7  ;;  %v6290_v59 = vpop.eup %6289  ;;  %6309 = vpow2.f32 %v4665_v38  ;;  %v11793_v7 = vld [vmem:[#allocation54_spill] sm:$0xff] }
 0x618   : > { %v6292_v30 = vpop.eup %6291  ;;  %6311 = vpow2.f32 %v4667_v10  ;;  %3037 = vperm.xlu0 %5752, %v6290_v59   ;;  %v11795_v10 = vld [vmem:[#allocation29_spill] sm:$0xff] }
 0x619   : > { %v6294_v29 = vpop.eup %6293  ;;  %6313 = vpow2.f32 %v4669_v49  ;;  %2932 = vperm.xlu1 %5751, %v6292_v30   ;;  %v4495_v11 = vpop.xlane.xlu0 %4494 }
 0x61a   : > { %v6296_v17 = vpop.eup %6295  ;;  %6315 = vpow2.f32 %v4671_v2  ;;  %v9695_v32 = vpop.f32.mrb[168].mxu1  ;;  %v4569_v40 = vsub.f32 %v11789_v52, %v4495_v11  ;;  %v4570_v4 = vsub.f32 %v11790_v41, %v4495_v11 }
 0x61b   : > { %4826 = vmatmul.mubr.bf16.gmra.mrb[12].mxu1 %v11788_v55  ;;  %v9702_v24 = vpop.eup %6297  ;;  %6317 = vrcp.f32 %v11791_v0  ;;  %v2869_v53 = vpop.f32.mrb[169].mxu1 }
 0x61c   : > { %4833 = vmatprep.mubr.bf16.mxu1 %v11792_v6  ;;  %v4498_v43 = vpop.xlane.xlu1 %4497  ;;  %v9708_v50 = vpop.eup %6299  ;;  %6319 = vrcp.f32 %v11793_v7  ;;  %v4673_v5 = vmul.f32 1.442695, %v4569_v40  ;;  %v4675_v30 = vmul.f32 1.442695, %v4570_v4  ;;  %v11798_v4 = vpack.c.bf16 %v9602_v13, %v9597_v27 }
 0x61d   : > { %v4571_v38 = vsub.f32 %v11794_v35, %v4498_v43  ;;  %v4572_v16 = vsub.f32 %v11795_v10, %v4498_v43  ;;  %v9713_v49 = vpop.f32.mrb[170].mxu1  ;;  %v9715_v2 = vpop.eup %6301  ;;  %2937 = vperm.xlu1 %5751, %v6294_v29  }
 0x61e   : > { %11796 = vst [vmem:[#allocation43_spill] sm:$0xff] %v9713_v49  ;;  %6321 = vrcp.f32 %v9713_v49  ;;  %v2872_v59 = vpop.f32.mrb[171].mxu1  ;;  %v6304_v48 = vpop.eup %6303 }
 0x61f   : > { %v4677_v11 = vmul.f32 1.442695, %v4571_v38  ;;  %v4679_v55 = vmul.f32 1.442695, %v4572_v16  ;;  %v6306_v52 = vpop.eup %6305  ;;  %6323 = vpow2.f32 %v4673_v5  ;;  %v4738_v40 = vpack.c.bf16 %v6304_v48, %v9708_v50  ;;  %v11799_v5 = vld [vmem:[#allocation67_spill] sm:$0xff] }
 0x620   : > { %v6308_v41 = vpop.eup %6307  ;;  %v11800_v50 = vld [vmem:[#allocation71_spill] sm:$0xff] }
 0x621   : > { %6325 = vpow2.f32 %v4677_v11  ;;  %v9721_v53 = vpop.eup %6309  ;;  %3047 = vperm.xlu0 %5752, %v6308_v41   ;;  %2942 = vperm.xlu1 %5751, %v6296_v17   ;;  %v11801_v17 = vpack.c.bf16 %v9620_v15, %v9613_v22  ;;  %v11803_v11 = vld [vmem:[#allocation26_spill] sm:$0xff] }
 0x622   : > { %6327 = vpow2.f32 %v4679_v55  ;;  %v4501_v29 = vpop.xlane.xlu0 %4500  ;;  %v9723_v6 = vpop.eup %6311 }
 0x623   : > { %6329 = vpow2.f32 %v4675_v30  ;;  %v9725_v43 = vpop.f32.mrb[172].mxu1  ;;  %4834 = vmatmul.mubr.bf16.gmra.mrb[16].mxu1 %v11798_v4  ;;  %v4573_v35 = vsub.f32 %v11799_v5, %v4501_v29  ;;  %v4574_v38 = vsub.f32 %v11800_v50, %v4501_v29  ;;  %v9732_v10 = vpop.eup %6313  ;;  %v11802_v30 = vld [vmem:[#allocation36_spill] sm:$0xff]  ;;  %v11805_v4 = vld [vmem:[#allocation113_spill] sm:$0xff] }
 0x624   : > { %11797 = vst [vmem:[#allocation60_spill] sm:$0xff] %v9725_v43  ;;  %v2877_v16 = vpop.f32.mrb[173].mxu1  ;;  %4841 = vmatprep.mubr.bf16.mxu1 %v11801_v17  ;;  %v4504_v59 = vpop.xlane.xlu1 %4503  ;;  %6331 = vrcp.f32 %v11802_v30 }
 0x625   : > { %v9737_v48 = vpop.eup %6315  ;;  %v4681_v13 = vmul.f32 1.442695, %v4573_v35  ;;  %v4575_v55 = vsub.f32 %v11803_v11, %v4504_v59  ;;  %v9743_v41 = vpop.f32.mrb[174].mxu1  ;;  %v4576_v5 = vsub.f32 %v11805_v4, %v4504_v59  ;;  %2952 = vperm.xlu1 %5751, %v6306_v52   ;;  %v4683_v16 = vmul.f32 1.442695, %v4574_v38  ;;  %v11808_v38 = vld [vmem:[#allocation28_spill] sm:$0xff] }
 0x626   : > { %11804 = vst [vmem:[#allocation53_spill] sm:$0xff] %v9743_v41  ;;  %v6318_v29 = vpop.eup %6317  ;;  %6333 = vrcp.f32 %v9743_v41  ;;  %v2880_v22 = vpop.f32.mrb[175].mxu1  ;;  %v4740_v15 = vpack.c.bf16 %v9737_v48, %v9723_v6  ;;  %v11807_v6 = vpack.c.bf16 %v9618_v39, %v9611_v51  ;;  %v11811_v39 = vld [vmem:[#allocation68_spill] sm:$0xff] }
 0x627   : > { %v6320_v50 = vpop.eup %6319  ;;  %6335 = vrcp.f32 %v9549_v28  ;;  %v4685_v17 = vmul.f32 1.442695, %v4575_v55  ;;  %v4687_v11 = vmul.f32 1.442695, %v4576_v5 }
 0x628   : > { %v6322_v35 = vpop.eup %6321  ;;  %6337 = vpow2.f32 %v4681_v13  ;;  %v4507_v59 = vpop.xlane.xlu0 %4506  ;;  %v11809_v13 = vld [vmem:[#allocation30_spill] sm:$0xff] }
 0x629   : > { %6339 = vpow2.f32 %v4685_v17  ;;  %3057 = vperm.xlu0 %5752, %v6322_v35   ;;  %v9750_v27 = vpop.eup %6323  ;;  %2962 = vperm.xlu1 %5751, %v6318_v29   ;;  %v4577_v48 = vsub.f32 %v11808_v38, %v4507_v59  ;;  %v4578_v55 = vsub.f32 %v11809_v13, %v4507_v59 }
 0x62a   : > { %6341 = vpow2.f32 %v4687_v11  ;;  %v9754_v4 = vpop.f32.mrb[176].mxu1  ;;  %v4510_v17 = vpop.xlane.xlu1 %4509  ;;  %v11810_v11 = vld [vmem:[#allocation31_spill] sm:$0xff] }
 0x62b   : > { %v9752_v52 = vpop.eup %6325  ;;  %6343 = vpow2.f32 %v4683_v16  ;;  %11806 = vst [vmem:[#allocation56_spill] sm:$0xff] %v9754_v4  ;;  %4842 = vmatmul.mubr.bf16.gmra.mrb[20].mxu1 %v11807_v6  ;;  %v2885_v29 = vpop.f32.mrb[177].mxu1  ;;  %v4689_v16 = vmul.f32 1.442695, %v4577_v48  ;;  %v4579_v51 = vsub.f32 %v11810_v11, %v4510_v17  ;;  %v4580_v6 = vsub.f32 %v11811_v39, %v4510_v17 }
 0x62c   : > { %v9761_v5 = vpop.eup %6327  ;;  %4849 = vmatprep.mubr.bf16.mxu1 %v4738_v40  ;;  %6345 = vrcp.f32 %v9585_v54  ;;  %v9770_v38 = vpop.f32.mrb[178].mxu1  ;;  %v4691_v29 = vmul.f32 1.442695, %v4578_v55  ;;  %v11813_v55 = vpack.c.bf16 %v9715_v2, %v9702_v24  ;;  %v11816_v24 = vld [vmem:[#allocation32_spill] sm:$0xff] }
 0x62d   : > { %v9765_v35 = vpop.eup %6329  ;;  %11812 = vst [vmem:[#allocation47_spill] sm:$0xff] %v9770_v38  ;;  %6347 = vrcp.f32 %v9770_v38  ;;  %2972 = vperm.xlu1 %5751, %v6320_v50   ;;  %v2888_v59 = vpop.f32.mrb[179].mxu1  ;;  %v4693_v22 = vmul.f32 1.442695, %v4579_v51  ;;  %v4695_v21 = vmul.f32 1.442695, %v4580_v6 }
 0x62e   : > { %v4742_v13 = vpack.c.bf16 %v9761_v5, %v9765_v35  ;;  %v6332_v40 = vpop.eup %6331  ;;  %6349 = vrcp.f32 %v9646_v34  ;;  %v11814_v35 = vld [vmem:[#allocation111_spill] sm:$0xff] }
 0x62f   : > { %6351 = vpow2.f32 %v4689_v16  ;;  %v11815_v16 = vld [vmem:[#allocation65_spill] sm:$0xff] }
 0x630   : > { %v6334_v48 = vpop.eup %6333  ;;  %6353 = vpow2.f32 %v4693_v22  ;;  %v4513_v50 = vpop.xlane.xlu0 %4512 }
 0x631   : > { %v6336_v11 = vpop.eup %6335  ;;  %3067 = vperm.xlu0 %5752, %v6334_v48   ;;  %6355 = vpow2.f32 %v4695_v21  ;;  %2982 = vperm.xlu1 %5751, %v6332_v40   ;;  %v4581_v51 = vsub.f32 %v11814_v35, %v4513_v50  ;;  %v4582_v6 = vsub.f32 %v11815_v16, %v4513_v50 }
 0x632   : > { %v9776_v17 = vpop.eup %6337  ;;  %6357 = vpow2.f32 %v4691_v29  ;;  %v9780_v5 = vpop.f32.mrb[180].mxu1 }
 0x633   : > { %v9778_v39 = vpop.eup %6339  ;;  %4850 = vmatmul.mubr.bf16.gmra.mrb[24].mxu1 %v11813_v55  ;;  %6359 = vrcp.f32 %v9657_v23  ;;  %v2893_v59 = vpop.f32.mrb[181].mxu1  ;;  %v4697_v48 = vmul.f32 1.442695, %v4581_v51  ;;  %v4699_v38 = vmul.f32 1.442695, %v4582_v6  ;;  %v11817_v55 = vld [vmem:[#allocation33_spill] sm:$0xff] }
 0x634   : > { %v9787_v22 = vpop.eup %6341  ;;  %4857 = vmatprep.mubr.bf16.mxu1 %v4740_v15  ;;  %v4516_v40 = vpop.xlane.xlu1 %4515 }
 0x635   : > { %v9792_v29 = vpop.eup %6343  ;;  %v4583_v2 = vsub.f32 %v11816_v24, %v4516_v40  ;;  %v4584_v35 = vsub.f32 %v11817_v55, %v4516_v40  ;;  %v9796_v41 = vpop.f32.mrb[182].mxu1  ;;  %2992 = vperm.xlu1 %5751, %v6336_v11  }
 0x636   : > { %11818 = vst [vmem:[#allocation63_spill] sm:$0xff] %v9796_v41  ;;  %6361 = vrcp.f32 %v9796_v41  ;;  %v2896_v50 = vpop.f32.mrb[183].mxu1  ;;  %v4744_v16 = vpack.c.bf16 %v9787_v22, %v9792_v29  ;;  %v6346_v59 = vpop.eup %6345  ;;  %v11819_v22 = vpack.c.bf16 %v9732_v10, %v9721_v53  ;;  %v11820_v29 = vld [vmem:[#allocation45_spill] sm:$0xff]  ;;  %v11822_v41 = vld [vmem:[#allocation34_spill] sm:$0xff] }
 0x637   : > { %6363 = vpow2.f32 %v4697_v48  ;;  %v4701_v15 = vmul.f32 1.442695, %v4583_v2  ;;  %v4703_v21 = vmul.f32 1.442695, %v4584_v35  ;;  %v6348_v49 = vpop.eup %6347  ;;  %v11821_v48 = vld [vmem:[#allocation44_spill] sm:$0xff] }
 0x638   : > { %6365 = vpow2.f32 %v4699_v38  ;;  %v6350_v51 = vpop.eup %6349  ;;  %3077 = vperm.xlu0 %5752, %v6348_v49  }
 0x639   : > { %6367 = vpow2.f32 %v4701_v15  ;;  %v9801_v6 = vpop.eup %6351  ;;  %3002 = vperm.xlu1 %5751, %v6346_v59   ;;  %v4519_v40 = vpop.xlane.xlu0 %4518 }
 0x63a   : > { %6369 = vpow2.f32 %v4703_v21  ;;  %v9803_v24 = vpop.eup %6353  ;;  %v9806_v11 = vpop.f32.mrb[184].mxu1  ;;  %v4585_v38 = vsub.f32 %v11820_v29, %v4519_v40  ;;  %v4586_v2 = vsub.f32 %v11821_v48, %v4519_v40 }
 0x63b   : > { %6371 = vrcp.f32 %v9670_v8  ;;  %4858 = vmatmul.mubr.bf16.gmra.mrb[28].mxu1 %v11819_v22  ;;  %v6356_v49 = vpop.eup %6355  ;;  %v3781_v55 = vpop.f32.mrb[185].mxu1  ;;  %v11823_v8 = vld [vmem:[#allocation35_spill] sm:$0xff] }
 0x63c   : > { %4865 = vmatprep.mubr.bf16.mxu1 %v4742_v13  ;;  %v4522_v35 = vpop.xlane.xlu1 %4521  ;;  %v6358_v50 = vpop.eup %6357  ;;  %v4705_v59 = vmul.f32 1.442695, %v4585_v38  ;;  %v4707_v15 = vmul.f32 1.442695, %v4586_v2  ;;  %6373 = vrcp.f32 %v9682_v19 }
 0x63d   : > { %v4587_v31 = vsub.f32 %v11822_v41, %v4522_v35  ;;  %v4588_v25 = vsub.f32 %v11823_v8, %v4522_v35  ;;  %v9817_v53 = vpop.f32.mrb[186].mxu1  ;;  %v6360_v10 = vpop.eup %6359  ;;  %3017 = vperm.xlu1 %5751, %v6350_v51   ;;  %v4746_v22 = vpack.c.bf16 %v6356_v49, %v6358_v50  ;;  %v11824_v51 = vpack.c.bf16 %v9752_v52, %v9750_v27 }
 0x63e   : > { %v3784_v40 = vpop.f32.mrb[187].mxu1  ;;  %6375 = vpow2.f32 %v4705_v59 }
 0x63f   : > { %v4709_v29 = vmul.f32 1.442695, %v4587_v31  ;;  %v4711_v48 = vmul.f32 1.442695, %v4588_v25  ;;  %6377 = vpow2.f32 %v4707_v15 }
 0x640   : > { %v6362_v13 = vpop.eup %6361  ;;  %v1925_v2 = vpop.permute.xlu1 %1924 }
 0x641   : > { %v9820_v55 = vpop.eup %6363  ;;  %6379 = vpow2.f32 %v4709_v29  ;;  %3087 = vperm.xlu0 %5752, %v6362_v13   ;;  %3022 = vperm.xlu1 %5751, %v6360_v10  }
 0x642   : > { %v6366_v41 = vpop.eup %6365  ;;  %6381 = vpow2.f32 %v4711_v48  ;;  %v9825_v38 = vpop.f32.mrb[188].mxu1 }
 0x643   : > { %v9822_v8 = vpop.eup %6367  ;;  %6383 = vrcp.f32 %v9695_v32  ;;  %4866 = vmatmul.mubr.bf16.gmra.mrb[32].mxu1 %v11824_v51  ;;  %v3789_v49 = vpop.f32.mrb[189].mxu1  ;;  %v11826_v51 = vld [vmem:[#allocation104_spill] sm:$0xff] }
 0x644   : > { %v6370_v25 = vpop.eup %6369  ;;  %v4747_v31 = vpack.c.bf16 %v9822_v8, %v9820_v55  ;;  %4873 = vmatprep.mubr.bf16.mxu1 %v4744_v16  ;;  %v9832_v50 = vpop.f32.mrb[190].mxu1  ;;  %6385 = vrcp.f32 %v9725_v43  ;;  %v11825_v16 = vpack.c.bf16 %v9778_v39, %v9776_v17  ;;  %v11828_v49 = vld [vmem:[#allocation10_spill] sm:$0xff] }
 0x645   : > { %v6372_v35 = vpop.eup %6371  ;;  %v4748_v59 = vpack.c.bf16 %v6370_v25, %v6366_v41  ;;  %v3792_v15 = vpop.f32.mrb[191].mxu1  ;;  %6387 = vrcp.f32 %v9754_v4  ;;  %v9844_v25 = vmul.f32 %v1925_v2, %v11826_v51 }
 0x646   : > { %3032 = vperm.xlu1 %5751, %v6372_v35   ;;  %v9835_v10 = vpop.xlane.xlu0 %4524  ;;  %v6374_v40 = vpop.eup %6373  ;;  %6389 = vrcp.f32 %v9780_v5 }
 0x647   : > { %v1935_v29 = vpop.permute.xlu1 %1934  ;;  %11827 = vst [vmem:[#allocation58_spill] sm:$0xff] %v9844_v25  ;;  %6391 = vrcp.f32 %v9806_v11 }
 0x648   : > { %v6376_v27 = vpop.eup %6375  ;;  %6393 = vrcp.f32 %v9817_v53 }
 0x649   : > { %v6378_v52 = vpop.eup %6377  ;;  %6395 = vrcp.f32 %v9825_v38 }
 0x64a   : > { %3042 = vperm.xlu1 %5751, %v6374_v40   ;;  %v9838_v13 = vpop.f32.mrb[192].mxu1 }
 0x64b   : > { %v6380_v48 = vpop.eup %6379  ;;  %4874 = vmatmul.mubr.bf16.gmra.mrb[36].mxu1 %v11825_v16  ;;  %v1930_v55 = vpop.permute.xlu0 %1929  ;;  %6397 = vrcp.f32 %v9838_v13 }
 0x64c   : > { %v6382_v41 = vpop.eup %6381  ;;  %v4749_v8 = vpack.c.bf16 %v6380_v48, %v6376_v27  ;;  %v9847_v35 = vmul.f32 %v1930_v55, %v11828_v49  ;;  %v3797_v15 = vpop.f32.mrb[193].mxu1  ;;  %4881 = vmatprep.mubr.bf16.mxu1 %v4746_v22  ;;  %v11830_v27 = vld [vmem:[#allocation77_spill] sm:$0xff]  ;;  %v11832_v48 = vld [vmem:[#allocation115_spill] sm:$0xff] }
 0x64d   : > { %v6384_v40 = vpop.eup %6383  ;;  %v9849_v21 = vpop.f32.mrb[194].mxu1  ;;  %v4750_v4 = vpack.c.bf16 %v6382_v41, %v6378_v52  ;;  %v9855_v2 = vmul.f32 %v1935_v29, %v11830_v27  ;;  %v11835_v41 = vpack.c.bf16 %v9803_v24, %v9801_v6  ;;  %v11836_v29 = vld [vmem:[#allocation116_spill] sm:$0xff] }
 0x64e   : > { %11829 = vst [vmem:[#allocation59_spill] sm:$0xff] %v9847_v35  ;;  %3052 = vperm.xlu1 %5751, %v6384_v40   ;;  %v3800_v17 = vpop.f32.mrb[195].mxu1  ;;  %v6386_v55 = vpop.eup %6385  ;;  %v11838_v40 = vld [vmem:[#allocation117_spill] sm:$0xff] }
 0x64f   : > { %v1940_v39 = vpop.permute.xlu0 %1939  ;;  %11831 = vst [vmem:[#allocation64_spill] sm:$0xff] %v9855_v2  ;;  %v1945_v22 = vpop.permute.xlu1 %1944 }
 0x650   : > { %v9858_v16 = vmul.f32 %v1940_v39, %v11832_v48  ;;  %v9869_v15 = vmul.f32 %v1945_v22, %v11836_v29  ;;  %v6388_v27 = vpop.eup %6387 }
 0x651   : > { %v6390_v6 = vpop.eup %6389 }
 0x652   : > { %11833 = vst [vmem:[#allocation81_spill] sm:$0xff] %v9858_v16  ;;  %3062 = vperm.xlu1 %5751, %v6386_v55   ;;  %v9863_v52 = vpop.f32.mrb[196].mxu1  ;;  %11837 = vst [vmem:[#allocation82_spill] sm:$0xff] %v9869_v15 }
 0x653   : > { %11834 = vst [vmem:[#allocation66_spill] sm:$0xff] %v9863_v52  ;;  %4882 = vmatmul.mubr.bf16.gmra.mrb[40].mxu1 %v11835_v41  ;;  %v1950_v49 = vpop.permute.xlu0 %1949  ;;  %v3805_v39 = vpop.f32.mrb[197].mxu1  ;;  %6399 = vrcp.f32 %v9863_v52 }
 0x654   : > { %v9872_v17 = vmul.f32 %v1950_v49, %v11838_v40  ;;  %4889 = vmatprep.mubr.bf16.mxu1 %v4748_v59  ;;  %v9874_v48 = vpop.f32.mrb[198].mxu1  ;;  %v6392_v59 = vpop.eup %6391 }
 0x655   : > { %v3808_v51 = vpop.f32.mrb[199].mxu1  ;;  %v6394_v29 = vpop.eup %6393 }
 0x656   : > { %11839 = vst [vmem:[#allocation78_spill] sm:$0xff] %v9872_v17  ;;  %3072 = vperm.xlu1 %5751, %v6388_v27   ;;  %v6396_v27 = vpop.eup %6395 }
 0x657   : > { %v1960_v51 = vpop.permute.xlu0 %1959 }
 0x65a   : > { %3082 = vperm.xlu1 %5751, %v6390_v6   ;;  %v9880_v24 = vpop.f32.mrb[200].mxu1  ;;  %v6398_v6 = vpop.eup %6397 }
 0x65b   : > { %11840 = vst [vmem:[#allocation70_spill] sm:$0xff] %v9880_v24  ;;  %4890 = vmatmul.mubr.bf16.gmra.mrb[44].mxu1 %v4747_v31  ;;  %v3813_v22 = vpop.f32.mrb[201].mxu1  ;;  %6401 = vrcp.f32 %v9880_v24 }
 0x65c   : > { %4897 = vmatprep.mubr.bf16.mxu1 %v4750_v4  ;;  %v9882_v41 = vpop.f32.mrb[202].mxu1  ;;  %v1970_v22 = vpop.permute.xlu0 %1969 }
 0x65d   : > { %v3816_v49 = vpop.f32.mrb[203].mxu1 }
 0x65e   : > { %3940 = vperm.xlu1 %5751, %v6392_v59  }
 0x662   : > { %3945 = vperm.xlu1 %5751, %v6394_v29   ;;  %v9886_v40 = vpop.f32.mrb[204].mxu1  ;;  %v6400_v29 = vpop.eup %6399 }
 0x663   : > { %11841 = vst [vmem:[#allocation73_spill] sm:$0xff] %v9886_v40  ;;  %4898 = vmatmul.mubr.bf16.gmra.mrb[48].mxu1 %v4749_v8  ;;  %v3821_v39 = vpop.f32.mrb[205].mxu1  ;;  %6403 = vrcp.f32 %v9886_v40 }
 0x664   : > { %v9888_v31 = vpop.f32.mrb[206].mxu1  ;;  %v2010_v39 = vpop.permute.xlu0 %2009 }
 0x665   : > { %v3824_v4 = vpop.f32.mrb[207].mxu1 }
 0x666   : > { %3950 = vperm.xlu1 %5751, %v6396_v27   ;;  %v6402_v27 = vpop.eup %6401  ;;  %v11843_v4 = vld [vmem:[#allocation48_spill] sm:$0xff] }
 0x667   : > { %v4589_v43 = vsub.f32 %v11843_v4, %v9835_v10 }
 0x668   : > { %v2020_v16 = vpop.permute.xlu0 %2019 }
 0x669   : > { %v4713_v25 = vmul.f32 1.442695, %v4589_v43  ;;  %v9943_v52 = vmul.f32 %v2020_v16, %v11753_v9 }
 0x66a   : > { %3960 = vperm.xlu1 %5751, %v6398_v6   ;;  %v9892_v59 = vpop.f32.mrb[208].mxu1 }
 0x66b   : > { %11842 = vst [vmem:[#allocation89_spill] sm:$0xff] %v9892_v59  ;;  %v3829_v49 = vpop.f32.mrb[209].mxu1  ;;  %6405 = vrcp.f32 %v9892_v59  ;;  %11855 = vst [vmem:[#allocation80_spill] sm:$0xff] %v9943_v52 }
 0x66c   : > { %v9894_v55 = vpop.f32.mrb[210].mxu1  ;;  %v11845_v49 = vld [vmem:[#allocation49_spill] sm:$0xff]  ;;  %v2030_v4 = vpop.permute.xlu0 %2029 }
 0x66d   : > { %v3832_v8 = vpop.f32.mrb[211].mxu1  ;;  %v6404_v17 = vpop.eup %6403  ;;  %v4590_v2 = vsub.f32 %v11845_v49, %v9835_v10 }
 0x66e   : > { %3970 = vperm.xlu1 %5751, %v6400_v29  }
 0x672   : > { %3980 = vperm.xlu1 %5751, %v6402_v27   ;;  %v9899_v15 = vpop.f32.mrb[212].mxu1  ;;  %v4715_v27 = vmul.f32 1.442695, %v4590_v2  ;;  %v11846_v2 = vld [vmem:[#allocation90_spill] sm:$0xff] }
 0x673   : > { %11844 = vst [vmem:[#allocation84_spill] sm:$0xff] %v9899_v15  ;;  %6407 = vrcp.f32 %v9899_v15  ;;  %v3837_v6 = vpop.f32.mrb[213].mxu1  ;;  %v9915_v24 = vmul.f32 %v1960_v51, %v11846_v2 }
 0x674   : > { %v9904_v29 = vpop.f32.mrb[214].mxu1  ;;  %6409 = vpow2.f32 %v4713_v25 }
 0x675   : > { %v3840_v8 = vpop.f32.mrb[215].mxu1  ;;  %v6406_v35 = vpop.eup %6405  ;;  %11847 = vst [vmem:[#allocation19_spill] sm:$0xff] %v9915_v24 }
 0x676   : > { %3990 = vperm.xlu1 %5751, %v6404_v17  }
 0x678   : > { %v4528_v59 = vpop.xlane.xlu1 %4527 }
 0x679   : > { %v4591_v40 = vsub.f32 %v9401_v61, %v4528_v59  ;;  %v4592_v6 = vsub.f32 %v9406_v44, %v4528_v59  ;;  %v2040_v44 = vpop.permute.xlu0 %2039 }
 0x67a   : > { %4000 = vperm.xlu1 %5751, %v6406_v35   ;;  %v9908_v15 = vpop.f32.mrb[216].mxu1  ;;  %v9959_v16 = vmul.f32 %v2040_v44, %v9207_v26 }
 0x67b   : > { %6411 = vrcp.f32 %v9908_v15  ;;  %v3845_v10 = vpop.f32.mrb[217].mxu1  ;;  %v4717_v49 = vmul.f32 1.442695, %v4591_v40  ;;  %v4719_v17 = vmul.f32 1.442695, %v4592_v6 }
 0x67c   : > { %6413 = vpow2.f32 %v4715_v27  ;;  %v9911_v8 = vpop.f32.mrb[218].mxu1  ;;  %v1955_v35 = vpop.permute.xlu1 %1954  ;;  %v11849_v27 = vld [vmem:[#allocation119_spill] sm:$0xff] }
 0x67d   : > { %v6408_v43 = vpop.eup %6407  ;;  %6415 = vrcp.f32 %v9911_v8  ;;  %v3848_v25 = vpop.f32.mrb[219].mxu1  ;;  %v9918_v61 = vmul.f32 %v1955_v35, %v11764_v14  ;;  %v9923_v6 = vmul.f32 %v1970_v22, %v11849_v27 }
 0x67e   : > { %6417 = vpow2.f32 %v4717_v49  ;;  %4010 = vperm.xlu1 %5751, %v6408_v43   ;;  %v6410_v49 = vpop.eup %6409  ;;  %v2050_v22 = vpop.permute.xlu0 %2049 }
 0x67f   : > { %11848 = vst [vmem:[#allocation20_spill] sm:$0xff] %v9918_v61  ;;  %6419 = vpow2.f32 %v4719_v17  ;;  %11850 = vst [vmem:[#allocation21_spill] sm:$0xff] %v9923_v6  ;;  %v11852_v61 = vld [vmem:[#allocation92_spill] sm:$0xff] }
 0x680   : > { %v1965_v59 = vpop.permute.xlu1 %1964  ;;  %v9935_v24 = vmul.f32 %v2010_v39, %v11852_v61  ;;  %6421 = vrcp.f32 %v9832_v50 }
 0x681   : > { %v9926_v10 = vmul.f32 %v1965_v59, %v11765_v42  ;;  %6423 = vrcp.f32 %v9849_v21 }
 0x682   : > { %v9928_v25 = vpop.f32.mrb[220].mxu1  ;;  %11853 = vst [vmem:[#allocation76_spill] sm:$0xff] %v9935_v24  ;;  %v2948_v61 = vpop.permute.xlu0 %2947  ;;  %6425 = vrcp.f32 %v9874_v48 }
 0x683   : > { %11851 = vst [vmem:[#allocation22_spill] sm:$0xff] %v9926_v10  ;;  %v3853_v51 = vpop.f32.mrb[221].mxu1  ;;  %6427 = vrcp.f32 %v9882_v41 }
 0x684   : > { %v9932_v43 = vpop.f32.mrb[222].mxu1  ;;  %v2005_v35 = vpop.permute.xlu1 %2004  ;;  %6429 = vrcp.f32 %v9888_v31 }
 0x685   : > { %v6412_v17 = vpop.eup %6411  ;;  %v3856_v2 = vpop.f32.mrb[223].mxu1  ;;  %v9938_v42 = vmul.f32 %v2005_v35, %v11768_v37  ;;  %v9951_v35 = vmul.f32 %v2030_v4, %v11755_v1  ;;  %6431 = vrcp.f32 %v9894_v55 }
 0x686   : > { %v6414_v40 = vpop.eup %6413  ;;  %4020 = vperm.xlu1 %5751, %v6412_v17   ;;  %6433 = vrcp.f32 %v9904_v29 }
 0x687   : > { %11854 = vst [vmem:[#allocation79_spill] sm:$0xff] %v9938_v42  ;;  %v6416_v59 = vpop.eup %6415  ;;  %11857 = vst [vmem:[#allocation87_spill] sm:$0xff] %v9951_v35  ;;  %6435 = vrcp.f32 %v9928_v25 }
 0x688   : > { %v6418_v27 = vpop.eup %6417  ;;  %v2015_v6 = vpop.permute.xlu1 %2014  ;;  %6437 = vrcp.f32 %v9932_v43 }
 0x689   : > { %v6420_v14 = vpop.eup %6419  ;;  %v4751_v10 = vpack.c.bf16 %v6418_v27, %v6410_v49  ;;  %v9946_v2 = vmul.f32 %v2015_v6, %v11771_v57 }
 0x68a   : > { %4025 = vperm.xlu1 %5751, %v6416_v59   ;;  %v4752_v39 = vpack.c.bf16 %v6420_v14, %v6414_v40  ;;  %v2958_v40 = vpop.permute.xlu0 %2957 }
 0x68b   : > { %11856 = vst [vmem:[#allocation86_spill] sm:$0xff] %v9946_v2 }
 0x68c   : > { %4905 = vmatprep.mubr.bf16.mxu1 %v4752_v39  ;;  %v2025_v17 = vpop.permute.xlu1 %2024 }
 0x68d   : > { %4906 = vmatmul.mubr.bf16.gmra.mrb[52].mxu1 %v4751_v10  ;;  %v9954_v49 = vmul.f32 %v2025_v17, %v11772_v18  ;;  %v9969_v18 = vmul.f32 %v2050_v22, %v9236_v60 }
 0x68e   : > { %v2968_v26 = vpop.permute.xlu0 %2967 }
 0x68f   : > { %11858 = vst [vmem:[#allocation94_spill] sm:$0xff] %v9954_v49  ;;  %11859 = vst [vmem:[#allocation95_spill] sm:$0xff] %v9969_v18  ;;  %v11869_v18 = vld [vmem:[#allocation51_spill] sm:$0xff] }
 0x690   : > { %v2035_v57 = vpop.permute.xlu1 %2034 }
 0x691   : > { %v9962_v6 = vmul.f32 %v2035_v57, %v11778_v47  ;;  %v3093_v47 = vmul.f32 %v2948_v61, %v9381_v45 }
 0x692   : > { %v2978_v9 = vpop.permute.xlu0 %2977 }
 0x694   : > { %v2045_v1 = vpop.permute.xlu1 %2044 }
 0x695   : > { %v9972_v4 = vmul.f32 %v2045_v1, %v9231_v58 }
 0x696   : > { %v9966_v14 = vpop.f32.mrb[224].mxu1  ;;  %v2988_v10 = vpop.permute.xlu0 %2987 }
 0x697   : > { %11860 = vst [vmem:[#allocation96_spill] sm:$0xff] %v9972_v4  ;;  %v3861_v59 = vpop.f32.mrb[225].mxu1  ;;  %6439 = vrcp.f32 %v9966_v14 }
 0x698   : > { %v9974_v27 = vpop.f32.mrb[226].mxu1  ;;  %v2933_v39 = vpop.permute.xlu1 %2932 }
 0x699   : > { %v3864_v44 = vpop.f32.mrb[227].mxu1  ;;  %v3090_v60 = vmul.f32 %v2933_v39, %v9330_v33  ;;  %v6422_v33 = vpop.eup %6421  ;;  %6441 = vrcp.f32 %v9974_v27 }
 0x69c   : > { %v2938_v57 = vpop.permute.xlu1 %2937 }
 0x69d   : > { %v3091_v58 = vmul.f32 %v2938_v57, %v9341_v62  ;;  %v3095_v57 = vmul.f32 %v2958_v40, %v9425_v46 }
 0x69e   : > { %v9979_v17 = vpop.f32.mrb[228].mxu1 }
 0x69f   : > { %v3869_v22 = vpop.f32.mrb[229].mxu1  ;;  %v3122_v59 = vpack.c.bf16 %v3091_v58, %v3090_v60  ;;  %v9996_v58 = vmul.f32 %v2968_v26, %v9458_v20 }
 0x6a0   : > { %v9983_v1 = vpop.f32.mrb[230].mxu1  ;;  %v2943_v51 = vpop.permute.xlu1 %2942 }
 0x6a1   : > { %v3872_v37 = vpop.f32.mrb[231].mxu1  ;;  %v3092_v44 = vmul.f32 %v2943_v51, %v9370_v63  ;;  %5170 = vrot.lane.b32.xlu0 %v3122_v59, %s6617_s6  ;;  %v2998_v22 = vpop.permute.xlu0 %2997  ;;  %6443 = vrcp.f32 %v9983_v1 }
 0x6a2   : > { %6445 = vrcp.f32 %v9979_v17 }
 0x6a3   : > { %v3123_v4 = vpack.c.bf16 %v3093_v47, %v3092_v44  ;;  %v10008_v44 = vmul.f32 %v2978_v9, %v9492_v56 }
 0x6a4   : > { %v2953_v62 = vpop.permute.xlu1 %2952 }
 0x6a5   : > { %v3094_v37 = vmul.f32 %v2953_v62, %v9417_v36  ;;  %3955 = vperm.xlu0 %5752, %v6422_v33   ;;  %v6424_v36 = vpop.eup %6423 }
 0x6a6   : > { %v9989_v39 = vpop.f32.mrb[232].mxu1  ;;  %v6426_v9 = vpop.eup %6425 }
 0x6a7   : > { %v3877_v60 = vpop.f32.mrb[233].mxu1  ;;  %v3124_v63 = vpack.c.bf16 %v3095_v57, %v3094_v37  ;;  %v10019_v37 = vmul.f32 %v2988_v10, %v9529_v12 }
 0x6a8   : > { %v9993_v45 = vpop.f32.mrb[234].mxu1  ;;  %v2963_v61 = vpop.permute.xlu1 %2962 }
 0x6a9   : > { %v3880_v51 = vpop.f32.mrb[235].mxu1  ;;  %v9999_v47 = vmul.f32 %v2963_v61, %v11791_v0  ;;  %5172 = vrot.lane.b32.xlu0 %v3123_v4, %s6617_s6  ;;  %v3008_v4 = vpop.permute.xlu0 %3007  ;;  %11861 = vst [vmem:[#allocation5_spill] sm:$0xff] %v10019_v37  ;;  %v10031_v61 = vmul.f32 %v2998_v22, %v9561_v3  ;;  %v11865_v3 = vld [vmem:[#allocation55_spill] sm:$0xff]  ;;  %6447 = vrcp.f32 %v9993_v45 }
 0x6aa   : > { %v10043_v22 = vmul.f32 %v3008_v4, %v11865_v3 }
 0x6ab   : > { %11863 = vst [vmem:[#allocation125_spill] sm:$0xff] %v10031_v61 }
 0x6ac   : > { %v2973_v59 = vpop.permute.xlu1 %2972  ;;  %11866 = vst [vmem:[#allocation129_spill] sm:$0xff] %v10043_v22 }
 0x6ad   : > { %v10011_v20 = vmul.f32 %v2973_v59, %v11793_v7  ;;  %3965 = vperm.xlu0 %5752, %v6424_v36   ;;  %v3013_v36 = vpop.permute.xlu0 %3012 }
 0x6ae   : > { %v10005_v40 = vpop.f32.mrb[236].mxu1 }
 0x6af   : > { %v3885_v26 = vpop.f32.mrb[237].mxu1 }
 0x6b0   : > { %v10014_v0 = vpop.f32.mrb[238].mxu1  ;;  %v2983_v57 = vpop.permute.xlu1 %2982 }
 0x6b1   : > { %v3888_v62 = vpop.f32.mrb[239].mxu1  ;;  %v10022_v56 = vmul.f32 %v2983_v57, %v11802_v30  ;;  %5174 = vrot.lane.b32.xlu0 %v3124_v63, %s6617_s6  ;;  %v6428_v26 = vpop.eup %6427  ;;  %v11868_v63 = vld [vmem:[#allocation39_spill] sm:$0xff]  ;;  %6449 = vrcp.f32 %v10014_v0 }
 0x6b2   : > { %v3028_v57 = vpop.permute.xlu0 %3027  ;;  %v3106_v7 = vmul.f32 %v3013_v36, %v11868_v63  ;;  %6451 = vrcp.f32 %v9989_v39 }
 0x6b3   : > { %11862 = vst [vmem:[#allocation8_spill] sm:$0xff] %v10022_v56 }
 0x6b4   : > { %v2993_v51 = vpop.permute.xlu1 %2992 }
 0x6b5   : > { %v10034_v12 = vmul.f32 %v2993_v51, %v9549_v28  ;;  %3975 = vperm.xlu0 %5752, %v6426_v9   ;;  %v6430_v51 = vpop.eup %6429  ;;  %v3109_v9 = vmul.f32 %v3028_v57, %v11869_v18 }
 0x6b6   : > { %v10028_v60 = vpop.f32.mrb[240].mxu1  ;;  %v6432_v3 = vpop.eup %6431 }
 0x6b7   : > { %11864 = vst [vmem:[#allocation128_spill] sm:$0xff] %v10034_v12  ;;  %v3893_v30 = vpop.f32.mrb[241].mxu1  ;;  %v6434_v36 = vpop.eup %6433 }
 0x6b8   : > { %v10037_v10 = vpop.f32.mrb[242].mxu1  ;;  %v3003_v62 = vpop.permute.xlu1 %3002 }
 0x6b9   : > { %v3896_v59 = vpop.f32.mrb[243].mxu1  ;;  %v10046_v28 = vmul.f32 %v3003_v62, %v9585_v54  ;;  %3985 = vperm.xlu0 %5752, %v6428_v26   ;;  %6453 = vrcp.f32 %v10037_v10 }
 0x6ba   : > { %6455 = vrcp.f32 %v10005_v40 }
 0x6bb   : > { %11867 = vst [vmem:[#allocation6_spill] sm:$0xff] %v10046_v28 }
 0x6bc   : > { %v3018_v59 = vpop.permute.xlu1 %3017 }
 0x6bd   : > { %v3107_v33 = vmul.f32 %v3018_v59, %v9646_v34  ;;  %3995 = vperm.xlu0 %5752, %v6430_v51   ;;  %v3038_v34 = vpop.permute.xlu0 %3037  ;;  %v6436_v51 = vpop.eup %6435 }
 0x6be   : > { %v10051_v30 = vpop.f32.mrb[244].mxu1  ;;  %v6438_v22 = vpop.eup %6437 }
 0x6bf   : > { %v3901_v4 = vpop.f32.mrb[245].mxu1  ;;  %v3130_v26 = vpack.c.bf16 %v3107_v33, %v3106_v7  ;;  %v11870_v7 = vld [vmem:[#allocation61_spill] sm:$0xff] }
 0x6c0   : > { %v10056_v54 = vpop.f32.mrb[246].mxu1  ;;  %v3023_v46 = vpop.permute.xlu1 %3022  ;;  %v3111_v4 = vmul.f32 %v3038_v34, %v11870_v7 }
 0x6c1   : > { %v3904_v62 = vpop.f32.mrb[247].mxu1  ;;  %v3108_v28 = vmul.f32 %v3023_v46, %v9657_v23  ;;  %4005 = vperm.xlu0 %5752, %v6432_v3   ;;  %5186 = vrot.lane.b32.xlu1 %v3130_v26, %s6617_s6  ;;  %v3048_v23 = vpop.permute.xlu0 %3047  ;;  %6457 = vrcp.f32 %v10056_v54 }
 0x6c2   : > { %v11871_v62 = vld [vmem:[#allocation38_spill] sm:$0xff]  ;;  %6459 = vrcp.f32 %v10028_v60 }
 0x6c3   : > { %v3131_v63 = vpack.c.bf16 %v3109_v9, %v3108_v28  ;;  %v11872_v9 = vld [vmem:[#allocation46_spill] sm:$0xff] }
 0x6c4   : > { %v3113_v49 = vmul.f32 %v3048_v23, %v11872_v9 }
 0x6c5   : > { %v3033_v33 = vpop.permute.xlu1 %3032  ;;  %4015 = vperm.xlu0 %5752, %v6434_v36   ;;  %4030 = vperm.xlu1 %5751, %v6436_v51   ;;  %v3058_v36 = vpop.permute.xlu0 %3057 }
 0x6c6   : > { %v10063_v59 = vpop.f32.mrb[248].mxu1  ;;  %v3110_v18 = vmul.f32 %v3033_v33, %v11871_v62  ;;  %v6440_v51 = vpop.eup %6439 }
 0x6c7   : > { %v4789_v57 = vpop.f32.mrb[249].mxu1  ;;  %v6442_v7 = vpop.eup %6441 }
 0x6c8   : > { %v10068_v46 = vpop.f32.mrb[250].mxu1  ;;  %v3132_v26 = vpack.c.bf16 %v3111_v4, %v3110_v18  ;;  %v11874_v18 = vld [vmem:[#allocation43_spill] sm:$0xff] }
 0x6c9   : > { %v4792_v3 = vpop.f32.mrb[251].mxu1  ;;  %v3043_v28 = vpop.permute.xlu1 %3042  ;;  %4035 = vperm.xlu0 %5752, %v6438_v22   ;;  %5188 = vrot.lane.b32.xlu1 %v3131_v63, %s6617_s6  ;;  %v10078_v57 = vmul.f32 %v3058_v36, %v11874_v18  ;;  %6461 = vrcp.f32 %v10068_v46 }
 0x6ca   : > { %v3112_v34 = vmul.f32 %v3043_v28, %v9682_v19  ;;  %v3068_v19 = vpop.permute.xlu0 %3067  ;;  %v6444_v28 = vpop.eup %6443  ;;  %6463 = vrcp.f32 %v10051_v30 }
 0x6cb   : > { %6465 = vrcp.f32 %v10063_v59 }
 0x6cc   : > { %v3133_v33 = vpack.c.bf16 %v3113_v49, %v3112_v34  ;;  %v11876_v34 = vld [vmem:[#allocation53_spill] sm:$0xff] }
 0x6cd   : > { %v3053_v4 = vpop.permute.xlu1 %3052  ;;  %4045 = vperm.xlu0 %5752, %v6442_v7   ;;  %4040 = vperm.xlu1 %5751, %v6440_v51   ;;  %v10090_v36 = vmul.f32 %v3068_v19, %v11876_v34  ;;  %v6446_v7 = vpop.eup %6445  ;;  %v11881_v19 = vld [vmem:[#allocation47_spill] sm:$0xff] }
 0x6ce   : > { %v10075_v62 = vpop.f32.mrb[252].mxu1  ;;  %v10081_v3 = vmul.f32 %v3053_v4, %v9695_v32  ;;  %v11878_v32 = vld [vmem:[#allocation60_spill] sm:$0xff]  ;;  %v3078_v51 = vpop.permute.xlu0 %3077 }
 0x6cf   : > { %11873 = vst [vmem:[#allocation7_spill] sm:$0xff] %v10075_v62  ;;  %v4797_v23 = vpop.f32.mrb[253].mxu1  ;;  %11877 = vst [vmem:[#allocation132_spill] sm:$0xff] %v10090_v36  ;;  %v10103_v34 = vmul.f32 %v3078_v51, %v11881_v19  ;;  %v11886_v51 = vld [vmem:[#allocation63_spill] sm:$0xff] }
 0x6d0   : > { %v10084_v22 = vpop.f32.mrb[254].mxu1  ;;  %v6448_v23 = vpop.eup %6447 }
 0x6d1   : > { %11875 = vst [vmem:[#allocation17_spill] sm:$0xff] %v10084_v22  ;;  %v4800_v63 = vpop.f32.mrb[255].mxu1  ;;  %v3063_v9 = vpop.permute.xlu1 %3062  ;;  %4055 = vperm.xlu0 %5752, %v6444_v28   ;;  %5190 = vrot.lane.b32.xlu1 %v3132_v26, %s6617_s6  ;;  %11882 = vst [vmem:[#allocation126_spill] sm:$0xff] %v10103_v34  ;;  %6467 = vrcp.f32 %v10084_v22 }
 0x6d2   : > { %v10093_v4 = vmul.f32 %v3063_v9, %v11878_v32  ;;  %v11883_v9 = vld [vmem:[#allocation56_spill] sm:$0xff]  ;;  %v3088_v32 = vpop.permute.xlu0 %3087  ;;  %v6450_v61 = vpop.eup %6449  ;;  %6469 = vrcp.f32 %v10075_v62 }
 0x6d3   : > { %v10115_v19 = vmul.f32 %v3088_v32, %v11886_v51 }
 0x6d4   : > { %11879 = vst [vmem:[#allocation133_spill] sm:$0xff] %v10093_v4 }
 0x6d5   : > { %v3073_v49 = vpop.permute.xlu1 %3072  ;;  %4065 = vperm.xlu0 %5752, %v6448_v23   ;;  %4050 = vperm.xlu1 %5751, %v6446_v7   ;;  %11887 = vst [vmem:[#allocation105_spill] sm:$0xff] %v10115_v19  ;;  %v6452_v7 = vpop.eup %6451 }
 0x6d6   : > { %v10099_v63 = vpop.f32.mrb[0].mxu1  ;;  %v10106_v28 = vmul.f32 %v3073_v49, %v11883_v9 }
 0x6d7   : > { %11880 = vst [vmem:[#allocation42_spill] sm:$0xff] %v10099_v63  ;;  %v4805_v26 = vpop.f32.mrb[1].mxu1  ;;  %6471 = vrcp.f32 %v10099_v63 }
 0x6d8   : > { %11884 = vst [vmem:[#allocation127_spill] sm:$0xff] %v10106_v28  ;;  %v10109_v35 = vpop.f32.mrb[2].mxu1 }
 0x6d9   : > { %11885 = vst [vmem:[#allocation103_spill] sm:$0xff] %v10109_v35  ;;  %v4808_v12 = vpop.f32.mrb[3].mxu1  ;;  %v3083_v2 = vpop.permute.xlu1 %3082  ;;  %4075 = vperm.xlu0 %5752, %v6450_v61   ;;  %5192 = vrot.lane.b32.xlu1 %v3133_v33, %s6617_s6 }
 0x6da   : > { %v10118_v49 = vmul.f32 %v3083_v2, %v9780_v5  ;;  %v6454_v12 = vpop.eup %6453 }
 0x6db   : > { %v6456_v2 = vpop.eup %6455 }
 0x6dc   : > { %11888 = vst [vmem:[#allocation130_spill] sm:$0xff] %v10118_v49  ;;  %v6458_v33 = vpop.eup %6457 }
 0x6dd   : > { %v3941_v26 = vpop.permute.xlu1 %3940  ;;  %4085 = vperm.xlu0 %5752, %v6454_v12   ;;  %4060 = vperm.xlu1 %5751, %v6452_v7  }
 0x6de   : > { %v10124_v9 = vpop.f32.mrb[4].mxu1  ;;  %v4098_v51 = vmul.f32 %v3941_v26, %v9806_v11 }
 0x6df   : > { %11889 = vst [vmem:[#allocation131_spill] sm:$0xff] %v10124_v9  ;;  %v4813_v18 = vpop.f32.mrb[5].mxu1  ;;  %6473 = vrcp.f32 %v10124_v9 }
 0x6e0   : > { %v10127_v5 = vpop.f32.mrb[6].mxu1  ;;  %v6460_v18 = vpop.eup %6459 }
 0x6e1   : > { %v4816_v61 = vpop.f32.mrb[7].mxu1  ;;  %v3946_v32 = vpop.permute.xlu1 %3945  ;;  %4095 = vperm.xlu0 %5752, %v6458_v33   ;;  %4070 = vperm.xlu1 %5751, %v6456_v2  }
 0x6e2   : > { %v4099_v23 = vmul.f32 %v3946_v32, %v9817_v53  ;;  %v6462_v12 = vpop.eup %6461 }
 0x6e3   : > { %v6464_v53 = vpop.eup %6463 }
 0x6e4   : > { %v4130_v7 = vpack.c.bf16 %v4099_v23, %v4098_v51  ;;  %v6466_v23 = vpop.eup %6465 }
 0x6e5   : > { %v10133_v49 = vpop.permute.xlu1 %3950  ;;  %4953 = vperm.xlu0 %5752, %v6462_v12   ;;  %4080 = vperm.xlu1 %5751, %v6460_v18   ;;  %v6468_v2 = vpop.eup %6467 }
 0x6e6   : > { %v10135_v19 = vpop.f32.mrb[8].mxu1 }
 0x6e7   : > { %11890 = vst [vmem:[#allocation62_spill] sm:$0xff] %v10135_v19  ;;  %v4821_v61 = vpop.f32.mrb[9].mxu1  ;;  %6475 = vrcp.f32 %v10135_v19 }
 0x6e8   : > { %v10138_v28 = vpop.f32.mrb[10].mxu1  ;;  %v6470_v61 = vpop.eup %6469 }
 0x6e9   : > { %11891 = vst [vmem:[#allocation52_spill] sm:$0xff] %v10138_v28  ;;  %v4824_v11 = vpop.f32.mrb[11].mxu1  ;;  %v10140_v26 = vpop.permute.xlu1 %3960  ;;  %5218 = vrot.lane.b32.xlu0 %v4130_v7, %s6618_s7  ;;  %4090 = vperm.xlu1 %5751, %v6464_v53  }
 0x6ea   : > { %v6472_v7 = vpop.eup %6471 }
 0x6ed   : > { %v10144_v33 = vpop.permute.xlu1 %3970  ;;  %4963 = vperm.xlu0 %5752, %v6468_v2   ;;  %4948 = vperm.xlu1 %5751, %v6466_v23  }
 0x6ee   : > { %v10146_v32 = vpop.f32.mrb[12].mxu1 }
 0x6ef   : > { %11892 = vst [vmem:[#allocation106_spill] sm:$0xff] %v10146_v32  ;;  %v4829_v51 = vpop.f32.mrb[13].mxu1  ;;  %6477 = vrcp.f32 %v10146_v32 }
 0x6f0   : > { %v10149_v18 = vpop.f32.mrb[14].mxu1  ;;  %v6474_v51 = vpop.eup %6473 }
 0x6f1   : > { %11893 = vst [vmem:[#allocation101_spill] sm:$0xff] %v10149_v18  ;;  %v4832_v12 = vpop.f32.mrb[15].mxu1  ;;  %v10151_v11 = vpop.permute.xlu1 %3980  ;;  %4958 = vperm.xlu1 %5751, %v6470_v61  }
 0x6f2   : > { %v6476_v61 = vpop.eup %6475 }
 0x6f5   : > { %v10154_v53 = vpop.permute.xlu1 %3990  ;;  %4968 = vperm.xlu1 %5751, %v6472_v7  }
 0x6f6   : > { %v10156_v34 = vpop.f32.mrb[16].mxu1 }
 0x6f7   : > { %11894 = vst [vmem:[#allocation102_spill] sm:$0xff] %v10156_v34  ;;  %v4837_v52 = vpop.f32.mrb[17].mxu1  ;;  %6479 = vrcp.f32 %v10156_v34 }
 0x6f8   : > { %v10159_v23 = vpop.f32.mrb[18].mxu1 }
 0x6f9   : > { %v4840_v2 = vpop.f32.mrb[19].mxu1  ;;  %4978 = vperm.xlu1 %5751, %v6474_v51   ;;  %v10162_v12 = vpop.permute.xlu1 %4000 }
 0x6fa   : > { %v6478_v32 = vpop.eup %6477 }
 0x6fd   : > { %4988 = vperm.xlu1 %5751, %v6476_v61   ;;  %v10169_v63 = vpop.permute.xlu1 %4010 }
 0x6fe   : > { %v10164_v19 = vpop.f32.mrb[20].mxu1 }
 0x6ff   : > { %11895 = vst [vmem:[#allocation23_spill] sm:$0xff] %v10164_v19  ;;  %6481 = vrcp.f32 %v10164_v19  ;;  %v4845_v9 = vpop.f32.mrb[21].mxu1 }
 0x700   : > { %v10167_v52 = vpop.f32.mrb[22].mxu1 }
 0x701   : > { %v4848_v7 = vpop.f32.mrb[23].mxu1  ;;  %4998 = vperm.xlu1 %5751, %v6478_v32   ;;  %v6480_v2 = vpop.eup %6479 }
 0x705   : > { %v4021_v51 = vpop.permute.xlu1 %4020  ;;  %5008 = vperm.xlu1 %5751, %v6480_v2  }
 0x706   : > { %v10171_v42 = vpop.f32.mrb[24].mxu1  ;;  %v4114_v56 = vmul.f32 %v4021_v51, %v9908_v15 }
 0x707   : > { %11896 = vst [vmem:[#allocation24_spill] sm:$0xff] %v10171_v42  ;;  %6483 = vrcp.f32 %v10171_v42  ;;  %v4853_v34 = vpop.f32.mrb[25].mxu1  ;;  %v11898_v42 = vld [vmem:[#allocation25_spill] sm:$0xff] }
 0x708   : > { %v10174_v24 = vpop.f32.mrb[26].mxu1 }
 0x709   : > { %v6482_v19 = vpop.eup %6481  ;;  %v4856_v9 = vpop.f32.mrb[27].mxu1 }
 0x70a   : > { %v4026_v61 = vpop.permute.xlu1 %4025  ;;  %5018 = vperm.xlu1 %5751, %v6482_v19  }
 0x70b   : > { %v4115_v7 = vmul.f32 %v4026_v61, %v9911_v8 }
 0x70d   : > { %v4138_v37 = vpack.c.bf16 %v4115_v7, %v4114_v56 }
 0x70e   : > { %v10178_v32 = vpop.f32.mrb[28].mxu1 }
 0x70f   : > { %11897 = vst [vmem:[#allocation50_spill] sm:$0xff] %v10178_v32  ;;  %6485 = vrcp.f32 %v10178_v32  ;;  %v4861_v4 = vpop.f32.mrb[29].mxu1 }
 0x710   : > { %v10181_v36 = vpop.f32.mrb[30].mxu1  ;;  %6487 = vrcp.f32 %v11898_v42 }
 0x711   : > { %v6484_v34 = vpop.eup %6483  ;;  %v4864_v2 = vpop.f32.mrb[31].mxu1  ;;  %6489 = vrcp.f32 %v10109_v35 }
 0x712   : > { %5028 = vperm.xlu1 %5751, %v6484_v34   ;;  %6491 = vrcp.f32 %v10127_v5 }
 0x713   : > { %v10193_v2 = vpop.permute.xlu0 %5170  ;;  %6493 = vrcp.f32 %v10138_v28 }
 0x714   : > { %6495 = vrcp.f32 %v10149_v18  ;;  %v11900_v18 = vld [vmem:[#allocation70_spill] sm:$0xff] }
 0x715   : > { %6497 = vrcp.f32 %v10159_v23  ;;  %v10235_v28 = vmul.f32 %v10151_v11, %v11900_v18 }
 0x716   : > { %v10184_v9 = vpop.f32.mrb[32].mxu1  ;;  %5234 = vrot.lane.b32.xlu1 %v4138_v37, %s6618_s7  ;;  %6499 = vrcp.f32 %v10167_v52 }
 0x717   : > { %v4869_v15 = vpop.f32.mrb[33].mxu1  ;;  %6501 = vrcp.f32 %v10174_v24 }
 0x718   : > { %v10187_v8 = vpop.f32.mrb[34].mxu1  ;;  %v4100_v15 = vmul.f32 %v10133_v49, %v9825_v38  ;;  %v4102_v38 = vmul.f32 %v10140_v26, %v9838_v13  ;;  %v11899_v26 = vld [vmem:[#allocation66_spill] sm:$0xff]  ;;  %6503 = vrcp.f32 %v10181_v36 }
 0x719   : > { %v6486_v56 = vpop.eup %6485  ;;  %v4872_v19 = vpop.f32.mrb[35].mxu1  ;;  %6505 = vrcp.f32 %v10184_v9 }
 0x71a   : > { %5038 = vperm.xlu1 %5751, %v6486_v56   ;;  %v6488_v51 = vpop.eup %6487  ;;  %6507 = vrcp.f32 %v10187_v8 }
 0x71e   : > { %v10189_v61 = vpop.f32.mrb[36].mxu1  ;;  %2054 = vperm.xlu1 %5751, %v6488_v51  }
 0x71f   : > { %v4877_v4 = vpop.f32.mrb[37].mxu1  ;;  %6509 = vrcp.f32 %v10189_v61 }
 0x720   : > { %v10191_v7 = vpop.f32.mrb[38].mxu1 }
 0x721   : > { %v4880_v34 = vpop.f32.mrb[39].mxu1 }
 0x722   : > { %v6490_v34 = vpop.eup %6489 }
 0x724   : > { %v3956_v37 = vpop.permute.xlu0 %3955 }
 0x725   : > { %v4101_v56 = vmul.f32 %v3956_v37, %v9832_v50 }
 0x726   : > { %v10196_v32 = vpop.f32.mrb[40].mxu1 }
 0x727   : > { %v4885_v19 = vpop.f32.mrb[41].mxu1  ;;  %v4131_v51 = vpack.c.bf16 %v4101_v56, %v4100_v15 }
 0x728   : > { %v10201_v42 = vpop.f32.mrb[42].mxu1  ;;  %v10203_v62 = vpop.permute.xlu0 %5172 }
 0x729   : > { %v4888_v4 = vpop.f32.mrb[43].mxu1  ;;  %5220 = vrot.lane.b32.xlu0 %v4131_v51, %s6618_s7  ;;  %v6492_v51 = vpop.eup %6491 }
 0x72c   : > { %v3966_v22 = vpop.permute.xlu0 %3965 }
 0x72d   : > { %v4103_v50 = vmul.f32 %v3966_v22, %v9849_v21  ;;  %4973 = vperm.xlu0 %5752, %v6490_v34   ;;  %v10223_v21 = vmul.f32 %v10144_v33, %v11899_v26  ;;  %v11901_v26 = vld [vmem:[#allocation73_spill] sm:$0xff] }
 0x72e   : > { %v10207_v35 = vpop.f32.mrb[44].mxu1 }
 0x72f   : > { %v4893_v49 = vpop.f32.mrb[45].mxu1  ;;  %v4132_v15 = vpack.c.bf16 %v4103_v50, %v4102_v38 }
 0x730   : > { %v10213_v37 = vpop.f32.mrb[46].mxu1  ;;  %v10215_v19 = vpop.permute.xlu0 %5174 }
 0x731   : > { %v4896_v56 = vpop.f32.mrb[47].mxu1  ;;  %5222 = vrot.lane.b32.xlu0 %v4132_v15, %s6618_s7  ;;  %v6494_v15 = vpop.eup %6493 }
 0x733   : > { %v10253_v11 = vpop.permute.xlu1 %5186 }
 0x734   : > { %v3976_v13 = vpop.permute.xlu0 %3975 }
 0x735   : > { %v10226_v22 = vmul.f32 %v3976_v13, %v9874_v48  ;;  %4983 = vperm.xlu0 %5752, %v6492_v51   ;;  %v6496_v51 = vpop.eup %6495 }
 0x736   : > { %v10219_v4 = vpop.f32.mrb[48].mxu1  ;;  %v6498_v18 = vpop.eup %6497 }
 0x737   : > { %v4901_v34 = vpop.f32.mrb[49].mxu1  ;;  %v4133_v50 = vpack.c.bf16 %v10226_v22, %v10223_v21  ;;  %v10245_v21 = vmul.f32 %v10154_v53, %v11901_v26  ;;  %v11904_v26 = vld [vmem:[#allocation84_spill] sm:$0xff] }
 0x738   : > { %v10229_v38 = vpop.f32.mrb[50].mxu1  ;;  %v3986_v56 = vpop.permute.xlu0 %3985 }
 0x739   : > { %v4904_v49 = vpop.f32.mrb[51].mxu1  ;;  %v10238_v33 = vmul.f32 %v3986_v56, %v9882_v41  ;;  %4993 = vperm.xlu0 %5752, %v6494_v15   ;;  %v6500_v56 = vpop.eup %6499  ;;  %v10266_v41 = vmul.f32 %v10169_v63, %v11904_v26 }
 0x73a   : > { %v11902_v49 = vld [vmem:[#allocation89_spill] sm:$0xff] }
 0x73b   : > { %v10257_v15 = vmul.f32 %v10162_v12, %v11902_v49  ;;  %v6502_v12 = vpop.eup %6501 }
 0x73c   : > { %v3996_v13 = vpop.permute.xlu0 %3995 }
 0x73d   : > { %v10248_v22 = vmul.f32 %v3996_v13, %v9888_v31  ;;  %5003 = vperm.xlu0 %5752, %v6496_v51   ;;  %11903 = vst [vmem:[#allocation107_spill] sm:$0xff] %v10257_v15 }
 0x740   : > { %v4006_v34 = vpop.permute.xlu0 %4005 }
 0x741   : > { %v10260_v53 = vmul.f32 %v4006_v34, %v9894_v55  ;;  %5013 = vperm.xlu0 %5752, %v6498_v18  }
 0x744   : > { %v4031_v51 = vpop.permute.xlu1 %4030  ;;  %v4016_v13 = vpop.permute.xlu0 %4015 }
 0x745   : > { %v10270_v48 = vmul.f32 %v4016_v13, %v9904_v29  ;;  %5023 = vperm.xlu0 %5752, %v6500_v56   ;;  %v4116_v49 = vmul.f32 %v4031_v51, %v9928_v25  ;;  %v11905_v13 = vpack.c.bf16 %v9996_v58, %v9999_v47  ;;  %v6504_v25 = vpop.eup %6503 }
 0x746   : > { %v6506_v51 = vpop.eup %6505 }
 0x748   : > { %v10275_v18 = vpop.permute.xlu1 %5188  ;;  %v4036_v34 = vpop.permute.xlu0 %4035 }
 0x749   : > { %v4117_v63 = vmul.f32 %v4036_v34, %v9932_v43  ;;  %5033 = vperm.xlu0 %5752, %v6502_v12  }
 0x74b   : > { %v4139_v26 = vpack.c.bf16 %v4117_v63, %v4116_v49 }
 0x74c   : > { %v4041_v31 = vpop.permute.xlu1 %4040  ;;  %v4046_v15 = vpop.permute.xlu0 %4045 }
 0x74d   : > { %v4118_v29 = vmul.f32 %v4041_v31, %v9966_v14  ;;  %v4119_v56 = vmul.f32 %v4046_v15, %v9974_v27  ;;  %5176 = vrot.lane.b32.xlu0 %v11905_v13, %s6617_s6  ;;  %5236 = vrot.lane.b32.xlu1 %v4139_v26, %s6618_s7  ;;  %v11906_v14 = vld [vmem:[#allocation108_spill] sm:$0xff]  ;;  %v6508_v31 = vpop.eup %6507  ;;  %v11908_v13 = vpack.c.bf16 %v9959_v16, %v9962_v6 }
 0x74e   : > { %6511 = vrcp.f32 %v11906_v14  ;;  %v6510_v63 = vpop.eup %6509 }
 0x74f   : > { %v4140_v43 = vpack.c.bf16 %v4119_v56, %v4118_v29  ;;  %6513 = vrcp.f32 %v10191_v7  ;;  %v11907_v56 = vld [vmem:[#allocation120_spill] sm:$0xff] }
 0x750   : > { %v10288_v12 = vpop.permute.xlu1 %5190  ;;  %v4056_v34 = vpop.permute.xlu0 %4055  ;;  %6515 = vrcp.f32 %v10196_v32 }
 0x751   : > { %5043 = vperm.xlu0 %5752, %v6504_v25   ;;  %5048 = vperm.xlu1 %5751, %v6506_v51   ;;  %v4121_v58 = vmul.f32 %v4056_v34, %v9983_v1  ;;  %6517 = vrcp.f32 %v11907_v56 }
 0x754   : > { %v4051_v27 = vpop.permute.xlu1 %4050  ;;  %v4066_v15 = vpop.permute.xlu0 %4065 }
 0x755   : > { %v4120_v47 = vmul.f32 %v4051_v27, %v9979_v17  ;;  %5224 = vrot.lane.b32.xlu0 %v4133_v50, %s6618_s7  ;;  %5238 = vrot.lane.b32.xlu1 %v4140_v43, %s6618_s7  ;;  %v11909_v50 = vld [vmem:[#allocation121_spill] sm:$0xff]  ;;  %v10310_v34 = vmul.f32 %v4066_v15, %v9993_v45 }
 0x756   : > { %6519 = vrcp.f32 %v11909_v50 }
 0x757   : > { %v4141_v49 = vpack.c.bf16 %v4121_v58, %v4120_v47  ;;  %6521 = vrcp.f32 %v10201_v42 }
 0x758   : > { %v5193_v26 = vpop.permute.xlu1 %5192  ;;  %v4076_v29 = vpop.permute.xlu0 %4075  ;;  %6523 = vrcp.f32 %v10207_v35 }
 0x759   : > { %v10302_v1 = vsel %vm1167_vm2, %v11908_v13, %v5193_v26  ;;  %v10305_v17 = vmul.f32 %v4076_v29, %v10014_v0  ;;  %5053 = vperm.xlu0 %5752, %v6508_v31   ;;  %5058 = vperm.xlu1 %5751, %v6510_v63   ;;  %v6512_v25 = vpop.eup %6511  ;;  %6525 = vrcp.f32 %v10213_v37 }
 0x75a   : > { %v6514_v0 = vpop.eup %6513  ;;  %6527 = vrcp.f32 %v10219_v4 }
 0x75b   : > { %v6516_v47 = vpop.eup %6515  ;;  %6529 = vrcp.f32 %v10229_v38 }
 0x75c   : > { %v4061_v43 = vpop.permute.xlu1 %4060  ;;  %v4086_v51 = vpop.permute.xlu0 %4085 }
 0x75d   : > { %v4122_v16 = vmul.f32 %v4061_v43, %v9989_v39  ;;  %v10314_v6 = vmul.f32 %v4086_v51, %v10037_v10  ;;  %2059 = vperm.xlu0 %5752, %v6512_v25   ;;  %5240 = vrot.lane.b32.xlu1 %v4141_v49, %s6618_s7  ;;  %v6518_v26 = vpop.eup %6517 }
 0x75f   : > { %v4142_v27 = vpack.c.bf16 %v10310_v34, %v4122_v16 }
 0x760   : > { %v10319_v58 = vpop.f32.mrb[52].mxu1  ;;  %v4071_v63 = vpop.permute.xlu1 %4070 }
 0x761   : > { %v4909_v31 = vpop.f32.mrb[53].mxu1  ;;  %v10324_v39 = vmul.f32 %v4071_v63, %v10005_v40  ;;  %v4096_v10 = vpop.permute.xlu0 %4095  ;;  %5063 = vperm.xlu0 %5752, %v6514_v0   ;;  %5068 = vperm.xlu1 %5751, %v6516_v47   ;;  %v11910_v0 = vld [vmem:[#allocation59_spill] sm:$0xff]  ;;  %v11911_v47 = vld [vmem:[#allocation58_spill] sm:$0xff]  ;;  %6531 = vrcp.f32 %v10319_v58 }
 0x762   : > { %v10321_v45 = vpop.f32.mrb[54].mxu1  ;;  %v10327_v15 = vmul.f32 %v4096_v10, %v10056_v54  ;;  %v6520_v13 = vpop.eup %6519  ;;  %v11912_v31 = vpack.c.bf16 %v11910_v0, %v11911_v47 }
 0x763   : > { %v4912_v49 = vpop.f32.mrb[55].mxu1  ;;  %v6522_v51 = vpop.eup %6521 }
 0x764   : > { %v4081_v25 = vpop.permute.xlu1 %4080  ;;  %v6524_v34 = vpop.eup %6523  ;;  %v5300_v63 = vsel %vm1167_vm2, %v11912_v31, %v10193_v2  ;;  %v11915_v2 = vpack.c.bf16 %v10078_v57, %v10081_v3  ;;  %v11920_v3 = vld [vmem:[#allocation122_spill] sm:$0xff] }
 0x765   : > { %v10333_v43 = vmul.f32 %v4081_v25, %v10028_v60  ;;  %v4954_v40 = vpop.permute.xlu0 %4953  ;;  %1979 = vperm.xlu0 %5752, %v6520_v13   ;;  %1974 = vperm.xlu1 %5751, %v6518_v26  }
 0x766   : > { %v5107_v25 = vmul.f32 %v4954_v40, %v10068_v46  ;;  %v11916_v46 = vld [vmem:[#allocation74_spill] sm:$0xff] }
 0x767   : > { %6533 = vrcp.f32 %v11916_v46 }
 0x768   : > { %v4091_v16 = vpop.permute.xlu1 %4090 }
 0x769   : > { %v10344_v60 = vmul.f32 %v4091_v16, %v10051_v30  ;;  %v5219_v10 = vpop.permute.xlu0 %5218  ;;  %5073 = vperm.xlu0 %5752, %v6522_v51   ;;  %5078 = vperm.xlu1 %5751, %v6524_v34   ;;  %v11914_v30 = vpack.c.bf16 %v10008_v44, %v10011_v20  ;;  %v6526_v34 = vpop.eup %6525  ;;  %v11919_v44 = vld [vmem:[#allocation27_spill] sm:$0xff] }
 0x76a   : > { %v10347_v49 = vsel %vm5346_vm3, %v5300_v63, %v5219_v10  ;;  %v6528_v47 = vpop.eup %6527  ;;  %v11918_v63 = vld [vmem:[#allocation7_spill] sm:$0xff]  ;;  %6535 = vrcp.f32 %v11919_v44 }
 0x76b   : > { %11913 = vst [vmem:[#allocation13_spill] sm:$0xff] %v10347_v49  ;;  %6537 = vrcp.f32 %v11920_v3 }
 0x76c   : > { %v4949_v13 = vpop.permute.xlu1 %4948  ;;  %6539 = vrcp.f32 %v10321_v45 }
 0x76d   : > { %v5106_v0 = vmul.f32 %v4949_v13, %v10063_v59  ;;  %5178 = vrot.lane.b32.xlu0 %v11914_v30, %s6617_s6  ;;  %5194 = vrot.lane.b32.xlu1 %v11915_v2, %s6617_s6  ;;  %v4964_v51 = vpop.permute.xlu0 %4963  ;;  %v11917_v59 = vld [vmem:[#allocation17_spill] sm:$0xff]  ;;  %v11921_v13 = vpack.c.bf16 %v10238_v33, %v10235_v28  ;;  %v11922_v2 = vld [vmem:[#allocation83_spill] sm:$0xff] }
 0x76e   : > { %v5109_v40 = vmul.f32 %v4964_v51, %v11917_v59  ;;  %6541 = vrcp.f32 %v11922_v2  ;;  %v11940_v2 = vld [vmem:[#allocation82_spill] sm:$0xff] }
 0x76f   : > { %v5138_v16 = vpack.c.bf16 %v5107_v25, %v5106_v0  ;;  %v6530_v25 = vpop.eup %6529 }
 0x770   : > { %v4959_v31 = vpop.permute.xlu1 %4958  ;;  %v6532_v0 = vpop.eup %6531 }
 0x771   : > { %v5108_v10 = vmul.f32 %v4959_v31, %v11918_v63  ;;  %5083 = vperm.xlu0 %5752, %v6526_v34   ;;  %5088 = vperm.xlu1 %5751, %v6528_v47   ;;  %v6534_v51 = vpop.eup %6533  ;;  %v11924_v63 = vld [vmem:[#allocation133_spill] sm:$0xff] }
 0x773   : > { %v5139_v20 = vpack.c.bf16 %v5109_v40, %v5108_v10  ;;  %v11923_v40 = vld [vmem:[#allocation132_spill] sm:$0xff] }
 0x774   : > { %v4969_v57 = vpop.permute.xlu1 %4968  ;;  %v6536_v34 = vpop.eup %6535  ;;  %v11925_v10 = vpack.c.bf16 %v11923_v40, %v11924_v63 }
 0x775   : > { %5226 = vrot.lane.b32.xlu0 %v11921_v13, %s6618_s7  ;;  %5242 = vrot.lane.b32.xlu1 %v4142_v27, %s6618_s7  ;;  %v6538_v31 = vpop.eup %6537  ;;  %v11926_v13 = vld [vmem:[#allocation5_spill] sm:$0xff] }
 0x776   : > { %v6540_v59 = vpop.eup %6539 }
 0x778   : > { %v4979_v30 = vpop.permute.xlu1 %4978  ;;  %v6542_v33 = vpop.eup %6541 }
 0x779   : > { %5093 = vperm.xlu0 %5752, %v6530_v25   ;;  %5098 = vperm.xlu1 %5751, %v6532_v0   ;;  %v11927_v25 = vld [vmem:[#allocation8_spill] sm:$0xff] }
 0x77a   : > { %v11928_v0 = vpack.c.bf16 %v11926_v13, %v11927_v25  ;;  %v11933_v13 = vld [vmem:[#allocation81_spill] sm:$0xff]  ;;  %v11934_v25 = vld [vmem:[#allocation64_spill] sm:$0xff] }
 0x77c   : > { %v4989_v47 = vpop.permute.xlu1 %4988 }
 0x77d   : > { %2069 = vperm.xlu0 %5752, %v6536_v34   ;;  %2064 = vperm.xlu1 %5751, %v6534_v51  }
 0x780   : > { %v4999_v28 = vpop.permute.xlu1 %4998 }
 0x781   : > { %5103 = vperm.xlu0 %5752, %v6540_v59   ;;  %1984 = vperm.xlu1 %5751, %v6538_v31   ;;  %v11929_v31 = vld [vmem:[#allocation76_spill] sm:$0xff]  ;;  %v11930_v59 = vld [vmem:[#allocation79_spill] sm:$0xff] }
 0x784   : > { %v5009_v27 = vpop.permute.xlu1 %5008 }
 0x785   : > { %1989 = vperm.xlu0 %5752, %v6542_v33   ;;  %5196 = vrot.lane.b32.xlu1 %v11925_v10, %s6617_s6  ;;  %v11931_v33 = vpack.c.bf16 %v11929_v31, %v11930_v59  ;;  %v11937_v59 = vld [vmem:[#allocation42_spill] sm:$0xff] }
 0x787   : > { %v5324_v26 = vsel %vm1167_vm2, %v11931_v33, %v10253_v11  ;;  %v5110_v33 = vmul.f32 %v4969_v57, %v11937_v59  ;;  %v11943_v59 = vld [vmem:[#allocation62_spill] sm:$0xff] }
 0x789   : > { %5180 = vrot.lane.b32.xlu0 %v11928_v0, %s6617_s6  ;;  %v5019_v34 = vpop.permute.xlu1 %5018  ;;  %v11935_v0 = vpack.c.bf16 %v11933_v13, %v11934_v25 }
 0x78d   : > { %5266 = vrot.lane.b32.xlu0 %v5138_v16, %s6619_s8  ;;  %v5303_v16 = vsel %vm1167_vm2, %v11935_v0, %v10203_v62 }
 0x791   : > { %v5029_v51 = vpop.permute.xlu1 %5028  ;;  %5268 = vrot.lane.b32.xlu0 %v5139_v20, %s6619_s8  ;;  %v11936_v20 = vld [vmem:[#allocation25_spill] sm:$0xff] }
 0x795   : > { %v5235_v40 = vpop.permute.xlu1 %5234 }
 0x796   : > { %v10391_v63 = vsel %vm5346_vm3, %v5324_v26, %v5235_v40  ;;  %v11938_v26 = vld [vmem:[#allocation103_spill] sm:$0xff] }
 0x797   : > { %11932 = vst [vmem:[#allocation109_spill] sm:$0xff] %v10391_v63  ;;  %v11939_v63 = vld [vmem:[#allocation78_spill] sm:$0xff] }
 0x798   : > { %v11941_v13 = vpack.c.bf16 %v11939_v63, %v11940_v2  ;;  %v11945_v63 = vld [vmem:[#allocation106_spill] sm:$0xff] }
 0x799   : > { %v5039_v10 = vpop.permute.xlu1 %5038 }
 0x79a   : > { %v5306_v62 = vsel %vm1167_vm2, %v11941_v13, %v10215_v19  ;;  %v5116_v13 = vmul.f32 %v4999_v28, %v11945_v63 }
 0x79b   : > { %v5221_v55 = vpop.permute.xlu0 %5220 }
 0x79c   : > { %v10402_v31 = vsel %vm5346_vm3, %v5303_v16, %v5221_v55 }
 0x79d   : > { %v2055_v54 = vpop.permute.xlu1 %2054 }
 0x79e   : > { %v10399_v29 = vmul.f32 %v2055_v54, %v11936_v20  ;;  %v11942_v54 = vld [vmem:[#allocation131_spill] sm:$0xff] }
 0x79f   : > { %v5112_v16 = vmul.f32 %v4979_v30, %v11942_v54  ;;  %v11949_v30 = vld [vmem:[#allocation86_spill] sm:$0xff] }
 0x7ac   : > { %v4974_v11 = vpop.permute.xlu0 %4973 }
 0x7ad   : > { %v5111_v40 = vmul.f32 %v4974_v11, %v11938_v26  ;;  %v11944_v26 = vld [vmem:[#allocation52_spill] sm:$0xff] }
 0x7af   : > { %v5140_v49 = vpack.c.bf16 %v5111_v40, %v5110_v33  ;;  %v5114_v33 = vmul.f32 %v4989_v47, %v11943_v59 }
 0x7b0   : > { %v5223_v25 = vpop.permute.xlu0 %5222 }
 0x7b1   : > { %v10412_v0 = vsel %vm5346_vm3, %v5306_v62, %v5223_v25  ;;  %5270 = vrot.lane.b32.xlu0 %v5140_v49, %s6619_s8  ;;  %v11946_v62 = vld [vmem:[#allocation101_spill] sm:$0xff]  ;;  %v11947_v49 = vld [vmem:[#allocation40_spill] sm:$0xff] }
 0x7b2   : > { %6543 = vrcp.f32 %v11947_v49 }
 0x7b4   : > { %v4984_v55 = vpop.permute.xlu0 %4983 }
 0x7b5   : > { %v5113_v57 = vmul.f32 %v4984_v55, %v10127_v5  ;;  %v11948_v5 = vld [vmem:[#allocation80_spill] sm:$0xff] }
 0x7b6   : > { %v11950_v55 = vpack.c.bf16 %v11948_v5, %v11949_v30 }
 0x7b7   : > { %v5141_v20 = vpack.c.bf16 %v5113_v57, %v5112_v16 }
 0x7b8   : > { %v4994_v11 = vpop.permute.xlu0 %4993  ;;  %v5327_v47 = vsel %vm1167_vm2, %v11950_v55, %v10275_v18  ;;  %v11954_v18 = vld [vmem:[#allocation23_spill] sm:$0xff] }
 0x7b9   : > { %v5115_v40 = vmul.f32 %v4994_v11, %v11944_v26  ;;  %5272 = vrot.lane.b32.xlu0 %v5141_v20, %s6619_s8  ;;  %v11951_v11 = vld [vmem:[#allocation102_spill] sm:$0xff]  ;;  %v11953_v26 = vld [vmem:[#allocation124_spill] sm:$0xff]  ;;  %v11956_v55 = vld [vmem:[#allocation19_spill] sm:$0xff] }
 0x7ba   : > { %v5118_v28 = vmul.f32 %v5009_v27, %v11951_v11  ;;  %6545 = vrcp.f32 %v11953_v26  ;;  %v11960_v11 = vld [vmem:[#allocation50_spill] sm:$0xff] }
 0x7bb   : > { %v5142_v19 = vpack.c.bf16 %v5115_v40, %v5114_v33  ;;  %v11952_v33 = vpack.c.bf16 %v10248_v22, %v10245_v21 }
 0x7bc   : > { %v5004_v2 = vpop.permute.xlu0 %5003 }
 0x7bd   : > { %v5117_v25 = vmul.f32 %v5004_v2, %v11946_v62  ;;  %5274 = vrot.lane.b32.xlu0 %v5142_v19, %s6619_s8  ;;  %v5120_v2 = vmul.f32 %v5019_v34, %v11954_v18  ;;  %v6544_v62 = vpop.eup %6543  ;;  %v11965_v18 = vmov 0  }
 0x7bf   : > { %v5143_v54 = vpack.c.bf16 %v5117_v25, %v5116_v13  ;;  %v5237_v16 = vpop.permute.xlu1 %5236  ;;  %v11955_v25 = vld [vmem:[#allocation24_spill] sm:$0xff] }
 0x7c0   : > { %v10430_v57 = vsel %vm5346_vm3, %v5327_v47, %v5237_v16  ;;  %v5014_v20 = vpop.permute.xlu0 %5013  ;;  %v11957_v47 = vld [vmem:[#allocation20_spill] sm:$0xff] }
 0x7c1   : > { %v5119_v59 = vmul.f32 %v5014_v20, %v10159_v23  ;;  %5228 = vrot.lane.b32.xlu0 %v11952_v33, %s6618_s7  ;;  %v5122_v23 = vmul.f32 %v5029_v51, %v11955_v25  ;;  %v11958_v16 = vpack.c.bf16 %v11956_v55, %v11957_v47  ;;  %v5124_v51 = vmul.f32 %v5039_v10, %v11960_v11 }
 0x7c3   : > { %v5144_v40 = vpack.c.bf16 %v5119_v59, %v5118_v28  ;;  %v11961_v28 = vld [vmem:[#allocation125_spill] sm:$0xff]  ;;  %v11962_v59 = vld [vmem:[#allocation128_spill] sm:$0xff] }
 0x7c4   : > { %v5024_v19 = vpop.permute.xlu0 %5023  ;;  %v6546_v22 = vpop.eup %6545  ;;  %v11963_v33 = vpack.c.bf16 %v11961_v28, %v11962_v59 }
 0x7c5   : > { %v5121_v63 = vmul.f32 %v5024_v19, %v10167_v52  ;;  %5276 = vrot.lane.b32.xlu0 %v5143_v54, %s6619_s8  ;;  %v11959_v52 = vld [vmem:[#allocation41_spill] sm:$0xff]  ;;  %v11964_v19 = vpack.c.bf16 %v10305_v17, %v10324_v39  ;;  %v11969_v17 = vld [vmem:[#allocation107_spill] sm:$0xff] }
 0x7c6   : > { %6547 = vrcp.f32 %v11959_v52  ;;  %v11970_v39 = vpack.c.bf16 %v10260_v53, %v11969_v17  ;;  %v11979_v17 = vld [vmem:[#allocation95_spill] sm:$0xff] }
 0x7c7   : > { %v5145_v13 = vpack.c.bf16 %v5121_v63, %v5120_v2  ;;  %v11966_v63 = vld [vmem:[#allocation87_spill] sm:$0xff] }
 0x7c8   : > { %v5034_v27 = vpop.permute.xlu0 %5033 }
 0x7c9   : > { %v5123_v5 = vmul.f32 %v5034_v27, %v10174_v24  ;;  %2079 = vperm.xlu0 %5752, %v6544_v62   ;;  %v11967_v62 = vld [vmem:[#allocation94_spill] sm:$0xff] }
 0x7ca   : > { %v11968_v27 = vpack.c.bf16 %v11966_v63, %v11967_v62 }
 0x7cb   : > { %v5146_v21 = vpack.c.bf16 %v5123_v5, %v5122_v23 }
 0x7cc   : > { %v5177_v30 = vpop.permute.xlu0 %5176  ;;  %v5330_v10 = vsel %vm1167_vm2, %v11968_v27, %v10288_v12 }
 0x7cd   : > { %v5309_v34 = vsel %vm1167_vm2, %v11958_v16, %v5177_v30  ;;  %1999 = vperm.xlu0 %5752, %v6546_v22   ;;  %5282 = vrot.lane.b32.xlu1 %v5146_v21, %s6619_s8  ;;  %v11971_v21 = vld [vmem:[#allocation123_spill] sm:$0xff] }
 0x7ce   : > { %6549 = vrcp.f32 %v11971_v21 }
 0x7d0   : > { %v5049_v54 = vpop.permute.xlu1 %5048  ;;  %v5044_v20 = vpop.permute.xlu0 %5043 }
 0x7d1   : > { %v5125_v24 = vmul.f32 %v5044_v20, %v10181_v36  ;;  %5182 = vrot.lane.b32.xlu0 %v11963_v33, %s6617_s6  ;;  %5244 = vrot.lane.b32.xlu1 %v11964_v19, %s6618_s7  ;;  %v6548_v22 = vpop.eup %6547  ;;  %v5126_v55 = vmul.f32 %v5049_v54, %v10184_v9 }
 0x7d2   : > { %5754 = vset.pattern.permute.xlu0 %v11965_v18 }
 0x7d3   : > { %v5147_v2 = vpack.c.bf16 %v5125_v24, %v5124_v51  ;;  %v11972_v51 = vld [vmem:[#allocation129_spill] sm:$0xff]  ;;  %v11973_v24 = vld [vmem:[#allocation6_spill] sm:$0xff] }
 0x7d4   : > { %v5239_v36 = vpop.permute.xlu1 %5238  ;;  %v5225_v25 = vpop.permute.xlu0 %5224  ;;  %v11974_v28 = vpack.c.bf16 %v11972_v51, %v11973_v24 }
 0x7d5   : > { %v10467_v23 = vsel %vm5346_vm3, %v5330_v10, %v5239_v36  ;;  %v10470_v5 = vsel %vm5346_vm3, %v5309_v34, %v5225_v25  ;;  %5230 = vrot.lane.b32.xlu0 %v11970_v39, %s6618_s7  ;;  %5284 = vrot.lane.b32.xlu1 %v5147_v2, %s6619_s8  ;;  %v11977_v10 = vld [vmem:[#allocation127_spill] sm:$0xff]  ;;  %v11980_v39 = vld [vmem:[#allocation96_spill] sm:$0xff] }
 0x7d8   : > { %v5059_v30 = vpop.permute.xlu1 %5058  ;;  %v5054_v12 = vpop.permute.xlu0 %5053 }
 0x7d9   : > { %v5127_v47 = vmul.f32 %v5054_v12, %v10187_v8  ;;  %5278 = vrot.lane.b32.xlu0 %v5144_v40, %s6619_s8  ;;  %2074 = vperm.xlu1 %5751, %v6548_v22   ;;  %v6550_v8 = vpop.eup %6549  ;;  %v5128_v59 = vmul.f32 %v5059_v30, %v10189_v61  ;;  %v11982_v30 = vld [vmem:[#allocation21_spill] sm:$0xff]  ;;  %v11983_v12 = vld [vmem:[#allocation22_spill] sm:$0xff] }
 0x7db   : > { %v5148_v16 = vpack.c.bf16 %v5127_v47, %v5126_v55  ;;  %v11984_v55 = vpack.c.bf16 %v11982_v30, %v11983_v12  ;;  %v11992_v12 = vld [vmem:[#allocation13_spill] sm:$0xff] }
 0x7dc   : > { %v5241_v34 = vpop.permute.xlu1 %5240  ;;  %v2060_v20 = vpop.permute.xlu0 %2059 }
 0x7dd   : > { %v10483_v53 = vsel %vm5346_vm3, %v10302_v1, %v5241_v34  ;;  %v10486_v11 = vmul.f32 %v2060_v20, %v11906_v14  ;;  %5184 = vrot.lane.b32.xlu0 %v11974_v28, %s6617_s6  ;;  %5286 = vrot.lane.b32.xlu1 %v5148_v16, %s6619_s8  ;;  %v11975_v14 = vpack.c.bf16 %v10270_v48, %v10266_v41 }
 0x7de   : > { %v11985_v20 = vpack.c.bf16 %v10314_v6, %v10333_v43  ;;  %v11986_v6 = vld [vmem:[#allocation105_spill] sm:$0xff]  ;;  %v11987_v43 = vld [vmem:[#allocation130_spill] sm:$0xff] }
 0x7df   : > { %v2127_v9 = vpack.c.bf16 %v10486_v11, %v10399_v29 }
 0x7e0   : > { %v5069_v40 = vpop.permute.xlu1 %5068  ;;  %v5064_v54 = vpop.permute.xlu0 %5063 }
 0x7e1   : > { %v5129_v1 = vmul.f32 %v5064_v54, %v10191_v7  ;;  %5232 = vrot.lane.b32.xlu0 %v11975_v14, %s6618_s7  ;;  %1994 = vperm.xlu1 %5751, %v6550_v8   ;;  %v5130_v41 = vmul.f32 %v5069_v40, %v10196_v32 }
 0x7e3   : > { %v5149_v33 = vpack.c.bf16 %v5129_v1, %v5128_v59  ;;  %v11988_v1 = vpack.c.bf16 %v11986_v6, %v11987_v43 }
 0x7e4   : > { %v1975_v19 = vpop.permute.xlu1 %1974  ;;  %v1980_v2 = vpop.permute.xlu0 %1979 }
 0x7e5   : > { %v10502_v63 = vmul.f32 %v1975_v19, %v11907_v56  ;;  %v10505_v62 = vmul.f32 %v1980_v2, %v11909_v50  ;;  %5280 = vrot.lane.b32.xlu0 %v5145_v13, %s6619_s8  ;;  %5288 = vrot.lane.b32.xlu1 %v5149_v33, %s6619_s8  ;;  %v11976_v56 = vld [vmem:[#allocation126_spill] sm:$0xff] }
 0x7e6   : > { %5753 = vset.pattern.permute.xlu1 %v11965_v18  ;;  %v11978_v50 = vpack.c.bf16 %v11976_v56, %v11977_v10  ;;  %v11981_v18 = vpack.c.bf16 %v11979_v17, %v11980_v39 }
 0x7e7   : > { %v2119_v61 = vpack.c.bf16 %v10505_v62, %v10502_v63 }
 0x7e8   : > { %v5079_v7 = vpop.permute.xlu1 %5078  ;;  %v5074_v48 = vpop.permute.xlu0 %5073 }
 0x7e9   : > { %v5131_v27 = vmul.f32 %v5074_v48, %v10201_v42  ;;  %5198 = vrot.lane.b32.xlu1 %v11978_v50, %s6617_s6  ;;  %v5132_v16 = vmul.f32 %v5079_v7, %v10207_v35  ;;  %v11990_v50 = vld [vmem:[#allocation83_spill] sm:$0xff] }
 0x7eb   : > { %v5150_v36 = vpack.c.bf16 %v5131_v27, %v5130_v41 }
 0x7ec   : > { %v5195_v13 = vpop.permute.xlu1 %5194  ;;  %v5179_v25 = vpop.permute.xlu0 %5178 }
 0x7ed   : > { %v5336_v22 = vsel %vm1167_vm2, %v11981_v18, %v5195_v13  ;;  %v5312_v32 = vsel %vm1167_vm2, %v11984_v55, %v5179_v25  ;;  %5290 = vrot.lane.b32.xlu1 %v5150_v36, %s6619_s8 }
 0x7f0   : > { %v5089_v42 = vpop.permute.xlu1 %5088  ;;  %v5084_v47 = vpop.permute.xlu0 %5083 }
 0x7f1   : > { %v5133_v34 = vmul.f32 %v5084_v47, %v10213_v37  ;;  %5246 = vrot.lane.b32.xlu1 %v11985_v20, %s6618_s7  ;;  %v5134_v37 = vmul.f32 %v5089_v42, %v10219_v4 }
 0x7f3   : > { %v5151_v51 = vpack.c.bf16 %v5133_v34, %v5132_v16 }
 0x7f4   : > { %v5243_v24 = vpop.permute.xlu1 %5242  ;;  %v5227_v28 = vpop.permute.xlu0 %5226 }
 0x7f5   : > { %v10534_v8 = vsel %vm5346_vm3, %v5336_v22, %v5243_v24  ;;  %v10537_v40 = vsel %vm5346_vm3, %v5312_v32, %v5227_v28  ;;  %5292 = vrot.lane.b32.xlu1 %v5151_v51, %s6619_s8  ;;  %v11991_v22 = vld [vmem:[#allocation109_spill] sm:$0xff] }
 0x7f8   : > { %v5099_v54 = vpop.permute.xlu1 %5098  ;;  %v5094_v35 = vpop.permute.xlu0 %5093 }
 0x7f9   : > { %v5135_v59 = vmul.f32 %v5094_v35, %v10229_v38  ;;  %5200 = vrot.lane.b32.xlu1 %v11988_v1, %s6617_s6  ;;  %v5136_v41 = vmul.f32 %v5099_v54, %v10319_v58  ;;  %s6620_s6 = smov [#allocation2]  }
 0x7fb   : > { %v5152_v14 = vpack.c.bf16 %v5135_v59, %v5134_v37 }
 0x7fc   : > { %v2065_v33 = vpop.permute.xlu1 %2064  ;;  %v2070_v19 = vpop.permute.xlu0 %2069 }
 0x7fd   : > { %v10547_v2 = vmul.f32 %v2065_v33, %v11916_v46  ;;  %v10550_v7 = vmul.f32 %v2070_v19, %v11919_v44  ;;  %5294 = vrot.lane.b32.xlu1 %v5152_v14, %s6619_s8  ;;  %v11989_v46 = vpack.c.bf16 %v10327_v15, %v10344_v60 }
 0x7ff   : > { %v2128_v4 = vpack.c.bf16 %v10550_v7, %v10547_v2 }
 0x800   : > { %v1985_v38 = vpop.permute.xlu1 %1984  ;;  %v5104_v48 = vpop.permute.xlu0 %5103 }
 0x801   : > { %v10557_v27 = vmul.f32 %v1985_v38, %v11920_v3  ;;  %v5137_v56 = vmul.f32 %v5104_v48, %v10321_v45  ;;  %5248 = vrot.lane.b32.xlu1 %v11989_v46, %s6618_s7  ;;  %v10573_v3 = vld [vmem:[%s10684_s3] sm:$0xf]  ;;  %s6555_s7 = sshll.u32 %s6620_s6, 4  ;;  %s6556_s7 = int_to_ptr.vmem [resolvable:$false] %s6555_s7 }
 0x802   : > { %5699 = vmatprep.mubr.bf16.mxu0 %v10573_v3  ;;  %v5429_v45 = vld [vmem:[%s10685_s4] sm:$0xff]  ;;  %p6558_p0 = scmp.lt.s32.totalorder %s10641_s17, %s6556_s7 }
 0x803   : > { %v5153_v44 = vpack.c.bf16 %v5137_v56, %v5136_v41 }
 0x804   : > { %v1990_v10 = vpop.permute.xlu0 %1989  ;;  %v5197_v25 = vpop.permute.xlu1 %5196 }
 0x805   : > { %v10565_v36 = vmul.f32 %v1990_v10, %v11990_v50  ;;  %5296 = vrot.lane.b32.xlu1 %v5153_v44, %s6619_s8  ;;  %s6557_s8 = scalar_lea.vmem %s6556_s7, 512 }
 0x806   : > { %p6559_p1 = scmp.lt.s32.totalorder %s6557_s8, %s6551_s30 }
 0x807   : > { %v2120_v58 = vpack.c.bf16 %v10565_v36, %v10557_v27 }
 0x808   : > { %v5181_v15 = vpop.permute.xlu0 %5180  ;;  %p6560_p2 = por %p6559_p1, %p6558_p0 }
 0x809   : > { %5432 = vperm.xlu1 %5753, %v5429_v45   ;;  %v5315_v56 = vsel %vm1167_vm2, %v2119_v61, %v5181_v15 }
 0x80a   : > { %p6561_p3 = pnand %p6560_p2, %p6554_p13 }
 0x80c   : > { %v5267_v60 = vpop.permute.xlu0 %5266 }
 0x80d   : > { %v5381_v55 = vsel %vm5379_vm4, %v11992_v12, %v5267_v60 }
 0x810   : > { %v5269_v13 = vpop.permute.xlu0 %5268 }
 0x811   : > { %v5384_v34 = vsel %vm5379_vm4, %v10402_v31, %v5269_v13 }
 0x823   : > { %v5271_v17 = vpop.permute.xlu0 %5270 }
 0x82b   : > { %v5273_v18 = vpop.permute.xlu0 %5272 }
 0x82c   : > { %v5390_v19 = vsel %vm5379_vm4, %v10470_v5, %v5273_v18  ;;  %v5339_v5 = vsel %vm1167_vm2, %v2127_v9, %v5197_v25 }
 0x82f   : > { %v5275_v42 = vpop.permute.xlu0 %5274 }
 0x833   : > { %v5229_v20 = vpop.permute.xlu0 %5228 }
 0x834   : > { %v5358_v44 = vsel %vm5346_vm3, %v5315_v56, %v5229_v20 }
 0x837   : > { %v5277_v51 = vpop.permute.xlu0 %5276 }
 0x838   : > { %v5396_v10 = vsel %vm5379_vm4, %v5358_v44, %v5277_v51 }
 0x83f   : > { %v5283_v39 = vpop.permute.xlu1 %5282 }
 0x840   : > { %v5405_v30 = vsel %vm5379_vm4, %v11991_v22, %v5283_v39 }
 0x841   : > { %5683 = vmatprep.subr.bf16.mxu0 %v5405_v30 }
 0x842   : > { %5684 = vmatpush3.bf16.xpose.msra.mxu0 %v5381_v55 }
 0x843   : > { %v5245_v32 = vpop.permute.xlu1 %5244 }
 0x844   : > { %v5374_v46 = vsel %vm5346_vm3, %v5339_v5, %v5245_v32 }
 0x847   : > { %v5285_v47 = vpop.permute.xlu1 %5284 }
 0x848   : > { %v5408_v16 = vsel %vm5379_vm4, %v10430_v57, %v5285_v47  ;;  %v2080_v24 = vpop.permute.xlu0 %2079  ;;  %v5387_v57 = vsel %vm5379_vm4, %v10412_v0, %v5271_v17 }
 0x849   : > { %5685 = vmatprep.subr.bf16.mxu0 %v5408_v16  ;;  %v2113_v54 = vmul.f32 %v2080_v24, %v11947_v49 }
 0x84a   : > { %5686 = vmatpush3.bf16.xpose.msra.mxu0 %v5384_v34 }
 0x84c   : > { %v2000_v43 = vpop.permute.xlu0 %1999 }
 0x84d   : > { %v2097_v1 = vmul.f32 %v2000_v43, %v11953_v26  ;;  %v5393_v26 = vsel %vm5379_vm4, %v10537_v40, %v5275_v42 }
 0x858   : > { %v2075_v28 = vpop.permute.xlu1 %2074 }
 0x859   : > { %v2112_v35 = vmul.f32 %v2075_v28, %v11959_v52 }
 0x85b   : > { %v2129_v37 = vpack.c.bf16 %v2113_v54, %v2112_v35 }
 0x85c   : > { %v5287_v59 = vpop.permute.xlu1 %5286 }
 0x85d   : > { %v5411_v6 = vsel %vm5379_vm4, %v10467_v23, %v5287_v59  ;;  %v5183_v23 = vpop.permute.xlu0 %5182 }
 0x85e   : > { %5687 = vmatprep.subr.bf16.mxu0 %v5411_v6  ;;  %v5318_v63 = vsel %vm1167_vm2, %v2120_v58, %v5183_v23 }
 0x85f   : > { %5688 = vmatpush3.bf16.xpose.msra.mxu0 %v5387_v57 }
 0x860   : > { %v1995_v31 = vpop.permute.xlu1 %1994 }
 0x861   : > { %v2096_v14 = vmul.f32 %v1995_v31, %v11971_v21  ;;  %v5231_v48 = vpop.permute.xlu0 %5230 }
 0x862   : > { %v5360_v50 = vsel %vm5346_vm3, %v5318_v63, %v5231_v48 }
 0x863   : > { %v2121_v33 = vpack.c.bf16 %v2097_v1, %v2096_v14 }
 0x864   : > { %v5289_v49 = vpop.permute.xlu1 %5288 }
 0x865   : > { %v5414_v52 = vsel %vm5379_vm4, %v10483_v53, %v5289_v49  ;;  %v5279_v53 = vpop.permute.xlu0 %5278 }
 0x866   : > { %5689 = vmatprep.subr.bf16.mxu0 %v5414_v52  ;;  %v5399_v15 = vsel %vm5379_vm4, %v5360_v50, %v5279_v53 }
 0x867   : > { %5690 = vmatpush3.bf16.xpose.msra.mxu0 %v5390_v19 }
 0x868   : > { %v5199_v0 = vpop.permute.xlu1 %5198 }
 0x869   : > { %v5185_v11 = vpop.permute.xlu0 %5184  ;;  %v5342_v9 = vsel %vm1167_vm2, %v2128_v4, %v5199_v0 }
 0x86a   : > { %v5321_v2 = vsel %vm1167_vm2, %v2121_v33, %v5185_v11 }
 0x86c   : > { %v5291_v38 = vpop.permute.xlu1 %5290 }
 0x86d   : > { %v5417_v41 = vsel %vm5379_vm4, %v10534_v8, %v5291_v38  ;;  %v5233_v60 = vpop.permute.xlu0 %5232 }
 0x86e   : > { %5691 = vmatprep.subr.bf16.mxu0 %v5417_v41  ;;  %v5362_v4 = vsel %vm5346_vm3, %v5321_v2, %v5233_v60 }
 0x86f   : > { %5692 = vmatpush3.bf16.xpose.msra.mxu0 %v5393_v26 }
 0x870   : > { %v5247_v21 = vpop.permute.xlu1 %5246 }
 0x871   : > { %v5376_v62 = vsel %vm5346_vm3, %v5342_v9, %v5247_v21  ;;  %v5281_v13 = vpop.permute.xlu0 %5280 }
 0x872   : > { %v5402_v17 = vsel %vm5379_vm4, %v5362_v4, %v5281_v13 }
 0x874   : > { %v5293_v8 = vpop.permute.xlu1 %5292 }
 0x875   : > { %v5420_v40 = vsel %vm5379_vm4, %v5374_v46, %v5293_v8 }
 0x876   : > { %5693 = vmatprep.subr.bf16.mxu0 %v5420_v40 }
 0x877   : > { %5694 = vmatpush3.bf16.xpose.msra.mxu0 %v5396_v10 }
 0x878   : > { %v5201_v29 = vpop.permute.xlu1 %5200 }
 0x879   : > { %v5345_v27 = vsel %vm1167_vm2, %v2129_v37, %v5201_v29 }
 0x87c   : > { %v5295_v61 = vpop.permute.xlu1 %5294 }
 0x87d   : > { %v5423_v45 = vsel %vm5379_vm4, %v5376_v62, %v5295_v61 }
 0x87e   : > { %5695 = vmatprep.subr.bf16.mxu0 %v5423_v45 }
 0x87f   : > { %5696 = vmatpush3.bf16.xpose.msra.mxu0 %v5399_v15 }
 0x880   : > { %v5249_v7 = vpop.permute.xlu1 %5248 }
 0x881   : > { %v5378_v36 = vsel %vm5346_vm3, %v5345_v27, %v5249_v7 }
 0x884   : > { %v5297_v58 = vpop.permute.xlu1 %5296 }
 0x885   : > { %v5426_v25 = vsel %vm5379_vm4, %v5378_v36, %v5297_v58 }
 0x886   : > { %5697 = vmatprep.subr.bf16.mxu0 %v5426_v25 }
 0x887   : > { %5698 = vmatpush3.bf16.xpose.msra.mxu0 %v5402_v17 }
 0x888   : > { %v5433_v39 = vpop.permute.xlu1 %5432 }
 0x88e   : > { %5700 = vmatmul.mubr.bf16.vlgmr.msra.gmra.mrb[48].mxu0 %v10573_v3 }
 0x961   : > { %v5469_v18 = vpop.f32.mrb[48].mxu0 }
 0x962   : > { %v5471_v22 = vpop.f32.mrb[49].mxu0  ;;  %v5470_v30 = vadd.f32 %v5469_v18, %v5433_v39 }
 0x963   : > { %v5473_v12 = vpop.f32.mrb[50].mxu0  ;;  %v5472_v55 = vadd.f32 %v5471_v22, %v5433_v39 }
 0x964   : > { %5476 = vst [vmem:[%s217_s16] sm:$0xff] %v5470_v30  ;;  %v5474_v3 = vpop.f32.mrb[51].mxu0 }
 0x965   : > { %5477 = vst [vmem:[%s217_s16 + $0x8] sm:$0xff] %v5472_v55 }
 0x966   : > { %6564 = shalt.err (!%p6561_p3)
}
 0x967   : > { %s6565_s9 = scalar_lea.hbm %s10639_s26, 256  ;;  %s6569_s12 = scalar_lea.hbm %s10686_s5, 512 }
 0x968   : > { %p6566_p4 = scmp.ne.s32.totalorder %s10639_s26, %s6565_s9  ;;  %p6570_p9 = scmp.lt.u32.totalorder %s10639_s26, %s10686_s5 }
 0x969   : > { %p6571_p10 = scmp.lt.u32.totalorder %s6569_s12, %s6565_s9  ;;  %p6573_p12 = scmp.lt.u32.totalorder %s6565_s9, %s10639_s26 }
 0x96a   : > { %p6567_p7 = pnand %p6566_p4, %p6689_p5 }
 0x96b   : > { %p6572_p11 = por %p6571_p10, %p6570_p9 }
 0x96c   : > { %p6568_p8 = pneg %p6567_p7 }
 0x96d   : > { %p6574_p13 = por %p6573_p12, %p6572_p11 }
 0x96f   : > { %p6575_p0 = pnand %p6574_p13, %p6568_p8 }
 0x971   : > { %6578 = shalt.err (!%p6575_p0)
}
 0x972   : > { %5705 = dma.vmem_to_hbm [thread:$0]  (%p6689_p5), %s10641_s17, 256, %s10639_s26, %s5479_s22  }
 0x973 PF: > { %p5711_p1 = scmp.ge.s32.totalorder %s6613_s21, 2  ;;  %s5505_s15 = sand.u32 1, %s6601_s18  }
 0x974   : > { %s5506_s16 = scalar_lea.sflag [#allocation3], %s5505_s15 }
 0x975   : > { %p5708_p2 = pnand %p5711_p1, %p6693_p6 }
 0x977   : > { %6596 = dma.done.wait (!%p5708_p2), %s5506_s16, 256  }
 0x978   : > { %6598 = vsyncadd (!%p5708_p2), %s5506_s16, 4294967040  ;;  %p15_p3 = scmp.ge.s32.totalorder %s6676_s24, 4   ;;  %s11993_s18 = smov %s6605_s19 }
 0x979   : > { %s11994_s19 = smov %s6609_s20  ;;  %s11995_s20 = smov %s6687_s27 }
 0x97a   : > { %s11996_s21 = smov %s6676_s24  ;;  %17 = sbr.rel (!%p15_p3) target bundleno = 3 (0x3), region = 75 }
 0x981   :  { %5511 = vsyncpa [#allocation3], 1 }
 0x982   :  { %5513 = vsyncpa [#allocation3 + $0x1], 1 }

</bundles_post_ra>
